<compile_context>
chip_gen: v7x
topology: tpu7x:2x2x1
jax: 0.10.0
libtpu: 0.0.40
codegen_flags: <defaults>
</compile_context>

<pallas_src>
import functools

import jax
import jax.numpy as jnp
from jax.experimental import pallas as pl
from jax.experimental.pallas import tpu as pltpu

VMEM_SPEC = pl.BlockSpec(memory_space=pltpu.MemorySpace.VMEM)


# --------------------------------------------------------------------------- #
# Fused bidirectional LSTM layer kernel (both directions in one program).
# --------------------------------------------------------------------------- #
def _bilstm_kernel(x_ref, wih_ref, whh_ref, b_ref, out_ref, xg_ref, *,
                   H, static_loop):
    # x_ref: (B, L, Din); wih_ref: (Din, 8H); whh_ref: (2H, 8H) block-diagonal;
    # b_ref: (1, 1, 8H); out_ref: (B, L, 2H); xg_ref: (B, L, 8H) scratch.
    B, L, _ = x_ref.shape
    G = 4 * H

    # Hoisted input projection for BOTH directions: one (B*L, Din) @ (Din, 8H)
    # MXU matmul for the whole sequence, with both (b_ih + b_hh) biases folded.
    xg_ref[...] = jax.lax.dot_general(
        x_ref[...], wih_ref[...], (((2,), (0,)), ((), ())),
        preferred_element_type=jnp.float32) + b_ref[...]

    def step(tf, tb, h, c_f, c_b, *, dyn):
        if dyn:
            gf = xg_ref[:, pl.ds(tf, 1), 0:G][:, 0, :]
            gb = xg_ref[:, pl.ds(tb, 1), G:2 * G][:, 0, :]
        else:
            gf = xg_ref[:, tf, 0:G]
            gb = xg_ref[:, tb, G:2 * G]
        # Single fused recurrent matmul: [h_f | h_b] @ blockdiag(Whh_f, Whh_b).
        gates = jnp.concatenate([gf, gb], axis=-1) + jnp.dot(
            h, whh_ref[...], preferred_element_type=jnp.float32)        # (B, 8H)
        s = jax.nn.sigmoid(gates)            # one wide EUP pass (i/f/o slots used)
        g_f = jnp.tanh(gates[:, 2 * H:3 * H])
        g_b = jnp.tanh(gates[:, G + 2 * H:G + 3 * H])
        c_f = s[:, H:2 * H] * c_f + s[:, 0:H] * g_f
        c_b = s[:, G + H:G + 2 * H] * c_b + s[:, G:G + H] * g_b
        h_f = s[:, 3 * H:4 * H] * jnp.tanh(c_f)
        h_b = s[:, G + 3 * H:G + 4 * H] * jnp.tanh(c_b)
        if dyn:
            out_ref[:, pl.ds(tf, 1), 0:H] = h_f[:, None, :]
            out_ref[:, pl.ds(tb, 1), H:2 * H] = h_b[:, None, :]
        else:
            out_ref[:, tf, 0:H] = h_f
            out_ref[:, tb, H:2 * H] = h_b
        return jnp.concatenate([h_f, h_b], axis=-1), c_f, c_b

    h0 = jnp.zeros((B, 2 * H), jnp.float32)
    c0 = jnp.zeros((B, H), jnp.float32)
    if static_loop:
        # Fully unrolled: all xg/out addresses are compile-time constants.
        h, c_f, c_b = h0, c0, c0
        for t in range(L):
            h, c_f, c_b = step(t, L - 1 - t, h, c_f, c_b, dyn=False)
    else:
        def body(t, carry):
            h, c_f, c_b = carry
            return step(t, L - 1 - t, h, c_f, c_b, dyn=True)
        jax.lax.fori_loop(0, L, body, (h0, c0, c0), unroll=4)


def bilstm_layer(x, lp):
    """x: (B, L, Din) -> (B, L, 2H); out[:, t, :] = [h_fwd(t) | h_bwd(t)]."""
    B, L, _ = x.shape
    H = lp["whh_blk"].shape[0] // 2
    kernel = functools.partial(_bilstm_kernel, H=H, static_loop=L <= 64)
    return pl.pallas_call(
        kernel,
        out_shape=jax.ShapeDtypeStruct((B, L, 2 * H), jnp.float32),
        in_specs=[VMEM_SPEC] * 4,
        out_specs=VMEM_SPEC,
        scratch_shapes=[pltpu.VMEM((B, L, 8 * H), jnp.float32)],
    )(x, lp["wih_cat"], lp["whh_blk"], lp["b_cat"])


# --------------------------------------------------------------------------- #
# Fused CNN head kernel:
#   conv1_D + per-branch convK (im2col) + branch-batched conv3/conv4(pad=1)
#   + inception add + masked max-pool + fc1 -- all intermediates in VMEM.
# --------------------------------------------------------------------------- #
def _cnn_head_kernel(h_ref, w1_ref, b1_ref, *refs, Ks):
    nK = len(Ks)
    wK_refs = refs[0:nK]
    bK_refs = refs[nK:2 * nK]
    (w3_ref, b3_ref, w4_ref, b4_ref,
     mask_ref, wfc_ref, bfc_ref, o_ref) = refs[2 * nK:]

    B, L, _ = h_ref.shape
    Co = w1_ref.shape[1]
    C = o_ref.shape[1]
    TKmax = L - min(Ks) + 1
    T3 = TKmax - 2

    def dotg(x, w):                        # (N, T, Cin) @ (Cin, Cout)
        return jax.lax.dot_general(x, w, (((2,), (0,)), ((), ())),
                                   preferred_element_type=jnp.float32)

    def unfold(x, K, T_out):               # im2col along time: (N, T_out, K*Cin)
        return jnp.concatenate([x[:, j:j + T_out, :] for j in range(K)], axis=-1)

    # conv1_D: Conv2d(1, Co, (1, 2H)) == contraction over the 2H axis (no ReLU).
    y = dotg(h_ref[...], w1_ref[...]) + b1_ref[...]                     # (B, L, Co)

    # Per-branch convK (distinct weights / K): one im2col matmul each; branch
    # outputs are zero-padded to a common length and stacked on the batch axis.
    xs = []
    for i, K in enumerate(Ks):
        TK = L - K + 1
        xk = jnp.maximum(
            dotg(unfold(y, K, TK), wK_refs[i][...]) + bK_refs[i][...], 0.0)
        if TK < TKmax:
            xk = jnp.concatenate(
                [xk, jnp.zeros((B, TKmax - TK, Co), jnp.float32)], axis=1)
        xs.append(xk)
    xs = jnp.concatenate(xs, axis=0)                                    # (nK*B, TKmax, Co)

    # Shared-weight conv3 / conv4 / inception / max-pool, batched over branches.
    mask = mask_ref[...]                                                # (nK*B, T3, 1)
    x3 = jnp.maximum(dotg(unfold(xs, 3, T3), w3_ref[...]) + b3_ref[...], 0.0)
    x3 = x3 * mask          # zero invalid tail; also gives conv4's right zero-pad
    # conv4 has padding=(1, 0): build the left/right shifted columns by value
    # (single zero row each), no per-branch scratch memset.
    zrow = jnp.zeros((nK * B, 1, Co), jnp.float32)
    left = jnp.concatenate([zrow, x3[:, 0:T3 - 1, :]], axis=1)          # x3[t-1]
    right = jnp.concatenate([x3[:, 1:T3, :], zrow], axis=1)             # x3[t+1]
    u4 = jnp.concatenate([left, x3, right], axis=-1)                    # (nK*B, T3, 3Co)
    x4 = jnp.maximum(dotg(u4, w4_ref[...]) + b4_ref[...], 0.0)
    incp = jnp.where(mask > 0.0, x3 + x4, -1e30)     # exclude padded steps from max
    feats = jnp.max(incp, axis=1)                                       # (nK*B, Co)

    # fc1: per-branch slice of the fc weights (avoids a (nK,B)->(B,nK) relayout).
    logit = jnp.zeros((B, C), jnp.float32) + bfc_ref[...]
    for i in range(nK):
        logit = logit + jnp.dot(feats[i * B:(i + 1) * B, :],
                                wfc_ref[i * Co:(i + 1) * Co, :],
                                preferred_element_type=jnp.float32)
    o_ref[...] = logit                                                  # (B, C)


def cnn_head(h, prep):
    B, L, _ = h.shape
    Co = prep["conv1_w"].shape[1]
    C = prep["fc_w"].shape[1]
    Ks = tuple(int(w.shape[0]) // Co for w in prep["convK_w"])
    T3 = (L - min(Ks) + 1) - 2
    # Valid-time mask per (branch, batch) row; purely static -> constant-folded.
    t3_len = jnp.repeat(jnp.array([L - K - 1 for K in Ks], jnp.int32), B)
    mask = (jnp.arange(T3)[None, :] < t3_len[:, None]).astype(jnp.float32)[:, :, None]
    inputs = [h, prep["conv1_w"], prep["conv1_b"],
              *prep["convK_w"], *prep["convK_b"],
              prep["conv3_w"], prep["conv3_b"], prep["conv4_w"], prep["conv4_b"],
              mask, prep["fc_w"], prep["fc_b"]]
    kernel = functools.partial(_cnn_head_kernel, Ks=Ks)
    return pl.pallas_call(
        kernel,
        out_shape=jax.ShapeDtypeStruct((B, C), jnp.float32),
        in_specs=[VMEM_SPEC] * len(inputs),
        out_specs=VMEM_SPEC,
    )(*inputs)


# --------------------------------------------------------------------------- #
# One-time parameter preparation (weight relayouts hoisted out of the forward).
# --------------------------------------------------------------------------- #
def prepare_params(params):
    def im2col_w(w):                      # (Co_out, Co_in, K, 1) -> (K*Co_in, Co_out)
        K, ci, co = w.shape[2], w.shape[1], w.shape[0]
        return jnp.transpose(w[:, :, :, 0], (2, 1, 0)).reshape(K * ci, co)

    prep = {
        "embed_sum": params["embed_A"] + params["embed_B"],
        "conv1_w": params["conv1_D_w"][:, 0, 0, :].T,                   # (2H, Co)
        "conv1_b": params["conv1_D_b"][None, None, :],
        "convK_w": [im2col_w(w) for w in params["convK_w"]],
        "convK_b": [b[None, None, :] for b in params["convK_b"]],
        "conv3_w": im2col_w(params["conv3_w"]),
        "conv3_b": params["conv3_b"][None, None, :],
        "conv4_w": im2col_w(params["conv4_w"]),
        "conv4_b": params["conv4_b"][None, None, :],
        "fc_w": params["fc1_w"].T,                                      # (nK*Co, C)
        "fc_b": params["fc1_b"][None, :],
        "lstm_layers": [],
    }
    for lp in params["lstm_layers"]:
        H = lp["w_hh_f"].shape[1]
        z = jnp.zeros((H, 4 * H), jnp.float32)
        prep["lstm_layers"].append({
            # (Din, 8H): [W_ih_f.T | W_ih_b.T]   (gate order i,f,g,o per direction)
            "wih_cat": jnp.concatenate([lp["w_ih_f"].T, lp["w_ih_b"].T], axis=1),
            # (2H, 8H): blockdiag(W_hh_f.T, W_hh_b.T)
            "whh_blk": jnp.concatenate(
                [jnp.concatenate([lp["w_hh_f"].T, z], axis=1),
                 jnp.concatenate([z, lp["w_hh_b"].T], axis=1)], axis=0),
            # (1, 1, 8H): folded (b_ih + b_hh) per direction
            "b_cat": jnp.concatenate([lp["b_ih_f"] + lp["b_hh_f"],
                                      lp["b_ih_b"] + lp["b_hh_b"]])[None, None, :],
        })
    return prep


# --------------------------------------------------------------------------- #
# Full forward pass (jit-compiled; no glue transposes / concats between kernels).
# --------------------------------------------------------------------------- #
@jax.jit
def r_bi_c_forward(x_ids, prep):
    h = prep["embed_sum"][x_ids]                     # (B, L, D) embedding gather
    for lp in prep["lstm_layers"]:                   # LSTM dropout: identity (eval)
        h = bilstm_layer(h, lp)                      # (B, L, 2H)
    return cnn_head(h, prep)                         # (B, C); CNN dropout: identity


# --------------------------------------------------------------------------- #
# Pure-JAX reference (for correctness checking).
# --------------------------------------------------------------------------- #
def _ref_lstm_dir(x, w_ih, w_hh, b_ih, b_hh, reverse):
    if reverse:
        x = x[:, ::-1, :]
    H = w_hh.shape[1]
    B = x.shape[0]

    def step(carry, x_t):
        h, c = carry
        g = x_t @ w_ih.T + h @ w_hh.T + b_ih + b_hh
        i = jax.nn.sigmoid(g[:, :H]); f = jax.nn.sigmoid(g[:, H:2 * H])
        gg = jnp.tanh(g[:, 2 * H:3 * H]); o = jax.nn.sigmoid(g[:, 3 * H:])
        c = f * c + i * gg
        h = o * jnp.tanh(c)
        return (h, c), h

    _, hs = jax.lax.scan(step, (jnp.zeros((B, H)), jnp.zeros((B, H))),
                         jnp.swapaxes(x, 0, 1))
    hs = jnp.swapaxes(hs, 0, 1)
    if reverse:
        hs = hs[:, ::-1, :]
    return hs


def _ref_tconv(x, w_oick, bias, relu, pad=0):
    if pad:
        x = jnp.pad(x, ((0, 0), (pad, pad), (0, 0)))
    K = w_oick.shape[2]
    T_out = x.shape[1] - K + 1
    out = jnp.zeros((x.shape[0], T_out, w_oick.shape[0]))
    for k in range(K):
        out = out + jnp.einsum('btc,oc->bto', x[:, k:k + T_out, :], w_oick[:, :, k, 0])
    out = out + bias
    return jnp.maximum(out, 0.0) if relu else out


def ref_forward(x_ids, params):
    emb = params["embed_A"][x_ids] + params["embed_B"][x_ids]
    h = emb
    for lp in params["lstm_layers"]:
        of = _ref_lstm_dir(h, lp["w_ih_f"], lp["w_hh_f"], lp["b_ih_f"], lp["b_hh_f"], False)
        ob = _ref_lstm_dir(h, lp["w_ih_b"], lp["w_hh_b"], lp["b_ih_b"], lp["b_hh_b"], True)
        h = jnp.concatenate([of, ob], axis=-1)
    w1 = params["conv1_D_w"]
    y = h @ w1[:, 0, 0, :].T + params["conv1_D_b"]
    feats = []
    for wK, bK in zip(params["convK_w"], params["convK_b"]):
        xk = _ref_tconv(y, wK, bK, relu=True)
        x3 = _ref_tconv(xk, params["conv3_w"], params["conv3_b"], relu=True)
        x4 = _ref_tconv(x3, params["conv4_w"], params["conv4_b"], relu=True, pad=1)
        feats.append(jnp.max(x3 + x4, axis=1))
    feat = jnp.concatenate(feats, axis=1)
    return feat @ params["fc1_w"].T + params["fc1_b"]


# --------------------------------------------------------------------------- #
# Deterministic parameter initialization (synthetic; no checkpoint loading).
# --------------------------------------------------------------------------- #
def init_params(key, *, V, D, C, N, H, Co, Ks):
    def nrm(k, shape, scale=0.1):
        return scale * jax.random.normal(k, shape, dtype=jnp.float32)

    ks = iter(jax.random.split(key, 64))
    params = {
        "embed_A": nrm(next(ks), (V, D)),
        "embed_B": nrm(next(ks), (V, D)),       # stands in for field.vocab.vectors
        "conv1_D_w": nrm(next(ks), (Co, 1, 1, 2 * H)),
        "conv1_D_b": nrm(next(ks), (Co,)),
        "convK_w": [nrm(next(ks), (Co, Co, K, 1)) for K in Ks],
        "convK_b": [nrm(next(ks), (Co,)) for _ in Ks],
        "conv3_w": nrm(next(ks), (Co, Co, 3, 1)),
        "conv3_b": nrm(next(ks), (Co,)),
        "conv4_w": nrm(next(ks), (Co, Co, 3, 1)),
        "conv4_b": nrm(next(ks), (Co,)),
        "fc1_w": nrm(next(ks), (C, len(Ks) * Co)),
        "fc1_b": nrm(next(ks), (C,)),
    }
    layers = []
    din = D
    for _ in range(N):
        layers.append({
            "w_ih_f": nrm(next(ks), (4 * H, din)),
            "w_hh_f": nrm(next(ks), (4 * H, H)),
            "b_ih_f": nrm(next(ks), (4 * H,)),
            "b_hh_f": nrm(next(ks), (4 * H,)),
            "w_ih_b": nrm(next(ks), (4 * H, din)),
            "w_hh_b": nrm(next(ks), (4 * H, H)),
            "b_ih_b": nrm(next(ks), (4 * H,)),
            "b_hh_b": nrm(next(ks), (4 * H,)),
        })
        din = 2 * H
    params["lstm_layers"] = layers
    return params


if __name__ == "__main__":
    B, L = 2, 16                     # batch, sequence length
    V, D, C, N, H, Co = 20, 16, 2, 1, 32, 8
    Ks = (3, 4, 5)

    key = jax.random.PRNGKey(0)
    pkey, xkey = jax.random.split(key)
    params = init_params(pkey, V=V, D=D, C=C, N=N, H=H, Co=Co, Ks=Ks)
    x_ids = jax.random.randint(xkey, (B, L), 0, V, dtype=jnp.int32)

    prep = prepare_params(params)    # one-time weight relayout (outside jit)

    logit = jax.block_until_ready(r_bi_c_forward(x_ids, prep))
    assert logit.shape == (B, C)

    ref = ref_forward(x_ids, params)
    err = float(jnp.max(jnp.abs(logit - ref)))
    assert err < 1e-3, f"mismatch vs reference: {err}"

    print("KERNEL_OK")
</pallas_src>

<mosaic_0001>
module attributes {stable_mosaic.version = 11 : i64} {
  func.func @_bilstm_kernel(%arg0: memref<2x16x16xf32, #tpu.memory_space<vmem>>, %arg1: memref<16x256xf32, #tpu.memory_space<vmem>>, %arg2: memref<64x256xf32, #tpu.memory_space<vmem>>, %arg3: memref<1x1x256xf32, #tpu.memory_space<vmem>>, %arg4: memref<2x16x64xf32, #tpu.memory_space<vmem>>, %arg5: memref<2x16x256xf32, #tpu.memory_space<vmem>>) attributes {dimension_semantics = [], scalar_prefetch = 0 : i64, scratch_operands = 1 : i64, tpu.core_type = #tpu.core_type<tc>} {
    %c0 = arith.constant 0 : index
    %c0_0 = arith.constant 0 : index
    %c0_1 = arith.constant 0 : index
    %0 = vector.load %arg0[%c0, %c0_0, %c0_1] : memref<2x16x16xf32, #tpu.memory_space<vmem>>, vector<2x16x16xf32>
    %c0_2 = arith.constant 0 : index
    %c0_3 = arith.constant 0 : index
    %1 = vector.load %arg1[%c0_2, %c0_3] : memref<16x256xf32, #tpu.memory_space<vmem>>, vector<16x256xf32>
    %cst = arith.constant dense<0.000000e+00> : vector<2x16x256xf32>
    %2 = tpu.matmul %0, %1, %cst {dimension_numbers = #tpu.dot_dimension_numbers<[2], [0], [0, 1], [1], [0, 0, 0, 1, 1, 1], [], []>} : vector<2x16x16xf32>, vector<16x256xf32>, vector<2x16x256xf32> -> vector<2x16x256xf32>
    %c0_4 = arith.constant 0 : index
    %c0_5 = arith.constant 0 : index
    %c0_6 = arith.constant 0 : index
    %3 = vector.load %arg3[%c0_4, %c0_5, %c0_6] : memref<1x1x256xf32, #tpu.memory_space<vmem>>, vector<1x1x256xf32>
    %4 = vector.broadcast %3 : vector<1x1x256xf32> to vector<2x16x256xf32>
    %5 = arith.addf %2, %4 : vector<2x16x256xf32>
    %c0_7 = arith.constant 0 : index
    %c0_8 = arith.constant 0 : index
    %c0_9 = arith.constant 0 : index
    %6 = vector.load %arg5[%c0_7, %c0_8, %c0_9] : memref<2x16x256xf32, #tpu.memory_space<vmem>>, vector<2x16x256xf32>
    tpu.vector_store %arg5[%c0_7, %c0_8, %c0_9], %5 {strides = array<i32>} : memref<2x16x256xf32, #tpu.memory_space<vmem>>, vector<2x16x256xf32>,
    %cst_10 = arith.constant 0.000000e+00 : f32
    %7 = vector.broadcast %cst_10 : f32 to vector<2x64xf32>
    %cst_11 = arith.constant 0.000000e+00 : f32
    %8 = vector.broadcast %cst_11 : f32 to vector<2x32xf32>
    %c0_12 = arith.constant 0 : index
    %c0_13 = arith.constant 0 : index
    %c0_14 = arith.constant 0 : index
    %9 = vector.load %arg5[%c0_12, %c0_13, %c0_14] : memref<2x16x256xf32, #tpu.memory_space<vmem>>, vector<2x1x128xf32>
    %10 = vector.shape_cast %9 : vector<2x1x128xf32> to vector<2x128xf32>
    %c0_15 = arith.constant 0 : index
    %c15 = arith.constant 15 : index
    %c128 = arith.constant 128 : index
    %11 = vector.load %arg5[%c0_15, %c15, %c128] : memref<2x16x256xf32, #tpu.memory_space<vmem>>, vector<2x1x128xf32>
    %12 = vector.shape_cast %11 : vector<2x1x128xf32> to vector<2x128xf32>
    %13 = tpu.concatenate %10, %12 in 1 : vector<2x128xf32>, vector<2x128xf32> -> vector<2x256xf32>
    %c0_16 = arith.constant 0 : index
    %c0_17 = arith.constant 0 : index
    %14 = vector.load %arg2[%c0_16, %c0_17] : memref<64x256xf32, #tpu.memory_space<vmem>>, vector<64x256xf32>
    %cst_18 = arith.constant dense<0.000000e+00> : vector<2x256xf32>
    %15 = tpu.matmul %7, %14, %cst_18 {dimension_numbers = #tpu.dot_dimension_numbers<[1], [0], [0], [1], [0, 0, 1, 1], [], []>} : vector<2x64xf32>, vector<64x256xf32>, vector<2x256xf32> -> vector<2x256xf32>
    %16 = arith.addf %13, %15 : vector<2x256xf32>
    %17 = arith.negf %16 : vector<2x256xf32>
    %18 = math.exp %17 : vector<2x256xf32>
    %cst_19 = arith.constant 1.000000e+00 : f32
    %19 = vector.broadcast %cst_19 : f32 to vector<2x256xf32>
    %20 = arith.addf %19, %18 : vector<2x256xf32>
    %21 = arith.divf %19, %20 : vector<2x256xf32>
    %22 = vector.extract_strided_slice %16 {offsets = [0, 64], sizes = [2, 32], strides = [1, 1]} : vector<2x256xf32> to vector<2x32xf32>
    %23 = math.tanh %22 : vector<2x32xf32>
    %24 = vector.extract_strided_slice %16 {offsets = [0, 192], sizes = [2, 32], strides = [1, 1]} : vector<2x256xf32> to vector<2x32xf32>
    %25 = math.tanh %24 : vector<2x32xf32>
    %26 = vector.extract_strided_slice %21 {offsets = [0, 32], sizes = [2, 32], strides = [1, 1]} : vector<2x256xf32> to vector<2x32xf32>
    %27 = arith.mulf %26, %8 : vector<2x32xf32>
    %28 = vector.extract_strided_slice %21 {offsets = [0, 0], sizes = [2, 32], strides = [1, 1]} : vector<2x256xf32> to vector<2x32xf32>
    %29 = arith.mulf %28, %23 : vector<2x32xf32>
    %30 = arith.addf %27, %29 : vector<2x32xf32>
    %31 = vector.extract_strided_slice %21 {offsets = [0, 160], sizes = [2, 32], strides = [1, 1]} : vector<2x256xf32> to vector<2x32xf32>
    %32 = arith.mulf %31, %8 : vector<2x32xf32>
    %33 = vector.extract_strided_slice %21 {offsets = [0, 128], sizes = [2, 32], strides = [1, 1]} : vector<2x256xf32> to vector<2x32xf32>
    %34 = arith.mulf %33, %25 : vector<2x32xf32>
    %35 = arith.addf %32, %34 : vector<2x32xf32>
    %36 = vector.extract_strided_slice %21 {offsets = [0, 96], sizes = [2, 32], strides = [1, 1]} : vector<2x256xf32> to vector<2x32xf32>
    %37 = math.tanh %30 : vector<2x32xf32>
    %38 = arith.mulf %36, %37 : vector<2x32xf32>
    %39 = vector.extract_strided_slice %21 {offsets = [0, 224], sizes = [2, 32], strides = [1, 1]} : vector<2x256xf32> to vector<2x32xf32>
    %40 = math.tanh %35 : vector<2x32xf32>
    %41 = arith.mulf %39, %40 : vector<2x32xf32>
    %c0_20 = arith.constant 0 : index
    %c0_21 = arith.constant 0 : index
    %c0_22 = arith.constant 0 : index
    %42 = vector.load %arg4[%c0_20, %c0_21, %c0_22] : memref<2x16x64xf32, #tpu.memory_space<vmem>>, vector<2x1x32xf32>
    %43 = vector.shape_cast %42 : vector<2x1x32xf32> to vector<2x32xf32>
    %44 = vector.shape_cast %38 : vector<2x32xf32> to vector<2x1x32xf32>
    tpu.vector_store %arg4[%c0_20, %c0_21, %c0_22], %44 {strides = array<i32>} : memref<2x16x64xf32, #tpu.memory_space<vmem>>, vector<2x1x32xf32>,
    %c0_23 = arith.constant 0 : index
    %c15_24 = arith.constant 15 : index
    %c32 = arith.constant 32 : index
    %45 = vector.load %arg4[%c0_23, %c15_24, %c32] : memref<2x16x64xf32, #tpu.memory_space<vmem>>, vector<2x1x32xf32>
    %46 = vector.shape_cast %45 : vector<2x1x32xf32> to vector<2x32xf32>
    %47 = vector.shape_cast %41 : vector<2x32xf32> to vector<2x1x32xf32>
    tpu.vector_store %arg4[%c0_23, %c15_24, %c32], %47 {strides = array<i32>} : memref<2x16x64xf32, #tpu.memory_space<vmem>>, vector<2x1x32xf32>,
    %48 = tpu.concatenate %38, %41 in 1 : vector<2x32xf32>, vector<2x32xf32> -> vector<2x64xf32>
    %c0_25 = arith.constant 0 : index
    %c1 = arith.constant 1 : index
    %c0_26 = arith.constant 0 : index
    %49 = vector.load %arg5[%c0_25, %c1, %c0_26] : memref<2x16x256xf32, #tpu.memory_space<vmem>>, vector<2x1x128xf32>
    %50 = vector.shape_cast %49 : vector<2x1x128xf32> to vector<2x128xf32>
    %c0_27 = arith.constant 0 : index
    %c14 = arith.constant 14 : index
    %c128_28 = arith.constant 128 : index
    %51 = vector.load %arg5[%c0_27, %c14, %c128_28] : memref<2x16x256xf32, #tpu.memory_space<vmem>>, vector<2x1x128xf32>
    %52 = vector.shape_cast %51 : vector<2x1x128xf32> to vector<2x128xf32>
    %53 = tpu.concatenate %50, %52 in 1 : vector<2x128xf32>, vector<2x128xf32> -> vector<2x256xf32>
    %c0_29 = arith.constant 0 : index
    %c0_30 = arith.constant 0 : index
    %54 = vector.load %arg2[%c0_29, %c0_30] : memref<64x256xf32, #tpu.memory_space<vmem>>, vector<64x256xf32>
    %cst_31 = arith.constant dense<0.000000e+00> : vector<2x256xf32>
    %55 = tpu.matmul %48, %54, %cst_31 {dimension_numbers = #tpu.dot_dimension_numbers<[1], [0], [0], [1], [0, 0, 1, 1], [], []>} : vector<2x64xf32>, vector<64x256xf32>, vector<2x256xf32> -> vector<2x256xf32>
    %56 = arith.addf %53, %55 : vector<2x256xf32>
    %57 = arith.negf %56 : vector<2x256xf32>
    %58 = math.exp %57 : vector<2x256xf32>
    %cst_32 = arith.constant 1.000000e+00 : f32
    %59 = vector.broadcast %cst_32 : f32 to vector<2x256xf32>
    %60 = arith.addf %59, %58 : vector<2x256xf32>
    %61 = arith.divf %59, %60 : vector<2x256xf32>
    %62 = vector.extract_strided_slice %56 {offsets = [0, 64], sizes = [2, 32], strides = [1, 1]} : vector<2x256xf32> to vector<2x32xf32>
    %63 = math.tanh %62 : vector<2x32xf32>
    %64 = vector.extract_strided_slice %56 {offsets = [0, 192], sizes = [2, 32], strides = [1, 1]} : vector<2x256xf32> to vector<2x32xf32>
    %65 = math.tanh %64 : vector<2x32xf32>
    %66 = vector.extract_strided_slice %61 {offsets = [0, 32], sizes = [2, 32], strides = [1, 1]} : vector<2x256xf32> to vector<2x32xf32>
    %67 = arith.mulf %66, %30 : vector<2x32xf32>
    %68 = vector.extract_strided_slice %61 {offsets = [0, 0], sizes = [2, 32], strides = [1, 1]} : vector<2x256xf32> to vector<2x32xf32>
    %69 = arith.mulf %68, %63 : vector<2x32xf32>
    %70 = arith.addf %67, %69 : vector<2x32xf32>
    %71 = vector.extract_strided_slice %61 {offsets = [0, 160], sizes = [2, 32], strides = [1, 1]} : vector<2x256xf32> to vector<2x32xf32>
    %72 = arith.mulf %71, %35 : vector<2x32xf32>
    %73 = vector.extract_strided_slice %61 {offsets = [0, 128], sizes = [2, 32], strides = [1, 1]} : vector<2x256xf32> to vector<2x32xf32>
    %74 = arith.mulf %73, %65 : vector<2x32xf32>
    %75 = arith.addf %72, %74 : vector<2x32xf32>
    %76 = vector.extract_strided_slice %61 {offsets = [0, 96], sizes = [2, 32], strides = [1, 1]} : vector<2x256xf32> to vector<2x32xf32>
    %77 = math.tanh %70 : vector<2x32xf32>
    %78 = arith.mulf %76, %77 : vector<2x32xf32>
    %79 = vector.extract_strided_slice %61 {offsets = [0, 224], sizes = [2, 32], strides = [1, 1]} : vector<2x256xf32> to vector<2x32xf32>
    %80 = math.tanh %75 : vector<2x32xf32>
    %81 = arith.mulf %79, %80 : vector<2x32xf32>
    %c0_33 = arith.constant 0 : index
    %c1_34 = arith.constant 1 : index
    %c0_35 = arith.constant 0 : index
    %82 = vector.load %arg4[%c0_33, %c1_34, %c0_35] : memref<2x16x64xf32, #tpu.memory_space<vmem>>, vector<2x1x32xf32>
    %83 = vector.shape_cast %82 : vector<2x1x32xf32> to vector<2x32xf32>
    %84 = vector.shape_cast %78 : vector<2x32xf32> to vector<2x1x32xf32>
    tpu.vector_store %arg4[%c0_33, %c1_34, %c0_35], %84 {strides = array<i32>} : memref<2x16x64xf32, #tpu.memory_space<vmem>>, vector<2x1x32xf32>,
    %c0_36 = arith.constant 0 : index
    %c14_37 = arith.constant 14 : index
    %c32_38 = arith.constant 32 : index
    %85 = vector.load %arg4[%c0_36, %c14_37, %c32_38] : memref<2x16x64xf32, #tpu.memory_space<vmem>>, vector<2x1x32xf32>
    %86 = vector.shape_cast %85 : vector<2x1x32xf32> to vector<2x32xf32>
    %87 = vector.shape_cast %81 : vector<2x32xf32> to vector<2x1x32xf32>
    tpu.vector_store %arg4[%c0_36, %c14_37, %c32_38], %87 {strides = array<i32>} : memref<2x16x64xf32, #tpu.memory_space<vmem>>, vector<2x1x32xf32>,
    %88 = tpu.concatenate %78, %81 in 1 : vector<2x32xf32>, vector<2x32xf32> -> vector<2x64xf32>
    %c0_39 = arith.constant 0 : index
    %c2 = arith.constant 2 : index
    %c0_40 = arith.constant 0 : index
    %89 = vector.load %arg5[%c0_39, %c2, %c0_40] : memref<2x16x256xf32, #tpu.memory_space<vmem>>, vector<2x1x128xf32>
    %90 = vector.shape_cast %89 : vector<2x1x128xf32> to vector<2x128xf32>
    %c0_41 = arith.constant 0 : index
    %c13 = arith.constant 13 : index
    %c128_42 = arith.constant 128 : index
    %91 = vector.load %arg5[%c0_41, %c13, %c128_42] : memref<2x16x256xf32, #tpu.memory_space<vmem>>, vector<2x1x128xf32>
    %92 = vector.shape_cast %91 : vector<2x1x128xf32> to vector<2x128xf32>
    %93 = tpu.concatenate %90, %92 in 1 : vector<2x128xf32>, vector<2x128xf32> -> vector<2x256xf32>
    %c0_43 = arith.constant 0 : index
    %c0_44 = arith.constant 0 : index
    %94 = vector.load %arg2[%c0_43, %c0_44] : memref<64x256xf32, #tpu.memory_space<vmem>>, vector<64x256xf32>
    %cst_45 = arith.constant dense<0.000000e+00> : vector<2x256xf32>
    %95 = tpu.matmul %88, %94, %cst_45 {dimension_numbers = #tpu.dot_dimension_numbers<[1], [0], [0], [1], [0, 0, 1, 1], [], []>} : vector<2x64xf32>, vector<64x256xf32>, vector<2x256xf32> -> vector<2x256xf32>
    %96 = arith.addf %93, %95 : vector<2x256xf32>
    %97 = arith.negf %96 : vector<2x256xf32>
    %98 = math.exp %97 : vector<2x256xf32>
    %cst_46 = arith.constant 1.000000e+00 : f32
    %99 = vector.broadcast %cst_46 : f32 to vector<2x256xf32>
    %100 = arith.addf %99, %98 : vector<2x256xf32>
    %101 = arith.divf %99, %100 : vector<2x256xf32>
    %102 = vector.extract_strided_slice %96 {offsets = [0, 64], sizes = [2, 32], strides = [1, 1]} : vector<2x256xf32> to vector<2x32xf32>
    %103 = math.tanh %102 : vector<2x32xf32>
    %104 = vector.extract_strided_slice %96 {offsets = [0, 192], sizes = [2, 32], strides = [1, 1]} : vector<2x256xf32> to vector<2x32xf32>
    %105 = math.tanh %104 : vector<2x32xf32>
    %106 = vector.extract_strided_slice %101 {offsets = [0, 32], sizes = [2, 32], strides = [1, 1]} : vector<2x256xf32> to vector<2x32xf32>
    %107 = arith.mulf %106, %70 : vector<2x32xf32>
    %108 = vector.extract_strided_slice %101 {offsets = [0, 0], sizes = [2, 32], strides = [1, 1]} : vector<2x256xf32> to vector<2x32xf32>
    %109 = arith.mulf %108, %103 : vector<2x32xf32>
    %110 = arith.addf %107, %109 : vector<2x32xf32>
    %111 = vector.extract_strided_slice %101 {offsets = [0, 160], sizes = [2, 32], strides = [1, 1]} : vector<2x256xf32> to vector<2x32xf32>
    %112 = arith.mulf %111, %75 : vector<2x32xf32>
    %113 = vector.extract_strided_slice %101 {offsets = [0, 128], sizes = [2, 32], strides = [1, 1]} : vector<2x256xf32> to vector<2x32xf32>
    %114 = arith.mulf %113, %105 : vector<2x32xf32>
    %115 = arith.addf %112, %114 : vector<2x32xf32>
    %116 = vector.extract_strided_slice %101 {offsets = [0, 96], sizes = [2, 32], strides = [1, 1]} : vector<2x256xf32> to vector<2x32xf32>
    %117 = math.tanh %110 : vector<2x32xf32>
    %118 = arith.mulf %116, %117 : vector<2x32xf32>
    %119 = vector.extract_strided_slice %101 {offsets = [0, 224], sizes = [2, 32], strides = [1, 1]} : vector<2x256xf32> to vector<2x32xf32>
    %120 = math.tanh %115 : vector<2x32xf32>
    %121 = arith.mulf %119, %120 : vector<2x32xf32>
    %c0_47 = arith.constant 0 : index
    %c2_48 = arith.constant 2 : index
    %c0_49 = arith.constant 0 : index
    %122 = vector.load %arg4[%c0_47, %c2_48, %c0_49] : memref<2x16x64xf32, #tpu.memory_space<vmem>>, vector<2x1x32xf32>
    %123 = vector.shape_cast %122 : vector<2x1x32xf32> to vector<2x32xf32>
    %124 = vector.shape_cast %118 : vector<2x32xf32> to vector<2x1x32xf32>
    tpu.vector_store %arg4[%c0_47, %c2_48, %c0_49], %124 {strides = array<i32>} : memref<2x16x64xf32, #tpu.memory_space<vmem>>, vector<2x1x32xf32>,
    %c0_50 = arith.constant 0 : index
    %c13_51 = arith.constant 13 : index
    %c32_52 = arith.constant 32 : index
    %125 = vector.load %arg4[%c0_50, %c13_51, %c32_52] : memref<2x16x64xf32, #tpu.memory_space<vmem>>, vector<2x1x32xf32>
    %126 = vector.shape_cast %125 : vector<2x1x32xf32> to vector<2x32xf32>
    %127 = vector.shape_cast %121 : vector<2x32xf32> to vector<2x1x32xf32>
    tpu.vector_store %arg4[%c0_50, %c13_51, %c32_52], %127 {strides = array<i32>} : memref<2x16x64xf32, #tpu.memory_space<vmem>>, vector<2x1x32xf32>,
    %128 = tpu.concatenate %118, %121 in 1 : vector<2x32xf32>, vector<2x32xf32> -> vector<2x64xf32>
    %c0_53 = arith.constant 0 : index
    %c3 = arith.constant 3 : index
    %c0_54 = arith.constant 0 : index
    %129 = vector.load %arg5[%c0_53, %c3, %c0_54] : memref<2x16x256xf32, #tpu.memory_space<vmem>>, vector<2x1x128xf32>
    %130 = vector.shape_cast %129 : vector<2x1x128xf32> to vector<2x128xf32>
    %c0_55 = arith.constant 0 : index
    %c12 = arith.constant 12 : index
    %c128_56 = arith.constant 128 : index
    %131 = vector.load %arg5[%c0_55, %c12, %c128_56] : memref<2x16x256xf32, #tpu.memory_space<vmem>>, vector<2x1x128xf32>
    %132 = vector.shape_cast %131 : vector<2x1x128xf32> to vector<2x128xf32>
    %133 = tpu.concatenate %130, %132 in 1 : vector<2x128xf32>, vector<2x128xf32> -> vector<2x256xf32>
    %c0_57 = arith.constant 0 : index
    %c0_58 = arith.constant 0 : index
    %134 = vector.load %arg2[%c0_57, %c0_58] : memref<64x256xf32, #tpu.memory_space<vmem>>, vector<64x256xf32>
    %cst_59 = arith.constant dense<0.000000e+00> : vector<2x256xf32>
    %135 = tpu.matmul %128, %134, %cst_59 {dimension_numbers = #tpu.dot_dimension_numbers<[1], [0], [0], [1], [0, 0, 1, 1], [], []>} : vector<2x64xf32>, vector<64x256xf32>, vector<2x256xf32> -> vector<2x256xf32>
    %136 = arith.addf %133, %135 : vector<2x256xf32>
    %137 = arith.negf %136 : vector<2x256xf32>
    %138 = math.exp %137 : vector<2x256xf32>
    %cst_60 = arith.constant 1.000000e+00 : f32
    %139 = vector.broadcast %cst_60 : f32 to vector<2x256xf32>
    %140 = arith.addf %139, %138 : vector<2x256xf32>
    %141 = arith.divf %139, %140 : vector<2x256xf32>
    %142 = vector.extract_strided_slice %136 {offsets = [0, 64], sizes = [2, 32], strides = [1, 1]} : vector<2x256xf32> to vector<2x32xf32>
    %143 = math.tanh %142 : vector<2x32xf32>
    %144 = vector.extract_strided_slice %136 {offsets = [0, 192], sizes = [2, 32], strides = [1, 1]} : vector<2x256xf32> to vector<2x32xf32>
    %145 = math.tanh %144 : vector<2x32xf32>
    %146 = vector.extract_strided_slice %141 {offsets = [0, 32], sizes = [2, 32], strides = [1, 1]} : vector<2x256xf32> to vector<2x32xf32>
    %147 = arith.mulf %146, %110 : vector<2x32xf32>
    %148 = vector.extract_strided_slice %141 {offsets = [0, 0], sizes = [2, 32], strides = [1, 1]} : vector<2x256xf32> to vector<2x32xf32>
    %149 = arith.mulf %148, %143 : vector<2x32xf32>
    %150 = arith.addf %147, %149 : vector<2x32xf32>
    %151 = vector.extract_strided_slice %141 {offsets = [0, 160], sizes = [2, 32], strides = [1, 1]} : vector<2x256xf32> to vector<2x32xf32>
    %152 = arith.mulf %151, %115 : vector<2x32xf32>
    %153 = vector.extract_strided_slice %141 {offsets = [0, 128], sizes = [2, 32], strides = [1, 1]} : vector<2x256xf32> to vector<2x32xf32>
    %154 = arith.mulf %153, %145 : vector<2x32xf32>
    %155 = arith.addf %152, %154 : vector<2x32xf32>
    %156 = vector.extract_strided_slice %141 {offsets = [0, 96], sizes = [2, 32], strides = [1, 1]} : vector<2x256xf32> to vector<2x32xf32>
    %157 = math.tanh %150 : vector<2x32xf32>
    %158 = arith.mulf %156, %157 : vector<2x32xf32>
    %159 = vector.extract_strided_slice %141 {offsets = [0, 224], sizes = [2, 32], strides = [1, 1]} : vector<2x256xf32> to vector<2x32xf32>
    %160 = math.tanh %155 : vector<2x32xf32>
    %161 = arith.mulf %159, %160 : vector<2x32xf32>
    %c0_61 = arith.constant 0 : index
    %c3_62 = arith.constant 3 : index
    %c0_63 = arith.constant 0 : index
    %162 = vector.load %arg4[%c0_61, %c3_62, %c0_63] : memref<2x16x64xf32, #tpu.memory_space<vmem>>, vector<2x1x32xf32>
    %163 = vector.shape_cast %162 : vector<2x1x32xf32> to vector<2x32xf32>
    %164 = vector.shape_cast %158 : vector<2x32xf32> to vector<2x1x32xf32>
    tpu.vector_store %arg4[%c0_61, %c3_62, %c0_63], %164 {strides = array<i32>} : memref<2x16x64xf32, #tpu.memory_space<vmem>>, vector<2x1x32xf32>,
    %c0_64 = arith.constant 0 : index
    %c12_65 = arith.constant 12 : index
    %c32_66 = arith.constant 32 : index
    %165 = vector.load %arg4[%c0_64, %c12_65, %c32_66] : memref<2x16x64xf32, #tpu.memory_space<vmem>>, vector<2x1x32xf32>
    %166 = vector.shape_cast %165 : vector<2x1x32xf32> to vector<2x32xf32>
    %167 = vector.shape_cast %161 : vector<2x32xf32> to vector<2x1x32xf32>
    tpu.vector_store %arg4[%c0_64, %c12_65, %c32_66], %167 {strides = array<i32>} : memref<2x16x64xf32, #tpu.memory_space<vmem>>, vector<2x1x32xf32>,
    %168 = tpu.concatenate %158, %161 in 1 : vector<2x32xf32>, vector<2x32xf32> -> vector<2x64xf32>
    %c0_67 = arith.constant 0 : index
    %c4 = arith.constant 4 : index
    %c0_68 = arith.constant 0 : index
    %169 = vector.load %arg5[%c0_67, %c4, %c0_68] : memref<2x16x256xf32, #tpu.memory_space<vmem>>, vector<2x1x128xf32>
    %170 = vector.shape_cast %169 : vector<2x1x128xf32> to vector<2x128xf32>
    %c0_69 = arith.constant 0 : index
    %c11 = arith.constant 11 : index
    %c128_70 = arith.constant 128 : index
    %171 = vector.load %arg5[%c0_69, %c11, %c128_70] : memref<2x16x256xf32, #tpu.memory_space<vmem>>, vector<2x1x128xf32>
    %172 = vector.shape_cast %171 : vector<2x1x128xf32> to vector<2x128xf32>
    %173 = tpu.concatenate %170, %172 in 1 : vector<2x128xf32>, vector<2x128xf32> -> vector<2x256xf32>
    %c0_71 = arith.constant 0 : index
    %c0_72 = arith.constant 0 : index
    %174 = vector.load %arg2[%c0_71, %c0_72] : memref<64x256xf32, #tpu.memory_space<vmem>>, vector<64x256xf32>
    %cst_73 = arith.constant dense<0.000000e+00> : vector<2x256xf32>
    %175 = tpu.matmul %168, %174, %cst_73 {dimension_numbers = #tpu.dot_dimension_numbers<[1], [0], [0], [1], [0, 0, 1, 1], [], []>} : vector<2x64xf32>, vector<64x256xf32>, vector<2x256xf32> -> vector<2x256xf32>
    %176 = arith.addf %173, %175 : vector<2x256xf32>
    %177 = arith.negf %176 : vector<2x256xf32>
    %178 = math.exp %177 : vector<2x256xf32>
    %cst_74 = arith.constant 1.000000e+00 : f32
    %179 = vector.broadcast %cst_74 : f32 to vector<2x256xf32>
    %180 = arith.addf %179, %178 : vector<2x256xf32>
    %181 = arith.divf %179, %180 : vector<2x256xf32>
    %182 = vector.extract_strided_slice %176 {offsets = [0, 64], sizes = [2, 32], strides = [1, 1]} : vector<2x256xf32> to vector<2x32xf32>
    %183 = math.tanh %182 : vector<2x32xf32>
    %184 = vector.extract_strided_slice %176 {offsets = [0, 192], sizes = [2, 32], strides = [1, 1]} : vector<2x256xf32> to vector<2x32xf32>
    %185 = math.tanh %184 : vector<2x32xf32>
    %186 = vector.extract_strided_slice %181 {offsets = [0, 32], sizes = [2, 32], strides = [1, 1]} : vector<2x256xf32> to vector<2x32xf32>
    %187 = arith.mulf %186, %150 : vector<2x32xf32>
    %188 = vector.extract_strided_slice %181 {offsets = [0, 0], sizes = [2, 32], strides = [1, 1]} : vector<2x256xf32> to vector<2x32xf32>
    %189 = arith.mulf %188, %183 : vector<2x32xf32>
    %190 = arith.addf %187, %189 : vector<2x32xf32>
    %191 = vector.extract_strided_slice %181 {offsets = [0, 160], sizes = [2, 32], strides = [1, 1]} : vector<2x256xf32> to vector<2x32xf32>
    %192 = arith.mulf %191, %155 : vector<2x32xf32>
    %193 = vector.extract_strided_slice %181 {offsets = [0, 128], sizes = [2, 32], strides = [1, 1]} : vector<2x256xf32> to vector<2x32xf32>
    %194 = arith.mulf %193, %185 : vector<2x32xf32>
    %195 = arith.addf %192, %194 : vector<2x32xf32>
    %196 = vector.extract_strided_slice %181 {offsets = [0, 96], sizes = [2, 32], strides = [1, 1]} : vector<2x256xf32> to vector<2x32xf32>
    %197 = math.tanh %190 : vector<2x32xf32>
    %198 = arith.mulf %196, %197 : vector<2x32xf32>
    %199 = vector.extract_strided_slice %181 {offsets = [0, 224], sizes = [2, 32], strides = [1, 1]} : vector<2x256xf32> to vector<2x32xf32>
    %200 = math.tanh %195 : vector<2x32xf32>
    %201 = arith.mulf %199, %200 : vector<2x32xf32>
    %c0_75 = arith.constant 0 : index
    %c4_76 = arith.constant 4 : index
    %c0_77 = arith.constant 0 : index
    %202 = vector.load %arg4[%c0_75, %c4_76, %c0_77] : memref<2x16x64xf32, #tpu.memory_space<vmem>>, vector<2x1x32xf32>
    %203 = vector.shape_cast %202 : vector<2x1x32xf32> to vector<2x32xf32>
    %204 = vector.shape_cast %198 : vector<2x32xf32> to vector<2x1x32xf32>
    tpu.vector_store %arg4[%c0_75, %c4_76, %c0_77], %204 {strides = array<i32>} : memref<2x16x64xf32, #tpu.memory_space<vmem>>, vector<2x1x32xf32>,
    %c0_78 = arith.constant 0 : index
    %c11_79 = arith.constant 11 : index
    %c32_80 = arith.constant 32 : index
    %205 = vector.load %arg4[%c0_78, %c11_79, %c32_80] : memref<2x16x64xf32, #tpu.memory_space<vmem>>, vector<2x1x32xf32>
    %206 = vector.shape_cast %205 : vector<2x1x32xf32> to vector<2x32xf32>
    %207 = vector.shape_cast %201 : vector<2x32xf32> to vector<2x1x32xf32>
    tpu.vector_store %arg4[%c0_78, %c11_79, %c32_80], %207 {strides = array<i32>} : memref<2x16x64xf32, #tpu.memory_space<vmem>>, vector<2x1x32xf32>,
    %208 = tpu.concatenate %198, %201 in 1 : vector<2x32xf32>, vector<2x32xf32> -> vector<2x64xf32>
    %c0_81 = arith.constant 0 : index
    %c5 = arith.constant 5 : index
    %c0_82 = arith.constant 0 : index
    %209 = vector.load %arg5[%c0_81, %c5, %c0_82] : memref<2x16x256xf32, #tpu.memory_space<vmem>>, vector<2x1x128xf32>
    %210 = vector.shape_cast %209 : vector<2x1x128xf32> to vector<2x128xf32>
    %c0_83 = arith.constant 0 : index
    %c10 = arith.constant 10 : index
    %c128_84 = arith.constant 128 : index
    %211 = vector.load %arg5[%c0_83, %c10, %c128_84] : memref<2x16x256xf32, #tpu.memory_space<vmem>>, vector<2x1x128xf32>
    %212 = vector.shape_cast %211 : vector<2x1x128xf32> to vector<2x128xf32>
    %213 = tpu.concatenate %210, %212 in 1 : vector<2x128xf32>, vector<2x128xf32> -> vector<2x256xf32>
    %c0_85 = arith.constant 0 : index
    %c0_86 = arith.constant 0 : index
    %214 = vector.load %arg2[%c0_85, %c0_86] : memref<64x256xf32, #tpu.memory_space<vmem>>, vector<64x256xf32>
    %cst_87 = arith.constant dense<0.000000e+00> : vector<2x256xf32>
    %215 = tpu.matmul %208, %214, %cst_87 {dimension_numbers = #tpu.dot_dimension_numbers<[1], [0], [0], [1], [0, 0, 1, 1], [], []>} : vector<2x64xf32>, vector<64x256xf32>, vector<2x256xf32> -> vector<2x256xf32>
    %216 = arith.addf %213, %215 : vector<2x256xf32>
    %217 = arith.negf %216 : vector<2x256xf32>
    %218 = math.exp %217 : vector<2x256xf32>
    %cst_88 = arith.constant 1.000000e+00 : f32
    %219 = vector.broadcast %cst_88 : f32 to vector<2x256xf32>
    %220 = arith.addf %219, %218 : vector<2x256xf32>
    %221 = arith.divf %219, %220 : vector<2x256xf32>
    %222 = vector.extract_strided_slice %216 {offsets = [0, 64], sizes = [2, 32], strides = [1, 1]} : vector<2x256xf32> to vector<2x32xf32>
    %223 = math.tanh %222 : vector<2x32xf32>
    %224 = vector.extract_strided_slice %216 {offsets = [0, 192], sizes = [2, 32], strides = [1, 1]} : vector<2x256xf32> to vector<2x32xf32>
    %225 = math.tanh %224 : vector<2x32xf32>
    %226 = vector.extract_strided_slice %221 {offsets = [0, 32], sizes = [2, 32], strides = [1, 1]} : vector<2x256xf32> to vector<2x32xf32>
    %227 = arith.mulf %226, %190 : vector<2x32xf32>
    %228 = vector.extract_strided_slice %221 {offsets = [0, 0], sizes = [2, 32], strides = [1, 1]} : vector<2x256xf32> to vector<2x32xf32>
    %229 = arith.mulf %228, %223 : vector<2x32xf32>
    %230 = arith.addf %227, %229 : vector<2x32xf32>
    %231 = vector.extract_strided_slice %221 {offsets = [0, 160], sizes = [2, 32], strides = [1, 1]} : vector<2x256xf32> to vector<2x32xf32>
    %232 = arith.mulf %231, %195 : vector<2x32xf32>
    %233 = vector.extract_strided_slice %221 {offsets = [0, 128], sizes = [2, 32], strides = [1, 1]} : vector<2x256xf32> to vector<2x32xf32>
    %234 = arith.mulf %233, %225 : vector<2x32xf32>
    %235 = arith.addf %232, %234 : vector<2x32xf32>
    %236 = vector.extract_strided_slice %221 {offsets = [0, 96], sizes = [2, 32], strides = [1, 1]} : vector<2x256xf32> to vector<2x32xf32>
    %237 = math.tanh %230 : vector<2x32xf32>
    %238 = arith.mulf %236, %237 : vector<2x32xf32>
    %239 = vector.extract_strided_slice %221 {offsets = [0, 224], sizes = [2, 32], strides = [1, 1]} : vector<2x256xf32> to vector<2x32xf32>
    %240 = math.tanh %235 : vector<2x32xf32>
    %241 = arith.mulf %239, %240 : vector<2x32xf32>
    %c0_89 = arith.constant 0 : index
    %c5_90 = arith.constant 5 : index
    %c0_91 = arith.constant 0 : index
    %242 = vector.load %arg4[%c0_89, %c5_90, %c0_91] : memref<2x16x64xf32, #tpu.memory_space<vmem>>, vector<2x1x32xf32>
    %243 = vector.shape_cast %242 : vector<2x1x32xf32> to vector<2x32xf32>
    %244 = vector.shape_cast %238 : vector<2x32xf32> to vector<2x1x32xf32>
    tpu.vector_store %arg4[%c0_89, %c5_90, %c0_91], %244 {strides = array<i32>} : memref<2x16x64xf32, #tpu.memory_space<vmem>>, vector<2x1x32xf32>,
    %c0_92 = arith.constant 0 : index
    %c10_93 = arith.constant 10 : index
    %c32_94 = arith.constant 32 : index
    %245 = vector.load %arg4[%c0_92, %c10_93, %c32_94] : memref<2x16x64xf32, #tpu.memory_space<vmem>>, vector<2x1x32xf32>
    %246 = vector.shape_cast %245 : vector<2x1x32xf32> to vector<2x32xf32>
    %247 = vector.shape_cast %241 : vector<2x32xf32> to vector<2x1x32xf32>
    tpu.vector_store %arg4[%c0_92, %c10_93, %c32_94], %247 {strides = array<i32>} : memref<2x16x64xf32, #tpu.memory_space<vmem>>, vector<2x1x32xf32>,
    %248 = tpu.concatenate %238, %241 in 1 : vector<2x32xf32>, vector<2x32xf32> -> vector<2x64xf32>
    %c0_95 = arith.constant 0 : index
    %c6 = arith.constant 6 : index
    %c0_96 = arith.constant 0 : index
    %249 = vector.load %arg5[%c0_95, %c6, %c0_96] : memref<2x16x256xf32, #tpu.memory_space<vmem>>, vector<2x1x128xf32>
    %250 = vector.shape_cast %249 : vector<2x1x128xf32> to vector<2x128xf32>
    %c0_97 = arith.constant 0 : index
    %c9 = arith.constant 9 : index
    %c128_98 = arith.constant 128 : index
    %251 = vector.load %arg5[%c0_97, %c9, %c128_98] : memref<2x16x256xf32, #tpu.memory_space<vmem>>, vector<2x1x128xf32>
    %252 = vector.shape_cast %251 : vector<2x1x128xf32> to vector<2x128xf32>
    %253 = tpu.concatenate %250, %252 in 1 : vector<2x128xf32>, vector<2x128xf32> -> vector<2x256xf32>
    %c0_99 = arith.constant 0 : index
    %c0_100 = arith.constant 0 : index
    %254 = vector.load %arg2[%c0_99, %c0_100] : memref<64x256xf32, #tpu.memory_space<vmem>>, vector<64x256xf32>
    %cst_101 = arith.constant dense<0.000000e+00> : vector<2x256xf32>
    %255 = tpu.matmul %248, %254, %cst_101 {dimension_numbers = #tpu.dot_dimension_numbers<[1], [0], [0], [1], [0, 0, 1, 1], [], []>} : vector<2x64xf32>, vector<64x256xf32>, vector<2x256xf32> -> vector<2x256xf32>
    %256 = arith.addf %253, %255 : vector<2x256xf32>
    %257 = arith.negf %256 : vector<2x256xf32>
    %258 = math.exp %257 : vector<2x256xf32>
    %cst_102 = arith.constant 1.000000e+00 : f32
    %259 = vector.broadcast %cst_102 : f32 to vector<2x256xf32>
    %260 = arith.addf %259, %258 : vector<2x256xf32>
    %261 = arith.divf %259, %260 : vector<2x256xf32>
    %262 = vector.extract_strided_slice %256 {offsets = [0, 64], sizes = [2, 32], strides = [1, 1]} : vector<2x256xf32> to vector<2x32xf32>
    %263 = math.tanh %262 : vector<2x32xf32>
    %264 = vector.extract_strided_slice %256 {offsets = [0, 192], sizes = [2, 32], strides = [1, 1]} : vector<2x256xf32> to vector<2x32xf32>
    %265 = math.tanh %264 : vector<2x32xf32>
    %266 = vector.extract_strided_slice %261 {offsets = [0, 32], sizes = [2, 32], strides = [1, 1]} : vector<2x256xf32> to vector<2x32xf32>
    %267 = arith.mulf %266, %230 : vector<2x32xf32>
    %268 = vector.extract_strided_slice %261 {offsets = [0, 0], sizes = [2, 32], strides = [1, 1]} : vector<2x256xf32> to vector<2x32xf32>
    %269 = arith.mulf %268, %263 : vector<2x32xf32>
    %270 = arith.addf %267, %269 : vector<2x32xf32>
    %271 = vector.extract_strided_slice %261 {offsets = [0, 160], sizes = [2, 32], strides = [1, 1]} : vector<2x256xf32> to vector<2x32xf32>
    %272 = arith.mulf %271, %235 : vector<2x32xf32>
    %273 = vector.extract_strided_slice %261 {offsets = [0, 128], sizes = [2, 32], strides = [1, 1]} : vector<2x256xf32> to vector<2x32xf32>
    %274 = arith.mulf %273, %265 : vector<2x32xf32>
    %275 = arith.addf %272, %274 : vector<2x32xf32>
    %276 = vector.extract_strided_slice %261 {offsets = [0, 96], sizes = [2, 32], strides = [1, 1]} : vector<2x256xf32> to vector<2x32xf32>
    %277 = math.tanh %270 : vector<2x32xf32>
    %278 = arith.mulf %276, %277 : vector<2x32xf32>
    %279 = vector.extract_strided_slice %261 {offsets = [0, 224], sizes = [2, 32], strides = [1, 1]} : vector<2x256xf32> to vector<2x32xf32>
    %280 = math.tanh %275 : vector<2x32xf32>
    %281 = arith.mulf %279, %280 : vector<2x32xf32>
    %c0_103 = arith.constant 0 : index
    %c6_104 = arith.constant 6 : index
    %c0_105 = arith.constant 0 : index
    %282 = vector.load %arg4[%c0_103, %c6_104, %c0_105] : memref<2x16x64xf32, #tpu.memory_space<vmem>>, vector<2x1x32xf32>
    %283 = vector.shape_cast %282 : vector<2x1x32xf32> to vector<2x32xf32>
    %284 = vector.shape_cast %278 : vector<2x32xf32> to vector<2x1x32xf32>
    tpu.vector_store %arg4[%c0_103, %c6_104, %c0_105], %284 {strides = array<i32>} : memref<2x16x64xf32, #tpu.memory_space<vmem>>, vector<2x1x32xf32>,
    %c0_106 = arith.constant 0 : index
    %c9_107 = arith.constant 9 : index
    %c32_108 = arith.constant 32 : index
    %285 = vector.load %arg4[%c0_106, %c9_107, %c32_108] : memref<2x16x64xf32, #tpu.memory_space<vmem>>, vector<2x1x32xf32>
    %286 = vector.shape_cast %285 : vector<2x1x32xf32> to vector<2x32xf32>
    %287 = vector.shape_cast %281 : vector<2x32xf32> to vector<2x1x32xf32>
    tpu.vector_store %arg4[%c0_106, %c9_107, %c32_108], %287 {strides = array<i32>} : memref<2x16x64xf32, #tpu.memory_space<vmem>>, vector<2x1x32xf32>,
    %288 = tpu.concatenate %278, %281 in 1 : vector<2x32xf32>, vector<2x32xf32> -> vector<2x64xf32>
    %c0_109 = arith.constant 0 : index
    %c7 = arith.constant 7 : index
    %c0_110 = arith.constant 0 : index
    %289 = vector.load %arg5[%c0_109, %c7, %c0_110] : memref<2x16x256xf32, #tpu.memory_space<vmem>>, vector<2x1x128xf32>
    %290 = vector.shape_cast %289 : vector<2x1x128xf32> to vector<2x128xf32>
    %c0_111 = arith.constant 0 : index
    %c8 = arith.constant 8 : index
    %c128_112 = arith.constant 128 : index
    %291 = vector.load %arg5[%c0_111, %c8, %c128_112] : memref<2x16x256xf32, #tpu.memory_space<vmem>>, vector<2x1x128xf32>
    %292 = vector.shape_cast %291 : vector<2x1x128xf32> to vector<2x128xf32>
    %293 = tpu.concatenate %290, %292 in 1 : vector<2x128xf32>, vector<2x128xf32> -> vector<2x256xf32>
    %c0_113 = arith.constant 0 : index
    %c0_114 = arith.constant 0 : index
    %294 = vector.load %arg2[%c0_113, %c0_114] : memref<64x256xf32, #tpu.memory_space<vmem>>, vector<64x256xf32>
    %cst_115 = arith.constant dense<0.000000e+00> : vector<2x256xf32>
    %295 = tpu.matmul %288, %294, %cst_115 {dimension_numbers = #tpu.dot_dimension_numbers<[1], [0], [0], [1], [0, 0, 1, 1], [], []>} : vector<2x64xf32>, vector<64x256xf32>, vector<2x256xf32> -> vector<2x256xf32>
    %296 = arith.addf %293, %295 : vector<2x256xf32>
    %297 = arith.negf %296 : vector<2x256xf32>
    %298 = math.exp %297 : vector<2x256xf32>
    %cst_116 = arith.constant 1.000000e+00 : f32
    %299 = vector.broadcast %cst_116 : f32 to vector<2x256xf32>
    %300 = arith.addf %299, %298 : vector<2x256xf32>
    %301 = arith.divf %299, %300 : vector<2x256xf32>
    %302 = vector.extract_strided_slice %296 {offsets = [0, 64], sizes = [2, 32], strides = [1, 1]} : vector<2x256xf32> to vector<2x32xf32>
    %303 = math.tanh %302 : vector<2x32xf32>
    %304 = vector.extract_strided_slice %296 {offsets = [0, 192], sizes = [2, 32], strides = [1, 1]} : vector<2x256xf32> to vector<2x32xf32>
    %305 = math.tanh %304 : vector<2x32xf32>
    %306 = vector.extract_strided_slice %301 {offsets = [0, 32], sizes = [2, 32], strides = [1, 1]} : vector<2x256xf32> to vector<2x32xf32>
    %307 = arith.mulf %306, %270 : vector<2x32xf32>
    %308 = vector.extract_strided_slice %301 {offsets = [0, 0], sizes = [2, 32], strides = [1, 1]} : vector<2x256xf32> to vector<2x32xf32>
    %309 = arith.mulf %308, %303 : vector<2x32xf32>
    %310 = arith.addf %307, %309 : vector<2x32xf32>
    %311 = vector.extract_strided_slice %301 {offsets = [0, 160], sizes = [2, 32], strides = [1, 1]} : vector<2x256xf32> to vector<2x32xf32>
    %312 = arith.mulf %311, %275 : vector<2x32xf32>
    %313 = vector.extract_strided_slice %301 {offsets = [0, 128], sizes = [2, 32], strides = [1, 1]} : vector<2x256xf32> to vector<2x32xf32>
    %314 = arith.mulf %313, %305 : vector<2x32xf32>
    %315 = arith.addf %312, %314 : vector<2x32xf32>
    %316 = vector.extract_strided_slice %301 {offsets = [0, 96], sizes = [2, 32], strides = [1, 1]} : vector<2x256xf32> to vector<2x32xf32>
    %317 = math.tanh %310 : vector<2x32xf32>
    %318 = arith.mulf %316, %317 : vector<2x32xf32>
    %319 = vector.extract_strided_slice %301 {offsets = [0, 224], sizes = [2, 32], strides = [1, 1]} : vector<2x256xf32> to vector<2x32xf32>
    %320 = math.tanh %315 : vector<2x32xf32>
    %321 = arith.mulf %319, %320 : vector<2x32xf32>
    %c0_117 = arith.constant 0 : index
    %c7_118 = arith.constant 7 : index
    %c0_119 = arith.constant 0 : index
    %322 = vector.load %arg4[%c0_117, %c7_118, %c0_119] : memref<2x16x64xf32, #tpu.memory_space<vmem>>, vector<2x1x32xf32>
    %323 = vector.shape_cast %322 : vector<2x1x32xf32> to vector<2x32xf32>
    %324 = vector.shape_cast %318 : vector<2x32xf32> to vector<2x1x32xf32>
    tpu.vector_store %arg4[%c0_117, %c7_118, %c0_119], %324 {strides = array<i32>} : memref<2x16x64xf32, #tpu.memory_space<vmem>>, vector<2x1x32xf32>,
    %c0_120 = arith.constant 0 : index
    %c8_121 = arith.constant 8 : index
    %c32_122 = arith.constant 32 : index
    %325 = vector.load %arg4[%c0_120, %c8_121, %c32_122] : memref<2x16x64xf32, #tpu.memory_space<vmem>>, vector<2x1x32xf32>
    %326 = vector.shape_cast %325 : vector<2x1x32xf32> to vector<2x32xf32>
    %327 = vector.shape_cast %321 : vector<2x32xf32> to vector<2x1x32xf32>
    tpu.vector_store %arg4[%c0_120, %c8_121, %c32_122], %327 {strides = array<i32>} : memref<2x16x64xf32, #tpu.memory_space<vmem>>, vector<2x1x32xf32>,
    %328 = tpu.concatenate %318, %321 in 1 : vector<2x32xf32>, vector<2x32xf32> -> vector<2x64xf32>
    %c0_123 = arith.constant 0 : index
    %c8_124 = arith.constant 8 : index
    %c0_125 = arith.constant 0 : index
    %329 = vector.load %arg5[%c0_123, %c8_124, %c0_125] : memref<2x16x256xf32, #tpu.memory_space<vmem>>, vector<2x1x128xf32>
    %330 = vector.shape_cast %329 : vector<2x1x128xf32> to vector<2x128xf32>
    %c0_126 = arith.constant 0 : index
    %c7_127 = arith.constant 7 : index
    %c128_128 = arith.constant 128 : index
    %331 = vector.load %arg5[%c0_126, %c7_127, %c128_128] : memref<2x16x256xf32, #tpu.memory_space<vmem>>, vector<2x1x128xf32>
    %332 = vector.shape_cast %331 : vector<2x1x128xf32> to vector<2x128xf32>
    %333 = tpu.concatenate %330, %332 in 1 : vector<2x128xf32>, vector<2x128xf32> -> vector<2x256xf32>
    %c0_129 = arith.constant 0 : index
    %c0_130 = arith.constant 0 : index
    %334 = vector.load %arg2[%c0_129, %c0_130] : memref<64x256xf32, #tpu.memory_space<vmem>>, vector<64x256xf32>
    %cst_131 = arith.constant dense<0.000000e+00> : vector<2x256xf32>
    %335 = tpu.matmul %328, %334, %cst_131 {dimension_numbers = #tpu.dot_dimension_numbers<[1], [0], [0], [1], [0, 0, 1, 1], [], []>} : vector<2x64xf32>, vector<64x256xf32>, vector<2x256xf32> -> vector<2x256xf32>
    %336 = arith.addf %333, %335 : vector<2x256xf32>
    %337 = arith.negf %336 : vector<2x256xf32>
    %338 = math.exp %337 : vector<2x256xf32>
    %cst_132 = arith.constant 1.000000e+00 : f32
    %339 = vector.broadcast %cst_132 : f32 to vector<2x256xf32>
    %340 = arith.addf %339, %338 : vector<2x256xf32>
    %341 = arith.divf %339, %340 : vector<2x256xf32>
    %342 = vector.extract_strided_slice %336 {offsets = [0, 64], sizes = [2, 32], strides = [1, 1]} : vector<2x256xf32> to vector<2x32xf32>
    %343 = math.tanh %342 : vector<2x32xf32>
    %344 = vector.extract_strided_slice %336 {offsets = [0, 192], sizes = [2, 32], strides = [1, 1]} : vector<2x256xf32> to vector<2x32xf32>
    %345 = math.tanh %344 : vector<2x32xf32>
    %346 = vector.extract_strided_slice %341 {offsets = [0, 32], sizes = [2, 32], strides = [1, 1]} : vector<2x256xf32> to vector<2x32xf32>
    %347 = arith.mulf %346, %310 : vector<2x32xf32>
    %348 = vector.extract_strided_slice %341 {offsets = [0, 0], sizes = [2, 32], strides = [1, 1]} : vector<2x256xf32> to vector<2x32xf32>
    %349 = arith.mulf %348, %343 : vector<2x32xf32>
    %350 = arith.addf %347, %349 : vector<2x32xf32>
    %351 = vector.extract_strided_slice %341 {offsets = [0, 160], sizes = [2, 32], strides = [1, 1]} : vector<2x256xf32> to vector<2x32xf32>
    %352 = arith.mulf %351, %315 : vector<2x32xf32>
    %353 = vector.extract_strided_slice %341 {offsets = [0, 128], sizes = [2, 32], strides = [1, 1]} : vector<2x256xf32> to vector<2x32xf32>
    %354 = arith.mulf %353, %345 : vector<2x32xf32>
    %355 = arith.addf %352, %354 : vector<2x32xf32>
    %356 = vector.extract_strided_slice %341 {offsets = [0, 96], sizes = [2, 32], strides = [1, 1]} : vector<2x256xf32> to vector<2x32xf32>
    %357 = math.tanh %350 : vector<2x32xf32>
    %358 = arith.mulf %356, %357 : vector<2x32xf32>
    %359 = vector.extract_strided_slice %341 {offsets = [0, 224], sizes = [2, 32], strides = [1, 1]} : vector<2x256xf32> to vector<2x32xf32>
    %360 = math.tanh %355 : vector<2x32xf32>
    %361 = arith.mulf %359, %360 : vector<2x32xf32>
    %c0_133 = arith.constant 0 : index
    %c8_134 = arith.constant 8 : index
    %c0_135 = arith.constant 0 : index
    %362 = vector.load %arg4[%c0_133, %c8_134, %c0_135] : memref<2x16x64xf32, #tpu.memory_space<vmem>>, vector<2x1x32xf32>
    %363 = vector.shape_cast %362 : vector<2x1x32xf32> to vector<2x32xf32>
    %364 = vector.shape_cast %358 : vector<2x32xf32> to vector<2x1x32xf32>
    tpu.vector_store %arg4[%c0_133, %c8_134, %c0_135], %364 {strides = array<i32>} : memref<2x16x64xf32, #tpu.memory_space<vmem>>, vector<2x1x32xf32>,
    %c0_136 = arith.constant 0 : index
    %c7_137 = arith.constant 7 : index
    %c32_138 = arith.constant 32 : index
    %365 = vector.load %arg4[%c0_136, %c7_137, %c32_138] : memref<2x16x64xf32, #tpu.memory_space<vmem>>, vector<2x1x32xf32>
    %366 = vector.shape_cast %365 : vector<2x1x32xf32> to vector<2x32xf32>
    %367 = vector.shape_cast %361 : vector<2x32xf32> to vector<2x1x32xf32>
    tpu.vector_store %arg4[%c0_136, %c7_137, %c32_138], %367 {strides = array<i32>} : memref<2x16x64xf32, #tpu.memory_space<vmem>>, vector<2x1x32xf32>,
    %368 = tpu.concatenate %358, %361 in 1 : vector<2x32xf32>, vector<2x32xf32> -> vector<2x64xf32>
    %c0_139 = arith.constant 0 : index
    %c9_140 = arith.constant 9 : index
    %c0_141 = arith.constant 0 : index
    %369 = vector.load %arg5[%c0_139, %c9_140, %c0_141] : memref<2x16x256xf32, #tpu.memory_space<vmem>>, vector<2x1x128xf32>
    %370 = vector.shape_cast %369 : vector<2x1x128xf32> to vector<2x128xf32>
    %c0_142 = arith.constant 0 : index
    %c6_143 = arith.constant 6 : index
    %c128_144 = arith.constant 128 : index
    %371 = vector.load %arg5[%c0_142, %c6_143, %c128_144] : memref<2x16x256xf32, #tpu.memory_space<vmem>>, vector<2x1x128xf32>
    %372 = vector.shape_cast %371 : vector<2x1x128xf32> to vector<2x128xf32>
    %373 = tpu.concatenate %370, %372 in 1 : vector<2x128xf32>, vector<2x128xf32> -> vector<2x256xf32>
    %c0_145 = arith.constant 0 : index
    %c0_146 = arith.constant 0 : index
    %374 = vector.load %arg2[%c0_145, %c0_146] : memref<64x256xf32, #tpu.memory_space<vmem>>, vector<64x256xf32>
    %cst_147 = arith.constant dense<0.000000e+00> : vector<2x256xf32>
    %375 = tpu.matmul %368, %374, %cst_147 {dimension_numbers = #tpu.dot_dimension_numbers<[1], [0], [0], [1], [0, 0, 1, 1], [], []>} : vector<2x64xf32>, vector<64x256xf32>, vector<2x256xf32> -> vector<2x256xf32>
    %376 = arith.addf %373, %375 : vector<2x256xf32>
    %377 = arith.negf %376 : vector<2x256xf32>
    %378 = math.exp %377 : vector<2x256xf32>
    %cst_148 = arith.constant 1.000000e+00 : f32
    %379 = vector.broadcast %cst_148 : f32 to vector<2x256xf32>
    %380 = arith.addf %379, %378 : vector<2x256xf32>
    %381 = arith.divf %379, %380 : vector<2x256xf32>
    %382 = vector.extract_strided_slice %376 {offsets = [0, 64], sizes = [2, 32], strides = [1, 1]} : vector<2x256xf32> to vector<2x32xf32>
    %383 = math.tanh %382 : vector<2x32xf32>
    %384 = vector.extract_strided_slice %376 {offsets = [0, 192], sizes = [2, 32], strides = [1, 1]} : vector<2x256xf32> to vector<2x32xf32>
    %385 = math.tanh %384 : vector<2x32xf32>
    %386 = vector.extract_strided_slice %381 {offsets = [0, 32], sizes = [2, 32], strides = [1, 1]} : vector<2x256xf32> to vector<2x32xf32>
    %387 = arith.mulf %386, %350 : vector<2x32xf32>
    %388 = vector.extract_strided_slice %381 {offsets = [0, 0], sizes = [2, 32], strides = [1, 1]} : vector<2x256xf32> to vector<2x32xf32>
    %389 = arith.mulf %388, %383 : vector<2x32xf32>
    %390 = arith.addf %387, %389 : vector<2x32xf32>
    %391 = vector.extract_strided_slice %381 {offsets = [0, 160], sizes = [2, 32], strides = [1, 1]} : vector<2x256xf32> to vector<2x32xf32>
    %392 = arith.mulf %391, %355 : vector<2x32xf32>
    %393 = vector.extract_strided_slice %381 {offsets = [0, 128], sizes = [2, 32], strides = [1, 1]} : vector<2x256xf32> to vector<2x32xf32>
    %394 = arith.mulf %393, %385 : vector<2x32xf32>
    %395 = arith.addf %392, %394 : vector<2x32xf32>
    %396 = vector.extract_strided_slice %381 {offsets = [0, 96], sizes = [2, 32], strides = [1, 1]} : vector<2x256xf32> to vector<2x32xf32>
    %397 = math.tanh %390 : vector<2x32xf32>
    %398 = arith.mulf %396, %397 : vector<2x32xf32>
    %399 = vector.extract_strided_slice %381 {offsets = [0, 224], sizes = [2, 32], strides = [1, 1]} : vector<2x256xf32> to vector<2x32xf32>
    %400 = math.tanh %395 : vector<2x32xf32>
    %401 = arith.mulf %399, %400 : vector<2x32xf32>
    %c0_149 = arith.constant 0 : index
    %c9_150 = arith.constant 9 : index
    %c0_151 = arith.constant 0 : index
    %402 = vector.load %arg4[%c0_149, %c9_150, %c0_151] : memref<2x16x64xf32, #tpu.memory_space<vmem>>, vector<2x1x32xf32>
    %403 = vector.shape_cast %402 : vector<2x1x32xf32> to vector<2x32xf32>
    %404 = vector.shape_cast %398 : vector<2x32xf32> to vector<2x1x32xf32>
    tpu.vector_store %arg4[%c0_149, %c9_150, %c0_151], %404 {strides = array<i32>} : memref<2x16x64xf32, #tpu.memory_space<vmem>>, vector<2x1x32xf32>,
    %c0_152 = arith.constant 0 : index
    %c6_153 = arith.constant 6 : index
    %c32_154 = arith.constant 32 : index
    %405 = vector.load %arg4[%c0_152, %c6_153, %c32_154] : memref<2x16x64xf32, #tpu.memory_space<vmem>>, vector<2x1x32xf32>
    %406 = vector.shape_cast %405 : vector<2x1x32xf32> to vector<2x32xf32>
    %407 = vector.shape_cast %401 : vector<2x32xf32> to vector<2x1x32xf32>
    tpu.vector_store %arg4[%c0_152, %c6_153, %c32_154], %407 {strides = array<i32>} : memref<2x16x64xf32, #tpu.memory_space<vmem>>, vector<2x1x32xf32>,
    %408 = tpu.concatenate %398, %401 in 1 : vector<2x32xf32>, vector<2x32xf32> -> vector<2x64xf32>
    %c0_155 = arith.constant 0 : index
    %c10_156 = arith.constant 10 : index
    %c0_157 = arith.constant 0 : index
    %409 = vector.load %arg5[%c0_155, %c10_156, %c0_157] : memref<2x16x256xf32, #tpu.memory_space<vmem>>, vector<2x1x128xf32>
    %410 = vector.shape_cast %409 : vector<2x1x128xf32> to vector<2x128xf32>
    %c0_158 = arith.constant 0 : index
    %c5_159 = arith.constant 5 : index
    %c128_160 = arith.constant 128 : index
    %411 = vector.load %arg5[%c0_158, %c5_159, %c128_160] : memref<2x16x256xf32, #tpu.memory_space<vmem>>, vector<2x1x128xf32>
    %412 = vector.shape_cast %411 : vector<2x1x128xf32> to vector<2x128xf32>
    %413 = tpu.concatenate %410, %412 in 1 : vector<2x128xf32>, vector<2x128xf32> -> vector<2x256xf32>
    %c0_161 = arith.constant 0 : index
    %c0_162 = arith.constant 0 : index
    %414 = vector.load %arg2[%c0_161, %c0_162] : memref<64x256xf32, #tpu.memory_space<vmem>>, vector<64x256xf32>
    %cst_163 = arith.constant dense<0.000000e+00> : vector<2x256xf32>
    %415 = tpu.matmul %408, %414, %cst_163 {dimension_numbers = #tpu.dot_dimension_numbers<[1], [0], [0], [1], [0, 0, 1, 1], [], []>} : vector<2x64xf32>, vector<64x256xf32>, vector<2x256xf32> -> vector<2x256xf32>
    %416 = arith.addf %413, %415 : vector<2x256xf32>
    %417 = arith.negf %416 : vector<2x256xf32>
    %418 = math.exp %417 : vector<2x256xf32>
    %cst_164 = arith.constant 1.000000e+00 : f32
    %419 = vector.broadcast %cst_164 : f32 to vector<2x256xf32>
    %420 = arith.addf %419, %418 : vector<2x256xf32>
    %421 = arith.divf %419, %420 : vector<2x256xf32>
    %422 = vector.extract_strided_slice %416 {offsets = [0, 64], sizes = [2, 32], strides = [1, 1]} : vector<2x256xf32> to vector<2x32xf32>
    %423 = math.tanh %422 : vector<2x32xf32>
    %424 = vector.extract_strided_slice %416 {offsets = [0, 192], sizes = [2, 32], strides = [1, 1]} : vector<2x256xf32> to vector<2x32xf32>
    %425 = math.tanh %424 : vector<2x32xf32>
    %426 = vector.extract_strided_slice %421 {offsets = [0, 32], sizes = [2, 32], strides = [1, 1]} : vector<2x256xf32> to vector<2x32xf32>
    %427 = arith.mulf %426, %390 : vector<2x32xf32>
    %428 = vector.extract_strided_slice %421 {offsets = [0, 0], sizes = [2, 32], strides = [1, 1]} : vector<2x256xf32> to vector<2x32xf32>
    %429 = arith.mulf %428, %423 : vector<2x32xf32>
    %430 = arith.addf %427, %429 : vector<2x32xf32>
    %431 = vector.extract_strided_slice %421 {offsets = [0, 160], sizes = [2, 32], strides = [1, 1]} : vector<2x256xf32> to vector<2x32xf32>
    %432 = arith.mulf %431, %395 : vector<2x32xf32>
    %433 = vector.extract_strided_slice %421 {offsets = [0, 128], sizes = [2, 32], strides = [1, 1]} : vector<2x256xf32> to vector<2x32xf32>
    %434 = arith.mulf %433, %425 : vector<2x32xf32>
    %435 = arith.addf %432, %434 : vector<2x32xf32>
    %436 = vector.extract_strided_slice %421 {offsets = [0, 96], sizes = [2, 32], strides = [1, 1]} : vector<2x256xf32> to vector<2x32xf32>
    %437 = math.tanh %430 : vector<2x32xf32>
    %438 = arith.mulf %436, %437 : vector<2x32xf32>
    %439 = vector.extract_strided_slice %421 {offsets = [0, 224], sizes = [2, 32], strides = [1, 1]} : vector<2x256xf32> to vector<2x32xf32>
    %440 = math.tanh %435 : vector<2x32xf32>
    %441 = arith.mulf %439, %440 : vector<2x32xf32>
    %c0_165 = arith.constant 0 : index
    %c10_166 = arith.constant 10 : index
    %c0_167 = arith.constant 0 : index
    %442 = vector.load %arg4[%c0_165, %c10_166, %c0_167] : memref<2x16x64xf32, #tpu.memory_space<vmem>>, vector<2x1x32xf32>
    %443 = vector.shape_cast %442 : vector<2x1x32xf32> to vector<2x32xf32>
    %444 = vector.shape_cast %438 : vector<2x32xf32> to vector<2x1x32xf32>
    tpu.vector_store %arg4[%c0_165, %c10_166, %c0_167], %444 {strides = array<i32>} : memref<2x16x64xf32, #tpu.memory_space<vmem>>, vector<2x1x32xf32>,
    %c0_168 = arith.constant 0 : index
    %c5_169 = arith.constant 5 : index
    %c32_170 = arith.constant 32 : index
    %445 = vector.load %arg4[%c0_168, %c5_169, %c32_170] : memref<2x16x64xf32, #tpu.memory_space<vmem>>, vector<2x1x32xf32>
    %446 = vector.shape_cast %445 : vector<2x1x32xf32> to vector<2x32xf32>
    %447 = vector.shape_cast %441 : vector<2x32xf32> to vector<2x1x32xf32>
    tpu.vector_store %arg4[%c0_168, %c5_169, %c32_170], %447 {strides = array<i32>} : memref<2x16x64xf32, #tpu.memory_space<vmem>>, vector<2x1x32xf32>,
    %448 = tpu.concatenate %438, %441 in 1 : vector<2x32xf32>, vector<2x32xf32> -> vector<2x64xf32>
    %c0_171 = arith.constant 0 : index
    %c11_172 = arith.constant 11 : index
    %c0_173 = arith.constant 0 : index
    %449 = vector.load %arg5[%c0_171, %c11_172, %c0_173] : memref<2x16x256xf32, #tpu.memory_space<vmem>>, vector<2x1x128xf32>
    %450 = vector.shape_cast %449 : vector<2x1x128xf32> to vector<2x128xf32>
    %c0_174 = arith.constant 0 : index
    %c4_175 = arith.constant 4 : index
    %c128_176 = arith.constant 128 : index
    %451 = vector.load %arg5[%c0_174, %c4_175, %c128_176] : memref<2x16x256xf32, #tpu.memory_space<vmem>>, vector<2x1x128xf32>
    %452 = vector.shape_cast %451 : vector<2x1x128xf32> to vector<2x128xf32>
    %453 = tpu.concatenate %450, %452 in 1 : vector<2x128xf32>, vector<2x128xf32> -> vector<2x256xf32>
    %c0_177 = arith.constant 0 : index
    %c0_178 = arith.constant 0 : index
    %454 = vector.load %arg2[%c0_177, %c0_178] : memref<64x256xf32, #tpu.memory_space<vmem>>, vector<64x256xf32>
    %cst_179 = arith.constant dense<0.000000e+00> : vector<2x256xf32>
    %455 = tpu.matmul %448, %454, %cst_179 {dimension_numbers = #tpu.dot_dimension_numbers<[1], [0], [0], [1], [0, 0, 1, 1], [], []>} : vector<2x64xf32>, vector<64x256xf32>, vector<2x256xf32> -> vector<2x256xf32>
    %456 = arith.addf %453, %455 : vector<2x256xf32>
    %457 = arith.negf %456 : vector<2x256xf32>
    %458 = math.exp %457 : vector<2x256xf32>
    %cst_180 = arith.constant 1.000000e+00 : f32
    %459 = vector.broadcast %cst_180 : f32 to vector<2x256xf32>
    %460 = arith.addf %459, %458 : vector<2x256xf32>
    %461 = arith.divf %459, %460 : vector<2x256xf32>
    %462 = vector.extract_strided_slice %456 {offsets = [0, 64], sizes = [2, 32], strides = [1, 1]} : vector<2x256xf32> to vector<2x32xf32>
    %463 = math.tanh %462 : vector<2x32xf32>
    %464 = vector.extract_strided_slice %456 {offsets = [0, 192], sizes = [2, 32], strides = [1, 1]} : vector<2x256xf32> to vector<2x32xf32>
    %465 = math.tanh %464 : vector<2x32xf32>
    %466 = vector.extract_strided_slice %461 {offsets = [0, 32], sizes = [2, 32], strides = [1, 1]} : vector<2x256xf32> to vector<2x32xf32>
    %467 = arith.mulf %466, %430 : vector<2x32xf32>
    %468 = vector.extract_strided_slice %461 {offsets = [0, 0], sizes = [2, 32], strides = [1, 1]} : vector<2x256xf32> to vector<2x32xf32>
    %469 = arith.mulf %468, %463 : vector<2x32xf32>
    %470 = arith.addf %467, %469 : vector<2x32xf32>
    %471 = vector.extract_strided_slice %461 {offsets = [0, 160], sizes = [2, 32], strides = [1, 1]} : vector<2x256xf32> to vector<2x32xf32>
    %472 = arith.mulf %471, %435 : vector<2x32xf32>
    %473 = vector.extract_strided_slice %461 {offsets = [0, 128], sizes = [2, 32], strides = [1, 1]} : vector<2x256xf32> to vector<2x32xf32>
    %474 = arith.mulf %473, %465 : vector<2x32xf32>
    %475 = arith.addf %472, %474 : vector<2x32xf32>
    %476 = vector.extract_strided_slice %461 {offsets = [0, 96], sizes = [2, 32], strides = [1, 1]} : vector<2x256xf32> to vector<2x32xf32>
    %477 = math.tanh %470 : vector<2x32xf32>
    %478 = arith.mulf %476, %477 : vector<2x32xf32>
    %479 = vector.extract_strided_slice %461 {offsets = [0, 224], sizes = [2, 32], strides = [1, 1]} : vector<2x256xf32> to vector<2x32xf32>
    %480 = math.tanh %475 : vector<2x32xf32>
    %481 = arith.mulf %479, %480 : vector<2x32xf32>
    %c0_181 = arith.constant 0 : index
    %c11_182 = arith.constant 11 : index
    %c0_183 = arith.constant 0 : index
    %482 = vector.load %arg4[%c0_181, %c11_182, %c0_183] : memref<2x16x64xf32, #tpu.memory_space<vmem>>, vector<2x1x32xf32>
    %483 = vector.shape_cast %482 : vector<2x1x32xf32> to vector<2x32xf32>
    %484 = vector.shape_cast %478 : vector<2x32xf32> to vector<2x1x32xf32>
    tpu.vector_store %arg4[%c0_181, %c11_182, %c0_183], %484 {strides = array<i32>} : memref<2x16x64xf32, #tpu.memory_space<vmem>>, vector<2x1x32xf32>,
    %c0_184 = arith.constant 0 : index
    %c4_185 = arith.constant 4 : index
    %c32_186 = arith.constant 32 : index
    %485 = vector.load %arg4[%c0_184, %c4_185, %c32_186] : memref<2x16x64xf32, #tpu.memory_space<vmem>>, vector<2x1x32xf32>
    %486 = vector.shape_cast %485 : vector<2x1x32xf32> to vector<2x32xf32>
    %487 = vector.shape_cast %481 : vector<2x32xf32> to vector<2x1x32xf32>
    tpu.vector_store %arg4[%c0_184, %c4_185, %c32_186], %487 {strides = array<i32>} : memref<2x16x64xf32, #tpu.memory_space<vmem>>, vector<2x1x32xf32>,
    %488 = tpu.concatenate %478, %481 in 1 : vector<2x32xf32>, vector<2x32xf32> -> vector<2x64xf32>
    %c0_187 = arith.constant 0 : index
    %c12_188 = arith.constant 12 : index
    %c0_189 = arith.constant 0 : index
    %489 = vector.load %arg5[%c0_187, %c12_188, %c0_189] : memref<2x16x256xf32, #tpu.memory_space<vmem>>, vector<2x1x128xf32>
    %490 = vector.shape_cast %489 : vector<2x1x128xf32> to vector<2x128xf32>
    %c0_190 = arith.constant 0 : index
    %c3_191 = arith.constant 3 : index
    %c128_192 = arith.constant 128 : index
    %491 = vector.load %arg5[%c0_190, %c3_191, %c128_192] : memref<2x16x256xf32, #tpu.memory_space<vmem>>, vector<2x1x128xf32>
    %492 = vector.shape_cast %491 : vector<2x1x128xf32> to vector<2x128xf32>
    %493 = tpu.concatenate %490, %492 in 1 : vector<2x128xf32>, vector<2x128xf32> -> vector<2x256xf32>
    %c0_193 = arith.constant 0 : index
    %c0_194 = arith.constant 0 : index
    %494 = vector.load %arg2[%c0_193, %c0_194] : memref<64x256xf32, #tpu.memory_space<vmem>>, vector<64x256xf32>
    %cst_195 = arith.constant dense<0.000000e+00> : vector<2x256xf32>
    %495 = tpu.matmul %488, %494, %cst_195 {dimension_numbers = #tpu.dot_dimension_numbers<[1], [0], [0], [1], [0, 0, 1, 1], [], []>} : vector<2x64xf32>, vector<64x256xf32>, vector<2x256xf32> -> vector<2x256xf32>
    %496 = arith.addf %493, %495 : vector<2x256xf32>
    %497 = arith.negf %496 : vector<2x256xf32>
    %498 = math.exp %497 : vector<2x256xf32>
    %cst_196 = arith.constant 1.000000e+00 : f32
    %499 = vector.broadcast %cst_196 : f32 to vector<2x256xf32>
    %500 = arith.addf %499, %498 : vector<2x256xf32>
    %501 = arith.divf %499, %500 : vector<2x256xf32>
    %502 = vector.extract_strided_slice %496 {offsets = [0, 64], sizes = [2, 32], strides = [1, 1]} : vector<2x256xf32> to vector<2x32xf32>
    %503 = math.tanh %502 : vector<2x32xf32>
    %504 = vector.extract_strided_slice %496 {offsets = [0, 192], sizes = [2, 32], strides = [1, 1]} : vector<2x256xf32> to vector<2x32xf32>
    %505 = math.tanh %504 : vector<2x32xf32>
    %506 = vector.extract_strided_slice %501 {offsets = [0, 32], sizes = [2, 32], strides = [1, 1]} : vector<2x256xf32> to vector<2x32xf32>
    %507 = arith.mulf %506, %470 : vector<2x32xf32>
    %508 = vector.extract_strided_slice %501 {offsets = [0, 0], sizes = [2, 32], strides = [1, 1]} : vector<2x256xf32> to vector<2x32xf32>
    %509 = arith.mulf %508, %503 : vector<2x32xf32>
    %510 = arith.addf %507, %509 : vector<2x32xf32>
    %511 = vector.extract_strided_slice %501 {offsets = [0, 160], sizes = [2, 32], strides = [1, 1]} : vector<2x256xf32> to vector<2x32xf32>
    %512 = arith.mulf %511, %475 : vector<2x32xf32>
    %513 = vector.extract_strided_slice %501 {offsets = [0, 128], sizes = [2, 32], strides = [1, 1]} : vector<2x256xf32> to vector<2x32xf32>
    %514 = arith.mulf %513, %505 : vector<2x32xf32>
    %515 = arith.addf %512, %514 : vector<2x32xf32>
    %516 = vector.extract_strided_slice %501 {offsets = [0, 96], sizes = [2, 32], strides = [1, 1]} : vector<2x256xf32> to vector<2x32xf32>
    %517 = math.tanh %510 : vector<2x32xf32>
    %518 = arith.mulf %516, %517 : vector<2x32xf32>
    %519 = vector.extract_strided_slice %501 {offsets = [0, 224], sizes = [2, 32], strides = [1, 1]} : vector<2x256xf32> to vector<2x32xf32>
    %520 = math.tanh %515 : vector<2x32xf32>
    %521 = arith.mulf %519, %520 : vector<2x32xf32>
    %c0_197 = arith.constant 0 : index
    %c12_198 = arith.constant 12 : index
    %c0_199 = arith.constant 0 : index
    %522 = vector.load %arg4[%c0_197, %c12_198, %c0_199] : memref<2x16x64xf32, #tpu.memory_space<vmem>>, vector<2x1x32xf32>
    %523 = vector.shape_cast %522 : vector<2x1x32xf32> to vector<2x32xf32>
    %524 = vector.shape_cast %518 : vector<2x32xf32> to vector<2x1x32xf32>
    tpu.vector_store %arg4[%c0_197, %c12_198, %c0_199], %524 {strides = array<i32>} : memref<2x16x64xf32, #tpu.memory_space<vmem>>, vector<2x1x32xf32>,
    %c0_200 = arith.constant 0 : index
    %c3_201 = arith.constant 3 : index
    %c32_202 = arith.constant 32 : index
    %525 = vector.load %arg4[%c0_200, %c3_201, %c32_202] : memref<2x16x64xf32, #tpu.memory_space<vmem>>, vector<2x1x32xf32>
    %526 = vector.shape_cast %525 : vector<2x1x32xf32> to vector<2x32xf32>
    %527 = vector.shape_cast %521 : vector<2x32xf32> to vector<2x1x32xf32>
    tpu.vector_store %arg4[%c0_200, %c3_201, %c32_202], %527 {strides = array<i32>} : memref<2x16x64xf32, #tpu.memory_space<vmem>>, vector<2x1x32xf32>,
    %528 = tpu.concatenate %518, %521 in 1 : vector<2x32xf32>, vector<2x32xf32> -> vector<2x64xf32>
    %c0_203 = arith.constant 0 : index
    %c13_204 = arith.constant 13 : index
    %c0_205 = arith.constant 0 : index
    %529 = vector.load %arg5[%c0_203, %c13_204, %c0_205] : memref<2x16x256xf32, #tpu.memory_space<vmem>>, vector<2x1x128xf32>
    %530 = vector.shape_cast %529 : vector<2x1x128xf32> to vector<2x128xf32>
    %c0_206 = arith.constant 0 : index
    %c2_207 = arith.constant 2 : index
    %c128_208 = arith.constant 128 : index
    %531 = vector.load %arg5[%c0_206, %c2_207, %c128_208] : memref<2x16x256xf32, #tpu.memory_space<vmem>>, vector<2x1x128xf32>
    %532 = vector.shape_cast %531 : vector<2x1x128xf32> to vector<2x128xf32>
    %533 = tpu.concatenate %530, %532 in 1 : vector<2x128xf32>, vector<2x128xf32> -> vector<2x256xf32>
    %c0_209 = arith.constant 0 : index
    %c0_210 = arith.constant 0 : index
    %534 = vector.load %arg2[%c0_209, %c0_210] : memref<64x256xf32, #tpu.memory_space<vmem>>, vector<64x256xf32>
    %cst_211 = arith.constant dense<0.000000e+00> : vector<2x256xf32>
    %535 = tpu.matmul %528, %534, %cst_211 {dimension_numbers = #tpu.dot_dimension_numbers<[1], [0], [0], [1], [0, 0, 1, 1], [], []>} : vector<2x64xf32>, vector<64x256xf32>, vector<2x256xf32> -> vector<2x256xf32>
    %536 = arith.addf %533, %535 : vector<2x256xf32>
    %537 = arith.negf %536 : vector<2x256xf32>
    %538 = math.exp %537 : vector<2x256xf32>
    %cst_212 = arith.constant 1.000000e+00 : f32
    %539 = vector.broadcast %cst_212 : f32 to vector<2x256xf32>
    %540 = arith.addf %539, %538 : vector<2x256xf32>
    %541 = arith.divf %539, %540 : vector<2x256xf32>
    %542 = vector.extract_strided_slice %536 {offsets = [0, 64], sizes = [2, 32], strides = [1, 1]} : vector<2x256xf32> to vector<2x32xf32>
    %543 = math.tanh %542 : vector<2x32xf32>
    %544 = vector.extract_strided_slice %536 {offsets = [0, 192], sizes = [2, 32], strides = [1, 1]} : vector<2x256xf32> to vector<2x32xf32>
    %545 = math.tanh %544 : vector<2x32xf32>
    %546 = vector.extract_strided_slice %541 {offsets = [0, 32], sizes = [2, 32], strides = [1, 1]} : vector<2x256xf32> to vector<2x32xf32>
    %547 = arith.mulf %546, %510 : vector<2x32xf32>
    %548 = vector.extract_strided_slice %541 {offsets = [0, 0], sizes = [2, 32], strides = [1, 1]} : vector<2x256xf32> to vector<2x32xf32>
    %549 = arith.mulf %548, %543 : vector<2x32xf32>
    %550 = arith.addf %547, %549 : vector<2x32xf32>
    %551 = vector.extract_strided_slice %541 {offsets = [0, 160], sizes = [2, 32], strides = [1, 1]} : vector<2x256xf32> to vector<2x32xf32>
    %552 = arith.mulf %551, %515 : vector<2x32xf32>
    %553 = vector.extract_strided_slice %541 {offsets = [0, 128], sizes = [2, 32], strides = [1, 1]} : vector<2x256xf32> to vector<2x32xf32>
    %554 = arith.mulf %553, %545 : vector<2x32xf32>
    %555 = arith.addf %552, %554 : vector<2x32xf32>
    %556 = vector.extract_strided_slice %541 {offsets = [0, 96], sizes = [2, 32], strides = [1, 1]} : vector<2x256xf32> to vector<2x32xf32>
    %557 = math.tanh %550 : vector<2x32xf32>
    %558 = arith.mulf %556, %557 : vector<2x32xf32>
    %559 = vector.extract_strided_slice %541 {offsets = [0, 224], sizes = [2, 32], strides = [1, 1]} : vector<2x256xf32> to vector<2x32xf32>
    %560 = math.tanh %555 : vector<2x32xf32>
    %561 = arith.mulf %559, %560 : vector<2x32xf32>
    %c0_213 = arith.constant 0 : index
    %c13_214 = arith.constant 13 : index
    %c0_215 = arith.constant 0 : index
    %562 = vector.load %arg4[%c0_213, %c13_214, %c0_215] : memref<2x16x64xf32, #tpu.memory_space<vmem>>, vector<2x1x32xf32>
    %563 = vector.shape_cast %562 : vector<2x1x32xf32> to vector<2x32xf32>
    %564 = vector.shape_cast %558 : vector<2x32xf32> to vector<2x1x32xf32>
    tpu.vector_store %arg4[%c0_213, %c13_214, %c0_215], %564 {strides = array<i32>} : memref<2x16x64xf32, #tpu.memory_space<vmem>>, vector<2x1x32xf32>,
    %c0_216 = arith.constant 0 : index
    %c2_217 = arith.constant 2 : index
    %c32_218 = arith.constant 32 : index
    %565 = vector.load %arg4[%c0_216, %c2_217, %c32_218] : memref<2x16x64xf32, #tpu.memory_space<vmem>>, vector<2x1x32xf32>
    %566 = vector.shape_cast %565 : vector<2x1x32xf32> to vector<2x32xf32>
    %567 = vector.shape_cast %561 : vector<2x32xf32> to vector<2x1x32xf32>
    tpu.vector_store %arg4[%c0_216, %c2_217, %c32_218], %567 {strides = array<i32>} : memref<2x16x64xf32, #tpu.memory_space<vmem>>, vector<2x1x32xf32>,
    %568 = tpu.concatenate %558, %561 in 1 : vector<2x32xf32>, vector<2x32xf32> -> vector<2x64xf32>
    %c0_219 = arith.constant 0 : index
    %c14_220 = arith.constant 14 : index
    %c0_221 = arith.constant 0 : index
    %569 = vector.load %arg5[%c0_219, %c14_220, %c0_221] : memref<2x16x256xf32, #tpu.memory_space<vmem>>, vector<2x1x128xf32>
    %570 = vector.shape_cast %569 : vector<2x1x128xf32> to vector<2x128xf32>
    %c0_222 = arith.constant 0 : index
    %c1_223 = arith.constant 1 : index
    %c128_224 = arith.constant 128 : index
    %571 = vector.load %arg5[%c0_222, %c1_223, %c128_224] : memref<2x16x256xf32, #tpu.memory_space<vmem>>, vector<2x1x128xf32>
    %572 = vector.shape_cast %571 : vector<2x1x128xf32> to vector<2x128xf32>
    %573 = tpu.concatenate %570, %572 in 1 : vector<2x128xf32>, vector<2x128xf32> -> vector<2x256xf32>
    %c0_225 = arith.constant 0 : index
    %c0_226 = arith.constant 0 : index
    %574 = vector.load %arg2[%c0_225, %c0_226] : memref<64x256xf32, #tpu.memory_space<vmem>>, vector<64x256xf32>
    %cst_227 = arith.constant dense<0.000000e+00> : vector<2x256xf32>
    %575 = tpu.matmul %568, %574, %cst_227 {dimension_numbers = #tpu.dot_dimension_numbers<[1], [0], [0], [1], [0, 0, 1, 1], [], []>} : vector<2x64xf32>, vector<64x256xf32>, vector<2x256xf32> -> vector<2x256xf32>
    %576 = arith.addf %573, %575 : vector<2x256xf32>
    %577 = arith.negf %576 : vector<2x256xf32>
    %578 = math.exp %577 : vector<2x256xf32>
    %cst_228 = arith.constant 1.000000e+00 : f32
    %579 = vector.broadcast %cst_228 : f32 to vector<2x256xf32>
    %580 = arith.addf %579, %578 : vector<2x256xf32>
    %581 = arith.divf %579, %580 : vector<2x256xf32>
    %582 = vector.extract_strided_slice %576 {offsets = [0, 64], sizes = [2, 32], strides = [1, 1]} : vector<2x256xf32> to vector<2x32xf32>
    %583 = math.tanh %582 : vector<2x32xf32>
    %584 = vector.extract_strided_slice %576 {offsets = [0, 192], sizes = [2, 32], strides = [1, 1]} : vector<2x256xf32> to vector<2x32xf32>
    %585 = math.tanh %584 : vector<2x32xf32>
    %586 = vector.extract_strided_slice %581 {offsets = [0, 32], sizes = [2, 32], strides = [1, 1]} : vector<2x256xf32> to vector<2x32xf32>
    %587 = arith.mulf %586, %550 : vector<2x32xf32>
    %588 = vector.extract_strided_slice %581 {offsets = [0, 0], sizes = [2, 32], strides = [1, 1]} : vector<2x256xf32> to vector<2x32xf32>
    %589 = arith.mulf %588, %583 : vector<2x32xf32>
    %590 = arith.addf %587, %589 : vector<2x32xf32>
    %591 = vector.extract_strided_slice %581 {offsets = [0, 160], sizes = [2, 32], strides = [1, 1]} : vector<2x256xf32> to vector<2x32xf32>
    %592 = arith.mulf %591, %555 : vector<2x32xf32>
    %593 = vector.extract_strided_slice %581 {offsets = [0, 128], sizes = [2, 32], strides = [1, 1]} : vector<2x256xf32> to vector<2x32xf32>
    %594 = arith.mulf %593, %585 : vector<2x32xf32>
    %595 = arith.addf %592, %594 : vector<2x32xf32>
    %596 = vector.extract_strided_slice %581 {offsets = [0, 96], sizes = [2, 32], strides = [1, 1]} : vector<2x256xf32> to vector<2x32xf32>
    %597 = math.tanh %590 : vector<2x32xf32>
    %598 = arith.mulf %596, %597 : vector<2x32xf32>
    %599 = vector.extract_strided_slice %581 {offsets = [0, 224], sizes = [2, 32], strides = [1, 1]} : vector<2x256xf32> to vector<2x32xf32>
    %600 = math.tanh %595 : vector<2x32xf32>
    %601 = arith.mulf %599, %600 : vector<2x32xf32>
    %c0_229 = arith.constant 0 : index
    %c14_230 = arith.constant 14 : index
    %c0_231 = arith.constant 0 : index
    %602 = vector.load %arg4[%c0_229, %c14_230, %c0_231] : memref<2x16x64xf32, #tpu.memory_space<vmem>>, vector<2x1x32xf32>
    %603 = vector.shape_cast %602 : vector<2x1x32xf32> to vector<2x32xf32>
    %604 = vector.shape_cast %598 : vector<2x32xf32> to vector<2x1x32xf32>
    tpu.vector_store %arg4[%c0_229, %c14_230, %c0_231], %604 {strides = array<i32>} : memref<2x16x64xf32, #tpu.memory_space<vmem>>, vector<2x1x32xf32>,
    %c0_232 = arith.constant 0 : index
    %c1_233 = arith.constant 1 : index
    %c32_234 = arith.constant 32 : index
    %605 = vector.load %arg4[%c0_232, %c1_233, %c32_234] : memref<2x16x64xf32, #tpu.memory_space<vmem>>, vector<2x1x32xf32>
    %606 = vector.shape_cast %605 : vector<2x1x32xf32> to vector<2x32xf32>
    %607 = vector.shape_cast %601 : vector<2x32xf32> to vector<2x1x32xf32>
    tpu.vector_store %arg4[%c0_232, %c1_233, %c32_234], %607 {strides = array<i32>} : memref<2x16x64xf32, #tpu.memory_space<vmem>>, vector<2x1x32xf32>,
    %608 = tpu.concatenate %598, %601 in 1 : vector<2x32xf32>, vector<2x32xf32> -> vector<2x64xf32>
    %c0_235 = arith.constant 0 : index
    %c15_236 = arith.constant 15 : index
    %c0_237 = arith.constant 0 : index
    %609 = vector.load %arg5[%c0_235, %c15_236, %c0_237] : memref<2x16x256xf32, #tpu.memory_space<vmem>>, vector<2x1x128xf32>
    %610 = vector.shape_cast %609 : vector<2x1x128xf32> to vector<2x128xf32>
    %c0_238 = arith.constant 0 : index
    %c0_239 = arith.constant 0 : index
    %c128_240 = arith.constant 128 : index
    %611 = vector.load %arg5[%c0_238, %c0_239, %c128_240] : memref<2x16x256xf32, #tpu.memory_space<vmem>>, vector<2x1x128xf32>
    %612 = vector.shape_cast %611 : vector<2x1x128xf32> to vector<2x128xf32>
    %613 = tpu.concatenate %610, %612 in 1 : vector<2x128xf32>, vector<2x128xf32> -> vector<2x256xf32>
    %c0_241 = arith.constant 0 : index
    %c0_242 = arith.constant 0 : index
    %614 = vector.load %arg2[%c0_241, %c0_242] : memref<64x256xf32, #tpu.memory_space<vmem>>, vector<64x256xf32>
    %cst_243 = arith.constant dense<0.000000e+00> : vector<2x256xf32>
    %615 = tpu.matmul %608, %614, %cst_243 {dimension_numbers = #tpu.dot_dimension_numbers<[1], [0], [0], [1], [0, 0, 1, 1], [], []>} : vector<2x64xf32>, vector<64x256xf32>, vector<2x256xf32> -> vector<2x256xf32>
    %616 = arith.addf %613, %615 : vector<2x256xf32>
    %617 = arith.negf %616 : vector<2x256xf32>
    %618 = math.exp %617 : vector<2x256xf32>
    %cst_244 = arith.constant 1.000000e+00 : f32
    %619 = vector.broadcast %cst_244 : f32 to vector<2x256xf32>
    %620 = arith.addf %619, %618 : vector<2x256xf32>
    %621 = arith.divf %619, %620 : vector<2x256xf32>
    %622 = vector.extract_strided_slice %616 {offsets = [0, 64], sizes = [2, 32], strides = [1, 1]} : vector<2x256xf32> to vector<2x32xf32>
    %623 = math.tanh %622 : vector<2x32xf32>
    %624 = vector.extract_strided_slice %616 {offsets = [0, 192], sizes = [2, 32], strides = [1, 1]} : vector<2x256xf32> to vector<2x32xf32>
    %625 = math.tanh %624 : vector<2x32xf32>
    %626 = vector.extract_strided_slice %621 {offsets = [0, 32], sizes = [2, 32], strides = [1, 1]} : vector<2x256xf32> to vector<2x32xf32>
    %627 = arith.mulf %626, %590 : vector<2x32xf32>
    %628 = vector.extract_strided_slice %621 {offsets = [0, 0], sizes = [2, 32], strides = [1, 1]} : vector<2x256xf32> to vector<2x32xf32>
    %629 = arith.mulf %628, %623 : vector<2x32xf32>
    %630 = arith.addf %627, %629 : vector<2x32xf32>
    %631 = vector.extract_strided_slice %621 {offsets = [0, 160], sizes = [2, 32], strides = [1, 1]} : vector<2x256xf32> to vector<2x32xf32>
    %632 = arith.mulf %631, %595 : vector<2x32xf32>
    %633 = vector.extract_strided_slice %621 {offsets = [0, 128], sizes = [2, 32], strides = [1, 1]} : vector<2x256xf32> to vector<2x32xf32>
    %634 = arith.mulf %633, %625 : vector<2x32xf32>
    %635 = arith.addf %632, %634 : vector<2x32xf32>
    %636 = vector.extract_strided_slice %621 {offsets = [0, 96], sizes = [2, 32], strides = [1, 1]} : vector<2x256xf32> to vector<2x32xf32>
    %637 = math.tanh %630 : vector<2x32xf32>
    %638 = arith.mulf %636, %637 : vector<2x32xf32>
    %639 = vector.extract_strided_slice %621 {offsets = [0, 224], sizes = [2, 32], strides = [1, 1]} : vector<2x256xf32> to vector<2x32xf32>
    %640 = math.tanh %635 : vector<2x32xf32>
    %641 = arith.mulf %639, %640 : vector<2x32xf32>
    %c0_245 = arith.constant 0 : index
    %c15_246 = arith.constant 15 : index
    %c0_247 = arith.constant 0 : index
    %642 = vector.load %arg4[%c0_245, %c15_246, %c0_247] : memref<2x16x64xf32, #tpu.memory_space<vmem>>, vector<2x1x32xf32>
    %643 = vector.shape_cast %642 : vector<2x1x32xf32> to vector<2x32xf32>
    %644 = vector.shape_cast %638 : vector<2x32xf32> to vector<2x1x32xf32>
    tpu.vector_store %arg4[%c0_245, %c15_246, %c0_247], %644 {strides = array<i32>} : memref<2x16x64xf32, #tpu.memory_space<vmem>>, vector<2x1x32xf32>,
    %c0_248 = arith.constant 0 : index
    %c0_249 = arith.constant 0 : index
    %c32_250 = arith.constant 32 : index
    %645 = vector.load %arg4[%c0_248, %c0_249, %c32_250] : memref<2x16x64xf32, #tpu.memory_space<vmem>>, vector<2x1x32xf32>
    %646 = vector.shape_cast %645 : vector<2x1x32xf32> to vector<2x32xf32>
    %647 = vector.shape_cast %641 : vector<2x32xf32> to vector<2x1x32xf32>
    tpu.vector_store %arg4[%c0_248, %c0_249, %c32_250], %647 {strides = array<i32>} : memref<2x16x64xf32, #tpu.memory_space<vmem>>, vector<2x1x32xf32>,
    return
  }
}

module attributes {stable_mosaic.version = 11 : i64} {
  func.func @_cnn_head_kernel(%arg0: memref<2x16x64xf32, #tpu.memory_space<vmem>>, %arg1: memref<64x8xf32, #tpu.memory_space<vmem>>, %arg2: memref<1x1x8xf32, #tpu.memory_space<vmem>>, %arg3: memref<24x8xf32, #tpu.memory_space<vmem>>, %arg4: memref<32x8xf32, #tpu.memory_space<vmem>>, %arg5: memref<40x8xf32, #tpu.memory_space<vmem>>, %arg6: memref<1x1x8xf32, #tpu.memory_space<vmem>>, %arg7: memref<1x1x8xf32, #tpu.memory_space<vmem>>, %arg8: memref<1x1x8xf32, #tpu.memory_space<vmem>>, %arg9: memref<24x8xf32, #tpu.memory_space<vmem>>, %arg10: memref<1x1x8xf32, #tpu.memory_space<vmem>>, %arg11: memref<24x8xf32, #tpu.memory_space<vmem>>, %arg12: memref<1x1x8xf32, #tpu.memory_space<vmem>>, %arg13: memref<6x12x1xf32, #tpu.memory_space<vmem>>, %arg14: memref<24x2xf32, #tpu.memory_space<vmem>>, %arg15: memref<1x2xf32, #tpu.memory_space<vmem>>, %arg16: memref<2x2xf32, #tpu.memory_space<vmem>>) attributes {dimension_semantics = [], scalar_prefetch = 0 : i64, scratch_operands = 0 : i64, tpu.core_type = #tpu.core_type<tc>} {
    %c0 = arith.constant 0 : index
    %c0_0 = arith.constant 0 : index
    %c0_1 = arith.constant 0 : index
    %0 = vector.load %arg0[%c0, %c0_0, %c0_1] : memref<2x16x64xf32, #tpu.memory_space<vmem>>, vector<2x16x64xf32>
    %c0_2 = arith.constant 0 : index
    %c0_3 = arith.constant 0 : index
    %1 = vector.load %arg1[%c0_2, %c0_3] : memref<64x8xf32, #tpu.memory_space<vmem>>, vector<64x8xf32>
    %cst = arith.constant dense<0.000000e+00> : vector<2x16x8xf32>
    %2 = tpu.matmul %0, %1, %cst {dimension_numbers = #tpu.dot_dimension_numbers<[2], [0], [0, 1], [1], [0, 0, 0, 1, 1, 1], [], []>} : vector<2x16x64xf32>, vector<64x8xf32>, vector<2x16x8xf32> -> vector<2x16x8xf32>
    %c0_4 = arith.constant 0 : index
    %c0_5 = arith.constant 0 : index
    %c0_6 = arith.constant 0 : index
    %3 = vector.load %arg2[%c0_4, %c0_5, %c0_6] : memref<1x1x8xf32, #tpu.memory_space<vmem>>, vector<1x1x8xf32>
    %4 = vector.broadcast %3 : vector<1x1x8xf32> to vector<2x16x8xf32>
    %5 = arith.addf %2, %4 : vector<2x16x8xf32>
    %6 = vector.extract_strided_slice %5 {offsets = [0, 0, 0], sizes = [2, 14, 8], strides = [1, 1, 1]} : vector<2x16x8xf32> to vector<2x14x8xf32>
    %7 = vector.extract_strided_slice %5 {offsets = [0, 1, 0], sizes = [2, 14, 8], strides = [1, 1, 1]} : vector<2x16x8xf32> to vector<2x14x8xf32>
    %8 = vector.extract_strided_slice %5 {offsets = [0, 2, 0], sizes = [2, 14, 8], strides = [1, 1, 1]} : vector<2x16x8xf32> to vector<2x14x8xf32>
    %9 = tpu.concatenate %6, %7, %8 in 2 : vector<2x14x8xf32>, vector<2x14x8xf32>, vector<2x14x8xf32> -> vector<2x14x24xf32>
    %c0_7 = arith.constant 0 : index
    %c0_8 = arith.constant 0 : index
    %10 = vector.load %arg3[%c0_7, %c0_8] : memref<24x8xf32, #tpu.memory_space<vmem>>, vector<24x8xf32>
    %cst_9 = arith.constant dense<0.000000e+00> : vector<2x14x8xf32>
    %11 = tpu.matmul %9, %10, %cst_9 {dimension_numbers = #tpu.dot_dimension_numbers<[2], [0], [0, 1], [1], [0, 0, 0, 1, 1, 1], [], []>} : vector<2x14x24xf32>, vector<24x8xf32>, vector<2x14x8xf32> -> vector<2x14x8xf32>
    %c0_10 = arith.constant 0 : index
    %c0_11 = arith.constant 0 : index
    %c0_12 = arith.constant 0 : index
    %12 = vector.load %arg6[%c0_10, %c0_11, %c0_12] : memref<1x1x8xf32, #tpu.memory_space<vmem>>, vector<1x1x8xf32>
    %13 = vector.broadcast %12 : vector<1x1x8xf32> to vector<2x14x8xf32>
    %14 = arith.addf %11, %13 : vector<2x14x8xf32>
    %cst_13 = arith.constant 0.000000e+00 : f32
    %15 = vector.broadcast %cst_13 : f32 to vector<2x14x8xf32>
    %16 = arith.maximumf %14, %15 : vector<2x14x8xf32>
    %17 = vector.extract_strided_slice %5 {offsets = [0, 0, 0], sizes = [2, 13, 8], strides = [1, 1, 1]} : vector<2x16x8xf32> to vector<2x13x8xf32>
    %18 = vector.extract_strided_slice %5 {offsets = [0, 1, 0], sizes = [2, 13, 8], strides = [1, 1, 1]} : vector<2x16x8xf32> to vector<2x13x8xf32>
    %19 = vector.extract_strided_slice %5 {offsets = [0, 2, 0], sizes = [2, 13, 8], strides = [1, 1, 1]} : vector<2x16x8xf32> to vector<2x13x8xf32>
    %20 = vector.extract_strided_slice %5 {offsets = [0, 3, 0], sizes = [2, 13, 8], strides = [1, 1, 1]} : vector<2x16x8xf32> to vector<2x13x8xf32>
    %21 = tpu.concatenate %17, %18, %19, %20 in 2 : vector<2x13x8xf32>, vector<2x13x8xf32>, vector<2x13x8xf32>, vector<2x13x8xf32> -> vector<2x13x32xf32>
    %c0_14 = arith.constant 0 : index
    %c0_15 = arith.constant 0 : index
    %22 = vector.load %arg4[%c0_14, %c0_15] : memref<32x8xf32, #tpu.memory_space<vmem>>, vector<32x8xf32>
    %cst_16 = arith.constant dense<0.000000e+00> : vector<2x13x8xf32>
    %23 = tpu.matmul %21, %22, %cst_16 {dimension_numbers = #tpu.dot_dimension_numbers<[2], [0], [0, 1], [1], [0, 0, 0, 1, 1, 1], [], []>} : vector<2x13x32xf32>, vector<32x8xf32>, vector<2x13x8xf32> -> vector<2x13x8xf32>
    %c0_17 = arith.constant 0 : index
    %c0_18 = arith.constant 0 : index
    %c0_19 = arith.constant 0 : index
    %24 = vector.load %arg7[%c0_17, %c0_18, %c0_19] : memref<1x1x8xf32, #tpu.memory_space<vmem>>, vector<1x1x8xf32>
    %25 = vector.broadcast %24 : vector<1x1x8xf32> to vector<2x13x8xf32>
    %26 = arith.addf %23, %25 : vector<2x13x8xf32>
    %cst_20 = arith.constant 0.000000e+00 : f32
    %27 = vector.broadcast %cst_20 : f32 to vector<2x13x8xf32>
    %28 = arith.maximumf %26, %27 : vector<2x13x8xf32>
    %cst_21 = arith.constant 0.000000e+00 : f32
    %29 = vector.broadcast %cst_21 : f32 to vector<2x1x8xf32>
    %30 = tpu.concatenate %28, %29 in 1 : vector<2x13x8xf32>, vector<2x1x8xf32> -> vector<2x14x8xf32>
    %31 = vector.extract_strided_slice %5 {offsets = [0, 0, 0], sizes = [2, 12, 8], strides = [1, 1, 1]} : vector<2x16x8xf32> to vector<2x12x8xf32>
    %32 = vector.extract_strided_slice %5 {offsets = [0, 1, 0], sizes = [2, 12, 8], strides = [1, 1, 1]} : vector<2x16x8xf32> to vector<2x12x8xf32>
    %33 = vector.extract_strided_slice %5 {offsets = [0, 2, 0], sizes = [2, 12, 8], strides = [1, 1, 1]} : vector<2x16x8xf32> to vector<2x12x8xf32>
    %34 = vector.extract_strided_slice %5 {offsets = [0, 3, 0], sizes = [2, 12, 8], strides = [1, 1, 1]} : vector<2x16x8xf32> to vector<2x12x8xf32>
    %35 = vector.extract_strided_slice %5 {offsets = [0, 4, 0], sizes = [2, 12, 8], strides = [1, 1, 1]} : vector<2x16x8xf32> to vector<2x12x8xf32>
    %36 = tpu.concatenate %31, %32, %33, %34, %35 in 2 : vector<2x12x8xf32>, vector<2x12x8xf32>, vector<2x12x8xf32>, vector<2x12x8xf32>, vector<2x12x8xf32> -> vector<2x12x40xf32>
    %c0_22 = arith.constant 0 : index
    %c0_23 = arith.constant 0 : index
    %37 = vector.load %arg5[%c0_22, %c0_23] : memref<40x8xf32, #tpu.memory_space<vmem>>, vector<40x8xf32>
    %cst_24 = arith.constant dense<0.000000e+00> : vector<2x12x8xf32>
    %38 = tpu.matmul %36, %37, %cst_24 {dimension_numbers = #tpu.dot_dimension_numbers<[2], [0], [0, 1], [1], [0, 0, 0, 1, 1, 1], [], []>} : vector<2x12x40xf32>, vector<40x8xf32>, vector<2x12x8xf32> -> vector<2x12x8xf32>
    %c0_25 = arith.constant 0 : index
    %c0_26 = arith.constant 0 : index
    %c0_27 = arith.constant 0 : index
    %39 = vector.load %arg8[%c0_25, %c0_26, %c0_27] : memref<1x1x8xf32, #tpu.memory_space<vmem>>, vector<1x1x8xf32>
    %40 = vector.broadcast %39 : vector<1x1x8xf32> to vector<2x12x8xf32>
    %41 = arith.addf %38, %40 : vector<2x12x8xf32>
    %cst_28 = arith.constant 0.000000e+00 : f32
    %42 = vector.broadcast %cst_28 : f32 to vector<2x12x8xf32>
    %43 = arith.maximumf %41, %42 : vector<2x12x8xf32>
    %cst_29 = arith.constant 0.000000e+00 : f32
    %44 = vector.broadcast %cst_29 : f32 to vector<2x2x8xf32>
    %45 = tpu.concatenate %43, %44 in 1 : vector<2x12x8xf32>, vector<2x2x8xf32> -> vector<2x14x8xf32>
    %46 = tpu.concatenate %16, %30, %45 in 0 : vector<2x14x8xf32>, vector<2x14x8xf32>, vector<2x14x8xf32> -> vector<6x14x8xf32>
    %c0_30 = arith.constant 0 : index
    %c0_31 = arith.constant 0 : index
    %c0_32 = arith.constant 0 : index
    %47 = vector.load %arg13[%c0_30, %c0_31, %c0_32] : memref<6x12x1xf32, #tpu.memory_space<vmem>>, vector<6x12x1xf32>
    %48 = vector.extract_strided_slice %46 {offsets = [0, 0, 0], sizes = [6, 12, 8], strides = [1, 1, 1]} : vector<6x14x8xf32> to vector<6x12x8xf32>
    %49 = vector.extract_strided_slice %46 {offsets = [0, 1, 0], sizes = [6, 12, 8], strides = [1, 1, 1]} : vector<6x14x8xf32> to vector<6x12x8xf32>
    %50 = vector.extract_strided_slice %46 {offsets = [0, 2, 0], sizes = [6, 12, 8], strides = [1, 1, 1]} : vector<6x14x8xf32> to vector<6x12x8xf32>
    %51 = tpu.concatenate %48, %49, %50 in 2 : vector<6x12x8xf32>, vector<6x12x8xf32>, vector<6x12x8xf32> -> vector<6x12x24xf32>
    %c0_33 = arith.constant 0 : index
    %c0_34 = arith.constant 0 : index
    %52 = vector.load %arg9[%c0_33, %c0_34] : memref<24x8xf32, #tpu.memory_space<vmem>>, vector<24x8xf32>
    %cst_35 = arith.constant dense<0.000000e+00> : vector<6x12x8xf32>
    %53 = tpu.matmul %51, %52, %cst_35 {dimension_numbers = #tpu.dot_dimension_numbers<[2], [0], [0, 1], [1], [0, 0, 0, 1, 1, 1], [], []>} : vector<6x12x24xf32>, vector<24x8xf32>, vector<6x12x8xf32> -> vector<6x12x8xf32>
    %c0_36 = arith.constant 0 : index
    %c0_37 = arith.constant 0 : index
    %c0_38 = arith.constant 0 : index
    %54 = vector.load %arg10[%c0_36, %c0_37, %c0_38] : memref<1x1x8xf32, #tpu.memory_space<vmem>>, vector<1x1x8xf32>
    %55 = vector.broadcast %54 : vector<1x1x8xf32> to vector<6x12x8xf32>
    %56 = arith.addf %53, %55 : vector<6x12x8xf32>
    %cst_39 = arith.constant 0.000000e+00 : f32
    %57 = vector.broadcast %cst_39 : f32 to vector<6x12x8xf32>
    %58 = arith.maximumf %56, %57 : vector<6x12x8xf32>
    %59 = vector.broadcast %47 : vector<6x12x1xf32> to vector<6x12x8xf32>
    %60 = arith.mulf %58, %59 : vector<6x12x8xf32>
    %cst_40 = arith.constant 0.000000e+00 : f32
    %61 = vector.broadcast %cst_40 : f32 to vector<6x1x8xf32>
    %62 = vector.extract_strided_slice %60 {offsets = [0, 0, 0], sizes = [6, 11, 8], strides = [1, 1, 1]} : vector<6x12x8xf32> to vector<6x11x8xf32>
    %63 = tpu.concatenate %61, %62 in 1 : vector<6x1x8xf32>, vector<6x11x8xf32> -> vector<6x12x8xf32>
    %64 = vector.extract_strided_slice %60 {offsets = [0, 1, 0], sizes = [6, 11, 8], strides = [1, 1, 1]} : vector<6x12x8xf32> to vector<6x11x8xf32>
    %65 = tpu.concatenate %64, %61 in 1 : vector<6x11x8xf32>, vector<6x1x8xf32> -> vector<6x12x8xf32>
    %66 = tpu.concatenate %63, %60, %65 in 2 : vector<6x12x8xf32>, vector<6x12x8xf32>, vector<6x12x8xf32> -> vector<6x12x24xf32>
    %c0_41 = arith.constant 0 : index
    %c0_42 = arith.constant 0 : index
    %67 = vector.load %arg11[%c0_41, %c0_42] : memref<24x8xf32, #tpu.memory_space<vmem>>, vector<24x8xf32>
    %cst_43 = arith.constant dense<0.000000e+00> : vector<6x12x8xf32>
    %68 = tpu.matmul %66, %67, %cst_43 {dimension_numbers = #tpu.dot_dimension_numbers<[2], [0], [0, 1], [1], [0, 0, 0, 1, 1, 1], [], []>} : vector<6x12x24xf32>, vector<24x8xf32>, vector<6x12x8xf32> -> vector<6x12x8xf32>
    %c0_44 = arith.constant 0 : index
    %c0_45 = arith.constant 0 : index
    %c0_46 = arith.constant 0 : index
    %69 = vector.load %arg12[%c0_44, %c0_45, %c0_46] : memref<1x1x8xf32, #tpu.memory_space<vmem>>, vector<1x1x8xf32>
    %70 = vector.broadcast %69 : vector<1x1x8xf32> to vector<6x12x8xf32>
    %71 = arith.addf %68, %70 : vector<6x12x8xf32>
    %cst_47 = arith.constant 0.000000e+00 : f32
    %72 = vector.broadcast %cst_47 : f32 to vector<6x12x8xf32>
    %73 = arith.maximumf %71, %72 : vector<6x12x8xf32>
    %cst_48 = arith.constant 0.000000e+00 : f32
    %74 = vector.broadcast %cst_48 : f32 to vector<6x12x1xf32>
    %75 = arith.cmpf ogt, %47, %74 : vector<6x12x1xf32>
    %76 = arith.addf %60, %73 : vector<6x12x8xf32>
    %cst_49 = arith.constant -1.000000e+30 : f32
    %77 = vector.shape_cast %75 : vector<6x12x1xi1> to vector<6x12x1xi1>
    %78 = vector.broadcast %77 : vector<6x12x1xi1> to vector<6x12x8xi1>
    %79 = vector.broadcast %cst_49 : f32 to vector<6x12x8xf32>
    %80 = arith.select %78, %76, %79 : vector<6x12x8xi1>, vector<6x12x8xf32>
    %cst_50 = arith.constant dense<0xFF800000> : vector<6x8xf32>
    %81 = vector.multi_reduction <maximumf>, %80, %cst_50 [1] : vector<6x12x8xf32> to vector<6x8xf32>
    %cst_51 = arith.constant 0.000000e+00 : f32
    %82 = vector.broadcast %cst_51 : f32 to vector<2x2xf32>
    %c0_52 = arith.constant 0 : index
    %c0_53 = arith.constant 0 : index
    %83 = vector.load %arg15[%c0_52, %c0_53] : memref<1x2xf32, #tpu.memory_space<vmem>>, vector<1x2xf32>
    %84 = vector.broadcast %83 : vector<1x2xf32> to vector<2x2xf32>
    %85 = arith.addf %82, %84 : vector<2x2xf32>
    %86 = vector.extract_strided_slice %81 {offsets = [0, 0], sizes = [2, 8], strides = [1, 1]} : vector<6x8xf32> to vector<2x8xf32>
    %c0_54 = arith.constant 0 : index
    %c0_55 = arith.constant 0 : index
    %87 = vector.load %arg14[%c0_54, %c0_55] : memref<24x2xf32, #tpu.memory_space<vmem>>, vector<8x2xf32>
    %cst_56 = arith.constant dense<0.000000e+00> : vector<2x2xf32>
    %88 = tpu.matmul %86, %87, %cst_56 {dimension_numbers = #tpu.dot_dimension_numbers<[1], [0], [0], [1], [0, 0, 1, 1], [], []>} : vector<2x8xf32>, vector<8x2xf32>, vector<2x2xf32> -> vector<2x2xf32>
    %89 = arith.addf %85, %88 : vector<2x2xf32>
    %90 = vector.extract_strided_slice %81 {offsets = [2, 0], sizes = [2, 8], strides = [1, 1]} : vector<6x8xf32> to vector<2x8xf32>
    %c8 = arith.constant 8 : index
    %c0_57 = arith.constant 0 : index
    %91 = vector.load %arg14[%c8, %c0_57] : memref<24x2xf32, #tpu.memory_space<vmem>>, vector<8x2xf32>
    %cst_58 = arith.constant dense<0.000000e+00> : vector<2x2xf32>
    %92 = tpu.matmul %90, %91, %cst_58 {dimension_numbers = #tpu.dot_dimension_numbers<[1], [0], [0], [1], [0, 0, 1, 1], [], []>} : vector<2x8xf32>, vector<8x2xf32>, vector<2x2xf32> -> vector<2x2xf32>
    %93 = arith.addf %89, %92 : vector<2x2xf32>
    %94 = vector.extract_strided_slice %81 {offsets = [4, 0], sizes = [2, 8], strides = [1, 1]} : vector<6x8xf32> to vector<2x8xf32>
    %c16 = arith.constant 16 : index
    %c0_59 = arith.constant 0 : index
    %95 = vector.load %arg14[%c16, %c0_59] : memref<24x2xf32, #tpu.memory_space<vmem>>, vector<8x2xf32>
    %cst_60 = arith.constant dense<0.000000e+00> : vector<2x2xf32>
    %96 = tpu.matmul %94, %95, %cst_60 {dimension_numbers = #tpu.dot_dimension_numbers<[1], [0], [0], [1], [0, 0, 1, 1], [], []>} : vector<2x8xf32>, vector<8x2xf32>, vector<2x2xf32> -> vector<2x2xf32>
    %97 = arith.addf %93, %96 : vector<2x2xf32>
    %c0_61 = arith.constant 0 : index
    %c0_62 = arith.constant 0 : index
    %98 = vector.load %arg16[%c0_61, %c0_62] : memref<2x2xf32, #tpu.memory_space<vmem>>, vector<2x2xf32>
    tpu.vector_store %arg16[%c0_61, %c0_62], %97 {strides = array<i32>} : memref<2x2xf32, #tpu.memory_space<vmem>>, vector<2x2xf32>,
    return
  }
}

</mosaic_0001>

<bundles_post_ra>
// kernel: r_bi_c_forward.3
= control target key start
LH: loop header
LB: loop body
LE: loop exit
PB: predicated region body
PF: predicated region fallthrough
CT: control target
= control target key end

     0   :  { %s5394_s0 = inlined_call_operand.vmem [shape: f32[2,16,64], index: 0, kind: input, shape index: {}]   ;;  %s5395_s1 = inlined_call_operand.vmem [shape: f32[64,8], index: 1, kind: input, shape index: {}]   ;;  %s5396_s2 = inlined_call_operand.vmem [shape: f32[1,1,8], index: 2, kind: input, shape index: {}]   ;;  %s5397_s3 = inlined_call_operand.vmem [shape: f32[24,8], index: 3, kind: input, shape index: {}]   ;;  %s5398_s4 = inlined_call_operand.vmem [shape: f32[32,8], index: 4, kind: input, shape index: {}]   ;;  %s5399_s5 = inlined_call_operand.vmem [shape: f32[40,8], index: 5, kind: input, shape index: {}]   ;;  %s5400_s6 = inlined_call_operand.vmem [shape: f32[1,1,8], index: 6, kind: input, shape index: {}]   ;;  %s5401_s7 = inlined_call_operand.vmem [shape: f32[1,1,8], index: 7, kind: input, shape index: {}]   ;;  %s5402_s8 = inlined_call_operand.vmem [shape: f32[1,1,8], index: 8, kind: input, shape index: {}]   ;;  %s5403_s9 = inlined_call_operand.vmem [shape: f32[24,8], index: 9, kind: input, shape index: {}]   ;;  %s5404_s10 = inlined_call_operand.vmem [shape: f32[1,1,8], index: 10, kind: input, shape index: {}]   ;;  %s5405_s11 = inlined_call_operand.vmem [shape: f32[24,8], index: 11, kind: input, shape index: {}]   ;;  %s5406_s12 = inlined_call_operand.vmem [shape: f32[1,1,8], index: 12, kind: input, shape index: {}]   ;;  %s5407_s13 = inlined_call_operand.vmem [shape: f32[6,12,1], index: 13, kind: input, shape index: {}]   ;;  %s5408_s14 = inlined_call_operand.vmem [shape: f32[24,2], index: 14, kind: input, shape index: {}]   ;;  %s5409_s15 = inlined_call_operand.vmem [shape: f32[1,2], index: 15, kind: input, shape index: {}]   ;;  %s5410_s16 = inlined_call_operand.hbm [shape: f32[2,2], index: 16, kind: output, shape index: {}]  }
   0x1   :  { %5412 = sst [smem:[#allocation5_spill]] %s5394_s0 }
   0x2   :  { %v58_v0 = vld [vmem:[%s5395_s1] sm:$0xff]  ;;  %v59_v1 = vld [vmem:[%s5395_s1 + $0x8] sm:$0xff]  ;;  %v60_v2 = vld [vmem:[%s5395_s1 + $0x10] sm:$0xff]  ;;  %vm73_vm0 = vcmask 523264   ;;  %s5413_s20 = sld [smem:[#allocation5_spill]] }
   0x3   :  { %v4019_v3 = vpack.c.bf16 %v59_v1, %v58_v0  ;;  %v61_v4 = vld [vmem:[%s5395_s1 + $0x18] sm:$0xff]  ;;  %v62_v6 = vld [vmem:[%s5395_s1 + $0x20] sm:$0xff]  ;;  %v63_v7 = vld [vmem:[%s5395_s1 + $0x28] sm:$0xff] }
   0x4   :  { %v4023_v5 = vpack.c.bf16 %v61_v4, %v60_v2 }
   0x5   :  { %4020 = vmatprep.subr.bf16.mxu0 %v4019_v3 }
   0x6   :  { %4022 = vmatpush3.bf16.msra.mxu0 %v4019_v3 }
   0x8   :  { %v54_v8 = vld [vmem:[%s5413_s20] sm:$0xff] }
   0x9   :  { %3887 = vmatprep.mubr.msk.f32.mxu0 %vm73_vm0, %v54_v8 }
   0xa   :  { %21 = vsyncpa [#allocation3], 0  ;;  %4024 = vmatprep.subr.bf16.mxu0 %v4023_v5  ;;  %v4027_v9 = vpack.c.bf16 %v63_v7, %v62_v6  ;;  %v64_v10 = vld [vmem:[%s5395_s1 + $0x30] sm:$0xff]  ;;  %v65_v11 = vld [vmem:[%s5395_s1 + $0x38] sm:$0xff]  ;;  %vm175_vm1 = vcmask 1046528   ;;  %s4103_s17 = smov 8   ;;  %v240_v60 = vlaneseq }
   0xb   :  { %4026 = vmatpush3.bf16.msra.mxu0 %v4023_v5  ;;  %v4031_v12 = vpack.c.bf16 %v65_v11, %v64_v10  ;;  %v55_v13 = vld [vmem:[%s5413_s20 + $0x8] sm:$0xff]  ;;  %v56_v14 = vld [vmem:[%s5413_s20 + $0x10] sm:$0xff]  ;;  %v57_v15 = vld [vmem:[%s5413_s20 + $0x18] sm:$0xff]  ;;  %vm194_vm2 = vcmask 1045504   ;;  %s4104_s21 = smov 16   ;;  %s4105_s22 = smov 24  }
   0xc   :  { %4028 = vmatprep.subr.bf16.mxu0 %v4027_v9  ;;  %v3754_v16 = vld [vmem:[%s5396_s2] ss:$0 sm:$0xff]  ;;  %v224_v31 = vld [vmem:[%s5397_s3 + $0x8] sm:$0xff]  ;;  %vm610_vm3 = vcmask 1044480   ;;  %v225_v45 = vld [vmem:[%s5397_s3 + $0x10] sm:$0xff]  ;;  %vm1685_vm4 = vcmask 1043456  }
   0xd   :  { %v223_v30 = vld [vmem:[%s5397_s3] sm:$0xff]  ;;  %v634_v48 = vld [vmem:[%s5398_s4 + $0x8] sm:$0xff]  ;;  %s4106_s3 = smov 32   ;;  %v4107_v56 = vmov 0.0|0.0   ;;  %vm4108_vm5 = vmmov 0   ;;  %v4109_v57 = vmov 0.0  }
   0xe   :  { %v4035_v34 = vpack.c.bf16 %v224_v31, %v223_v30  ;;  %v633_v47 = vld [vmem:[%s5398_s4] sm:$0xff]  ;;  %v4110_v58 = vmov 1983009808   ;;  %v4305_v62 = vshrl.u32 %v240_v60, 7  ;;  %v4111_v63 = vmov 1966171168  }
   0xf   :  { %4030 = vmatpush3.bf16.msra.mxu0 %v4027_v9  ;;  %v4292_v49 = vpack.c.bf16 %v634_v48, %v633_v47  ;;  %v238_v59 = vunpack.c.l.s4 %v4110_v58  ;;  %v649_v0 = vunpack.c.l.s4 %v4111_v63  ;;  %vm213_vm6 = vcmask 64512  }
  0x10   :  { %4032 = vmatprep.subr.bf16.mxu0 %v4031_v12  ;;  %4036 = vmatprep.subr.bf16.mxu1 %v4035_v34  ;;  %vm218_vm7 = vcmask 130048   ;;  %vm425_vm8 = vcmask 195584   ;;  %vm1160_vm9 = vcmask 261120   ;;  %vm1735_vm10 = vcmask 326656  }
  0x11   :  { %4038 = vmatpush3.bf16.msra.mxu1 %v4035_v34  ;;  %v239_v61 = vunpack.c.0.s8 %v238_v59  ;;  %v650_v4 = vunpack.c.0.s8 %v649_v0  ;;  %vm2992_vm11 = vcmask 1042432  }
  0x12   :  { %3897 = vmatprep.subr.mxu1 %v225_v45 }
  0x13   :  { %4034 = vmatpush3.bf16.msra.mxu0 %v4031_v12  ;;  %v4308_v3 = vsub.s32 %v239_v61, %v4305_v62  ;;  %v4318_v12 = vsub.s32 %v650_v4, %v4305_v62 }
  0x14   :  { %4053 = vmatprep.subr.bf16.mxu0 %v4107_v56 }
  0x15   :  { %3898 = vmatpush3.msra.mxu1 %v225_v45 }
  0x16   :  { %3888 = vmatmul.mubr.msk.f32.vlgmr.msra.gmra.mrb[0].mxu0 %vm73_vm0, %v55_v13  ;;  %4040 = vmatprep.subr.bf16.mxu1 %v4292_v49 }
  0x17   :  { %3890 = vmatprep.mubr.msk.f32.mxu0 %vm73_vm0, %v56_v14 }
  0x1a   :  { %3891 = vmatmul.mubr.msk.f32.gmra.mrb[2].mxu0 %vm73_vm0, %v57_v15 }
  0x1b   :  { %3944 = vmatprep.mubr.msk.f32.mxu0 %vm4108_vm5, %v4109_v57 }
  0xe9   :  { %v3889_v17 = vpop.f32.mrb[0].mxu0 }
  0xea   :  { %v4244_v18 = vadd.f32 %v3889_v17, %v3754_v16  ;;  %v152_v19 = vpop.f32.mrb[1].mxu0 }
  0xeb   :  { %v4246_v20 = vadd.f32 %v3754_v16, %v152_v19 }
  0xec   :  { %v177_v21 = vrot.slane %v4244_v18, 1  ;;  %v196_v28 = vrot.slane %v4244_v18, 2  ;;  %v612_v36 = vrot.slane %v4244_v18, 3  ;;  %v1687_v50 = vrot.slane %v4244_v18, 4 }
  0xed   :  { %v3892_v22 = vpop.f32.mrb[2].mxu0  ;;  %v176_v23 = vrot.slane %v4246_v20, 1  ;;  %v195_v29 = vrot.slane %v4246_v20, 2  ;;  %v611_v38 = vrot.slane %v4246_v20, 3  ;;  %v1686_v51 = vrot.slane %v4246_v20, 4 }
  0xee   :  { %184 = vrot.lane.b32.xlu1 %v177_v21, %s4103_s17  ;;  %v4251_v24 = vadd.f32 %v3892_v22, %v3754_v16  ;;  %v162_v25 = vpop.f32.mrb[3].mxu0 }
  0xef   :  { %v178_v26 = vsel %vm175_vm1, %v176_v23, %v177_v21  ;;  %v4254_v27 = vadd.f32 %v3754_v16, %v162_v25  ;;  %v197_v35 = vsel %vm194_vm2, %v195_v29, %v196_v28  ;;  %v613_v41 = vsel %vm610_vm3, %v611_v38, %v612_v36 }
  0xf0   :  { %182 = vrot.lane.b32.xlu0 %v178_v26, %s4103_s17  ;;  %v180_v33 = vrot.slane %v4251_v24, 1  ;;  %v199_v40 = vrot.slane %v4251_v24, 2  ;;  %v615_v44 = vrot.slane %v4251_v24, 3  ;;  %v1688_v52 = vsel %vm1685_vm4, %v1686_v51, %v1687_v50 }
  0xf1   :  { %v179_v32 = vrot.slane %v4254_v27, 1  ;;  %v198_v39 = vrot.slane %v4254_v27, 2  ;;  %v614_v43 = vrot.slane %v4254_v27, 3  ;;  %v1690_v53 = vrot.slane %v4251_v24, 4 }
  0xf2   :  { %203 = vrot.lane.b32.xlu1 %v196_v28, %s4104_s21  ;;  %v1689_v54 = vrot.slane %v4254_v27, 4 }
  0xf3   :  { %v181_v37 = vsel %vm175_vm1, %v179_v32, %v180_v33  ;;  %v200_v42 = vsel %vm194_vm2, %v198_v39, %v199_v40  ;;  %v616_v46 = vsel %vm610_vm3, %v614_v43, %v615_v44 }
  0xf4   :  { %201 = vrot.lane.b32.xlu0 %v197_v35, %s4104_s21  ;;  %v1691_v55 = vsel %vm1685_vm4, %v1689_v54, %v1690_v53 }
  0xf6   :  { %619 = vrot.lane.b32.xlu1 %v612_v36, %s4105_s22 }
  0xf8   :  { %186 = vrot.lane.b32.xlu0 %v181_v37, %s4103_s17 }
  0xfa   :  { %617 = vrot.lane.b32.xlu1 %v613_v41, %s4105_s22  ;;  %v636_v41 = vld [vmem:[%s5398_s4 + $0x18] sm:$0xff] }
  0xfc   :  { %205 = vrot.lane.b32.xlu0 %v200_v42, %s4104_s21 }
  0xfe   :  { %188 = vrot.lane.b32.xlu1 %v180_v33, %s4103_s17 }
 0x100   :  { %621 = vrot.lane.b32.xlu0 %v616_v46, %s4105_s22 }
 0x102   :  { %623 = vrot.lane.b32.xlu1 %v615_v44, %s4105_s22 }
 0x104   :  { %207 = vrot.lane.b32.xlu0 %v199_v40, %s4104_s21 }
 0x106   :  { %1694 = vrot.lane.b32.xlu1 %v1687_v50, %s4106_s3 }
 0x108   :  { %1692 = vrot.lane.b32.xlu0 %v1688_v52, %s4106_s3 }
 0x10a   :  { %1698 = vrot.lane.b32.xlu1 %v1690_v53, %s4106_s3 }
 0x10c   :  { %1696 = vrot.lane.b32.xlu0 %v1691_v55, %s4106_s3  ;;  %s4115_s3 = smov [#allocation2]  }
 0x160   :  { %v185_v1 = vpop.permute.xlu1 %184 }
 0x161   :  { %v215_v5 = vsel %vm213_vm6, %v4244_v18, %v185_v1 }
 0x162   :  { %v183_v2 = vpop.permute.xlu0 %182 }
 0x163   :  { %v214_v8 = vsel %vm213_vm6, %v4246_v20, %v183_v2 }
 0x164   :  { %v204_v6 = vpop.permute.xlu1 %203 }
 0x165   :  { %v220_v7 = vsel %vm218_vm7, %v215_v5, %v204_v6 }
 0x166   :  { %v260_v9 = vrot.slane %v220_v7, %v4308_v3  ;;  %v202_v10 = vpop.permute.xlu0 %201  ;;  %v253_v23 = vcombine.high %v220_v7, %v220_v7 }
 0x167   :  { %v219_v11 = vsel %vm218_vm7, %v214_v8, %v202_v10 }
 0x168   :  { %v236_v13 = vcombine.high %v219_v11, %v219_v11  ;;  %v620_v14 = vpop.permute.xlu1 %619  ;;  %v243_v15 = vrot.slane %v219_v11, %v4308_v3  ;;  %v268_v17 = vcombine.high %v260_v9, %v260_v9  ;;  %v267_v45 = vrot.slane %v253_v23, %v4308_v3 }
 0x169   :  { %v4322_v16 = vsel %vm425_vm8, %v220_v7, %v620_v14 }
 0x16a   :  { %v187_v18 = vpop.permute.xlu0 %186  ;;  %v250_v19 = vrot.slane %v236_v13, %v4308_v3  ;;  %v696_v20 = vcombine.high %v4322_v16, %v4322_v16  ;;  %v703_v21 = vrot.slane %v4322_v16, %v4318_v12  ;;  %v251_v25 = vcombine.high %v243_v15, %v243_v15 }
 0x16b   :  { %v4332_v29 = vcombine.low %v260_v9, %v268_v17  ;;  %v216_v30 = vsel %vm213_vm6, %v4254_v27, %v187_v18  ;;  %v635_v27 = vld [vmem:[%s5398_s4 + $0x10] sm:$0xff] }
 0x16c   :  { %v618_v22 = vpop.permute.xlu1 %617  ;;  %v711_v26 = vcombine.high %v703_v21, %v703_v21  ;;  %v710_v34 = vrot.slane %v696_v20, %v4318_v12  ;;  %v252_v37 = vcombine.high %v250_v19, %v250_v19  ;;  %v718_v38 = vrot.slane %v703_v21, %v4318_v12 }
 0x16d   :  { %v4330_v28 = vsel %vm425_vm8, %v219_v11, %v618_v22  ;;  %v319_v44 = vcombine.low %v243_v15, %v251_v25  ;;  %v344_v50 = vrot.slane %v4332_v29, %v4308_v3  ;;  %v4356_v54 = vpack.c.bf16 %v636_v41, %v635_v27 }
 0x16e   :  { %v647_v31 = vcombine.high %v4330_v28, %v4330_v28  ;;  %v654_v32 = vrot.slane %v4330_v28, %v4318_v12  ;;  %v206_v33 = vpop.permute.xlu0 %205  ;;  %v732_v35 = vrot.slane %v711_v26, %v4318_v12  ;;  %v725_v51 = vrot.slane %v710_v34, %v4318_v12 }
 0x16f   :  { %v221_v36 = vsel %vm218_vm7, %v216_v30, %v206_v33  ;;  %v320_v53 = vcombine.low %v250_v19, %v252_v37  ;;  %v327_v1 = vrot.slane %v319_v44, %v4308_v3 }
 0x170   :  { %v661_v39 = vrot.slane %v647_v31, %v4318_v12  ;;  %v662_v40 = vcombine.high %v654_v32, %v654_v32  ;;  %v269_v42 = vcombine.high %v221_v36, %v221_v36  ;;  %v276_v43 = vrot.slane %v221_v36, %v4308_v3  ;;  %v189_v52 = vpop.permute.xlu1 %188 }
 0x171   :  { %v921_v46 = vcombine.low %v718_v38, %v732_v35  ;;  %v3767_v47 = vcombine.high %v718_v38, %v732_v35  ;;  %v670_v61 = vrot.slane %v654_v32, %v4318_v12  ;;  %v217_v6 = vsel %vm213_vm6, %v4251_v24, %v189_v52 }
 0x172   :  { %v622_v48 = vpop.permute.xlu0 %621  ;;  %v663_v55 = vcombine.high %v661_v39, %v661_v39  ;;  %v684_v58 = vrot.slane %v662_v40, %v4318_v12  ;;  %v337_v59 = vcombine.low %v267_v45, %v276_v43  ;;  %v283_v63 = vrot.slane %v269_v42, %v4308_v3 }
 0x173   :  { %v4360_v60 = vsel %vm425_vm8, %v221_v36, %v622_v48  ;;  %v4368_v2 = vrot.slane %v921_v46, %v4318_v12  ;;  %v4371_v4 = vrot.slane %v3767_v47, %v4318_v12  ;;  %v677_v5 = vrot.slane %v661_v39, %v4318_v12 }
 0x174   :  { %v735_v0 = vcombine.high %v4360_v60, %v4360_v60  ;;  %v284_v8 = vcombine.high %v276_v43, %v276_v43  ;;  %v742_v9 = vrot.slane %v4360_v60, %v4318_v12  ;;  %v334_v11 = vrot.slane %v320_v53, %v4308_v3  ;;  %v624_v42 = vpop.permute.xlu1 %623 }
 0x175   :  { %v691_v13 = vrot.slane %v663_v55, %v4318_v12  ;;  %v872_v14 = vcombine.low %v670_v61, %v684_v58  ;;  %v351_v15 = vrot.slane %v337_v59, %v4308_v3  ;;  %v285_v20 = vcombine.high %v283_v63, %v283_v63 }
 0x176   :  { %v208_v7 = vpop.permute.xlu0 %207  ;;  %v749_v10 = vrot.slane %v735_v0, %v4318_v12  ;;  %v750_v18 = vcombine.high %v742_v9, %v742_v9  ;;  %v758_v24 = vrot.slane %v742_v9, %v4318_v12  ;;  %v335_v22 = vcombine.low %v327_v1, %v334_v11 }
 0x177   :  { %v222_v17 = vsel %vm218_vm7, %v217_v6, %v208_v7  ;;  %v953_v26 = vcombine.low %v4368_v2, %v4371_v4  ;;  %v3765_v29 = vcombine.high %v670_v61, %v684_v58  ;;  %v353_v32 = vcombine.low %v284_v8, %v283_v63 }
 0x178   :  { %v751_v19 = vcombine.high %v749_v10, %v749_v10  ;;  %v765_v21 = vrot.slane %v749_v10, %v4318_v12  ;;  %v286_v23 = vcombine.high %v222_v17, %v222_v17  ;;  %v293_v25 = vrot.slane %v222_v17, %v4308_v3  ;;  %3899 = vmatprep.mubr.msk.f32.mxu1 %vm425_vm8, %v335_v22 }
 0x179   :  { %v772_v30 = vrot.slane %v750_v18, %v4318_v12  ;;  %v780_v31 = vcombine.high %v758_v24, %v758_v24  ;;  %v923_v34 = vcombine.low %v725_v51, %v758_v24  ;;  %v874_v40 = vcombine.low %v677_v5, %v691_v13 }
 0x17a   :  { %v779_v33 = vrot.slane %v751_v19, %v4318_v12  ;;  %v354_v35 = vcombine.low %v285_v20, %v293_v25  ;;  %v300_v38 = vrot.slane %v286_v23, %v4308_v3  ;;  %v301_v39 = vcombine.high %v293_v25, %v293_v25 }
 0x17b   :  { %v782_v36 = vcombine.high %v772_v30, %v772_v30  ;;  %v924_v37 = vcombine.low %v772_v30, %v780_v31  ;;  %v3766_v27 = vcombine.high %v677_v5, %v691_v13  ;;  %v781_v41 = vcombine.high %v765_v21, %v765_v21 }
 0x17c   :  { %v352_v43 = vcombine.low %v344_v50, %v351_v15  ;;  %v945_v44 = vrot.slane %v923_v34, %v4318_v12  ;;  %v368_v46 = vrot.slane %v354_v35, %v4308_v3  ;;  %v4396_v47 = vsel %vm425_vm8, %v222_v17, %v624_v42  ;;  %v1693_v34 = vpop.permute.xlu0 %1692 }
 0x17d   :  { %v952_v45 = vrot.slane %v924_v37, %v4318_v12  ;;  %v783_v48 = vcombine.high %v779_v33, %v779_v33  ;;  %v970_v51 = vcombine.low %v782_v36, %v765_v21  ;;  %v784_v52 = vcombine.high %v4396_v47, %v4396_v47  ;;  %v1708_v21 = vld [vmem:[%s5399_s5] sm:$0xff]  ;;  %v1710_v37 = vld [vmem:[%s5399_s5 + $0x10] sm:$0xff] }
 0x17e   :  { %3900 = vmatmul.mubr.msk.f32.vlgmr.msra.gmra.mrb[0].mxu1 %vm425_vm8, %v352_v43  ;;  %v791_v53 = vrot.slane %v4396_v47, %v4318_v12  ;;  %v882_v50 = vrot.slane %v872_v14, %v4318_v12  ;;  %v370_v58 = vcombine.low %v301_v39, %v300_v38  ;;  %v361_v59 = vrot.slane %v353_v32, %v4308_v3  ;;  %v1711_v38 = vld [vmem:[%s5399_s5 + $0x18] sm:$0xff] }
 0x17f   :  { %v954_v55 = vcombine.low %v945_v44, %v952_v45  ;;  %4042 = vmatpush3.bf16.msra.mxu1 %v4292_v49  ;;  %v889_v61 = vrot.slane %v3765_v29, %v4318_v12  ;;  %v798_v63 = vrot.slane %v784_v52, %v4318_v12  ;;  %v896_v2 = vrot.slane %v874_v40, %v4318_v12  ;;  %v1695_v44 = vpop.permute.xlu1 %1694 }
 0x180   :  { %v799_v0 = vcombine.high %v791_v53, %v791_v53  ;;  %v806_v1 = vrot.slane %v791_v53, %v4318_v12  ;;  %4044 = vmatprep.subr.bf16.mxu1 %v4356_v54  ;;  %v903_v4 = vrot.slane %v3766_v27, %v4318_v12  ;;  %v971_v5 = vcombine.low %v779_v33, %v781_v41  ;;  %v1697_v45 = vpop.permute.xlu0 %1696 }
 0x181   :  { %v369_v6 = vcombine.low %v361_v59, %v368_v46  ;;  %v980_v7 = vrot.slane %v970_v51, %v4318_v12  ;;  %v968_v10 = vrot.slane %v954_v55, %v4318_v12  ;;  %v813_v11 = vrot.slane %v798_v63, %v4318_v12 }
 0x182   :  { %v820_v49 = vrot.slane %v799_v0, %v4318_v12  ;;  %v821_v8 = vcombine.high %v806_v1, %v806_v1  ;;  %v972_v9 = vcombine.low %v783_v48, %v806_v1  ;;  %v377_v13 = vrot.slane %v370_v58, %v4308_v3  ;;  %v3759_v58 = vld [vmem:[%s5400_s6] ss:$0 sm:$0xff]  ;;  %s3746_s6 = sshll.u32 %s4115_s3, 4  ;;  %s3747_s6 = int_to_ptr.vmem [resolvable:$true] %s3746_s6 }
 0x183   :  { %3902 = vmatprep.mubr.msk.f32.mxu1 %vm425_vm8, %v369_v6  ;;  %4046 = vmatpush3.bf16.msra.mxu1 %v4356_v54  ;;  %v904_v18 = vcombine.low %v882_v50, %v889_v61  ;;  %v905_v19 = vcombine.low %v896_v2, %v903_v4  ;;  %v987_v24 = vrot.slane %v971_v5, %v4318_v12  ;;  %v1709_v54 = vld [vmem:[%s5399_s5 + $0x8] sm:$0xff]  ;;  %v1699_v52 = vpop.permute.xlu1 %1698  ;;  %p4084_p1 = scmp.lt.s32.totalorder %s3747_s6, %s3747_s6 }
 0x184   :  { %v822_v14 = vcombine.high %v820_v49, %v820_v49  ;;  %v973_v15 = vcombine.low %v820_v49, %v821_v8  ;;  %v994_v17 = vrot.slane %v972_v9, %v4318_v12  ;;  %4047 = vmatprep.subr.bf16.mxu1 %v4107_v56  ;;  %3903 = vmatmul.mubr.msk.f32.gmra.mrb[2].mxu1 %vm425_vm8, %v377_v13 }
 0x185   :  { %v961_v20 = vrot.slane %v953_v26, %v4318_v12  ;;  %v912_v25 = vrot.slane %v904_v18, %v4318_v12  ;;  %v919_v29 = vrot.slane %v905_v19, %v4318_v12  ;;  %v1002_v30 = vcombine.low %v980_v7, %v987_v24 }
 0x186   :  { %v1001_v22 = vrot.slane %v973_v15, %v4318_v12  ;;  %v1019_v23 = vcombine.low %v822_v14, %v813_v11  ;;  %v4048_v26 = vpack.c.bf16 %v1709_v54, %v1708_v21  ;;  %v1704_v27 = vsel %vm1160_vm9, %v4330_v28, %v1693_v34  ;;  %v1712_v28 = vld [vmem:[%s5399_s5 + $0x20] sm:$0xff] }
 0x187   :  { %v969_v31 = vcombine.low %v961_v20, %v968_v10  ;;  %v920_v33 = vcombine.low %v912_v25, %v919_v29  ;;  %v1010_v35 = vrot.slane %v1002_v30, %v4318_v12  ;;  %v4051_v41 = vpack.c.bf16 %v1711_v38, %v1710_v37 }
 0x188   :  { %v1003_v32 = vcombine.low %v994_v17, %v1001_v22  ;;  %v1026_v39 = vrot.slane %v1019_v23, %v4318_v12  ;;  %v1723_v43 = vcombine.high %v1704_v27, %v1704_v27  ;;  %v1706_v48 = vsel %vm1160_vm9, %v4360_v60, %v1697_v45 }
 0x189   :  { %3913 = vmatprep.mubr.msk.f32.mxu1 %vm1160_vm9, %v920_v33  ;;  %v1705_v51 = vsel %vm1160_vm9, %v4322_v16, %v1695_v44  ;;  %v1724_v53 = vcombine.high %v1706_v48, %v1706_v48  ;;  %v1707_v55 = vsel %vm1160_vm9, %v4396_v47, %v1699_v52  ;;  %v302_v61 = vcombine.high %v3759_v58, %v3759_v58 }
 0x18a   :  { %v1017_v36 = vrot.slane %v1003_v32, %v4318_v12  ;;  %3914 = vmatmul.mubr.msk.f32.vlgmr.msra.gmra.mrb[4].mxu1 %vm1160_vm9, %v969_v31  ;;  %v1033_v42 = vrot.slane %v1026_v39, %v4318_v12  ;;  %v1726_v46 = vcombine.low %v1704_v27, %v1723_v43  ;;  %v1727_v50 = vcombine.low %v1705_v51, %v1706_v48 }
 0x18b   :  { %4049 = vmatpush3.bf16.msra.mxu1 %v4048_v26  ;;  %v1728_v60 = vcombine.low %v1724_v53, %v1707_v55  ;;  %v309_v1 = vrot.slane %v3759_v58, %v4308_v3  ;;  %v316_v4 = vrot.slane %v302_v61, %v4308_v3 }
 0x18c   :  { %v1018_v40 = vcombine.low %v1010_v35, %v1017_v36  ;;  %4050 = vmatprep.subr.bf16.mxu1 %v4107_v56 }
 0x18d   :  { %v317_v49 = vcombine.high %v309_v1, %v309_v1  ;;  %v318_v9 = vcombine.high %v316_v4, %v316_v4  ;;  %v395_v19 = vcombine.low %v316_v4, %v309_v1 }
 0x18e   :  { %3916 = vmatprep.mubr.msk.f32.mxu1 %vm1160_vm9, %v1018_v40 }
 0x18f   :  { %3917 = vmatmul.mubr.msk.f32.gmra.mrb[6].mxu1 %vm1160_vm9, %v1033_v42  ;;  %v378_v15 = vcombine.low %v309_v1, %v317_v49  ;;  %v379_v54 = vcombine.low %v316_v4, %v318_v9  ;;  %v402_v33 = vrot.slane %v395_v19, %v4308_v3  ;;  %v404_v37 = vcombine.low %v317_v49, %v316_v4 }
 0x190   :  { %4052 = vmatpush3.bf16.msra.mxu1 %v4051_v41  ;;  %3929 = vmatprep.mubr.msk.f32.mxu1 %vm4108_vm5, %v4109_v57  ;;  %v405_v38 = vcombine.low %v318_v9, %v309_v1 }
 0x191   :  { %3927 = vmatprep.subr.mxu1 %v4109_v57  ;;  %v386_v30 = vrot.slane %v378_v15, %v4308_v3  ;;  %v393_v36 = vrot.slane %v379_v54, %v4308_v3 }
 0x193   :  { %v403_v41 = vcombine.low %v386_v30, %v402_v33  ;;  %v394_v45 = vcombine.low %v386_v30, %v393_v36 }
 0x194   :  { %3928 = vmatpush3.msra.mxu1 %v1712_v28  ;;  %v412_v28 = vrot.slane %v404_v37, %v4308_v3 }
 0x195   :  { %3930 = vmatmul.mubr.msk.f32.vlgmr.msra.gmra.mrb[8].mxu1 %vm1735_vm10, %v1726_v46  ;;  %4056 = vmatprep.subr.bf16.mxu1 %v4107_v56  ;;  %v3764_v56 = vld [vmem:[%s5401_s7] ss:$0 sm:$0xff]  ;;  %v419_v46 = vrot.slane %v405_v38, %v4308_v3  ;;  %s4079_s7 = scalar_lea.vmem %s3747_s6, 32 }
 0x196   :  { %3932 = vmatprep.mubr.msk.f32.mxu1 %vm4108_vm5, %v4109_v57  ;;  %v823_v16 = vcombine.high %v3764_v56, %v3764_v56  ;;  %v830_v59 = vrot.slane %v3764_v56, %v4318_v12  ;;  %p4080_p0 = scmp.ne.s32.totalorder %s3747_s6, %s4079_s7  ;;  %p4085_p2 = scmp.lt.s32.totalorder %s4079_s7, %s4079_s7 }
 0x198   :  { %v837_v47 = vrot.slane %v823_v16, %v4318_v12  ;;  %v838_v63 = vcombine.high %v830_v59, %v830_v59  ;;  %v846_v0 = vrot.slane %v830_v59, %v4318_v12  ;;  %p4086_p3 = por %p4085_p2, %p4084_p1 }
 0x199   :  { %3933 = vmatmul.mubr.msk.f32.gmra.mrb[10].mxu1 %vm1735_vm10, %v1727_v50 }
 0x19a   :  { %3935 = vmatprep.mubr.msk.f32.mxu1 %vm4108_vm5, %v4109_v57  ;;  %v839_v2 = vcombine.high %v837_v47, %v837_v47  ;;  %v853_v5 = vrot.slane %v837_v47, %v4318_v12  ;;  %v860_v6 = vrot.slane %v838_v63, %v4318_v12  ;;  %v868_v7 = vcombine.high %v846_v0, %v846_v0  ;;  %v4515_v63 = vld [vmem:[%s5402_s8] ss:$0 sm:$0xff]  ;;  %p4087_p4 = pnand %p4086_p3, %p4080_p0 }
 0x19b   :  { %v420_v47 = vcombine.low %v412_v28, %v419_v46  ;;  %v1730_v36 = vcombine.low %v4515_v63, %v4515_v63 }
 0x19c   :  { %v867_v8 = vrot.slane %v839_v2, %v4318_v12  ;;  %v1034_v10 = vcombine.low %v846_v0, %v860_v6  ;;  %v3768_v11 = vcombine.high %v846_v0, %v860_v6  ;;  %v1083_v13 = vcombine.low %v853_v5, %v846_v0 }
 0x19d   :  { %3936 = vmatmul.mubr.msk.f32.gmra.mrb[12].mxu1 %vm1735_vm10, %v1728_v60  ;;  %v1084_v14 = vcombine.low %v860_v6, %v868_v7  ;;  %v870_v24 = vcombine.high %v860_v6, %v860_v6  ;;  %v869_v20 = vcombine.high %v853_v5, %v853_v5 }
 0x19e   :  { %3977 = vmatprep.mubr.msk.f32.mxu1 %vm4108_vm5, %v4109_v57  ;;  %v1036_v17 = vcombine.low %v853_v5, %v867_v8  ;;  %v3769_v18 = vcombine.high %v853_v5, %v867_v8  ;;  %v871_v21 = vcombine.high %v867_v8, %v867_v8  ;;  %v1044_v22 = vrot.slane %v1034_v10, %v4318_v12 }
 0x19f   :  { %v1051_v23 = vrot.slane %v3768_v11, %v4318_v12  ;;  %v1091_v25 = vrot.slane %v1083_v13, %v4318_v12  ;;  %v1098_v29 = vrot.slane %v1084_v14, %v4318_v12  ;;  %v1108_v26 = vcombine.low %v870_v24, %v853_v5 }
 0x1a0   :  { %v1058_v31 = vrot.slane %v1036_v17, %v4318_v12  ;;  %v1065_v32 = vrot.slane %v3769_v18, %v4318_v12  ;;  %v1109_v34 = vcombine.low %v867_v8, %v869_v20  ;;  %v1110_v35 = vcombine.low %v871_v21, %v846_v0 }
 0x1a1   :  { %v1066_v39 = vcombine.low %v1044_v22, %v1051_v23  ;;  %v1099_v40 = vcombine.low %v1091_v25, %v1098_v29  ;;  %v4493_v42 = vrot.slane %v1108_v26, %v4318_v12  ;;  %v4528_v11 = vcombine.high %v4515_v63, %v4515_v63 }
 0x1a2   :  { %v1067_v27 = vcombine.low %v1058_v31, %v1065_v32  ;;  %v1124_v43 = vrot.slane %v1109_v34, %v4318_v12  ;;  %v1131_v44 = vrot.slane %v1110_v35, %v4318_v12 }
 0x1a3   :  { %v4500_v48 = vrot.slane %v1066_v39, %v4318_v12  ;;  %v4503_v51 = vrot.slane %v1099_v40, %v4318_v12  ;;  %v1155_v4 = vrot.slane %v4493_v42, %v4318_v12  ;;  %v1729_v33 = vcombine.low %v4515_v63, %v4528_v11 }
 0x1a4   :  { %v4506_v53 = vrot.slane %v1067_v27, %v4318_v12  ;;  %v1132_v60 = vcombine.low %v4493_v42, %v1124_v43  ;;  %v1133_v56 = vcombine.low %v1131_v44, %v1098_v29 }
 0x1a5   :  { %v1107_v61 = vcombine.low %v4500_v48, %v4503_v51 }
 0x1a6   :  { %v1082_v2 = vcombine.low %v4500_v48, %v4506_v53  ;;  %v1140_v7 = vrot.slane %v1132_v60, %v4318_v12  ;;  %v1147_v49 = vrot.slane %v1133_v56, %v4318_v12 }
 0x1a8   :  { %v4530_v29 = vcombine.low %v1140_v7, %v1147_v49 }
 0x251   :  { %v3901_v52 = vpop.f32.mrb[0].mxu1 }
 0x252   :  { %v506_v50 = vadd.f32 %v3901_v52, %v403_v41  ;;  %v500_v55 = vpop.f32.mrb[1].mxu1 }
 0x253   :  { %v501_v16 = vadd.f32 %v500_v55, %v394_v45 }
 0x254   :  { %v540_v58 = vcombine.high %v506_v50, %v506_v50  ;;  %v547_v59 = vrot.slane %v506_v50, %v4308_v3 }
 0x255   :  { %v523_v0 = vcombine.high %v501_v16, %v501_v16  ;;  %v530_v1 = vrot.slane %v501_v16, %v4308_v3 }
 0x256   :  { %v554_v5 = vrot.slane %v540_v58, %v4308_v3  ;;  %v555_v6 = vcombine.high %v547_v59, %v547_v59  ;;  %v600_v8 = vmax.f32 %v547_v59, 0.0  ;;  %v1731_v59 = vcombine.low %v4528_v11, %v4515_v63 }
 0x257   :  { %v537_v9 = vrot.slane %v523_v0, %v4308_v3  ;;  %v538_v10 = vcombine.high %v530_v1, %v530_v1  ;;  %v596_v17 = vmax.f32 %v530_v1, 0.0  ;;  %v3904_v18 = vpop.f32.mrb[2].mxu1 }
 0x258   :  { %v556_v13 = vcombine.high %v554_v5, %v554_v5  ;;  %v601_v14 = vmax.f32 %v555_v6, 0.0  ;;  %v602_v15 = vmax.f32 %v554_v5, 0.0  ;;  %v516_v21 = vadd.f32 %v3904_v18, %v412_v28  ;;  %v510_v54 = vpop.f32.mrb[3].mxu1 }
 0x259   :  { %v539_v19 = vcombine.high %v537_v9, %v537_v9  ;;  %v597_v24 = vmax.f32 %v538_v10, 0.0  ;;  %v598_v20 = vmax.f32 %v537_v9, 0.0  ;;  %v511_v23 = vadd.f32 %v510_v54, %v420_v47 }
 0x25a   :  { %v2022_v22 = vcombine.low %v600_v8, %v601_v14  ;;  %v2288_v25 = vcombine.low %v601_v14, %v602_v15  ;;  %v4533_v32 = vrot.slane %v516_v21, %v4308_v3  ;;  %v603_v37 = vmax.f32 %v556_v13, 0.0 }
 0x25b   :  { %v599_v30 = vmax.f32 %v539_v19, 0.0  ;;  %v2005_v31 = vcombine.low %v596_v17, %v597_v24  ;;  %v557_v26 = vcombine.high %v511_v23, %v511_v23  ;;  %v564_v34 = vrot.slane %v511_v23, %v4308_v3 }
 0x25c   :  { %v2295_v35 = vrot.slane %v2288_v25, %v4308_v3  ;;  %v4541_v39 = vcombine.low %v597_v24, %v598_v20  ;;  %v4544_v40 = vrot.slane %v2022_v22, %v4308_v3  ;;  %v581_v27 = vcombine.high %v4533_v32, %v4533_v32 }
 0x25d   :  { %v2006_v38 = vcombine.low %v598_v20, %v599_v30  ;;  %v4549_v41 = vrot.slane %v557_v26, %v4308_v3  ;;  %v572_v43 = vcombine.high %v564_v34, %v564_v34  ;;  %v604_v44 = vmax.f32 %v564_v34, 0.0  ;;  %v3915_v28 = vpop.f32.mrb[4].mxu1 }
 0x25e   :  { %2423 = vrot.lane.b32.xlu0 %v2295_v35, %s4104_s21  ;;  %v2013_v45 = vrot.slane %v2005_v31, %v4308_v3  ;;  %v2175_v46 = vrot.slane %v602_v15, %v4308_v3  ;;  %v4555_v51 = vcombine.low %v599_v30, %v600_v8  ;;  %v1235_v60 = vpop.f32.mrb[5].mxu1  ;;  %v1241_v56 = vadd.f32 %v3915_v28, %v1107_v61 }
 0x25f   :  { %v2020_v48 = vrot.slane %v2006_v38, %v4308_v3  ;;  %v573_v52 = vcombine.high %v4549_v41, %v4549_v41  ;;  %v605_v53 = vmax.f32 %v572_v43, 0.0  ;;  %v606_v50 = vmax.f32 %v4549_v41, 0.0 }
 0x260   :  { %v4560_v55 = vcombine.low %v603_v37, %v604_v44  ;;  %v1236_v16 = vadd.f32 %v1235_v60, %v1082_v2  ;;  %v2176_v58 = vcombine.low %v4544_v40, %v2175_v46  ;;  %v608_v47 = vmax.f32 %v4533_v32, 0.0 }
 0x261   :  { %v4566_v0 = vmax.f32 %v581_v27, 0.0  ;;  %v4568_v1 = vcombine.low %v2013_v45, %v2020_v48  ;;  %v2279_v5 = vrot.slane %v4541_v39, %v4308_v3  ;;  %v1307_v6 = vcombine.high %v1241_v56, %v1241_v56 }
 0x262   :  { %v1314_v7 = vrot.slane %v1241_v56, %v4318_v12  ;;  %v1258_v49 = vcombine.high %v1236_v16, %v1236_v16  ;;  %v1265_v61 = vrot.slane %v1236_v16, %v4318_v12  ;;  %v3918_v2 = vpop.f32.mrb[6].mxu1  ;;  %v4574_v8 = vmax.f32 %v573_v52, 0.0 }
 0x263   :  { %v4578_v9 = vcombine.low %v605_v53, %v606_v50  ;;  %v2038_v10 = vrot.slane %v4560_v55, %v4308_v3  ;;  %v4582_v13 = vrot.slane %v2176_v58, 1  ;;  %v1245_v14 = vpop.f32.mrb[7].mxu1  ;;  %v1321_v15 = vrot.slane %v1307_v6, %v4318_v12 }
 0x264   :  { %v1322_v17 = vcombine.high %v1314_v7, %v1314_v7  ;;  %v1330_v18 = vrot.slane %v1314_v7, %v4318_v12  ;;  %v1272_v19 = vrot.slane %v1258_v49, %v4318_v12  ;;  %v4587_v24 = vcombine.low %v604_v44, %v605_v53 }
 0x265   :  { %v1273_v20 = vcombine.high %v1265_v61, %v1265_v61  ;;  %v1281_v21 = vrot.slane %v1265_v61, %v4318_v12  ;;  %2237 = vrot.lane.b32.xlu0 %v4582_v13, %s4103_s17  ;;  %v1251_v54 = vadd.f32 %v3918_v2, %v1155_v4  ;;  %v1323_v22 = vcombine.high %v1321_v15, %v1321_v15 }
 0x266   :  { %v1337_v23 = vrot.slane %v1321_v15, %v4318_v12  ;;  %v1344_v25 = vrot.slane %v1322_v17, %v4318_v12  ;;  %v1352_v30 = vcombine.high %v1330_v18, %v1330_v18  ;;  %v1274_v31 = vcombine.high %v1272_v19, %v1272_v19 }
 0x267   :  { %v1288_v26 = vrot.slane %v1272_v19, %v4318_v12  ;;  %v1295_v34 = vrot.slane %v1273_v20, %v4318_v12  ;;  %v2217_v35 = vrot.slane %v4568_v1, 1  ;;  %v4601_v37 = vrot.slane %v1323_v22, %v4318_v12 }
 0x268   :  { %v1353_v38 = vcombine.high %v1337_v23, %v1337_v23  ;;  %v1354_v27 = vcombine.high %v1344_v25, %v1344_v25  ;;  %v1462_v42 = vmax.f32 %v1344_v25, 0.0  ;;  %v4603_v4 = vpop.f32.mrb[8].mxu1  ;;  %v1461_v43 = vmax.f32 %v1330_v18, 0.0 }
 0x269   :  { %v1463_v44 = vmax.f32 %v1352_v30, 0.0  ;;  %v1465_v45 = vmax.f32 %v1337_v23, 0.0  ;;  %v1302_v28 = vrot.slane %v1274_v31, %v4318_v12  ;;  %v3931_v46 = vpop.f32.mrb[9].mxu1  ;;  %v1466_v52 = vmax.f32 %v4601_v37, 0.0 }
 0x26a   :  { %v1464_v48 = vmax.f32 %v1354_v27, 0.0  ;;  %v1467_v53 = vmax.f32 %v1353_v38, 0.0  ;;  %v1303_v60 = vcombine.high %v1281_v21, %v1281_v21  ;;  %v1554_v56 = vcombine.low %v1461_v43, %v1462_v42 }
 0x26b   :  { %v1304_v16 = vcombine.high %v1288_v26, %v1288_v26  ;;  %v1305_v58 = vcombine.high %v1295_v34, %v1295_v34  ;;  %v1411_v6 = vrot.slane %v1251_v54, %v4318_v12  ;;  %v4609_v49 = vrot.slane %v1465_v45, %v4318_v12 }
 0x26c   :  { %v1555_v7 = vcombine.low %v1463_v44, %v1464_v48  ;;  %v1306_v61 = vcombine.high %v1302_v28, %v1302_v28  ;;  %v1246_v2 = vadd.f32 %v1245_v14, %v4530_v29  ;;  %v4612_v15 = vpop.f32.mrb[10].mxu1  ;;  %v1562_v17 = vrot.slane %v1554_v56, %v4318_v12 }
 0x26d   :  { %v4615_v18 = vcombine.low %v1466_v52, %v1467_v53  ;;  %v1453_v19 = vmax.f32 %v1281_v21, 0.0  ;;  %v1454_v20 = vmax.f32 %v1295_v34, 0.0  ;;  %v3934_v22 = vpop.f32.mrb[11].mxu1  ;;  %v1455_v25 = vmax.f32 %v1303_v60, 0.0 }
 0x26e   :  { %v1569_v23 = vrot.slane %v1555_v7, %v4318_v12  ;;  %v1456_v54 = vmax.f32 %v1305_v58, 0.0  ;;  %v1457_v30 = vmax.f32 %v1288_v26, 0.0  ;;  %v1458_v31 = vmax.f32 %v1302_v28, 0.0 }
 0x26f   :  { %v1459_v38 = vmax.f32 %v1304_v16, 0.0  ;;  %v1460_v27 = vmax.f32 %v1306_v61, 0.0  ;;  %v1505_v42 = vcombine.low %v1453_v19, %v1454_v20  ;;  %v1412_v14 = vcombine.high %v1411_v6, %v1411_v6 }
 0x270   :  { %v4618_v43 = vcombine.low %v1562_v17, %v1569_v23  ;;  %v1506_v29 = vcombine.low %v1455_v25, %v1456_v54  ;;  %v1419_v44 = vrot.slane %v1411_v6, %v4318_v12  ;;  %v4621_v45 = vpop.f32.mrb[12].mxu1  ;;  %v2045_v21 = vrot.slane %v4578_v9, %v4308_v3 }
 0x271   :  { %v4625_v34 = vcombine.low %v1457_v30, %v1458_v31  ;;  %v1508_v46 = vcombine.low %v1459_v38, %v1460_v27  ;;  %v1356_v48 = vcombine.high %v1246_v2, %v1246_v2  ;;  %v3937_v26 = vpop.f32.mrb[13].mxu1  ;;  %v1355_v28 = vcombine.high %v4601_v37, %v4601_v37 }
 0x272   :  { %v1591_v52 = vrot.slane %v4609_v49, %v4318_v12  ;;  %v1603_v53 = vrot.slane %v4615_v18, %v4318_v12  ;;  %v1522_v60 = vrot.slane %v1506_v29, %v4318_v12  ;;  %v1584_v56 = vrot.slane %v4618_v43, %v4318_v12 }
 0x273   :  { %v1515_v16 = vrot.slane %v1505_v42, %v4318_v12  ;;  %v1363_v58 = vrot.slane %v1246_v2, %v4318_v12  ;;  %v1370_v6 = vrot.slane %v1356_v48, %v4318_v12  ;;  %v1529_v37 = vrot.slane %v4625_v34, %v4318_v12 }
 0x274   :  { %v1426_v7 = vrot.slane %v1412_v14, %v4318_v12  ;;  %v1477_v61 = vmax.f32 %v1419_v44, 0.0  ;;  %v2219_v17 = vsel %vm175_vm1, %v2217_v35, %v4582_v13  ;;  %v1536_v18 = vrot.slane %v1508_v46, %v4318_v12 }
 0x275   :  { %v1371_v19 = vcombine.high %v1363_v58, %v1363_v58  ;;  %v1372_v20 = vcombine.high %v1370_v6, %v1370_v6  ;;  %v1379_v22 = vrot.slane %v1363_v58, %v4318_v12  ;;  %2235 = vrot.lane.b32.xlu0 %v2219_v17, %s4103_s17  ;;  %v4647_v2 = vcombine.low %v1515_v16, %v1522_v60 }
 0x276   :  { %v1386_v23 = vrot.slane %v1370_v6, %v4318_v12  ;;  %v1468_v25 = vmax.f32 %v1355_v28, 0.0  ;;  %v2313_v54 = vcombine.low %v608_v47, %v4566_v0  ;;  %v1478_v38 = vmax.f32 %v1426_v7, 0.0 }
 0x277   :  { %v1393_v30 = vrot.slane %v1371_v19, %v4318_v12  ;;  %v1400_v13 = vrot.slane %v1372_v20, %v4318_v12  ;;  %v1401_v35 = vcombine.high %v1379_v22, %v1379_v22  ;;  %v1469_v31 = vmax.f32 %v1379_v22, 0.0 }
 0x278   :  { %v1402_v27 = vcombine.high %v1386_v23, %v1386_v23  ;;  %v1473_v42 = vmax.f32 %v1386_v23, 0.0  ;;  %v2320_v29 = vrot.slane %v2313_v54, %v4308_v3  ;;  %v1809_v60 = vadd.f32 %v4603_v4, %v1729_v33 }
 0x279   :  { %v1403_v14 = vcombine.high %v1393_v30, %v1393_v30  ;;  %v1404_v44 = vcombine.high %v1400_v13, %v1400_v13  ;;  %v1470_v34 = vmax.f32 %v1393_v30, 0.0  ;;  %v1471_v46 = vmax.f32 %v1401_v35, 0.0 }
 0x27a   :  { %v1474_v48 = vmax.f32 %v1400_v13, 0.0  ;;  %v1475_v26 = vmax.f32 %v1402_v27, 0.0  ;;  %v1594_v28 = vcombine.low %v1468_v25, %v1469_v31  ;;  %2427 = vrot.lane.b32.xlu1 %v2320_v29, %s4104_s21  ;;  %v2286_v7 = vrot.slane %v4555_v51, %v4308_v3 }
 0x27b   :  { %v1472_v16 = vmax.f32 %v1403_v14, 0.0  ;;  %v1476_v58 = vmax.f32 %v1404_v44, 0.0  ;;  %v1595_v6 = vcombine.low %v1470_v34, %v1471_v46  ;;  %v4664_v17 = vrot.slane %v1478_v38, %v4318_v12 }
 0x27c   :  { %v1610_v19 = vrot.slane %v1594_v28, %v4318_v12  ;;  %v1642_v20 = vcombine.low %v1474_v48, %v1475_v26  ;;  %v1825_v22 = vcombine.high %v1809_v60, %v1809_v60  ;;  %v1831_v54 = vmax.f32 %v1809_v60, 0.0 }
 0x27d   :  { %v1596_v23 = vcombine.low %v1472_v16, %v1473_v42  ;;  %v1643_v25 = vcombine.low %v1476_v58, %v1477_v61  ;;  %v2287_v33 = vcombine.low %v2279_v5, %v2286_v7  ;;  %v1617_v4 = vrot.slane %v1595_v6, %v4318_v12 }
 0x27e   :  { %v1625_v30 = vcombine.low %v1603_v53, %v1610_v19  ;;  %v1832_v13 = vmax.f32 %v1825_v22, 0.0  ;;  %v1814_v51 = vadd.f32 %v4612_v15, %v1730_v36  ;;  %v1650_v31 = vrot.slane %v1642_v20, %v4318_v12 }
 0x27f   :  { %v1624_v35 = vrot.slane %v1596_v23, %v4318_v12  ;;  %v1657_v61 = vrot.slane %v1643_v25, %v4318_v12  ;;  %2421 = vrot.lane.b32.xlu1 %v2287_v33, %s4104_s21  ;;  %v2047_v39 = vcombine.low %v4574_v8, %v608_v47  ;;  %v2183_v27 = vrot.slane %v4566_v0, %v4308_v3 }
 0x280   :  { %v1841_v5 = vcombine.low %v1831_v54, %v1832_v13  ;;  %v3780_v53 = vcombine.low %v1832_v13, %v1832_v13  ;;  %v1826_v38 = vcombine.high %v1814_v51, %v1814_v51  ;;  %v1833_v15 = vmax.f32 %v1814_v51, 0.0 }
 0x281   :  { %v1626_v42 = vcombine.low %v1617_v4, %v1624_v35  ;;  %v1665_v36 = vcombine.low %v1650_v31, %v1657_v61  ;;  %v4685_v29 = vrot.slane %v2047_v39, %v4308_v3  ;;  %v1538_v14 = vcombine.low %v1529_v37, %v1536_v18 }
 0x282   :  { %v4688_v44 = vrot.slane %v1841_v5, %v4308_v3  ;;  %v4691_v32 = vrot.slane %v3780_v53, %v4308_v3  ;;  %v2297_v47 = vcombine.low %v606_v50, %v4574_v8  ;;  %v1545_v0 = vrot.slane %v4647_v2, %v4318_v12 }
 0x283   :  { %v1679_v34 = vrot.slane %v4664_v17, %v4318_v12  ;;  %v1843_v46 = vsel %vm1685_vm4, %v1833_v15, 0.0  ;;  %v2184_v37 = vcombine.low %v4685_v29, %v2183_v27  ;;  %v1633_v18 = vrot.slane %v1625_v30, %v4318_v12 }
 0x284   :  { %v4704_v48 = vrot.slane %v1626_v42, %v4318_v12  ;;  %v1834_v26 = vmax.f32 %v1826_v38, 0.0  ;;  %v4707_v28 = vrot.slane %v1843_v46, %v4308_v3  ;;  %v2304_v50 = vrot.slane %v4587_v24, %v4308_v3 }
 0x285   :  { %v2221_v41 = vrot.slane %v2184_v37, 1  ;;  %v2311_v8 = vrot.slane %v2297_v47, %v4308_v3  ;;  %v1819_v2 = vadd.f32 %v4621_v45, %v1731_v59  ;;  %v1672_v60 = vrot.slane %v1665_v36, %v4318_v12 }
 0x286   :  { %v4719_v16 = vcombine.high %v4688_v44, %v4688_v44  ;;  %v4723_v58 = vcombine.high %v4691_v32, %v4691_v32  ;;  %v1932_v6 = vcombine.high %v1843_v46, %v1843_v46  ;;  %v4732_v63 = vcombine.low %v2038_v10, %v2045_v21 }
 0x287   :  { %2241 = vrot.lane.b32.xlu0 %v2221_v41, %s4103_s17  ;;  %v2312_v24 = vcombine.low %v2304_v50, %v2311_v8  ;;  %v1827_v7 = vcombine.high %v1819_v2, %v1819_v2  ;;  %v1835_v17 = vmax.f32 %v1819_v2, 0.0  ;;  %v4736_v11 = vcombine.high %v4707_v28, %v4707_v28 }
 0x288   :  { %v1592_v59 = vcombine.low %v1584_v56, %v1591_v52  ;;  %v1552_v45 = vrot.slane %v1538_v14, %v4318_v12  ;;  %v1641_v9 = vcombine.low %v1633_v18, %v4704_v48  ;;  %v2220_v19 = vrot.slane %v4732_v63, 1 }
 0x289   :  { %2425 = vrot.lane.b32.xlu1 %v2312_v24, %s4104_s21  ;;  %v1836_v55 = vmax.f32 %v1827_v7, 0.0  ;;  %v1842_v10 = vcombine.low %v1834_v26, %v1835_v17  ;;  %v3781_v21 = vcombine.low %v1835_v17, %v1835_v17  ;;  %v1680_v49 = vcombine.low %v1672_v60, %v1679_v34 }
 0x28a   :  { %v1683_v20 = vsel %vm610_vm3, %v1592_v59, 0.0  ;;  %v1553_v22 = vcombine.low %v1545_v0, %v1552_v45  ;;  %v3778_v23 = vcombine.low %v1552_v45, %v1552_v45  ;;  %v2222_v56 = vsel %vm175_vm1, %v2220_v19, %v2221_v41 }
 0x28b   :  { %v4750_v25 = vsel %vm1685_vm4, %v1836_v55, 0.0  ;;  %v4753_v43 = vrot.slane %v1842_v10, %v4308_v3  ;;  %v4756_v12 = vrot.slane %v3781_v21, %v4308_v3  ;;  %v1864_v54 = vcombine.high %v1683_v20, %v1683_v20 }
 0x28c   :  { %v4760_v52 = vrot.slane %v4750_v25, %v4308_v3  ;;  %v1871_v33 = vrot.slane %v1683_v20, %v4308_v3  ;;  %v2105_v4 = vcombine.low %v4688_v44, %v4719_v16  ;;  %v2106_v30 = vcombine.low %v4691_v32, %v4723_v58 }
 0x28d   :  { %2239 = vrot.lane.b32.xlu1 %v2222_v56, %s4103_s17  ;;  %v1854_v13 = vrot.slane %v1553_v22, %v4308_v3  ;;  %v1861_v51 = vrot.slane %v3778_v23, %v4308_v3  ;;  %v4772_v35 = vrot.slane %v1932_v6, %v4308_v3  ;;  %v2122_v31 = vcombine.low %v4707_v28, %v4736_v11 }
 0x28e   :  { %v1878_v61 = vrot.slane %v1864_v54, %v4308_v3  ;;  %v1879_v39 = vcombine.high %v1871_v33, %v1871_v33  ;;  %v4779_v5 = vcombine.high %v4753_v43, %v4753_v43  ;;  %v4783_v53 = vcombine.high %v4756_v12, %v4756_v12 }
 0x28f   :  { %v1862_v38 = vcombine.high %v1854_v13, %v1854_v13  ;;  %v1863_v27 = vcombine.high %v1861_v51, %v1861_v51  ;;  %v4787_v42 = vcombine.high %v4760_v52, %v4760_v52  ;;  %v1684_v14 = vsel %vm610_vm3, %v1680_v49, 0.0 }
 0x290   :  { %v2072_v36 = vcombine.low %v1871_v33, %v1879_v39  ;;  %v2191_v15 = vrot.slane %v1878_v61, %v4308_v3  ;;  %v3779_v37 = vcombine.low %v4704_v48, %v4704_v48  ;;  %v1887_v18 = vrot.slane %v1641_v9, %v4308_v3 }
 0x291   :  { %v2055_v44 = vcombine.low %v1854_v13, %v1862_v38  ;;  %v2056_v47 = vcombine.low %v1861_v51, %v1863_v27  ;;  %v2321_v0 = vcombine.low %v1862_v38, %v1861_v51  ;;  %v2322_v34 = vcombine.low %v1863_v27, %v1871_v33 }
 0x292   :  { %v4792_v46 = vrot.slane %v2072_v36, %v4308_v3  ;;  %v1904_v26 = vrot.slane %v1684_v14, %v4308_v3  ;;  %v2130_v60 = vcombine.low %v4753_v43, %v4779_v5  ;;  %v1894_v24 = vrot.slane %v3779_v37, %v4308_v3 }
 0x293   :  { %v2329_v41 = vrot.slane %v2321_v0, %v4308_v3  ;;  %v2336_v50 = vrot.slane %v2322_v34, %v4308_v3  ;;  %v2063_v8 = vrot.slane %v2055_v44, %v4308_v3  ;;  %v2070_v2 = vrot.slane %v2056_v47, %v4308_v3 }
 0x294   :  { %v2192_v6 = vcombine.low %v4792_v46, %v2191_v15  ;;  %v1895_v48 = vcombine.high %v1887_v18, %v1887_v18  ;;  %v1897_v59 = vcombine.high %v1684_v14, %v1684_v14  ;;  %v4808_v45 = vcombine.high %v1904_v26, %v1904_v26 }
 0x295   :  { %v2337_v7 = vcombine.low %v2329_v41, %v2336_v50  ;;  %v4806_v17 = vcombine.low %v2063_v8, %v2070_v2  ;;  %v1896_v55 = vcombine.high %v1894_v24, %v1894_v24  ;;  %v2338_v20 = vcombine.low %v1879_v39, %v1878_v61 }
 0x296   :  { %v2224_v9 = vrot.slane %v2192_v6, 1  ;;  %v2080_v10 = vcombine.low %v1887_v18, %v1895_v48  ;;  %v2346_v21 = vcombine.low %v1895_v48, %v1894_v24  ;;  %v1911_v22 = vrot.slane %v1897_v59, %v4308_v3  ;;  %v2482_v48 = vld [vmem:[%s5403_s9 + $0x8] sm:$0xff] }
 0x297   :  { %2429 = vrot.lane.b32.xlu1 %v2337_v7, %s4104_s21  ;;  %v2223_v19 = vrot.slane %v4806_v17, 1  ;;  %v2097_v23 = vcombine.low %v1904_v26, %v4808_v45  ;;  %v2081_v49 = vcombine.low %v1894_v24, %v1896_v55  ;;  %v2347_v43 = vcombine.low %v1896_v55, %v1904_v26  ;;  %v2481_v24 = vld [vmem:[%s5403_s9] sm:$0xff] }
 0x298   :  { %2245 = vrot.lane.b32.xlu0 %v2224_v9, %s4103_s17  ;;  %v2354_v56 = vrot.slane %v2346_v21, %v4308_v3  ;;  %v2088_v54 = vrot.slane %v2080_v10, %v4308_v3  ;;  %v2131_v33 = vcombine.low %v4756_v12, %v4783_v53  ;;  %v2199_v61 = vrot.slane %v1911_v22, %v4308_v3 }
 0x299   :  { %v2225_v13 = vsel %vm175_vm1, %v2223_v19, %v2224_v9  ;;  %v4821_v51 = vrot.slane %v2097_v23, %v4308_v3  ;;  %v2361_v39 = vrot.slane %v2347_v43, %v4308_v3  ;;  %v2095_v38 = vrot.slane %v2081_v49, %v4308_v3 }
 0x29a   :  { %v2113_v27 = vrot.slane %v2105_v4, %v4308_v3  ;;  %v2120_v36 = vrot.slane %v2106_v30, %v4308_v3  ;;  %v1965_v15 = vcombine.high %v4750_v25, %v4750_v25  ;;  %v2147_v14 = vcombine.low %v4760_v52, %v4787_v42 }
 0x29b   :  { %v2200_v44 = vcombine.low %v4821_v51, %v2199_v61  ;;  %v4834_v47 = vrot.slane %v2122_v31, %v4308_v3  ;;  %v2362_v0 = vcombine.low %v2354_v56, %v2361_v39  ;;  %v2345_v34 = vrot.slane %v2338_v20, %v4308_v3  ;;  %v4914_v61 = vld [vmem:[%s5407_s13 + $0x8] sm:$0xf] }
 0x29c   :  { %2243 = vrot.lane.b32.xlu0 %v2225_v13, %s4103_s17  ;;  %v4838_v37 = vcombine.low %v2088_v54, %v2095_v38  ;;  %v2371_v4 = vcombine.low %v4719_v16, %v4691_v32  ;;  %v2207_v25 = vrot.slane %v4772_v35, %v4308_v3  ;;  %v2372_v18 = vcombine.low %v4723_v58, %v4707_v28  ;;  %v4932_v39 = vld [vmem:[%s5407_s13 + $0x28] sm:$0xf]  ;;  %v4938_v38 = vld [vmem:[%s5407_s13 + $0x20] sm:$0xff] }
 0x29d   :  { %v2227_v30 = vrot.slane %v2200_v44, 1  ;;  %v2138_v31 = vrot.slane %v2130_v60, %v4308_v3  ;;  %2433 = vrot.lane.b32.xlu1 %v2362_v0, %s4104_s21  ;;  %v4849_v41 = vcombine.low %v2113_v27, %v2120_v36  ;;  %v2145_v8 = vrot.slane %v2131_v33, %v4308_v3  ;;  %v4944_v27 = vld [vmem:[%s5407_s13 + $0x38] sm:$0xf]  ;;  %v4950_v36 = vld [vmem:[%s5407_s13 + $0x30] sm:$0xff] }
 0x29e   :  { %v2226_v26 = vrot.slane %v4838_v37, 1  ;;  %v2379_v50 = vrot.slane %v2371_v4, %v4308_v3  ;;  %v1979_v32 = vrot.slane %v1965_v15, %v4308_v3  ;;  %v2208_v16 = vcombine.low %v4834_v47, %v2207_v25  ;;  %v4956_v15 = vld [vmem:[%s5407_s13 + $0x48] sm:$0xf]  ;;  %v4968_v44 = vld [vmem:[%s5407_s13 + $0x58] sm:$0xf]  ;;  %v4974_v0 = vld [vmem:[%s5407_s13 + $0x50] sm:$0xff] }
 0x29f   :  { %v2386_v2 = vrot.slane %v2372_v18, %v4308_v3  ;;  %v2363_v58 = vcombine.low %v4808_v45, %v1911_v22  ;;  %v4859_v60 = vcombine.low %v2138_v31, %v2145_v8  ;;  %v2396_v6 = vcombine.low %v4779_v5, %v4756_v12 }
 0x2a0   :  { %2431 = vrot.lane.b32.xlu0 %v2345_v34, %s4104_s21  ;;  %v2228_v28 = vsel %vm175_vm1, %v2226_v26, %v2227_v30  ;;  %v4870_v59 = vrot.slane %v2147_v14, %v4308_v3  ;;  %v2397_v45 = vcombine.low %v4783_v53, %v4760_v52  ;;  %v2229_v9 = vrot.slane %v4849_v41, 1  ;;  %v2483_v52 = vld [vmem:[%s5403_s9 + $0x10] sm:$0xff]  ;;  %v4962_v14 = vld [vmem:[%s5407_s13 + $0x40] sm:$0xff] }
 0x2a1   :  { %v2387_v7 = vcombine.low %v2379_v50, %v2386_v2  ;;  %2247 = vrot.lane.b32.xlu1 %v2228_v28, %s4103_s17  ;;  %v2404_v12 = vrot.slane %v2396_v6, %v4308_v3  ;;  %v2230_v5 = vrot.slane %v2208_v16, 1  ;;  %v2215_v55 = vrot.slane %v1979_v32, %v4308_v3 }
 0x2a2   :  { %v2411_v10 = vrot.slane %v2397_v45, %v4308_v3  ;;  %v4054_v21 = vpack.c.bf16 %v2482_v48, %v2481_v24  ;;  %v2370_v19 = vrot.slane %v2363_v58, %v4308_v3  ;;  %v2232_v23 = vrot.slane %v4859_v60, 1 }
 0x2a3   :  { %v2216_v20 = vcombine.low %v4870_v59, %v2215_v55  ;;  %v2231_v53 = vsel %vm175_vm1, %v2229_v9, %v2230_v5  ;;  %v2388_v43 = vcombine.low %v4736_v11, %v4772_v35  ;;  %v4112_v54 = vmov 0   ;;  %v4908_v35 = vld [vmem:[%s5407_s13] sm:$0xff] }
 0x2a4   :  { %2249 = vrot.lane.b32.xlu0 %v2227_v30, %s4103_s17  ;;  %v2412_v22 = vcombine.low %v2404_v12, %v2411_v10  ;;  %4055 = vmatpush3.bf16.msra.mxu0 %v4054_v21  ;;  %v2413_v13 = vcombine.low %v4787_v42, %v1979_v32  ;;  %v4920_v42 = vld [vmem:[%s5407_s13 + $0x18] sm:$0xf]  ;;  %vm3317_vm12 = vcmp.gt.f32.partialorder %v4908_v35, 0.0  ;;  %vm3318_vm13 = vcmp.gt.f32.partialorder %v4914_v61, 0.0 }
 0x2a5   :  { %2435 = vrot.lane.b32.xlu1 %v2370_v19, %s4104_s21  ;;  %3942 = vmatprep.subr.mxu0 %v4109_v57  ;;  %v2233_v49 = vrot.slane %v2216_v20, 1  ;;  %v2395_v33 = vrot.slane %v2388_v43, %v4308_v3  ;;  %vm3320_vm15 = vcmp.gt.f32.partialorder %v4920_v42, 0.0  ;;  %vm3321_vm0 = vcmp.gt.f32.partialorder %v4938_v38, 0.0 }
 0x2a6   :  { %4077 = vset.pattern.permute.xlu0 %v4112_v54  ;;  %4078 = vset.pattern.permute.xlu1 %v4112_v54  ;;  %v2420_v11 = vrot.slane %v2413_v13, %v4308_v3  ;;  %v4926_v3 = vld [vmem:[%s5407_s13 + $0x10] sm:$0xff]  ;;  %vm3323_vm2 = vcmp.gt.f32.partialorder %v4950_v36, 0.0  ;;  %vm3324_vm3 = vcmp.gt.f32.partialorder %v4944_v27, 0.0  ;;  %vm3325_vm4 = vcmp.gt.f32.partialorder %v4962_v14, 0.0 }
 0x2a7   :  { %v2234_v56 = vsel %vm175_vm1, %v2232_v23, %v2233_v49  ;;  %vm3319_vm14 = vcmp.gt.f32.partialorder %v4926_v3, 0.0  ;;  %vm3326_vm9 = vcmp.gt.f32.partialorder %v4956_v15, 0.0  ;;  %vm3327_vm10 = vcmp.gt.f32.partialorder %v4974_v0, 0.0 }
 0x2a8   :  { %2251 = vrot.lane.b32.xlu0 %v2231_v53, %s4103_s17  ;;  %3943 = vmatpush3.msra.mxu0 %v2483_v52 }
 0x2a9   :  { %2437 = vrot.lane.b32.xlu1 %v2387_v7, %s4104_s21  ;;  %4004 = vmatprep.subr.mxu0 %v4109_v57 }
 0x2ac   :  { %2253 = vrot.lane.b32.xlu0 %v2230_v5, %s4103_s17 }
 0x2ad   :  { %2255 = vrot.lane.b32.xlu1 %v2234_v56, %s4103_s17 }
 0x2b0   :  { %2439 = vrot.lane.b32.xlu0 %v2395_v33, %s4104_s21 }
 0x2b1   :  { %2441 = vrot.lane.b32.xlu1 %v2412_v22, %s4104_s21 }
 0x2b4   :  { %2257 = vrot.lane.b32.xlu0 %v2233_v49, %s4103_s17 }
 0x2b5   :  { %2443 = vrot.lane.b32.xlu1 %v2420_v11, %s4104_s21 }
 0x2b8   :  { %2699 = vperm.xlu0 %4077, %v4908_v35   ;;  %v3348_v35 = vsel %vm3318_vm13, 1, %v4112_v54 }
 0x2b9   :  { %2703 = vperm.xlu1 %4078, %v4914_v61   ;;  %v3351_v61 = vsel %vm3321_vm0, 1, %v4112_v54 }
 0x2bc   :  { %2711 = vperm.xlu0 %4077, %v4920_v42   ;;  %v3354_v42 = vsel %vm3324_vm3, 1, %v4112_v54 }
 0x2bd   :  { %2707 = vperm.xlu1 %4078, %v4926_v3  }
 0x2c0   :  { %2719 = vperm.xlu0 %4077, %v4932_v39  }
 0x2c1   :  { %2715 = vperm.xlu1 %4078, %v4938_v38   ;;  %v3355_v38 = vsel %vm3325_vm4, 1, %v4112_v54 }
 0x2c4   :  { %2727 = vperm.xlu0 %4077, %v4944_v27  }
 0x2c5   :  { %2723 = vperm.xlu1 %4078, %v4950_v36   ;;  %v3357_v36 = vsel %vm3327_vm10, 1, %v4112_v54 }
 0x2c8   :  { %2735 = vperm.xlu0 %4077, %v4956_v15  }
 0x2c9   :  { %2731 = vperm.xlu1 %4078, %v4962_v14  }
 0x2cc   :  { %2743 = vperm.xlu0 %4077, %v4968_v44  }
 0x2cd   :  { %2739 = vperm.xlu1 %4078, %v4974_v0  }
 0x2d0   :  { %v2424_v34 = vpop.permute.xlu0 %2423 }
 0x2d7   :  { %v2238_v4 = vpop.permute.xlu0 %2237 }
 0x2d8   :  { %v2458_v16 = vsel %vm213_vm6, %v4544_v40, %v2238_v4 }
 0x2e7   :  { %v2236_v25 = vpop.permute.xlu0 %2235 }
 0x2e8   :  { %v2457_v18 = vsel %vm213_vm6, %v4568_v1, %v2236_v25  ;;  %v2470_v1 = vsel %vm218_vm7, %v2458_v16, %v2424_v34 }
 0x2ec   :  { %v2428_v30 = vpop.permute.xlu1 %2427 }
 0x2f1   :  { %v2422_v31 = vpop.permute.xlu1 %2421 }
 0x2f2   :  { %v2469_v26 = vsel %vm218_vm7, %v2457_v18, %v2422_v31 }
 0x2f3   :  { %v2502_v50 = vcombine.high %v2469_v26, %v2469_v26 }
 0x2f5   :  { %v2509_v8 = vcombine.low %v2469_v26, %v2502_v50 }
 0x2f7   :  { %3945 = vmatmul.mubr.msk.f32.vlgmr.msra.gmra.mrb[4].mxu0 %vm425_vm8, %v2509_v8 }
 0x2f8   :  { %3947 = vmatprep.mubr.msk.f32.mxu0 %vm4108_vm5, %v4109_v57 }
 0x2f9   :  { %v2242_v2 = vpop.permute.xlu0 %2241 }
 0x2fa   :  { %v2460_v24 = vsel %vm213_vm6, %v4685_v29, %v2242_v2 }
 0x2fb   :  { %v2426_v32 = vpop.permute.xlu1 %2425  ;;  %v2472_v45 = vsel %vm218_vm7, %v2460_v24, %v2428_v30 }
 0x2ff   :  { %v2240_v28 = vpop.permute.xlu1 %2239 }
 0x300   :  { %v2459_v58 = vsel %vm213_vm6, %v4732_v63, %v2240_v28 }
 0x301   :  { %v2471_v6 = vsel %vm218_vm7, %v2459_v58, %v2426_v32 }
 0x302   :  { %v2503_v48 = vcombine.high %v2471_v6, %v2471_v6  ;;  %v2510_v7 = vcombine.low %v2470_v1, %v2471_v6 }
 0x304   :  { %3948 = vmatmul.mubr.msk.f32.gmra.mrb[6].mxu0 %vm425_vm8, %v2510_v7  ;;  %v2511_v40 = vcombine.low %v2503_v48, %v2472_v45  ;;  %v4114_v48 = vmov 1985246804  }
 0x305   :  { %3950 = vmatprep.mubr.msk.f32.mxu0 %vm4108_vm5, %v4109_v57  ;;  %v2753_v7 = vunpack.c.l.s4 %v4114_v48 }
 0x308   :  { %3951 = vmatmul.mubr.msk.f32.gmra.mrb[8].mxu0 %vm425_vm8, %v2511_v40 }
 0x309   :  { %3953 = vmatprep.mubr.msk.f32.mxu0 %vm4108_vm5, %v4109_v57  ;;  %v2430_v63 = vpop.permute.xlu1 %2429 }
 0x30a   :  { %v2246_v9 = vpop.permute.xlu0 %2245 }
 0x30b   :  { %v2462_v22 = vsel %vm213_vm6, %v4792_v46, %v2246_v9 }
 0x30e   :  { %v2244_v12 = vpop.permute.xlu0 %2243 }
 0x30f   :  { %v2461_v29 = vsel %vm213_vm6, %v4806_v17, %v2244_v12  ;;  %v2434_v5 = vpop.permute.xlu1 %2433 }
 0x310   :  { %v2473_v55 = vsel %vm218_vm7, %v2461_v29, %v2430_v63  ;;  %v2754_v63 = vunpack.c.0.s8 %v2753_v7 }
 0x311   :  { %v2504_v10 = vcombine.high %v2473_v55, %v2473_v55 }
 0x312   :  { %v2432_v21 = vpop.permute.xlu0 %2431  ;;  %v5050_v29 = vsub.s32 %v2754_v63, %v4305_v62 }
 0x313   :  { %v2512_v19 = vcombine.low %v2473_v55, %v2504_v10  ;;  %v2248_v20 = vpop.permute.xlu1 %2247  ;;  %v2474_v53 = vsel %vm218_vm7, %v2462_v22, %v2432_v21 }
 0x314   :  { %v2463_v52 = vsel %vm213_vm6, %v4838_v37, %v2248_v20 }
 0x315   :  { %3954 = vmatmul.mubr.msk.f32.gmra.mrb[10].mxu0 %vm425_vm8, %v2512_v19  ;;  %v2475_v23 = vsel %vm218_vm7, %v2463_v52, %v2434_v5 }
 0x316   :  { %v2250_v17 = vpop.permute.xlu0 %2249  ;;  %3956 = vmatprep.mubr.msk.f32.mxu0 %vm4108_vm5, %v4109_v57  ;;  %v2513_v49 = vcombine.low %v2474_v53, %v2475_v23  ;;  %v2505_v56 = vcombine.high %v2475_v23, %v2475_v23 }
 0x317   :  { %v2464_v43 = vsel %vm213_vm6, %v4821_v51, %v2250_v17  ;;  %v2436_v33 = vpop.permute.xlu1 %2435 }
 0x318   :  { %v2476_v46 = vsel %vm218_vm7, %v2464_v43, %v2436_v33  ;;  %v3101_v33 = vld [vmem:[%s5405_s11] sm:$0xff] }
 0x319   :  { %3957 = vmatmul.mubr.msk.f32.gmra.mrb[12].mxu0 %vm425_vm8, %v2513_v49  ;;  %v2514_v13 = vcombine.low %v2505_v56, %v2476_v46  ;;  %v3102_v46 = vld [vmem:[%s5405_s11 + $0x8] sm:$0xff] }
 0x31a   :  { %v2252_v37 = vpop.permute.xlu0 %2251  ;;  %3959 = vmatprep.mubr.msk.f32.mxu0 %vm4108_vm5, %v4109_v57 }
 0x31b   :  { %v2465_v11 = vsel %vm213_vm6, %v4849_v41, %v2252_v37  ;;  %v2438_v34 = vpop.permute.xlu1 %2437 }
 0x31c   :  { %v2477_v4 = vsel %vm218_vm7, %v2465_v11, %v2438_v34 }
 0x31d   :  { %3960 = vmatmul.mubr.msk.f32.gmra.mrb[14].mxu0 %vm425_vm8, %v2514_v13  ;;  %v2506_v51 = vcombine.high %v2477_v4, %v2477_v4 }
 0x31e   :  { %v2254_v30 = vpop.permute.xlu0 %2253  ;;  %3962 = vmatprep.mubr.msk.f32.mxu0 %vm4108_vm5, %v4109_v57 }
 0x31f   :  { %v2515_v25 = vcombine.low %v2477_v4, %v2506_v51  ;;  %v2256_v18 = vpop.permute.xlu1 %2255  ;;  %v2466_v31 = vsel %vm213_vm6, %v4834_v47, %v2254_v30  ;;  %v4057_v4 = vpack.c.bf16 %v3102_v46, %v3101_v33 }
 0x320   :  { %v2467_v50 = vsel %vm213_vm6, %v4859_v60, %v2256_v18  ;;  %v3782_v60 = vld [vmem:[%s5404_s10] ss:$0 sm:$0xff] }
 0x321   :  { %3963 = vmatmul.mubr.msk.f32.gmra.mrb[16].mxu0 %vm425_vm8, %v2515_v25  ;;  %v2508_v45 = vcombine.high %v3782_v60, %v3782_v60  ;;  %v5063_v43 = vcombine.low %v3782_v60, %v3782_v60  ;;  %4058 = vmatpush3.bf16.msra.mxu1 %v4057_v4 }
 0x322   :  { %v2440_v26 = vpop.permute.xlu0 %2439  ;;  %3965 = vmatprep.mubr.msk.f32.mxu0 %vm4108_vm5, %v4109_v57  ;;  %3975 = vmatprep.subr.mxu1 %v4109_v57 }
 0x323   :  { %v2478_v41 = vsel %vm218_vm7, %v2466_v31, %v2440_v26  ;;  %v2442_v8 = vpop.permute.xlu1 %2441  ;;  %v5044_v9 = vcombine.low %v3782_v60, %v2508_v45  ;;  %v5075_v34 = vcombine.low %v2508_v45, %v3782_v60  ;;  %v3103_v26 = vld [vmem:[%s5405_s11 + $0x10] sm:$0xff] }
 0x324   :  { %v2479_v32 = vsel %vm218_vm7, %v2467_v50, %v2442_v8 }
 0x325   :  { %v2516_v16 = vcombine.low %v2478_v41, %v2479_v32  ;;  %v2507_v47 = vcombine.high %v2479_v32, %v2479_v32  ;;  %3976 = vmatpush3.msra.mxu1 %v3103_v26 }
 0x326   :  { %v2258_v2 = vpop.permute.xlu0 %2257 }
 0x327   :  { %v2468_v28 = vsel %vm213_vm6, %v4870_v59, %v2258_v2  ;;  %v2444_v58 = vpop.permute.xlu1 %2443  ;;  %3966 = vmatmul.mubr.msk.f32.gmra.mrb[18].mxu0 %vm425_vm8, %v2516_v16  ;;  %v4113_v59 = vmov 839922192  }
 0x328   :  { %v2480_v1 = vsel %vm218_vm7, %v2468_v28, %v2444_v58  ;;  %3968 = vmatprep.mubr.msk.f32.mxu0 %vm4108_vm5, %v4109_v57  ;;  %v2746_v24 = vunpack.c.l.s4 %v4113_v59 }
 0x329   :  { %v2517_v6 = vcombine.low %v2507_v47, %v2480_v1 }
 0x32a   :  { %v2747_v40 = vunpack.c.0.s8 %v2746_v24 }
 0x32b   :  { %3969 = vmatmul.mubr.msk.f32.gmra.mrb[20].mxu0 %vm425_vm8, %v2517_v6 }
 0x32c   :  { %4006 = vmatprep.mubr.msk.f32.mxu0 %vm4108_vm5, %v4109_v57  ;;  %v5047_v12 = vsub.s32 %v2747_v40, %v4305_v62 }
 0x337   :  { %v2700_v21 = vpop.permute.xlu0 %2699 }
 0x338   :  { %v2751_v19 = vrot.slane %v2700_v21, %v5047_v12  ;;  %v2758_v20 = vrot.slane %v2700_v21, %v5050_v29  ;;  %v2704_v49 = vpop.permute.xlu1 %2703 }
 0x339   :  { %v2765_v37 = vrot.slane %v2704_v49, %v5047_v12 }
 0x33b   :  { %v2712_v41 = vpop.permute.xlu0 %2711 }
 0x33c   :  { %v2708_v51 = vpop.permute.xlu1 %2707  ;;  %v2786_v28 = vrot.slane %v2712_v41, %v5047_v12 }
 0x33d   :  { %v2772_v18 = vrot.slane %v2708_v51, %v5047_v12  ;;  %v2779_v50 = vrot.slane %v2708_v51, %v5050_v29 }
 0x3ca   :  { %v2608_v5 = vpop.f32.mrb[4].mxu0 }
 0x3cb   :  { %v2609_v55 = vadd.f32 %v2608_v5, %v5044_v9  ;;  %v3946_v10 = vpop.f32.mrb[5].mxu0 }
 0x3cd   :  { %v2661_v22 = vcombine.high %v2609_v55, %v2609_v55  ;;  %v2679_v52 = vmax.f32 %v2609_v55, 0.0 }
 0x3cf   :  { %v2680_v53 = vmax.f32 %v2661_v22, 0.0  ;;  %v5055_v23 = vmul.f32 %v2751_v19, %v2679_v52 }
 0x3d1   :  { %v5057_v17 = vmul.f32 %v2758_v20, %v2680_v53  ;;  %v2716_v20 = vpop.permute.xlu1 %2715 }
 0x3d2   :  { %v2793_v33 = vrot.slane %v2716_v20, %v5047_v12  ;;  %v2800_v46 = vrot.slane %v2716_v20, %v5050_v29 }
 0x3d3   :  { %v5061_v62 = vcombine.low %v5055_v23, %v5057_v17 }
 0x3d5   :  { %2999 = vrot.lane.b32.xlu1 %v5061_v62, %s4103_s17  ;;  %v2968_v1 = vrot.slane %v5061_v62, 1  ;;  %v2724_v26 = vpop.permute.xlu1 %2723 }
 0x3d7   :  { %v2613_v56 = vpop.f32.mrb[6].mxu0 }
 0x3d8   :  { %v2614_v13 = vadd.f32 %v2613_v56, %v5063_v43  ;;  %v3949_v11 = vpop.f32.mrb[7].mxu0  ;;  %v2720_v56 = vpop.permute.xlu0 %2719 }
 0x3d9   :  { %v2807_v4 = vrot.slane %v2720_v56, %v5047_v12 }
 0x3da   :  { %v2662_v30 = vcombine.high %v2614_v13, %v2614_v13  ;;  %v2681_v25 = vmax.f32 %v2614_v13, 0.0 }
 0x3db   :  { %v2618_v31 = vpop.f32.mrb[8].mxu0 }
 0x3dc   :  { %v2682_v8 = vmax.f32 %v2662_v30, 0.0  ;;  %v5083_v32 = vmul.f32 %v2765_v37, %v2681_v25  ;;  %v2619_v16 = vadd.f32 %v2618_v31, %v5075_v34  ;;  %v3952_v2 = vpop.f32.mrb[9].mxu0 }
 0x3de   :  { %v2663_v47 = vcombine.high %v2619_v16, %v2619_v16  ;;  %v2683_v58 = vmax.f32 %v2619_v16, 0.0  ;;  %3001 = vrot.lane.b32.xlu1 %v5083_v32, %s4103_s17  ;;  %v2969_v6 = vrot.slane %v5083_v32, 1  ;;  %v5091_v60 = vmul.f32 %v2772_v18, %v2682_v8 }
 0x3e0   :  { %v2684_v59 = vmax.f32 %v2663_v47, 0.0  ;;  %v5093_v24 = vmul.f32 %v2779_v50, %v2683_v58  ;;  %v2970_v48 = vsel %vm175_vm1, %v2968_v1, %v2969_v6  ;;  %v2993_v7 = vsel %vm2992_vm11, %v2969_v6, 0.0 }
 0x3e1   :  { %3041 = vrot.lane.b32.xlu0 %v2970_v48, %s4104_s21  ;;  %v2821_v47 = vrot.slane %v2724_v26, %v5050_v29 }
 0x3e2   :  { %v5098_v45 = vmul.f32 %v2786_v28, %v2684_v59  ;;  %3043 = vrot.lane.b32.xlu1 %v2993_v7, %s4104_s21  ;;  %v5103_v40 = vcombine.low %v5091_v60, %v5093_v24  ;;  %v2814_v28 = vrot.slane %v2724_v26, %v5047_v12  ;;  %v2728_v59 = vpop.permute.xlu0 %2727 }
 0x3e3   :  { %v2828_v7 = vrot.slane %v2728_v59, %v5047_v12 }
 0x3e4   :  { %v2971_v63 = vrot.slane %v5103_v40, 1  ;;  %v2972_v5 = vrot.slane %v5098_v45, 1 }
 0x3e5   :  { %3003 = vrot.lane.b32.xlu0 %v5103_v40, %s4103_s17 }
 0x3e6   :  { %3005 = vrot.lane.b32.xlu1 %v5098_v45, %s4103_s17  ;;  %v2973_v55 = vsel %vm175_vm1, %v2971_v63, %v2972_v5  ;;  %v2994_v53 = vsel %vm2992_vm11, %v2972_v5, 0.0 }
 0x3e8   :  { %v2623_v10 = vpop.f32.mrb[10].mxu0 }
 0x3e9   :  { %3045 = vrot.lane.b32.xlu0 %v2973_v55, %s4104_s21  ;;  %v2624_v21 = vadd.f32 %v2623_v10, %v5044_v9  ;;  %v3955_v19 = vpop.f32.mrb[11].mxu0 }
 0x3eb   :  { %v2664_v22 = vcombine.high %v2624_v21, %v2624_v21  ;;  %v2685_v52 = vmax.f32 %v2624_v21, 0.0 }
 0x3ec   :  { %v2628_v49 = vpop.f32.mrb[12].mxu0 }
 0x3ed   :  { %v2686_v37 = vmax.f32 %v2664_v22, 0.0  ;;  %3047 = vrot.lane.b32.xlu0 %v2994_v53, %s4104_s21  ;;  %v2629_v13 = vadd.f32 %v2628_v49, %v5063_v43  ;;  %v3958_v11 = vpop.f32.mrb[13].mxu0  ;;  %v5120_v51 = vmul.f32 %v2793_v33, %v2685_v52  ;;  %v2732_v53 = vpop.permute.xlu1 %2731 }
 0x3ee   :  { %v2842_v56 = vrot.slane %v2732_v53, %v5050_v29  ;;  %v2736_v33 = vpop.permute.xlu0 %2735 }
 0x3ef   :  { %v5122_v30 = vmul.f32 %v2800_v46, %v2686_v37  ;;  %v2665_v25 = vcombine.high %v2629_v13, %v2629_v13  ;;  %v2687_v18 = vmax.f32 %v2629_v13, 0.0 }
 0x3f0   :  { %v2633_v31 = vpop.f32.mrb[14].mxu0 }
 0x3f1   :  { %v2688_v41 = vmax.f32 %v2665_v25, 0.0  ;;  %v5124_v50 = vmul.f32 %v2807_v4, %v2687_v18  ;;  %v2634_v8 = vadd.f32 %v2633_v31, %v5075_v34  ;;  %v3961_v16 = vpop.f32.mrb[15].mxu0  ;;  %v5129_v2 = vcombine.low %v5120_v51, %v5122_v30 }
 0x3f2   :  { %v2835_v25 = vrot.slane %v2732_v53, %v5047_v12 }
 0x3f3   :  { %v2666_v58 = vcombine.high %v2634_v8, %v2634_v8  ;;  %v2689_v1 = vmax.f32 %v2634_v8, 0.0  ;;  %3007 = vrot.lane.b32.xlu1 %v5129_v2, %s4103_s17  ;;  %v2974_v6 = vrot.slane %v5129_v2, 1  ;;  %v2975_v48 = vrot.slane %v5124_v50, 1  ;;  %v2740_v8 = vpop.permute.xlu1 %2739 }
 0x3f4   :  { %v5138_v63 = vmul.f32 %v2814_v28, %v2688_v41  ;;  %v2638_v10 = vpop.f32.mrb[16].mxu0  ;;  %v2849_v41 = vrot.slane %v2736_v33, %v5047_v12 }
 0x3f5   :  { %v2690_v5 = vmax.f32 %v2666_v58, 0.0  ;;  %v5140_v55 = vmul.f32 %v2821_v47, %v2689_v1  ;;  %v2639_v21 = vadd.f32 %v2638_v10, %v5044_v9  ;;  %v3964_v19 = vpop.f32.mrb[17].mxu0  ;;  %v2976_v20 = vsel %vm175_vm1, %v2974_v6, %v2975_v48  ;;  %v2744_v6 = vpop.permute.xlu0 %2743 }
 0x3f6   :  { %3049 = vrot.lane.b32.xlu0 %v2976_v20, %s4104_s21  ;;  %v2995_v9 = vsel %vm2992_vm11, %v2975_v48, 0.0  ;;  %v2856_v10 = vrot.slane %v2740_v8, %v5047_v12 }
 0x3f7   :  { %v5144_v22 = vmul.f32 %v2828_v7, %v2690_v5  ;;  %3009 = vrot.lane.b32.xlu1 %v5124_v50, %s4103_s17  ;;  %v5151_v52 = vcombine.low %v5138_v63, %v5140_v55  ;;  %v2667_v49 = vcombine.high %v2639_v21, %v2639_v21  ;;  %v2691_v46 = vmax.f32 %v2639_v21, 0.0 }
 0x3f8   :  { %v2863_v21 = vrot.slane %v2740_v8, %v5050_v29  ;;  %v3350_v8 = vsel %vm3320_vm15, 1, %v4112_v54 }
 0x3f9   :  { %v2692_v37 = vmax.f32 %v2667_v49, 0.0  ;;  %v2977_v13 = vrot.slane %v5151_v52, 1  ;;  %v2978_v11 = vrot.slane %v5144_v22, 1  ;;  %v5165_v16 = vmul.f32 %v2835_v25, %v2691_v46 }
 0x3fa   :  { %v2643_v4 = vpop.f32.mrb[18].mxu0  ;;  %3011 = vrot.lane.b32.xlu0 %v5151_v52, %s4103_s17 }
 0x3fb   :  { %3051 = vrot.lane.b32.xlu1 %v2995_v9, %s4104_s21  ;;  %v5161_v18 = vmul.f32 %v2842_v56, %v2692_v37  ;;  %v2644_v31 = vadd.f32 %v2643_v4, %v5063_v43  ;;  %v3967_v26 = vpop.f32.mrb[19].mxu0  ;;  %v2979_v58 = vsel %vm175_vm1, %v2977_v13, %v2978_v11  ;;  %v2996_v53 = vsel %vm2992_vm11, %v2978_v11, 0.0 }
 0x3fc   :  { %v2870_v56 = vrot.slane %v2744_v6, %v5047_v12 }
 0x3fd   :  { %v2668_v28 = vcombine.high %v2644_v31, %v2644_v31  ;;  %v2693_v47 = vmax.f32 %v2644_v31, 0.0  ;;  %v5176_v5 = vcombine.low %v5165_v16, %v5161_v18  ;;  %v3347_v31 = vsel %vm3317_vm12, 1, %v4112_v54 }
 0x3fe   :  { %v2648_v1 = vpop.f32.mrb[20].mxu0  ;;  %3053 = vrot.lane.b32.xlu0 %v2979_v58, %s4104_s21  ;;  %vm2931_vm12 = vcmask 1040384  }
 0x3ff   :  { %3013 = vrot.lane.b32.xlu1 %v5144_v22, %s4103_s17  ;;  %v2694_v59 = vmax.f32 %v2668_v28, 0.0  ;;  %v5171_v48 = vmul.f32 %v2849_v41, %v2693_v47  ;;  %v2649_v43 = vadd.f32 %v2648_v1, %v5075_v34  ;;  %v3970_v7 = vpop.f32.mrb[21].mxu0  ;;  %v2980_v29 = vrot.slane %v5176_v5, 1 }
 0x400   :  { %v3349_v41 = vsel %vm3319_vm14, 1, %v4112_v54  ;;  %v3353_v28 = vsel %vm3323_vm2, 1, %v4112_v54  ;;  %v2932_v47 = vrot.slane %v5061_v62, 7  ;;  %v2935_v7 = vrot.slane %v5103_v40, 7 }
 0x401   :  { %v2669_v19 = vcombine.high %v2649_v43, %v2649_v43  ;;  %v2695_v20 = vmax.f32 %v2649_v43, 0.0  ;;  %v2981_v49 = vrot.slane %v5171_v48, 1  ;;  %v5186_v34 = vmul.f32 %v2856_v10, %v2694_v59 }
 0x402   :  { %3055 = vrot.lane.b32.xlu0 %v2996_v53, %s4104_s21  ;;  %v2962_v0 = vsel %vm2931_vm12, 0.0, %v2932_v47 }
 0x403   :  { %3015 = vrot.lane.b32.xlu1 %v5176_v5, %s4103_s17  ;;  %v2696_v9 = vmax.f32 %v2669_v19, 0.0  ;;  %v5188_v33 = vmul.f32 %v2863_v21, %v2695_v20  ;;  %v2982_v37 = vsel %vm175_vm1, %v2980_v29, %v2981_v49  ;;  %v2997_v12 = vsel %vm2992_vm11, %v2981_v49, 0.0 }
 0x404   :  { %v2963_v21 = vsel %vm2931_vm12, 0.0, %v2935_v7  ;;  %v2936_v19 = vrot.slane %v5098_v45, 7 }
 0x405   :  { %v5191_v46 = vmul.f32 %v2870_v56, %v2696_v9  ;;  %v5196_v13 = vcombine.low %v5186_v34, %v5188_v33 }
 0x406   :  { %3057 = vrot.lane.b32.xlu0 %v2982_v37, %s4104_s21  ;;  %v2937_v37 = vsel %vm2931_vm12, %v2935_v7, %v2936_v19  ;;  %v2944_v7 = vrot.slane %v5176_v5, 7 }
 0x407   :  { %3017 = vrot.lane.b32.xlu1 %v5171_v48, %s4103_s17  ;;  %v2983_v11 = vrot.slane %v5196_v13, 1  ;;  %v2984_v4 = vrot.slane %v5191_v46, 1 }
 0x409   :  { %v2985_v25 = vsel %vm175_vm1, %v2983_v11, %v2984_v4  ;;  %v2998_v26 = vsel %vm2992_vm11, %v2984_v4, 0.0  ;;  %vm3322_vm1 = vcmp.gt.f32.partialorder %v4932_v39, 0.0  ;;  %v3356_v39 = vsel %vm3326_vm9, 1, %v4112_v54 }
 0x40a   :  { %3019 = vrot.lane.b32.xlu0 %v5196_v13, %s4103_s17  ;;  %v3352_v3 = vsel %vm3322_vm1, 1, %v4112_v54  ;;  %vm3328_vm11 = vcmp.gt.f32.partialorder %v4968_v44, 0.0  ;;  %v2933_v44 = vrot.slane %v5083_v32, 7  ;;  %vm3509_vm1 = vcmask 1041409  }
 0x40b   :  { %3059 = vrot.lane.b32.xlu1 %v2997_v12, %s4104_s21  ;;  %v3358_v27 = vsel %vm3328_vm11, 1, %v4112_v54 }
 0x40c   :  { %v2934_v62 = vsel %vm2931_vm12, %v2932_v47, %v2933_v44 }
 0x40e   :  { %3061 = vrot.lane.b32.xlu0 %v2985_v25, %s4104_s21 }
 0x40f   :  { %3021 = vrot.lane.b32.xlu1 %v5191_v46, %s4103_s17 }
 0x412   :  { %3063 = vrot.lane.b32.xlu0 %v2998_v26, %s4104_s21  ;;  %v2938_v26 = vrot.slane %v5129_v2, 7 }
 0x413   :  { %3360 = vperm.xlu1 %4078, %v3347_v31  }
 0x416   :  { %3363 = vperm.xlu0 %4077, %v3348_v35  }
 0x417   :  { %3366 = vperm.xlu1 %4078, %v3349_v41   ;;  %v2964_v41 = vsel %vm2931_vm12, 0.0, %v2938_v26 }
 0x41a   :  { %3369 = vperm.xlu0 %4077, %v3350_v8  }
 0x41b   :  { %3372 = vperm.xlu1 %4078, %v3351_v61  }
 0x41e   :  { %3375 = vperm.xlu0 %4077, %v3352_v3  }
 0x41f   :  { %3378 = vperm.xlu1 %4078, %v3353_v28  }
 0x422   :  { %3381 = vperm.xlu0 %4077, %v3354_v42  }
 0x423   :  { %3384 = vperm.xlu1 %4078, %v3355_v38   ;;  %v2939_v38 = vrot.slane %v5124_v50, 7 }
 0x426   :  { %3387 = vperm.xlu0 %4077, %v3356_v39   ;;  %v2941_v39 = vrot.slane %v5151_v52, 7 }
 0x427   :  { %3390 = vperm.xlu1 %4078, %v3357_v36  }
 0x428   :  { %v2965_v47 = vsel %vm2931_vm12, 0.0, %v2941_v39 }
 0x42a   :  { %3393 = vperm.xlu0 %4077, %v3358_v27  }
 0x447   :  { %v3000_v14 = vpop.permute.xlu1 %2999 }
 0x448   :  { %v3077_v58 = vsel %vm213_vm6, %v2962_v0, %v3000_v14  ;;  %v2940_v14 = vsel %vm2931_vm12, %v2938_v26, %v2939_v38  ;;  %v2948_v26 = vrot.slane %v5191_v46, 7 }
 0x450   :  { %v3002_v15 = vpop.permute.xlu1 %3001 }
 0x451   :  { %v3078_v20 = vsel %vm213_vm6, %v2934_v62, %v3002_v15  ;;  %v2942_v15 = vrot.slane %v5144_v22, 7 }
 0x453   :  { %v3042_v1 = vpop.permute.xlu0 %3041 }
 0x454   :  { %v3089_v6 = vsel %vm218_vm7, %v3077_v58, %v3042_v1  ;;  %v3044_v43 = vpop.permute.xlu1 %3043 }
 0x455   :  { %v3122_v59 = vcombine.high %v3089_v6, %v3089_v6  ;;  %v3090_v40 = vsel %vm218_vm7, %v3078_v20, %v3044_v43  ;;  %v2943_v43 = vsel %vm2931_vm12, %v2941_v39, %v2942_v15 }
 0x457   :  { %v3129_v54 = vcombine.low %v3089_v6, %v3122_v59  ;;  %v3004_v10 = vpop.permute.xlu0 %3003 }
 0x458   :  { %v3079_v53 = vsel %vm213_vm6, %v2963_v21, %v3004_v10  ;;  %v3006_v56 = vpop.permute.xlu1 %3005 }
 0x459   :  { %3978 = vmatmul.mubr.msk.f32.vlgmr.msra.gmra.mrb[14].mxu1 %vm425_vm8, %v3129_v54  ;;  %v3080_v12 = vsel %vm213_vm6, %v2937_v37, %v3006_v56  ;;  %v2947_v37 = vrot.slane %v5196_v13, 7 }
 0x45a   :  { %3980 = vmatprep.mubr.msk.f32.mxu1 %vm4108_vm5, %v4109_v57 }
 0x45b   :  { %v3046_v49 = vpop.permute.xlu0 %3045 }
 0x45c   :  { %v3091_v9 = vsel %vm218_vm7, %v3079_v53, %v3046_v49  ;;  %v2966_v53 = vsel %vm2931_vm12, 0.0, %v2944_v7 }
 0x45d   :  { %v3130_v29 = vcombine.low %v3090_v40, %v3091_v9  ;;  %v3123_v11 = vcombine.high %v3091_v9, %v3091_v9 }
 0x45f   :  { %3981 = vmatmul.mubr.msk.f32.gmra.mrb[16].mxu1 %vm425_vm8, %v3130_v29  ;;  %v3048_v4 = vpop.permute.xlu0 %3047  ;;  %v2945_v29 = vrot.slane %v5171_v48, 7 }
 0x460   :  { %v3092_v25 = vsel %vm218_vm7, %v3080_v12, %v3048_v4  ;;  %3983 = vmatprep.mubr.msk.f32.mxu1 %vm4108_vm5, %v4109_v57 }
 0x461   :  { %v3131_v31 = vcombine.low %v3123_v11, %v3092_v25  ;;  %v2946_v25 = vsel %vm2931_vm12, %v2944_v7, %v2945_v29 }
 0x463   :  { %3984 = vmatmul.mubr.msk.f32.gmra.mrb[18].mxu1 %vm425_vm8, %v3131_v31  ;;  %v2967_v31 = vsel %vm2931_vm12, 0.0, %v2947_v37 }
 0x464   :  { %3986 = vmatprep.mubr.msk.f32.mxu1 %vm4108_vm5, %v4109_v57 }
 0x465   :  { %v3008_v35 = vpop.permute.xlu1 %3007 }
 0x466   :  { %v3081_v8 = vsel %vm213_vm6, %v2964_v41, %v3008_v35 }
 0x468   :  { %v3050_v61 = vpop.permute.xlu0 %3049 }
 0x469   :  { %v3010_v3 = vpop.permute.xlu1 %3009  ;;  %v3093_v28 = vsel %vm218_vm7, %v3081_v8, %v3050_v61 }
 0x46a   :  { %v3124_v42 = vcombine.high %v3093_v28, %v3093_v28  ;;  %v3082_v0 = vsel %vm213_vm6, %v2940_v14, %v3010_v3  ;;  %v3506_v14 = vld [vmem:[%s5408_s14] sm:$0xff] }
 0x46b   :  { %4005 = vmatpush3.msra.mxu0 %v3506_v14 }
 0x46c   :  { %v3132_v36 = vcombine.low %v3093_v28, %v3124_v42  ;;  %v3012_v27 = vpop.permute.xlu0 %3011  ;;  %v2949_v42 = vsel %vm2931_vm12, %v2947_v37, %v2948_v26  ;;  %4009 = vmatprep.subr.mxu0 %v4109_v57 }
 0x46d   :  { %v3052_v2 = vpop.permute.xlu1 %3051  ;;  %v3083_v58 = vsel %vm213_vm6, %v2965_v47, %v3012_v27  ;;  %v3792_v47 = vld [vmem:[%s5406_s12] ss:$0 sm:$0xff] }
 0x46e   :  { %3987 = vmatmul.mubr.msk.f32.gmra.mrb[20].mxu1 %vm425_vm8, %v3132_v36  ;;  %v3094_v6 = vsel %vm218_vm7, %v3082_v0, %v3052_v2  ;;  %v3128_v15 = vcombine.high %v3792_v47, %v3792_v47 }
 0x46f   :  { %3989 = vmatprep.mubr.msk.f32.mxu1 %vm4108_vm5, %v4109_v57 }
 0x470   :  { %v3054_v1 = vpop.permute.xlu0 %3053  ;;  %v5317_v0 = vcombine.low %v3792_v47, %v3128_v15 }
 0x471   :  { %v3014_v52 = vpop.permute.xlu1 %3013  ;;  %v3095_v59 = vsel %vm218_vm7, %v3083_v58, %v3054_v1 }
 0x472   :  { %v3133_v44 = vcombine.low %v3094_v6, %v3095_v59  ;;  %v3125_v54 = vcombine.high %v3095_v59, %v3095_v59  ;;  %v3084_v10 = vsel %vm213_vm6, %v2943_v43, %v3014_v52 }
 0x474   :  { %3990 = vmatmul.mubr.msk.f32.gmra.mrb[22].mxu1 %vm425_vm8, %v3133_v44  ;;  %v3056_v62 = vpop.permute.xlu0 %3055  ;;  %v5320_v44 = vcombine.low %v3792_v47, %v3792_v47 }
 0x475   :  { %v3016_v21 = vpop.permute.xlu1 %3015  ;;  %v3096_v19 = vsel %vm218_vm7, %v3084_v10, %v3056_v62  ;;  %3992 = vmatprep.mubr.msk.f32.mxu1 %vm4108_vm5, %v4109_v57 }
 0x476   :  { %v3134_v20 = vcombine.low %v3125_v54, %v3096_v19  ;;  %v3085_v49 = vsel %vm213_vm6, %v2966_v53, %v3016_v21 }
 0x478   :  { %3993 = vmatmul.mubr.msk.f32.gmra.mrb[24].mxu1 %vm425_vm8, %v3134_v20  ;;  %v3058_v5 = vpop.permute.xlu0 %3057  ;;  %v5325_v20 = vcombine.low %v3128_v15, %v3792_v47 }
 0x479   :  { %v3018_v40 = vpop.permute.xlu1 %3017  ;;  %v3097_v56 = vsel %vm218_vm7, %v3085_v49, %v3058_v5  ;;  %3995 = vmatprep.mubr.msk.f32.mxu1 %vm4108_vm5, %v4109_v57 }
 0x47a   :  { %v3126_v9 = vcombine.high %v3097_v56, %v3097_v56  ;;  %v3086_v35 = vsel %vm213_vm6, %v2946_v25, %v3018_v40 }
 0x47c   :  { %v3135_v12 = vcombine.low %v3097_v56, %v3126_v9  ;;  %v3020_v11 = vpop.permute.xlu0 %3019 }
 0x47d   :  { %v3060_v4 = vpop.permute.xlu1 %3059  ;;  %v3087_v41 = vsel %vm213_vm6, %v2967_v31, %v3020_v11 }
 0x47e   :  { %3996 = vmatmul.mubr.msk.f32.gmra.mrb[26].mxu1 %vm425_vm8, %v3135_v12  ;;  %v3098_v13 = vsel %vm218_vm7, %v3086_v35, %v3060_v4 }
 0x47f   :  { %3998 = vmatprep.mubr.msk.f32.mxu1 %vm4108_vm5, %v4109_v57 }
 0x480   :  { %v3062_v8 = vpop.permute.xlu0 %3061 }
 0x481   :  { %v3099_v61 = vsel %vm218_vm7, %v3087_v41, %v3062_v8  ;;  %v3022_v3 = vpop.permute.xlu1 %3021 }
 0x482   :  { %v3136_v28 = vcombine.low %v3098_v13, %v3099_v61  ;;  %v3127_v38 = vcombine.high %v3099_v61, %v3099_v61  ;;  %v3088_v39 = vsel %vm213_vm6, %v2949_v42, %v3022_v3 }
 0x484   :  { %3999 = vmatmul.mubr.msk.f32.gmra.mrb[28].mxu1 %vm425_vm8, %v3136_v28  ;;  %v3064_v36 = vpop.permute.xlu0 %3063 }
 0x485   :  { %v3100_v27 = vsel %vm218_vm7, %v3088_v39, %v3064_v36  ;;  %4001 = vmatprep.mubr.msk.f32.mxu1 %vm4108_vm5, %v4109_v57 }
 0x486   :  { %v3137_v2 = vcombine.low %v3127_v38, %v3100_v27 }
 0x488   :  { %4002 = vmatmul.mubr.msk.f32.gmra.mrb[30].mxu1 %vm425_vm8, %v3137_v2  ;;  %vm3444_vm8 = vcmask 60416  }
 0x492   :  { %v3361_v54 = vpop.permute.xlu1 %3360 }
 0x493   :  { %vm3395_vm7 = vcmp.eq.s32.totalorder %v3361_v54, 1 }
 0x495   :  { %v3364_v53 = vpop.permute.xlu0 %3363 }
 0x496   :  { %vm3396_vm13 = vcmp.eq.s32.totalorder %v3364_v53, 1  ;;  %v3367_v26 = vpop.permute.xlu1 %3366 }
 0x497   :  { %vm3397_vm14 = vcmp.eq.s32.totalorder %v3367_v26, 1  ;;  %v3584_v26 = vld [vmem:[%s5408_s14 + $0x8] sm:$0xff] }
 0x499   :  { %v3370_v35 = vpop.permute.xlu0 %3369 }
 0x49a   :  { %vm3398_vm15 = vcmp.eq.s32.totalorder %v3370_v35, 1 }
 0x52c   :  { %v3228_v58 = vpop.f32.mrb[14].mxu1 }
 0x52d   :  { %v3229_v1 = vadd.f32 %v3228_v58, %v5317_v0  ;;  %v3979_v52 = vpop.f32.mrb[15].mxu1 }
 0x52f   :  { %v3281_v6 = vcombine.high %v3229_v1, %v3229_v1  ;;  %v3299_v59 = vmax.f32 %v3229_v1, 0.0 }
 0x531   :  { %v3300_v43 = vmax.f32 %v3281_v6, 0.0  ;;  %v3329_v10 = vadd.f32 %v3299_v59, %v5055_v23 }
 0x532   :  { %v3233_v7 = vpop.f32.mrb[16].mxu1 }
 0x533   :  { %v3330_v62 = vadd.f32 %v3300_v43, %v5057_v17  ;;  %v3234_v21 = vadd.f32 %v3233_v7, %v5320_v44  ;;  %v3982_v19 = vpop.f32.mrb[17].mxu1  ;;  %v3373_v7 = vpop.permute.xlu1 %3372 }
 0x534   :  { %vm3399_vm0 = vcmp.eq.s32.totalorder %v3373_v7, 1 }
 0x535   :  { %v3419_v49 = vcombine.low %v3329_v10, %v3330_v62  ;;  %v3282_v5 = vcombine.high %v3234_v21, %v3234_v21  ;;  %v3301_v40 = vmax.f32 %v3234_v21, 0.0 }
 0x536   :  { %v3238_v56 = vpop.f32.mrb[18].mxu1 }
 0x537   :  { %v3431_v9 = vsel %vm3395_vm7, %v3419_v49, -1e+30  ;;  %v3302_v29 = vmax.f32 %v3282_v5, 0.0  ;;  %v3331_v37 = vadd.f32 %v3301_v40, %v5083_v32  ;;  %v3239_v23 = vadd.f32 %v3238_v56, %v5325_v20  ;;  %v3985_v12 = vpop.f32.mrb[19].mxu1  ;;  %v3376_v49 = vpop.permute.xlu0 %3375 }
 0x538   :  { %v3443_v25 = vsel %vm213_vm6, %v3431_v9, -inf  ;;  %vm3400_vm2 = vcmp.eq.s32.totalorder %v3376_v49, 1 }
 0x539   :  { %v3432_v17 = vsel %vm3396_vm13, %v3331_v37, -1e+30  ;;  %v3283_v11 = vcombine.high %v3239_v23, %v3239_v23  ;;  %v3303_v4 = vmax.f32 %v3239_v23, 0.0  ;;  %v3332_v41 = vadd.f32 %v3302_v29, %v5091_v60 }
 0x53a   :  { %v3445_v31 = vsel %vm3444_vm8, %v3432_v17, -inf }
 0x53b   :  { %v3446_v8 = vmax.f32 %v3443_v25, %v3445_v31  ;;  %v3304_v13 = vmax.f32 %v3283_v11, 0.0  ;;  %v3333_v61 = vadd.f32 %v3303_v4, %v5093_v24 }
 0x53d   :  { %v3447_v32 = vrot.slane %v3446_v8, 4  ;;  %v3334_v3 = vadd.f32 %v3304_v13, %v5098_v45  ;;  %v3420_v28 = vcombine.low %v3332_v41, %v3333_v61  ;;  %v3382_v13 = vpop.permute.xlu0 %3381 }
 0x53e   :  { %vm3402_vm4 = vcmp.eq.s32.totalorder %v3382_v13, 1  ;;  %v3661_v13 = vld [vmem:[%s5408_s14 + $0x10] sm:$0xff] }
 0x53f   :  { %v3448_v42 = vmax.f32 %v3446_v8, %v3447_v32  ;;  %v3433_v38 = vsel %vm3397_vm14, %v3420_v28, -1e+30  ;;  %v3434_v39 = vsel %vm3398_vm15, %v3334_v3, -1e+30 }
 0x540   :  { %v3453_v36 = vsel %vm213_vm6, %v3433_v38, -inf  ;;  %v3454_v27 = vsel %vm3444_vm8, %v3434_v39, -inf }
 0x541   :  { %v3455_v2 = vmax.f32 %v3453_v36, %v3454_v27  ;;  %v3449_v14 = vrot.slane %v3448_v42, 2  ;;  %v3243_v60 = vpop.f32.mrb[20].mxu1 }
 0x542   :  { %v3244_v15 = vadd.f32 %v3243_v60, %v5317_v0  ;;  %v3988_v24 = vpop.f32.mrb[21].mxu1 }
 0x543   :  { %v3456_v47 = vrot.slane %v3455_v2, 4  ;;  %v3450_v52 = vmax.f32 %v3448_v42, %v3449_v14 }
 0x544   :  { %v3284_v1 = vcombine.high %v3244_v15, %v3244_v15  ;;  %v3305_v45 = vmax.f32 %v3244_v15, 0.0 }
 0x545   :  { %v3457_v58 = vmax.f32 %v3455_v2, %v3456_v47  ;;  %v3451_v53 = vrot.slane %v3450_v52, 1 }
 0x546   :  { %v3306_v59 = vmax.f32 %v3284_v1, 0.0  ;;  %v3335_v10 = vadd.f32 %v3305_v45, %v5120_v51 }
 0x547   :  { %v3458_v6 = vrot.slane %v3457_v58, 2  ;;  %v3248_v43 = vpop.f32.mrb[22].mxu1 }
 0x548   :  { %v3336_v62 = vadd.f32 %v3306_v59, %v5122_v30  ;;  %v3249_v21 = vadd.f32 %v3248_v43, %v5320_v44  ;;  %v3991_v19 = vpop.f32.mrb[23].mxu1  ;;  %v3452_v30 = vmax.f32 %v3450_v52, %v3451_v53 }
 0x549   :  { %v3459_v54 = vmax.f32 %v3457_v58, %v3458_v6 }
 0x54a   :  { %v3421_v5 = vcombine.low %v3335_v10, %v3336_v62  ;;  %v3285_v40 = vcombine.high %v3249_v21, %v3249_v21  ;;  %v3307_v56 = vmax.f32 %v3249_v21, 0.0  ;;  %v3388_v10 = vpop.permute.xlu0 %3387 }
 0x54b   :  { %v3460_v9 = vrot.slane %v3459_v54, 1  ;;  %v3253_v29 = vpop.f32.mrb[24].mxu1  ;;  %vm3404_vm10 = vcmp.eq.s32.totalorder %v3388_v10, 1 }
 0x54c   :  { %v3435_v37 = vsel %vm3399_vm0, %v3421_v5, -1e+30  ;;  %v3308_v23 = vmax.f32 %v3285_v40, 0.0  ;;  %v3337_v12 = vadd.f32 %v3307_v56, %v5124_v50  ;;  %v3254_v51 = vadd.f32 %v3253_v29, %v5325_v20  ;;  %v3994_v17 = vpop.f32.mrb[25].mxu1  ;;  %v3379_v50 = vpop.permute.xlu1 %3378 }
 0x54d   :  { %v3461_v11 = vmax.f32 %v3459_v54, %v3460_v9  ;;  %v3462_v35 = vsel %vm213_vm6, %v3435_v37, -inf  ;;  %vm3401_vm3 = vcmp.eq.s32.totalorder %v3379_v50, 1 }
 0x54e   :  { %v3436_v4 = vsel %vm3400_vm2, %v3337_v12, -1e+30  ;;  %v3286_v25 = vcombine.high %v3254_v51, %v3254_v51  ;;  %v3309_v31 = vmax.f32 %v3254_v51, 0.0  ;;  %v3338_v61 = vadd.f32 %v3308_v23, %v5138_v63 }
 0x54f   :  { %v3463_v41 = vsel %vm3444_vm8, %v3436_v4, -inf  ;;  %v3510_v8 = vsel %vm3509_vm1, %v3461_v11, %v3452_v30 }
 0x550   :  { %v3464_v32 = vmax.f32 %v3462_v35, %v3463_v41  ;;  %v3310_v3 = vmax.f32 %v3286_v25, 0.0  ;;  %v3339_v28 = vadd.f32 %v3309_v31, %v5140_v55  ;;  %4007 = vmatmul.mubr.msk.f32.vlgmr.msra.gmra.mrb[22].mxu0 %vm213_vm6, %v3510_v8  ;;  %v3385_v52 = vpop.permute.xlu1 %3384  ;;  %v3394_v25 = vpop.permute.xlu0 %3393 }
 0x551   :  { %v3258_v42 = vpop.f32.mrb[26].mxu1  ;;  %4010 = vmatpush3.msra.mxu0 %v3584_v26  ;;  %4011 = vmatprep.mubr.msk.f32.mxu0 %vm4108_vm5, %v4109_v57  ;;  %vm3403_vm9 = vcmp.eq.s32.totalorder %v3385_v52, 1  ;;  %vm3406_vm12 = vcmp.eq.s32.totalorder %v3394_v25, 1 }
 0x552   :  { %v3465_v38 = vrot.slane %v3464_v32, 4  ;;  %v3340_v39 = vadd.f32 %v3310_v3, %v5144_v22  ;;  %v3422_v36 = vcombine.low %v3338_v61, %v3339_v28  ;;  %v3259_v27 = vadd.f32 %v3258_v42, %v5317_v0  ;;  %v3997_v2 = vpop.f32.mrb[27].mxu1  ;;  %4014 = vmatprep.subr.mxu0 %v4109_v57 }
 0x554   :  { %v3466_v63 = vmax.f32 %v3464_v32, %v3465_v38  ;;  %v3437_v55 = vsel %vm3401_vm3, %v3422_v36, -1e+30  ;;  %v3438_v14 = vsel %vm3402_vm4, %v3340_v39, -1e+30  ;;  %v3287_v60 = vcombine.high %v3259_v27, %v3259_v27  ;;  %v3391_v4 = vpop.permute.xlu1 %3390 }
 0x555   :  { %v3471_v47 = vsel %vm213_vm6, %v3437_v55, -inf  ;;  %v3472_v15 = vsel %vm3444_vm8, %v3438_v14, -inf  ;;  %v3311_v24 = vmax.f32 %v3259_v27, 0.0  ;;  %vm3405_vm11 = vcmp.eq.s32.totalorder %v3391_v4, 1 }
 0x556   :  { %v3467_v58 = vrot.slane %v3466_v63, 2  ;;  %v3473_v1 = vmax.f32 %v3471_v47, %v3472_v15  ;;  %v3312_v22 = vmax.f32 %v3287_v60, 0.0  ;;  %v3802_v15 = vld [vmem:[%s5409_s15] ss:$0 sm:$0xff] }
 0x557   :  { %v3263_v45 = vpop.f32.mrb[28].mxu1  ;;  %v3341_v6 = vadd.f32 %v3311_v24, %v5165_v16 }
 0x558   :  { %v3474_v0 = vrot.slane %v3473_v1, 4  ;;  %v3342_v59 = vadd.f32 %v3312_v22, %v5161_v18  ;;  %v3264_v43 = vadd.f32 %v3263_v45, %v5320_v44  ;;  %v4000_v7 = vpop.f32.mrb[29].mxu1  ;;  %v3468_v54 = vmax.f32 %v3466_v63, %v3467_v58 }
 0x55a   :  { %v3475_v62 = vmax.f32 %v3473_v1, %v3474_v0  ;;  %v3423_v21 = vcombine.low %v3341_v6, %v3342_v59  ;;  %v3288_v19 = vcombine.high %v3264_v43, %v3264_v43  ;;  %v3313_v53 = vmax.f32 %v3264_v43, 0.0 }
 0x55b   :  { %v3268_v49 = vpop.f32.mrb[30].mxu1  ;;  %v3469_v44 = vrot.slane %v3468_v54, 1 }
 0x55c   :  { %v3476_v5 = vrot.slane %v3475_v62, 2  ;;  %v3439_v40 = vsel %vm3403_vm9, %v3423_v21, -1e+30  ;;  %v3343_v56 = vadd.f32 %v3313_v53, %v5171_v48  ;;  %v4003_v9 = vpop.f32.mrb[31].mxu1  ;;  %v3314_v16 = vmax.f32 %v3288_v19, 0.0 }
 0x55d   :  { %v3269_v18 = vadd.f32 %v3268_v49, %v5325_v20  ;;  %v3480_v23 = vsel %vm213_vm6, %v3439_v40, -inf  ;;  %v3470_v20 = vmax.f32 %v3468_v54, %v3469_v44 }
 0x55e   :  { %v3440_v29 = vsel %vm3404_vm10, %v3343_v56, -1e+30  ;;  %v3477_v37 = vmax.f32 %v3475_v62, %v3476_v5  ;;  %v3344_v48 = vadd.f32 %v3314_v16, %v5186_v34 }
 0x55f   :  { %v3481_v12 = vsel %vm3444_vm8, %v3440_v29, -inf  ;;  %v3289_v51 = vcombine.high %v3269_v18, %v3269_v18  ;;  %v3315_v17 = vmax.f32 %v3269_v18, 0.0 }
 0x560   :  { %v3482_v30 = vmax.f32 %v3480_v23, %v3481_v12  ;;  %v3478_v11 = vrot.slane %v3477_v37, 1 }
 0x561   :  { %v3316_v31 = vmax.f32 %v3289_v51, 0.0  ;;  %v3345_v26 = vadd.f32 %v3315_v17, %v5188_v33 }
 0x562   :  { %v3483_v35 = vrot.slane %v3482_v30, 4  ;;  %v3479_v41 = vmax.f32 %v3477_v37, %v3478_v11 }
 0x563   :  { %v3346_v8 = vadd.f32 %v3316_v31, %v5191_v46  ;;  %v3424_v50 = vcombine.low %v3344_v48, %v3345_v26 }
 0x564   :  { %v3484_v61 = vmax.f32 %v3482_v30, %v3483_v35  ;;  %v3587_v32 = vsel %vm3509_vm1, %v3479_v41, %v3470_v20 }
 0x565   :  { %v3441_v3 = vsel %vm3405_vm11, %v3424_v50, -1e+30  ;;  %v3442_v34 = vsel %vm3406_vm12, %v3346_v8, -1e+30  ;;  %4012 = vmatmul.mubr.msk.f32.vlgmr.msra.gmra.mrb[22].mxu0 %vm213_vm6, %v3587_v32 }
 0x566   :  { %v3489_v33 = vsel %vm213_vm6, %v3441_v3, -inf  ;;  %v3490_v28 = vsel %vm3444_vm8, %v3442_v34, -inf  ;;  %4015 = vmatpush3.msra.mxu0 %v3661_v13  ;;  %4016 = vmatprep.mubr.msk.f32.mxu0 %vm4108_vm5, %v4109_v57  ;;  %v3485_v46 = vrot.slane %v3484_v61, 2  ;;  %vm3738_vm5 = vcmask 9216  }
 0x567   :  { %v3491_v42 = vmax.f32 %v3489_v33, %v3490_v28 }
 0x568   :  { %v3486_v36 = vmax.f32 %v3484_v61, %v3485_v46 }
 0x569   :  { %v3492_v38 = vrot.slane %v3491_v42, 4 }
 0x56a   :  { %v3487_v2 = vrot.slane %v3486_v36, 1 }
 0x56b   :  { %v3493_v39 = vmax.f32 %v3491_v42, %v3492_v38 }
 0x56c   :  { %v3488_v14 = vmax.f32 %v3486_v36, %v3487_v2 }
 0x56d   :  { %v3494_v27 = vrot.slane %v3493_v39, 2 }
 0x56f   :  { %v3495_v63 = vmax.f32 %v3493_v39, %v3494_v27 }
 0x571   :  { %v3496_v55 = vrot.slane %v3495_v63, 1 }
 0x573   :  { %v3497_v60 = vmax.f32 %v3495_v63, %v3496_v55 }
 0x575   :  { %v3664_v47 = vsel %vm3509_vm1, %v3497_v60, %v3488_v14 }
 0x576   :  { %4017 = vmatmul.mubr.msk.f32.vlgmr.msra.gmra.mrb[22].mxu0 %vm213_vm6, %v3664_v47 }
 0x649   :  { %v3733_v57 = vpop.f32.mrb[22].mxu0 }
 0x64a   :  { %v4059_v24 = vadd.f32 %v3802_v15, %v3733_v57  ;;  %v4018_v58 = vpop.f32.mrb[23].mxu0 }
 0x64c   :  { %3739 = vst.msk [vmem:[#allocation2] sm:$0x3] %vm3738_vm5, %v4059_v24 }
 0x64d   :  { %4090 = shalt.err (!%p4087_p4)
}
 0x64e   :  { %s4091_s1 = scalar_lea.hbm %s5410_s16, 32 }
 0x64f   :  { %p4092_p5 = scmp.ne.s32.totalorder %s5410_s16, %s4091_s1  ;;  %p4095_p6 = scmp.lt.u32.totalorder %s4091_s1, %s5410_s16 }
 0x651   :  { %p4097_p7 = pnand %p4095_p6, %p4092_p5 }
 0x653   :  { %4100 = shalt.err (!%p4097_p7)
}
 0x654   :  { %3749 = dma.vmem_to_hbm [thread:$0]  %s3747_s6, 32, %s5410_s16, [#allocation3]  }
 0x655   :  { %4101 = dma.done.wait [#allocation3], 32  }
 0x656   :  { %4102 = vsyncadd [#allocation3], 4294967264 }
 0x657   :  { %3753 = vsyncpa [#allocation3], 1 }

// kernel: r_bi_c_forward.2
= control target key start
LH: loop header
LB: loop body
LE: loop exit
PB: predicated region body
PF: predicated region fallthrough
CT: control target
= control target key end

     0   :  { %v4512_v3 = vmov 0.0   ;;  %vm37_vm0 = vcmask 130048   ;;  %v27_v35 = vlaneseq  ;;  %vm153_vm1 = vcmask 1041409   ;;  %s4514_s10 = smov 32   ;;  %s5767_s1 = inlined_call_operand.vmem [shape: f32[16,256], index: 1, kind: input, shape index: {}]   ;;  %s5768_s2 = inlined_call_operand.vmem [shape: f32[64,256], index: 2, kind: input, shape index: {}]   ;;  %s5769_s0 = inlined_call_operand.vmem [shape: f32[2,16,16], index: 0, kind: input, shape index: {}]   ;;  %s5770_s3 = inlined_call_operand.vmem [shape: f32[1,1,256], index: 3, kind: input, shape index: {}]   ;;  %s5771_s4 = inlined_call_operand.vmem [shape: f32[2,16,64], index: 4, kind: output, shape index: {}]  }
   0x1   :  { %v22_v0 = vld [vmem:[%s5767_s1 + $0x8] sm:$0xff]  ;;  %v24_v1 = vld [vmem:[%s5767_s1 + $0x18] sm:$0xff]  ;;  %v21_v2 = vld [vmem:[%s5767_s1] sm:$0xff]  ;;  %114 = vmatprep.mubr.f32.mxu0 %v4512_v3  ;;  %244 = vmatprep.mubr.f32.mxu1 %v4512_v3  ;;  %vm387_vm2 = vcmask 261120   ;;  %vm176_vm3 = vcmask 523264   ;;  %vm338_vm4 = vcmask 253952  }
   0x2   :  { %v3992_v4 = vpack.c.bf16 %v24_v1, %v22_v0  ;;  %v23_v5 = vld [vmem:[%s5767_s1 + $0x10] sm:$0xff]  ;;  %v161_v6 = vld [vmem:[%s5768_s2 + $0x8] sm:$0xff]  ;;  %v163_v8 = vld [vmem:[%s5768_s2 + $0x18] sm:$0xff]  ;;  %v4667_v36 = vshrl.u32 %v27_v35, 7  ;;  %vm378_vm5 = vcmask 516352  }
   0x3   :  { %v3994_v7 = vpack.c.bf16 %v23_v5, %v21_v2  ;;  %v160_v9 = vld [vmem:[%s5768_s2] sm:$0xff]  ;;  %v4564_v10 = vpack.c.bf16 %v163_v8, %v161_v6  ;;  %v162_v11 = vld [vmem:[%s5768_s2 + $0x10] sm:$0xff]  ;;  %v165_v12 = vld [vmem:[%s5768_s2 + $0x28] sm:$0xff] }
   0x4   :  { %3993 = vmatprep.subr.bf16.mxu0 %v3992_v4  ;;  %v167_v13 = vld [vmem:[%s5768_s2 + $0x38] sm:$0xff]  ;;  %v17_v14 = vld [vmem:[%s5769_s0] sm:$0xff]  ;;  %v4578_v15 = vpack.c.bf16 %v162_v11, %v160_v9  ;;  %v166_v18 = vld [vmem:[%s5768_s2 + $0x30] sm:$0xff]  ;;  %v4670_v37 = vsub.s32 0, %v4667_v36  ;;  %v33_v39 = vsub.s32 1, %v4667_v36 }
   0x5   :  { %3995 = vmatpush1.bf16.msra.mxu0 %v3994_v7  ;;  %v4580_v16 = vpack.c.bf16 %v167_v13, %v165_v12  ;;  %v164_v17 = vld [vmem:[%s5768_s2 + $0x20] sm:$0xff]  ;;  %3997 = vmatprep.subr.bf16.mxu1 %v4564_v10  ;;  %v169_v19 = vld [vmem:[%s5768_s2 + $0x48] sm:$0xff]  ;;  %v171_v20 = vld [vmem:[%s5768_s2 + $0x58] sm:$0xff] }
   0x6   :  { %4013 = vmatprep.subr.bf16.mxu0 %v4564_v10  ;;  %3999 = vmatpush1.bf16.msra.mxu1 %v4578_v15  ;;  %v4597_v21 = vpack.c.bf16 %v166_v18, %v164_v17  ;;  %v4601_v22 = vpack.c.bf16 %v171_v20, %v169_v19  ;;  %v168_v23 = vld [vmem:[%s5768_s2 + $0x40] sm:$0xff]  ;;  %v170_v24 = vld [vmem:[%s5768_s2 + $0x50] sm:$0xff]  ;;  %v18_v25 = vld [vmem:[%s5769_s0 + $0x8] sm:$0xff] }
   0x7   :  { %4001 = vmatprep.subr.bf16.mxu1 %v4580_v16  ;;  %v173_v26 = vld [vmem:[%s5768_s2 + $0x68] sm:$0xff]  ;;  %v175_v27 = vld [vmem:[%s5768_s2 + $0x78] sm:$0xff]  ;;  %v4622_v28 = vpack.c.bf16 %v170_v24, %v168_v23  ;;  %v172_v30 = vld [vmem:[%s5768_s2 + $0x60] sm:$0xff] }
   0x8   :  { %3941 = vmatmul.mubr.msk.f32.vlgmr.msra.gmra.mrb[0].mxu0 %vm37_vm0, %v17_v14  ;;  %v4626_v29 = vpack.c.bf16 %v175_v27, %v173_v26  ;;  %v174_v31 = vld [vmem:[%s5768_s2 + $0x70] sm:$0xff]  ;;  %v20_v34 = vld [vmem:[%s5769_s0 + $0x18] sm:$0xff]  ;;  %v25_v38 = vld [vmem:[%s5770_s3] sm:$0x3]  ;;  %s4513_s3 = smov 64  }
   0x9   :  { %120 = vmatprep.mubr.f32.mxu0 %v4512_v3  ;;  %4015 = vmatpush1.bf16.msra.mxu0 %v4578_v15  ;;  %v19_v32 = vld [vmem:[%s5769_s0 + $0x10] sm:$0xff]  ;;  %v4641_v33 = vpack.c.bf16 %v174_v31, %v172_v30  ;;  %v30_v40 = vrot.slane %v25_v38, %v4670_v37  ;;  %v34_v41 = vrot.slane %v25_v38, %v33_v39 }
   0xa   :  { %4017 = vmatprep.subr.bf16.mxu0 %v4580_v16  ;;  %4003 = vmatpush1.bf16.msra.mxu1 %v4597_v21 }
   0xb   :  { %4005 = vmatprep.subr.bf16.mxu1 %v4601_v22 }
   0xc   :  { %3942 = vmatmul.mubr.msk.f32.gmra.mrb[2].mxu0 %vm37_vm0, %v18_v25 }
   0xd   :  { %126 = vmatprep.mubr.f32.mxu0 %v4512_v3  ;;  %4019 = vmatpush1.bf16.msra.mxu0 %v4597_v21 }
   0xe   :  { %4021 = vmatprep.subr.bf16.mxu0 %v4601_v22  ;;  %4007 = vmatpush1.bf16.msra.mxu1 %v4622_v28 }
   0xf   :  { %4009 = vmatprep.subr.bf16.mxu1 %v4626_v29 }
  0x10   :  { %3943 = vmatmul.mubr.msk.f32.gmra.mrb[4].mxu0 %vm37_vm0, %v19_v32 }
  0x11   :  { %132 = vmatprep.mubr.f32.mxu0 %v4512_v3  ;;  %4023 = vmatpush1.bf16.msra.mxu0 %v4622_v28 }
  0x12   :  { %4025 = vmatprep.subr.bf16.mxu0 %v4626_v29  ;;  %4011 = vmatpush1.bf16.msra.mxu1 %v4641_v33 }
  0x13   :  { %4029 = vmatprep.subr.bf16.mxu1 %v4564_v10 }
  0x14   :  { %3944 = vmatmul.mubr.msk.f32.gmra.mrb[6].mxu0 %vm37_vm0, %v20_v34 }
  0x15   :  { %4027 = vmatpush1.bf16.msra.mxu0 %v4641_v33  ;;  %484 = vmatprep.mubr.f32.mxu0 %v4512_v3 }
  0x16   :  { %245 = vmatmul.mubr.f32.vlgmr.msra.gmra.mrb[0].mxu1 %v4512_v3  ;;  %4045 = vmatprep.subr.bf16.mxu0 %v4564_v10 }
  0x17   :  { %4031 = vmatpush1.bf16.msra.mxu1 %v4578_v15  ;;  %721 = vmatprep.mubr.f32.mxu1 %v4512_v3 }
  0x18   :  { %4033 = vmatprep.subr.bf16.mxu1 %v4580_v16 }
  0x1b   :  { %4035 = vmatpush1.bf16.msra.mxu1 %v4597_v21 }
  0x1c   :  { %4037 = vmatprep.subr.bf16.mxu1 %v4601_v22 }
  0x1f   :  { %4039 = vmatpush1.bf16.msra.mxu1 %v4622_v28 }
  0x20   :  { %4041 = vmatprep.subr.bf16.mxu1 %v4626_v29 }
  0x23   :  { %4043 = vmatpush1.bf16.msra.mxu1 %v4641_v33 }
  0x24   :  { %4061 = vmatprep.subr.bf16.mxu1 %v4564_v10 }
  0xdb   :  { %v116_v42 = vpop.f32.mrb[0].mxu0 }
  0xdc   :  { %v117_v43 = vadd.f32 %v116_v42, %v30_v40  ;;  %v118_v44 = vpop.f32.mrb[1].mxu0 }
  0xdd   :  { %v119_v45 = vadd.f32 %v118_v44, %v34_v41 }
  0xde   :  { %139 = vst [vmem:[#allocation2] sm:$0xff] %v117_v43 }
  0xdf   :  { %140 = vst [vmem:[#allocation2 + $0x8] sm:$0xff] %v119_v45  ;;  %v122_v46 = vpop.f32.mrb[2].mxu0 }
  0xe0   :  { %v123_v47 = vadd.f32 %v122_v46, %v30_v40  ;;  %v124_v48 = vpop.f32.mrb[3].mxu0 }
  0xe1   :  { %v125_v49 = vadd.f32 %v124_v48, %v34_v41 }
  0xe2   :  { %141 = vst [vmem:[#allocation2 + $0x10] sm:$0xff] %v123_v47 }
  0xe3   :  { %142 = vst [vmem:[#allocation2 + $0x18] sm:$0xff] %v125_v49  ;;  %v128_v50 = vpop.f32.mrb[4].mxu0 }
  0xe4   :  { %v129_v51 = vadd.f32 %v128_v50, %v30_v40  ;;  %v130_v52 = vpop.f32.mrb[5].mxu0 }
  0xe5   :  { %v131_v53 = vadd.f32 %v130_v52, %v34_v41  ;;  %v147_v60 = vld [vmem:[#allocation2] ss:$0 sm:$0xff]  ;;  %v389_v46 = vld [vmem:[#allocation2 + $0x1] ss:$0 sm:$0xff] }
  0xe6   :  { %143 = vst [vmem:[#allocation2 + $0x20] sm:$0xff] %v129_v51 }
  0xe7   :  { %144 = vst [vmem:[#allocation2 + $0x28] sm:$0xff] %v131_v53  ;;  %v134_v54 = vpop.f32.mrb[6].mxu0 }
  0xe8   :  { %v135_v55 = vadd.f32 %v134_v54, %v30_v40  ;;  %v136_v56 = vpop.f32.mrb[7].mxu0 }
  0xe9   :  { %v137_v57 = vadd.f32 %v136_v56, %v34_v41  ;;  %v246_v58 = vpop.f32.mrb[0].mxu1 }
  0xea   :  { %145 = vst [vmem:[#allocation2 + $0x30] sm:$0xff] %v135_v55  ;;  %v248_v59 = vpop.f32.mrb[1].mxu1  ;;  %v149_v0 = vld [vmem:[#allocation2 + $0x1f] ss:$0 sm:$0xff]  ;;  %v391_v49 = vld [vmem:[#allocation2 + $0x1e] ss:$0 sm:$0xff] }
  0xeb   :  { %146 = vst [vmem:[#allocation2 + $0x38] sm:$0xff] %v137_v57 }
  0xed   :  { %v148_v61 = vld [vmem:[#allocation2 + $0x20] ss:$0 sm:$0xff]  ;;  %v390_v44 = vld [vmem:[#allocation2 + $0x21] ss:$0 sm:$0xff] }
  0xee   :  { %v154_v62 = vsel %vm153_vm1, %v148_v61, %v147_v60  ;;  %v395_v47 = vsel %vm153_vm1, %v390_v44, %v389_v46 }
  0xef   :  { %v251_v63 = vadd.f32 %v246_v58, %v154_v62 }
  0xf1   :  { %4256 = vtanh.f32 %v251_v63  ;;  %v3945_v7 = vmul.f32 -1.442695, %v251_v63 }
  0xf2   :  { %v150_v1 = vld [vmem:[#allocation2 + $0x3f] ss:$0 sm:$0xff]  ;;  %v392_v45 = vld [vmem:[#allocation2 + $0x3e] ss:$0 sm:$0xff] }
  0xf3   :  { %v158_v2 = vsel %vm153_vm1, %v150_v1, %v149_v0  ;;  %v399_v51 = vsel %vm153_vm1, %v392_v45, %v391_v49 }
  0xf4   :  { %v252_v4 = vadd.f32 %v248_v59, %v158_v2 }
  0xf6   :  { %4258 = vtanh.f32 %v252_v4  ;;  %v3946_v8 = vmul.f32 -1.442695, %v252_v4 }
  0xf7   :  { %4260 = vpow2.f32 %v3945_v7 }
  0xf8   :  { %4262 = vpow2.f32 %v3946_v8 }
  0xfb   :  { %v4257_v5 = vpop.eup %4256 }
  0xfc   :  { %269 = vrot.lane.b32.xlu0 %v4257_v5, %s4513_s3 }
 0x100   :  { %v4259_v6 = vpop.eup %4258 }
 0x101   :  { %280 = vrot.lane.b32.xlu0 %v4259_v6, %s4513_s3  ;;  %v4261_v9 = vpop.eup %4260 }
 0x102   :  { %v259_v11 = vadd.f32 1.0, %v4261_v9  ;;  %v4263_v12 = vpop.eup %4262 }
 0x103   :  { %v260_v13 = vadd.f32 1.0, %v4263_v12 }
 0x104   :  { %4264 = vrcp.f32 %v259_v11 }
 0x105   :  { %4266 = vrcp.f32 %v260_v13 }
 0x10e   :  { %v4265_v14 = vpop.eup %4264 }
 0x10f   :  { %v4267_v19 = vpop.eup %4266  ;;  %v267_v24 = vmul.f32 0.0, %v4265_v14 }
 0x110   :  { %v278_v27 = vmul.f32 0.0, %v4267_v19 }
 0x16e   :  { %v270_v17 = vpop.permute.xlu0 %269 }
 0x16f   :  { %v272_v18 = vmul.f32 %v4265_v14, %v270_v17 }
 0x171   :  { %274 = vrot.lane.b32.xlu1 %v272_v18, %s4514_s10 }
 0x173   :  { %v281_v20 = vpop.permute.xlu0 %280 }
 0x174   :  { %v283_v23 = vmul.f32 %v4267_v19, %v281_v20 }
 0x176   :  { %285 = vrot.lane.b32.xlu1 %v283_v23, %s4514_s10 }
 0x1e3   :  { %v275_v25 = vpop.permute.xlu1 %274 }
 0x1e4   :  { %v4683_v26 = vadd.f32 %v275_v25, %v267_v24  ;;  %v627_v24 = vld [vmem:[#allocation2 + $0x22] ss:$0 sm:$0xff]  ;;  %v629_v25 = vld [vmem:[#allocation2 + $0x3d] ss:$0 sm:$0xff] }
 0x1e6   :  { %4268 = vtanh.f32 %v4683_v26 }
 0x1e8   :  { %v286_v30 = vpop.permute.xlu1 %285 }
 0x1e9   :  { %v4686_v31 = vadd.f32 %v286_v30, %v278_v27 }
 0x1eb   :  { %4270 = vtanh.f32 %v4686_v31 }
 0x1f0   :  { %v4269_v32 = vpop.eup %4268 }
 0x1f1   :  { %291 = vrot.lane.b32.xlu0 %v4269_v32, %s4513_s3 }
 0x1f5   :  { %v4271_v34 = vpop.eup %4270 }
 0x1f6   :  { %297 = vrot.lane.b32.xlu1 %v4271_v34, %s4513_s3 }
 0x263   :  { %v292_v35 = vpop.permute.xlu0 %291 }
 0x264   :  { %v4691_v38 = vmul.f32 %v4265_v14, %v292_v35 }
 0x266   :  { %381 = vrot.lane.b32.xlu0 %v4691_v38, %s4514_s10 }
 0x268   :  { %v298_v39 = vpop.permute.xlu1 %297 }
 0x269   :  { %v4695_v40 = vmul.f32 %v4267_v19, %v298_v39 }
 0x26b   :  { %384 = vrot.lane.b32.xlu1 %v4695_v40, %s4513_s3 }
 0x2d8   :  { %v382_v41 = vpop.permute.xlu0 %381 }
 0x2dd   :  { %v385_v42 = vpop.permute.xlu1 %384 }
 0x2de   :  { %v388_v43 = vsel %vm387_vm2, %v382_v41, %v385_v42 }
 0x2df   :  { %3947 = vmatmul.mubr.msk.f32.vlgmr.msra.gmra.mrb[8].mxu0 %vm176_vm3, %v388_v43 }
 0x2e0   :  { %4047 = vmatpush1.bf16.msra.mxu0 %v4578_v15  ;;  %958 = vmatprep.mubr.f32.mxu0 %v4512_v3 }
 0x2e1   :  { %4049 = vmatprep.subr.bf16.mxu0 %v4580_v16 }
 0x2e4   :  { %4051 = vmatpush1.bf16.msra.mxu0 %v4597_v21 }
 0x2e5   :  { %4053 = vmatprep.subr.bf16.mxu0 %v4601_v22 }
 0x2e8   :  { %4055 = vmatpush1.bf16.msra.mxu0 %v4622_v28 }
 0x2e9   :  { %4057 = vmatprep.subr.bf16.mxu0 %v4626_v29 }
 0x2ec   :  { %4059 = vmatpush1.bf16.msra.mxu0 %v4641_v33 }
 0x2ed   :  { %4077 = vmatprep.subr.bf16.mxu0 %v4564_v10 }
 0x3b2   :  { %v486_v48 = vpop.f32.mrb[8].mxu0 }
 0x3b3   :  { %v491_v50 = vadd.f32 %v486_v48, %v395_v47  ;;  %v488_v52 = vpop.f32.mrb[9].mxu0 }
 0x3b4   :  { %v492_v53 = vadd.f32 %v488_v52, %v399_v51 }
 0x3b5   :  { %4272 = vtanh.f32 %v491_v50  ;;  %v3948_v10 = vmul.f32 -1.442695, %v491_v50 }
 0x3b6   :  { %4274 = vtanh.f32 %v492_v53  ;;  %v3949_v56 = vmul.f32 -1.442695, %v492_v53 }
 0x3b7   :  { %4276 = vpow2.f32 %v3948_v10 }
 0x3b8   :  { %4278 = vpow2.f32 %v3949_v56 }
 0x3bf   :  { %v4273_v54 = vpop.eup %4272 }
 0x3c0   :  { %v4275_v55 = vpop.eup %4274  ;;  %509 = vrot.lane.b32.xlu0 %v4273_v54, %s4513_s3 }
 0x3c1   :  { %520 = vrot.lane.b32.xlu1 %v4275_v55, %s4513_s3  ;;  %v4277_v57 = vpop.eup %4276 }
 0x3c2   :  { %v4279_v58 = vpop.eup %4278  ;;  %v499_v59 = vadd.f32 1.0, %v4277_v57 }
 0x3c3   :  { %v500_v60 = vadd.f32 1.0, %v4279_v58 }
 0x3c4   :  { %4280 = vrcp.f32 %v499_v59 }
 0x3c5   :  { %4282 = vrcp.f32 %v500_v60 }
 0x3ce   :  { %v4281_v61 = vpop.eup %4280 }
 0x3cf   :  { %v4283_v63 = vpop.eup %4282  ;;  %v507_v4 = vmul.f32 %v4281_v61, %v4683_v26  ;;  %v626_v26 = vld [vmem:[#allocation2 + $0x2] ss:$0 sm:$0xff] }
 0x3d0   :  { %v518_v6 = vmul.f32 %v4283_v63, %v4686_v31  ;;  %v632_v27 = vsel %vm153_vm1, %v627_v24, %v626_v26  ;;  %v628_v31 = vld [vmem:[#allocation2 + $0x1d] ss:$0 sm:$0xff] }
 0x3d1   :  { %v636_v34 = vsel %vm153_vm1, %v629_v25, %v628_v31 }
 0x432   :  { %v510_v62 = vpop.permute.xlu0 %509 }
 0x433   :  { %v512_v0 = vmul.f32 %v4281_v61, %v510_v62  ;;  %v521_v1 = vpop.permute.xlu1 %520 }
 0x434   :  { %v523_v2 = vmul.f32 %v4283_v63, %v521_v1 }
 0x435   :  { %514 = vrot.lane.b32.xlu0 %v512_v0, %s4514_s10 }
 0x436   :  { %525 = vrot.lane.b32.xlu1 %v523_v2, %s4514_s10 }
 0x4a7   :  { %v515_v5 = vpop.permute.xlu0 %514 }
 0x4a8   :  { %v517_v7 = vadd.f32 %v515_v5, %v507_v4  ;;  %v526_v8 = vpop.permute.xlu1 %525 }
 0x4a9   :  { %v528_v9 = vadd.f32 %v526_v8, %v518_v6  ;;  %v864_v6 = vld [vmem:[#allocation2 + $0x23] ss:$0 sm:$0xff] }
 0x4aa   :  { %4284 = vtanh.f32 %v517_v7  ;;  %v863_v8 = vld [vmem:[#allocation2 + $0x3] ss:$0 sm:$0xff] }
 0x4ab   :  { %4286 = vtanh.f32 %v528_v9 }
 0x4b4   :  { %v4285_v11 = vpop.eup %4284 }
 0x4b5   :  { %v4287_v12 = vpop.eup %4286  ;;  %531 = vrot.lane.b32.xlu0 %v4285_v11, %s4513_s3  ;;  %v865_v11 = vld [vmem:[#allocation2 + $0x1c] ss:$0 sm:$0xff] }
 0x4b6   :  { %537 = vrot.lane.b32.xlu1 %v4287_v12, %s4513_s3 }
 0x527   :  { %v532_v13 = vpop.permute.xlu0 %531 }
 0x528   :  { %v4720_v14 = vmul.f32 %v4281_v61, %v532_v13  ;;  %v538_v17 = vpop.permute.xlu1 %537 }
 0x529   :  { %v4722_v18 = vmul.f32 %v4283_v63, %v538_v17 }
 0x52a   :  { %619 = vrot.lane.b32.xlu0 %v4720_v14, %s4514_s10 }
 0x52b   :  { %622 = vrot.lane.b32.xlu1 %v4722_v18, %s4513_s3 }
 0x59c   :  { %v620_v19 = vpop.permute.xlu0 %619 }
 0x59d   :  { %v623_v20 = vpop.permute.xlu1 %622 }
 0x59e   :  { %v625_v23 = vsel %vm387_vm2, %v620_v19, %v623_v20 }
 0x59f   :  { %3950 = vmatmul.mubr.msk.f32.vlgmr.msra.gmra.mrb[2].mxu1 %vm176_vm3, %v625_v23 }
 0x5a0   :  { %4063 = vmatpush1.bf16.msra.mxu1 %v4578_v15  ;;  %1195 = vmatprep.mubr.f32.mxu1 %v4512_v3 }
 0x5a1   :  { %4065 = vmatprep.subr.bf16.mxu1 %v4580_v16 }
 0x5a4   :  { %4067 = vmatpush1.bf16.msra.mxu1 %v4597_v21 }
 0x5a5   :  { %4069 = vmatprep.subr.bf16.mxu1 %v4601_v22 }
 0x5a8   :  { %4071 = vmatpush1.bf16.msra.mxu1 %v4622_v28 }
 0x5a9   :  { %4073 = vmatprep.subr.bf16.mxu1 %v4626_v29 }
 0x5ac   :  { %4075 = vmatpush1.bf16.msra.mxu1 %v4641_v33 }
 0x672   :  { %v723_v30 = vpop.f32.mrb[2].mxu1 }
 0x673   :  { %v728_v32 = vadd.f32 %v723_v30, %v632_v27  ;;  %v725_v35 = vpop.f32.mrb[3].mxu1 }
 0x674   :  { %v729_v39 = vadd.f32 %v725_v35, %v636_v34 }
 0x675   :  { %4288 = vtanh.f32 %v728_v32  ;;  %v3951_v43 = vmul.f32 -1.442695, %v728_v32 }
 0x676   :  { %4290 = vtanh.f32 %v729_v39  ;;  %v3952_v44 = vmul.f32 -1.442695, %v729_v39 }
 0x677   :  { %4292 = vpow2.f32 %v3951_v43 }
 0x678   :  { %4294 = vpow2.f32 %v3952_v44 }
 0x67f   :  { %v4289_v41 = vpop.eup %4288 }
 0x680   :  { %v4291_v42 = vpop.eup %4290  ;;  %746 = vrot.lane.b32.xlu0 %v4289_v41, %s4513_s3 }
 0x681   :  { %757 = vrot.lane.b32.xlu1 %v4291_v42, %s4513_s3  ;;  %v4293_v45 = vpop.eup %4292 }
 0x682   :  { %v4295_v46 = vpop.eup %4294  ;;  %v736_v47 = vadd.f32 1.0, %v4293_v45 }
 0x683   :  { %v737_v48 = vadd.f32 1.0, %v4295_v46 }
 0x684   :  { %4296 = vrcp.f32 %v736_v47 }
 0x685   :  { %4298 = vrcp.f32 %v737_v48 }
 0x68e   :  { %v4297_v49 = vpop.eup %4296 }
 0x68f   :  { %v4299_v51 = vpop.eup %4298  ;;  %v744_v55 = vmul.f32 %v4297_v49, %v517_v7  ;;  %v866_v7 = vld [vmem:[#allocation2 + $0x3c] ss:$0 sm:$0xff] }
 0x690   :  { %v755_v56 = vmul.f32 %v4299_v51, %v528_v9  ;;  %v869_v9 = vsel %vm153_vm1, %v864_v6, %v863_v8 }
 0x6f2   :  { %v747_v50 = vpop.permute.xlu0 %746 }
 0x6f3   :  { %v749_v52 = vmul.f32 %v4297_v49, %v747_v50  ;;  %v758_v53 = vpop.permute.xlu1 %757 }
 0x6f4   :  { %v760_v54 = vmul.f32 %v4299_v51, %v758_v53  ;;  %v1103_v53 = vld [vmem:[#allocation2 + $0x3b] ss:$0 sm:$0xff] }
 0x6f5   :  { %751 = vrot.lane.b32.xlu0 %v749_v52, %s4514_s10  ;;  %v1101_v52 = vld [vmem:[#allocation2 + $0x24] ss:$0 sm:$0xff] }
 0x6f6   :  { %762 = vrot.lane.b32.xlu1 %v760_v54, %s4514_s10  ;;  %v1100_v54 = vld [vmem:[#allocation2 + $0x4] ss:$0 sm:$0xff] }
 0x767   :  { %v752_v10 = vpop.permute.xlu0 %751 }
 0x768   :  { %v754_v57 = vadd.f32 %v752_v10, %v744_v55  ;;  %v763_v58 = vpop.permute.xlu1 %762  ;;  %v1106_v55 = vsel %vm153_vm1, %v1101_v52, %v1100_v54 }
 0x769   :  { %v765_v59 = vadd.f32 %v763_v58, %v755_v56  ;;  %v1102_v56 = vld [vmem:[#allocation2 + $0x1b] ss:$0 sm:$0xff] }
 0x76a   :  { %4300 = vtanh.f32 %v754_v57  ;;  %v1110_v58 = vsel %vm153_vm1, %v1103_v53, %v1102_v56 }
 0x76b   :  { %4302 = vtanh.f32 %v765_v59 }
 0x774   :  { %v4301_v60 = vpop.eup %4300 }
 0x775   :  { %v4303_v61 = vpop.eup %4302  ;;  %768 = vrot.lane.b32.xlu0 %v4301_v60, %s4513_s3 }
 0x776   :  { %774 = vrot.lane.b32.xlu1 %v4303_v61, %s4513_s3 }
 0x7e7   :  { %v769_v62 = vpop.permute.xlu0 %768 }
 0x7e8   :  { %v4746_v63 = vmul.f32 %v4297_v49, %v769_v62  ;;  %v775_v0 = vpop.permute.xlu1 %774 }
 0x7e9   :  { %v4748_v1 = vmul.f32 %v4299_v51, %v775_v0 }
 0x7ea   :  { %856 = vrot.lane.b32.xlu0 %v4746_v63, %s4514_s10 }
 0x7eb   :  { %859 = vrot.lane.b32.xlu1 %v4748_v1, %s4513_s3 }
 0x85c   :  { %v857_v2 = vpop.permute.xlu0 %856 }
 0x85d   :  { %v860_v4 = vpop.permute.xlu1 %859 }
 0x85e   :  { %v862_v5 = vsel %vm387_vm2, %v857_v2, %v860_v4 }
 0x85f   :  { %3953 = vmatmul.mubr.msk.f32.vlgmr.msra.gmra.mrb[10].mxu0 %vm176_vm3, %v862_v5 }
 0x860   :  { %4079 = vmatpush1.bf16.msra.mxu0 %v4578_v15  ;;  %1432 = vmatprep.mubr.f32.mxu0 %v4512_v3 }
 0x861   :  { %4081 = vmatprep.subr.bf16.mxu0 %v4580_v16  ;;  %v873_v16 = vsel %vm153_vm1, %v866_v7, %v865_v11 }
 0x864   :  { %4083 = vmatpush1.bf16.msra.mxu0 %v4597_v21 }
 0x865   :  { %4085 = vmatprep.subr.bf16.mxu0 %v4601_v22 }
 0x868   :  { %4087 = vmatpush1.bf16.msra.mxu0 %v4622_v28 }
 0x869   :  { %4089 = vmatprep.subr.bf16.mxu0 %v4626_v29 }
 0x86c   :  { %4091 = vmatpush1.bf16.msra.mxu0 %v4641_v33 }
 0x932   :  { %v960_v15 = vpop.f32.mrb[10].mxu0 }
 0x933   :  { %v965_v12 = vadd.f32 %v960_v15, %v869_v9  ;;  %v962_v13 = vpop.f32.mrb[11].mxu0 }
 0x934   :  { %v966_v21 = vadd.f32 %v962_v13, %v873_v16 }
 0x935   :  { %4304 = vtanh.f32 %v965_v12  ;;  %v3954_v29 = vmul.f32 -1.442695, %v965_v12 }
 0x936   :  { %4306 = vtanh.f32 %v966_v21  ;;  %v3955_v33 = vmul.f32 -1.442695, %v966_v21 }
 0x937   :  { %4308 = vpow2.f32 %v3954_v29 }
 0x938   :  { %4310 = vpow2.f32 %v3955_v33 }
 0x93f   :  { %v4305_v22 = vpop.eup %4304 }
 0x940   :  { %v4307_v28 = vpop.eup %4306  ;;  %983 = vrot.lane.b32.xlu0 %v4305_v22, %s4513_s3 }
 0x941   :  { %994 = vrot.lane.b32.xlu1 %v4307_v28, %s4513_s3  ;;  %v4309_v17 = vpop.eup %4308 }
 0x942   :  { %v4311_v19 = vpop.eup %4310  ;;  %v973_v20 = vadd.f32 1.0, %v4309_v17 }
 0x943   :  { %v974_v23 = vadd.f32 1.0, %v4311_v19 }
 0x944   :  { %4312 = vrcp.f32 %v973_v20 }
 0x945   :  { %4314 = vrcp.f32 %v974_v23 }
 0x94e   :  { %v4313_v24 = vpop.eup %4312 }
 0x94f   :  { %v4315_v26 = vpop.eup %4314  ;;  %v981_v32 = vmul.f32 %v4313_v24, %v754_v57 }
 0x950   :  { %v992_v35 = vmul.f32 %v4315_v26, %v765_v59 }
 0x9b2   :  { %v984_v25 = vpop.permute.xlu0 %983 }
 0x9b3   :  { %v986_v27 = vmul.f32 %v4313_v24, %v984_v25  ;;  %v995_v30 = vpop.permute.xlu1 %994 }
 0x9b4   :  { %v997_v31 = vmul.f32 %v4315_v26, %v995_v30 }
 0x9b5   :  { %988 = vrot.lane.b32.xlu0 %v986_v27, %s4514_s10 }
 0x9b6   :  { %999 = vrot.lane.b32.xlu1 %v997_v31, %s4514_s10  ;;  %v1338_v31 = vld [vmem:[#allocation2 + $0x25] ss:$0 sm:$0xff] }
 0xa27   :  { %v989_v34 = vpop.permute.xlu0 %988 }
 0xa28   :  { %v991_v39 = vadd.f32 %v989_v34, %v981_v32  ;;  %v1000_v41 = vpop.permute.xlu1 %999  ;;  %v1340_v32 = vld [vmem:[#allocation2 + $0x3a] ss:$0 sm:$0xff]  ;;  %v1337_v34 = vld [vmem:[#allocation2 + $0x5] ss:$0 sm:$0xff] }
 0xa29   :  { %v1002_v42 = vadd.f32 %v1000_v41, %v992_v35  ;;  %v1343_v35 = vsel %vm153_vm1, %v1338_v31, %v1337_v34  ;;  %v1339_v41 = vld [vmem:[#allocation2 + $0x1a] ss:$0 sm:$0xff]  ;;  %v1598_v34 = vld [vmem:[%s5768_s2 + $0x60] sm:$0xff] }
 0xa2a   :  { %4316 = vtanh.f32 %v991_v39 }
 0xa2b   :  { %4318 = vtanh.f32 %v1002_v42 }
 0xa34   :  { %v4317_v43 = vpop.eup %4316 }
 0xa35   :  { %v4319_v44 = vpop.eup %4318  ;;  %1005 = vrot.lane.b32.xlu0 %v4317_v43, %s4513_s3  ;;  %v1347_v43 = vsel %vm153_vm1, %v1340_v32, %v1339_v41 }
 0xa36   :  { %1011 = vrot.lane.b32.xlu1 %v4319_v44, %s4513_s3 }
 0xaa7   :  { %v1006_v45 = vpop.permute.xlu0 %1005 }
 0xaa8   :  { %v4772_v46 = vmul.f32 %v4313_v24, %v1006_v45  ;;  %v1012_v47 = vpop.permute.xlu1 %1011 }
 0xaa9   :  { %v4774_v48 = vmul.f32 %v4315_v26, %v1012_v47 }
 0xaaa   :  { %1093 = vrot.lane.b32.xlu0 %v4772_v46, %s4514_s10 }
 0xaab   :  { %1096 = vrot.lane.b32.xlu1 %v4774_v48, %s4513_s3 }
 0xb1c   :  { %v1094_v49 = vpop.permute.xlu0 %1093 }
 0xb1d   :  { %v1097_v50 = vpop.permute.xlu1 %1096 }
 0xb1e   :  { %v1099_v51 = vsel %vm387_vm2, %v1094_v49, %v1097_v50 }
 0xb1f   :  { %3956 = vmatmul.mubr.msk.f32.vlgmr.msra.gmra.mrb[4].mxu1 %vm176_vm3, %v1099_v51 }
 0xb20   :  { %1669 = vmatprep.mubr.f32.mxu1 %v4512_v3 }
 0xbf2   :  { %v1197_v10 = vpop.f32.mrb[4].mxu1 }
 0xbf3   :  { %v1202_v57 = vadd.f32 %v1197_v10, %v1106_v55  ;;  %v1199_v59 = vpop.f32.mrb[5].mxu1 }
 0xbf4   :  { %v1203_v60 = vadd.f32 %v1199_v59, %v1110_v58 }
 0xbf5   :  { %4320 = vtanh.f32 %v1202_v57  ;;  %v3957_v0 = vmul.f32 -1.442695, %v1202_v57 }
 0xbf6   :  { %4322 = vtanh.f32 %v1203_v60  ;;  %v3958_v2 = vmul.f32 -1.442695, %v1203_v60 }
 0xbf7   :  { %4324 = vpow2.f32 %v3957_v0 }
 0xbf8   :  { %4326 = vpow2.f32 %v3958_v2 }
 0xbff   :  { %v4321_v61 = vpop.eup %4320 }
 0xc00   :  { %v4323_v62 = vpop.eup %4322  ;;  %1220 = vrot.lane.b32.xlu0 %v4321_v61, %s4513_s3 }
 0xc01   :  { %1231 = vrot.lane.b32.xlu1 %v4323_v62, %s4513_s3  ;;  %v4325_v4 = vpop.eup %4324 }
 0xc02   :  { %v4327_v5 = vpop.eup %4326  ;;  %v1210_v6 = vadd.f32 1.0, %v4325_v4 }
 0xc03   :  { %v1211_v7 = vadd.f32 1.0, %v4327_v5 }
 0xc04   :  { %4328 = vrcp.f32 %v1210_v6  ;;  %v1587_v6 = vld [vmem:[%s5768_s2 + $0x8] sm:$0xff] }
 0xc05   :  { %4330 = vrcp.f32 %v1211_v7  ;;  %v1589_v7 = vld [vmem:[%s5768_s2 + $0x18] sm:$0xff] }
 0xc0e   :  { %v4329_v8 = vpop.eup %4328 }
 0xc0f   :  { %v4331_v15 = vpop.eup %4330  ;;  %v1218_v13 = vmul.f32 %v4329_v8, %v991_v39 }
 0xc10   :  { %v1229_v22 = vmul.f32 %v4331_v15, %v1002_v42 }
 0xc72   :  { %v1221_v9 = vpop.permute.xlu0 %1220 }
 0xc73   :  { %v1223_v11 = vmul.f32 %v4329_v8, %v1221_v9  ;;  %v1232_v12 = vpop.permute.xlu1 %1231  ;;  %v4831_v9 = vpack.c.bf16 %v1589_v7, %v1587_v6 }
 0xc74   :  { %v1234_v16 = vmul.f32 %v4331_v15, %v1232_v12  ;;  %v1593_v12 = vld [vmem:[%s5768_s2 + $0x38] sm:$0xff] }
 0xc75   :  { %1225 = vrot.lane.b32.xlu0 %v1223_v11, %s4514_s10  ;;  %v1591_v11 = vld [vmem:[%s5768_s2 + $0x28] sm:$0xff]  ;;  %4093 = vmatprep.subr.bf16.mxu1 %v4831_v9 }
 0xc76   :  { %1236 = vrot.lane.b32.xlu1 %v1234_v16, %s4514_s10  ;;  %4109 = vmatprep.subr.bf16.mxu0 %v4831_v9 }
 0xce7   :  { %v1226_v21 = vpop.permute.xlu0 %1225 }
 0xce8   :  { %v1228_v28 = vadd.f32 %v1226_v21, %v1218_v13  ;;  %v1237_v29 = vpop.permute.xlu1 %1236  ;;  %v4844_v13 = vpack.c.bf16 %v1593_v12, %v1591_v11  ;;  %v1590_v21 = vld [vmem:[%s5768_s2 + $0x20] sm:$0xff] }
 0xce9   :  { %v1239_v33 = vadd.f32 %v1237_v29, %v1229_v22  ;;  %v1592_v22 = vld [vmem:[%s5768_s2 + $0x30] sm:$0xff]  ;;  %v1597_v29 = vld [vmem:[%s5768_s2 + $0x58] sm:$0xff] }
 0xcea   :  { %4332 = vtanh.f32 %v1228_v28 }
 0xceb   :  { %4334 = vtanh.f32 %v1239_v33 }
 0xcf4   :  { %v4333_v17 = vpop.eup %4332 }
 0xcf5   :  { %v4335_v19 = vpop.eup %4334  ;;  %1242 = vrot.lane.b32.xlu0 %v4333_v17, %s4513_s3 }
 0xcf6   :  { %1248 = vrot.lane.b32.xlu1 %v4335_v19, %s4513_s3 }
 0xd67   :  { %v1243_v20 = vpop.permute.xlu0 %1242 }
 0xd68   :  { %v4791_v23 = vmul.f32 %v4329_v8, %v1243_v20  ;;  %v1249_v24 = vpop.permute.xlu1 %1248  ;;  %v1586_v8 = vld [vmem:[%s5768_s2] sm:$0xff] }
 0xd69   :  { %v4793_v25 = vmul.f32 %v4331_v15, %v1249_v24  ;;  %v1588_v15 = vld [vmem:[%s5768_s2 + $0x10] sm:$0xff]  ;;  %v1594_v20 = vld [vmem:[%s5768_s2 + $0x40] sm:$0xff] }
 0xd6a   :  { %1330 = vrot.lane.b32.xlu0 %v4791_v23, %s4514_s10  ;;  %v4842_v16 = vpack.c.bf16 %v1588_v15, %v1586_v8  ;;  %v1596_v24 = vld [vmem:[%s5768_s2 + $0x50] sm:$0xff] }
 0xd6b   :  { %1333 = vrot.lane.b32.xlu1 %v4793_v25, %s4513_s3  ;;  %v4883_v31 = vpack.c.bf16 %v1596_v24, %v1594_v20 }
 0xd6c   :  { %4095 = vmatpush1.bf16.msra.mxu1 %v4842_v16 }
 0xd6d   :  { %4097 = vmatprep.subr.bf16.mxu1 %v4844_v13 }
 0xddc   :  { %v1331_v26 = vpop.permute.xlu0 %1330 }
 0xddd   :  { %v1334_v27 = vpop.permute.xlu1 %1333 }
 0xdde   :  { %v1336_v30 = vsel %vm387_vm2, %v1331_v26, %v1334_v27  ;;  %v1599_v27 = vld [vmem:[%s5768_s2 + $0x68] sm:$0xff] }
 0xddf   :  { %3959 = vmatmul.mubr.msk.f32.vlgmr.msra.gmra.mrb[12].mxu0 %vm176_vm3, %v1336_v30  ;;  %v1601_v30 = vld [vmem:[%s5768_s2 + $0x78] sm:$0xff] }
 0xde0   :  { %1906 = vmatprep.mubr.f32.mxu0 %v4512_v3  ;;  %4111 = vmatpush1.bf16.msra.mxu0 %v4842_v16  ;;  %v4887_v32 = vpack.c.bf16 %v1601_v30, %v1599_v27 }
 0xde1   :  { %4113 = vmatprep.subr.bf16.mxu0 %v4844_v13 }
 0xeb2   :  { %v1434_v39 = vpop.f32.mrb[12].mxu0 }
 0xeb3   :  { %v1439_v42 = vadd.f32 %v1434_v39, %v1343_v35  ;;  %v1436_v44 = vpop.f32.mrb[13].mxu0  ;;  %v1600_v35 = vld [vmem:[%s5768_s2 + $0x70] sm:$0xff] }
 0xeb4   :  { %v1440_v45 = vadd.f32 %v1436_v44, %v1347_v43  ;;  %v4897_v39 = vpack.c.bf16 %v1600_v35, %v1598_v34 }
 0xeb5   :  { %4336 = vtanh.f32 %v1439_v42  ;;  %v3960_v50 = vmul.f32 -1.442695, %v1439_v42 }
 0xeb6   :  { %4338 = vtanh.f32 %v1440_v45  ;;  %v3961_v51 = vmul.f32 -1.442695, %v1440_v45 }
 0xeb7   :  { %4340 = vpow2.f32 %v3960_v50  ;;  %v1575_v50 = vld [vmem:[#allocation2 + $0x26] ss:$0 sm:$0xff] }
 0xeb8   :  { %4342 = vpow2.f32 %v3961_v51  ;;  %v1577_v51 = vld [vmem:[#allocation2 + $0x39] ss:$0 sm:$0xff] }
 0xebf   :  { %v4337_v47 = vpop.eup %4336 }
 0xec0   :  { %v4339_v49 = vpop.eup %4338  ;;  %1457 = vrot.lane.b32.xlu0 %v4337_v47, %s4513_s3 }
 0xec1   :  { %1468 = vrot.lane.b32.xlu1 %v4339_v49, %s4513_s3  ;;  %v4341_v52 = vpop.eup %4340 }
 0xec2   :  { %v4343_v53 = vpop.eup %4342  ;;  %v1447_v54 = vadd.f32 1.0, %v4341_v52  ;;  %v1574_v52 = vld [vmem:[#allocation2 + $0x6] ss:$0 sm:$0xff] }
 0xec3   :  { %v1448_v55 = vadd.f32 1.0, %v4343_v53  ;;  %v1580_v53 = vsel %vm153_vm1, %v1575_v50, %v1574_v52  ;;  %v1811_v50 = vld [vmem:[#allocation2 + $0x7] ss:$0 sm:$0xff] }
 0xec4   :  { %4344 = vrcp.f32 %v1447_v54 }
 0xec5   :  { %4346 = vrcp.f32 %v1448_v55  ;;  %v1576_v55 = vld [vmem:[#allocation2 + $0x19] ss:$0 sm:$0xff] }
 0xece   :  { %v4806_v10 = vpop.eup %4344 }
 0xecf   :  { %v4808_v57 = vpop.eup %4346  ;;  %v1455_v61 = vmul.f32 %v4806_v10, %v1228_v28  ;;  %v1595_v28 = vld [vmem:[%s5768_s2 + $0x48] sm:$0xff] }
 0xed0   :  { %v1466_v0 = vmul.f32 %v4808_v57, %v1239_v33  ;;  %v4861_v33 = vpack.c.bf16 %v1592_v22, %v1590_v21  ;;  %v4865_v19 = vpack.c.bf16 %v1597_v29, %v1595_v28 }
 0xed2   :  { %4099 = vmatpush1.bf16.msra.mxu1 %v4861_v33  ;;  %4115 = vmatpush1.bf16.msra.mxu0 %v4861_v33 }
 0xed3   :  { %4101 = vmatprep.subr.bf16.mxu1 %v4865_v19  ;;  %4117 = vmatprep.subr.bf16.mxu0 %v4865_v19 }
 0xed6   :  { %4103 = vmatpush1.bf16.msra.mxu1 %v4883_v31  ;;  %4119 = vmatpush1.bf16.msra.mxu0 %v4883_v31 }
 0xed7   :  { %4105 = vmatprep.subr.bf16.mxu1 %v4887_v32  ;;  %4121 = vmatprep.subr.bf16.mxu0 %v4887_v32 }
 0xeda   :  { %4107 = vmatpush1.bf16.msra.mxu1 %v4897_v39  ;;  %4123 = vmatpush1.bf16.msra.mxu0 %v4897_v39 }
 0xedb   :  { %4125 = vmatprep.subr.bf16.mxu1 %v4831_v9  ;;  %4141 = vmatprep.subr.bf16.mxu0 %v4831_v9 }
 0xf32   :  { %v1458_v56 = vpop.permute.xlu0 %1457 }
 0xf33   :  { %v1460_v58 = vmul.f32 %v4806_v10, %v1458_v56  ;;  %v1469_v59 = vpop.permute.xlu1 %1468  ;;  %v1584_v56 = vsel %vm153_vm1, %v1577_v51, %v1576_v55 }
 0xf34   :  { %v1471_v60 = vmul.f32 %v4808_v57, %v1469_v59 }
 0xf35   :  { %1462 = vrot.lane.b32.xlu0 %v1460_v58, %s4514_s10 }
 0xf36   :  { %1473 = vrot.lane.b32.xlu1 %v1471_v60, %s4514_s10 }
 0xfa7   :  { %v1463_v62 = vpop.permute.xlu0 %1462 }
 0xfa8   :  { %v4816_v2 = vadd.f32 %v1463_v62, %v1455_v61  ;;  %v1474_v4 = vpop.permute.xlu1 %1473 }
 0xfa9   :  { %v4818_v5 = vadd.f32 %v1474_v4, %v1466_v0 }
 0xfaa   :  { %4348 = vtanh.f32 %v4816_v2 }
 0xfab   :  { %4350 = vtanh.f32 %v4818_v5 }
 0xfb4   :  { %v4349_v17 = vpop.eup %4348 }
 0xfb5   :  { %v4351_v26 = vpop.eup %4350  ;;  %1479 = vrot.lane.b32.xlu0 %v4349_v17, %s4513_s3 }
 0xfb6   :  { %1485 = vrot.lane.b32.xlu1 %v4351_v26, %s4513_s3 }
0x1027   :  { %v1480_v41 = vpop.permute.xlu0 %1479 }
0x1028   :  { %v4907_v42 = vmul.f32 %v4806_v10, %v1480_v41  ;;  %v1486_v43 = vpop.permute.xlu1 %1485 }
0x1029   :  { %v4910_v44 = vmul.f32 %v4808_v57, %v1486_v43 }
0x102a   :  { %1567 = vrot.lane.b32.xlu0 %v4907_v42, %s4514_s10 }
0x102b   :  { %1570 = vrot.lane.b32.xlu1 %v4910_v44, %s4513_s3 }
0x109c   :  { %v1568_v45 = vpop.permute.xlu0 %1567 }
0x109d   :  { %v1571_v47 = vpop.permute.xlu1 %1570 }
0x109e   :  { %v1573_v49 = vsel %vm387_vm2, %v1568_v45, %v1571_v47  ;;  %v1812_v47 = vld [vmem:[#allocation2 + $0x27] ss:$0 sm:$0xff] }
0x109f   :  { %3962 = vmatmul.mubr.msk.f32.vlgmr.msra.gmra.mrb[6].mxu1 %vm176_vm3, %v1573_v49  ;;  %v1814_v49 = vld [vmem:[#allocation2 + $0x38] ss:$0 sm:$0xff]  ;;  %v1817_v51 = vsel %vm153_vm1, %v1812_v47, %v1811_v50  ;;  %v2051_v47 = vld [vmem:[#allocation2 + $0x2f] ss:$0 sm:$0xff] }
0x10a0   :  { %4127 = vmatpush1.bf16.msra.mxu1 %v4842_v16  ;;  %2143 = vmatprep.mubr.f32.mxu1 %v4512_v3 }
0x10a1   :  { %4129 = vmatprep.subr.bf16.mxu1 %v4844_v13 }
0x10a4   :  { %4131 = vmatpush1.bf16.msra.mxu1 %v4861_v33 }
0x10a5   :  { %4133 = vmatprep.subr.bf16.mxu1 %v4865_v19 }
0x10a8   :  { %4135 = vmatpush1.bf16.msra.mxu1 %v4883_v31 }
0x10a9   :  { %4137 = vmatprep.subr.bf16.mxu1 %v4887_v32 }
0x10ac   :  { %4139 = vmatpush1.bf16.msra.mxu1 %v4897_v39 }
0x10ad   :  { %4157 = vmatprep.subr.bf16.mxu1 %v4831_v9 }
0x1172   :  { %v1671_v54 = vpop.f32.mrb[6].mxu1 }
0x1173   :  { %v1676_v10 = vadd.f32 %v1671_v54, %v1580_v53  ;;  %v1673_v57 = vpop.f32.mrb[7].mxu1  ;;  %v1813_v53 = vld [vmem:[#allocation2 + $0x18] ss:$0 sm:$0xff] }
0x1174   :  { %v1677_v58 = vadd.f32 %v1673_v57, %v1584_v56  ;;  %v1821_v55 = vsel %vm153_vm1, %v1814_v49, %v1813_v53  ;;  %v2048_v49 = vld [vmem:[#allocation2 + $0x10] ss:$0 sm:$0xff] }
0x1175   :  { %4352 = vtanh.f32 %v1676_v10  ;;  %v3963_v61 = vmul.f32 -1.442695, %v1676_v10 }
0x1176   :  { %4354 = vtanh.f32 %v1677_v58  ;;  %v3964_v62 = vmul.f32 -1.442695, %v1677_v58 }
0x1177   :  { %4356 = vpow2.f32 %v3963_v61 }
0x1178   :  { %4358 = vpow2.f32 %v3964_v62 }
0x117f   :  { %v4353_v59 = vpop.eup %4352 }
0x1180   :  { %v4355_v60 = vpop.eup %4354  ;;  %1694 = vrot.lane.b32.xlu0 %v4353_v59, %s4513_s3 }
0x1181   :  { %1705 = vrot.lane.b32.xlu1 %v4355_v60, %s4513_s3  ;;  %v4357_v0 = vpop.eup %4356 }
0x1182   :  { %v4359_v4 = vpop.eup %4358  ;;  %v1684_v6 = vadd.f32 1.0, %v4357_v0 }
0x1183   :  { %v1685_v7 = vadd.f32 1.0, %v4359_v4 }
0x1184   :  { %4360 = vrcp.f32 %v1684_v6 }
0x1185   :  { %4362 = vrcp.f32 %v1685_v7 }
0x118e   :  { %v4361_v8 = vpop.eup %4360 }
0x118f   :  { %v4363_v11 = vpop.eup %4362  ;;  %v1692_v28 = vmul.f32 %v4361_v8, %v4816_v2 }
0x1190   :  { %v1703_v17 = vmul.f32 %v4363_v11, %v4818_v5 }
0x11f2   :  { %v1695_v15 = vpop.permute.xlu0 %1694 }
0x11f3   :  { %v1697_v12 = vmul.f32 %v4361_v8, %v1695_v15  ;;  %v1706_v21 = vpop.permute.xlu1 %1705 }
0x11f4   :  { %v1708_v22 = vmul.f32 %v4363_v11, %v1706_v21 }
0x11f5   :  { %1699 = vrot.lane.b32.xlu0 %v1697_v12, %s4514_s10 }
0x11f6   :  { %1710 = vrot.lane.b32.xlu1 %v1708_v22, %s4514_s10 }
0x1267   :  { %v1700_v29 = vpop.permute.xlu0 %1699 }
0x1268   :  { %v1702_v20 = vadd.f32 %v1700_v29, %v1692_v28  ;;  %v1711_v24 = vpop.permute.xlu1 %1710 }
0x1269   :  { %v1713_v26 = vadd.f32 %v1711_v24, %v1703_v17 }
0x126a   :  { %4364 = vtanh.f32 %v1702_v20 }
0x126b   :  { %4366 = vtanh.f32 %v1713_v26 }
0x1274   :  { %v4365_v27 = vpop.eup %4364 }
0x1275   :  { %v4367_v30 = vpop.eup %4366  ;;  %1716 = vrot.lane.b32.xlu0 %v4365_v27, %s4513_s3 }
0x1276   :  { %1722 = vrot.lane.b32.xlu1 %v4367_v30, %s4513_s3 }
0x12e7   :  { %v1717_v34 = vpop.permute.xlu0 %1716 }
0x12e8   :  { %v4937_v35 = vmul.f32 %v4361_v8, %v1717_v34  ;;  %v1723_v41 = vpop.permute.xlu1 %1722 }
0x12e9   :  { %v4939_v43 = vmul.f32 %v4363_v11, %v1723_v41 }
0x12ea   :  { %1804 = vrot.lane.b32.xlu0 %v4937_v35, %s4514_s10 }
0x12eb   :  { %1807 = vrot.lane.b32.xlu1 %v4939_v43, %s4513_s3 }
0x135c   :  { %v1805_v2 = vpop.permute.xlu0 %1804 }
0x135d   :  { %v1808_v5 = vpop.permute.xlu1 %1807 }
0x135e   :  { %v1810_v45 = vsel %vm387_vm2, %v1805_v2, %v1808_v5 }
0x135f   :  { %3965 = vmatmul.mubr.msk.f32.vlgmr.msra.gmra.mrb[14].mxu0 %vm176_vm3, %v1810_v45  ;;  %v2049_v45 = vld [vmem:[#allocation2 + $0x30] ss:$0 sm:$0xff] }
0x1360   :  { %4143 = vmatpush1.bf16.msra.mxu0 %v4842_v16  ;;  %2380 = vmatprep.mubr.f32.mxu0 %v4512_v3  ;;  %v2054_v50 = vsel %vm153_vm1, %v2049_v45, %v2048_v49  ;;  %v2288_v49 = vld [vmem:[#allocation2 + $0x2e] ss:$0 sm:$0xff] }
0x1361   :  { %4145 = vmatprep.subr.bf16.mxu0 %v4844_v13 }
0x1364   :  { %4147 = vmatpush1.bf16.msra.mxu0 %v4861_v33 }
0x1365   :  { %4149 = vmatprep.subr.bf16.mxu0 %v4865_v19 }
0x1368   :  { %4151 = vmatpush1.bf16.msra.mxu0 %v4883_v31 }
0x1369   :  { %4153 = vmatprep.subr.bf16.mxu0 %v4887_v32 }
0x136c   :  { %4155 = vmatpush1.bf16.msra.mxu0 %v4897_v39 }
0x136d   :  { %4173 = vmatprep.subr.bf16.mxu0 %v4831_v9 }
0x1432   :  { %v1908_v52 = vpop.f32.mrb[14].mxu0 }
0x1433   :  { %v1913_v54 = vadd.f32 %v1908_v52, %v1817_v51  ;;  %v1910_v10 = vpop.f32.mrb[15].mxu0  ;;  %v2050_v52 = vld [vmem:[#allocation2 + $0xf] ss:$0 sm:$0xff] }
0x1434   :  { %v1914_v56 = vadd.f32 %v1910_v10, %v1821_v55 }
0x1435   :  { %4368 = vtanh.f32 %v1913_v54  ;;  %v3966_v9 = vmul.f32 -1.442695, %v1913_v54  ;;  %v2058_v54 = vsel %vm153_vm1, %v2051_v47, %v2050_v52  ;;  %v2286_v47 = vld [vmem:[#allocation2 + $0x31] ss:$0 sm:$0xff]  ;;  %v2287_v52 = vld [vmem:[#allocation2 + $0xe] ss:$0 sm:$0xff] }
0x1436   :  { %4370 = vtanh.f32 %v1914_v56  ;;  %v3967_v59 = vmul.f32 -1.442695, %v1914_v56 }
0x1437   :  { %4372 = vpow2.f32 %v3966_v9 }
0x1438   :  { %4374 = vpow2.f32 %v3967_v59 }
0x143f   :  { %v4369_v57 = vpop.eup %4368 }
0x1440   :  { %v4371_v58 = vpop.eup %4370  ;;  %1931 = vrot.lane.b32.xlu0 %v4369_v57, %s4513_s3 }
0x1441   :  { %1942 = vrot.lane.b32.xlu1 %v4371_v58, %s4513_s3  ;;  %v4373_v60 = vpop.eup %4372 }
0x1442   :  { %v4375_v61 = vpop.eup %4374  ;;  %v1921_v62 = vadd.f32 1.0, %v4373_v60 }
0x1443   :  { %v1922_v0 = vadd.f32 1.0, %v4375_v61 }
0x1444   :  { %4376 = vrcp.f32 %v1921_v62 }
0x1445   :  { %4378 = vrcp.f32 %v1922_v0 }
0x144e   :  { %v4377_v4 = vpop.eup %4376 }
0x144f   :  { %v4379_v7 = vpop.eup %4378  ;;  %v1929_v12 = vmul.f32 %v4377_v4, %v1702_v20 }
0x1450   :  { %v1940_v22 = vmul.f32 %v4379_v7, %v1713_v26 }
0x14b2   :  { %v1932_v6 = vpop.permute.xlu0 %1931 }
0x14b3   :  { %v1934_v8 = vmul.f32 %v4377_v4, %v1932_v6  ;;  %v1943_v15 = vpop.permute.xlu1 %1942 }
0x14b4   :  { %v1945_v11 = vmul.f32 %v4379_v7, %v1943_v15 }
0x14b5   :  { %1936 = vrot.lane.b32.xlu0 %v1934_v8, %s4514_s10 }
0x14b6   :  { %1947 = vrot.lane.b32.xlu1 %v1945_v11, %s4514_s10 }
0x1527   :  { %v1937_v21 = vpop.permute.xlu0 %1936 }
0x1528   :  { %v1939_v28 = vadd.f32 %v1937_v21, %v1929_v12  ;;  %v1948_v29 = vpop.permute.xlu1 %1947 }
0x1529   :  { %v1950_v17 = vadd.f32 %v1948_v29, %v1940_v22 }
0x152a   :  { %4380 = vtanh.f32 %v1939_v28 }
0x152b   :  { %4382 = vtanh.f32 %v1950_v17 }
0x1534   :  { %v4381_v24 = vpop.eup %4380 }
0x1535   :  { %v4383_v27 = vpop.eup %4382  ;;  %1953 = vrot.lane.b32.xlu0 %v4381_v24, %s4513_s3 }
0x1536   :  { %1959 = vrot.lane.b32.xlu1 %v4383_v27, %s4513_s3 }
0x15a7   :  { %v1954_v30 = vpop.permute.xlu0 %1953 }
0x15a8   :  { %v4964_v34 = vmul.f32 %v4377_v4, %v1954_v30  ;;  %v1960_v41 = vpop.permute.xlu1 %1959 }
0x15a9   :  { %v4966_v2 = vmul.f32 %v4379_v7, %v1960_v41 }
0x15aa   :  { %2041 = vrot.lane.b32.xlu0 %v4964_v34, %s4514_s10 }
0x15ab   :  { %2044 = vrot.lane.b32.xlu1 %v4966_v2, %s4513_s3 }
0x161c   :  { %v2042_v20 = vpop.permute.xlu0 %2041 }
0x161d   :  { %v2045_v26 = vpop.permute.xlu1 %2044 }
0x161e   :  { %v2047_v5 = vsel %vm387_vm2, %v2042_v20, %v2045_v26 }
0x161f   :  { %3968 = vmatmul.mubr.msk.f32.vlgmr.msra.gmra.mrb[8].mxu1 %vm176_vm3, %v2047_v5 }
0x1620   :  { %4159 = vmatpush1.bf16.msra.mxu1 %v4842_v16  ;;  %2617 = vmatprep.mubr.f32.mxu1 %v4512_v3 }
0x1621   :  { %4161 = vmatprep.subr.bf16.mxu1 %v4844_v13 }
0x1624   :  { %4163 = vmatpush1.bf16.msra.mxu1 %v4861_v33 }
0x1625   :  { %4165 = vmatprep.subr.bf16.mxu1 %v4865_v19 }
0x1628   :  { %4167 = vmatpush1.bf16.msra.mxu1 %v4883_v31 }
0x1629   :  { %4169 = vmatprep.subr.bf16.mxu1 %v4887_v32 }
0x162c   :  { %4171 = vmatpush1.bf16.msra.mxu1 %v4897_v39 }
0x16f2   :  { %v2145_v51 = vpop.f32.mrb[8].mxu1 }
0x16f3   :  { %v2150_v53 = vadd.f32 %v2145_v51, %v2054_v50  ;;  %v2147_v55 = vpop.f32.mrb[9].mxu1  ;;  %v2285_v50 = vld [vmem:[#allocation2 + $0x11] ss:$0 sm:$0xff] }
0x16f4   :  { %v2151_v10 = vadd.f32 %v2147_v55, %v2058_v54  ;;  %v2291_v51 = vsel %vm153_vm1, %v2286_v47, %v2285_v50 }
0x16f5   :  { %4384 = vtanh.f32 %v2150_v53  ;;  %v3969_v58 = vmul.f32 -1.442695, %v2150_v53 }
0x16f6   :  { %4386 = vtanh.f32 %v2151_v10  ;;  %v3970_v9 = vmul.f32 -1.442695, %v2151_v10 }
0x16f7   :  { %4388 = vpow2.f32 %v3969_v58 }
0x16f8   :  { %4390 = vpow2.f32 %v3970_v9 }
0x16ff   :  { %v4385_v56 = vpop.eup %4384 }
0x1700   :  { %v4387_v57 = vpop.eup %4386  ;;  %2168 = vrot.lane.b32.xlu0 %v4385_v56, %s4513_s3 }
0x1701   :  { %2179 = vrot.lane.b32.xlu1 %v4387_v57, %s4513_s3  ;;  %v4389_v59 = vpop.eup %4388 }
0x1702   :  { %v4391_v60 = vpop.eup %4390  ;;  %v2158_v61 = vadd.f32 1.0, %v4389_v59 }
0x1703   :  { %v2159_v62 = vadd.f32 1.0, %v4391_v60 }
0x1704   :  { %4392 = vrcp.f32 %v2158_v61 }
0x1705   :  { %4394 = vrcp.f32 %v2159_v62 }
0x170e   :  { %v4393_v0 = vpop.eup %4392 }
0x170f   :  { %v4395_v6 = vpop.eup %4394  ;;  %v2166_v11 = vmul.f32 %v4393_v0, %v1939_v28 }
0x1710   :  { %v2177_v21 = vmul.f32 %v4395_v6, %v1950_v17 }
0x1772   :  { %v2169_v4 = vpop.permute.xlu0 %2168 }
0x1773   :  { %v2171_v7 = vmul.f32 %v4393_v0, %v2169_v4  ;;  %v2180_v8 = vpop.permute.xlu1 %2179 }
0x1774   :  { %v2182_v15 = vmul.f32 %v4395_v6, %v2180_v8 }
0x1775   :  { %2173 = vrot.lane.b32.xlu0 %v2171_v7, %s4514_s10 }
0x1776   :  { %2184 = vrot.lane.b32.xlu1 %v2182_v15, %s4514_s10 }
0x17e7   :  { %v2174_v12 = vpop.permute.xlu0 %2173 }
0x17e8   :  { %v2176_v22 = vadd.f32 %v2174_v12, %v2166_v11  ;;  %v2185_v29 = vpop.permute.xlu1 %2184 }
0x17e9   :  { %v2187_v24 = vadd.f32 %v2185_v29, %v2177_v21 }
0x17ea   :  { %4396 = vtanh.f32 %v2176_v22 }
0x17eb   :  { %4398 = vtanh.f32 %v2187_v24 }
0x17f4   :  { %v4397_v27 = vpop.eup %4396 }
0x17f5   :  { %v4399_v30 = vpop.eup %4398  ;;  %2190 = vrot.lane.b32.xlu0 %v4397_v27, %s4513_s3 }
0x17f6   :  { %2196 = vrot.lane.b32.xlu1 %v4399_v30, %s4513_s3 }
0x1867   :  { %v2191_v41 = vpop.permute.xlu0 %2190 }
0x1868   :  { %v4990_v20 = vmul.f32 %v4393_v0, %v2191_v41  ;;  %v2197_v26 = vpop.permute.xlu1 %2196 }
0x1869   :  { %v4992_v5 = vmul.f32 %v4395_v6, %v2197_v26  ;;  %v2523_v26 = vld [vmem:[#allocation2 + $0x32] ss:$0 sm:$0xff] }
0x186a   :  { %2278 = vrot.lane.b32.xlu0 %v4990_v20, %s4514_s10 }
0x186b   :  { %2281 = vrot.lane.b32.xlu1 %v4992_v5, %s4513_s3 }
0x18dc   :  { %v2279_v28 = vpop.permute.xlu0 %2278 }
0x18dd   :  { %v2282_v17 = vpop.permute.xlu1 %2281 }
0x18de   :  { %v2284_v45 = vsel %vm387_vm2, %v2279_v28, %v2282_v17  ;;  %v2525_v28 = vld [vmem:[#allocation2 + $0x2d] ss:$0 sm:$0xff]  ;;  %v2522_v17 = vld [vmem:[#allocation2 + $0x12] ss:$0 sm:$0xff] }
0x18df   :  { %3971 = vmatmul.mubr.msk.f32.vlgmr.msra.gmra.mrb[16].mxu0 %vm176_vm3, %v2284_v45  ;;  %v2528_v45 = vsel %vm153_vm1, %v2523_v26, %v2522_v17  ;;  %v2759_v26 = vld [vmem:[#allocation2 + $0x13] ss:$0 sm:$0xff] }
0x18e0   :  { %4175 = vmatpush1.bf16.msra.mxu0 %v4842_v16  ;;  %2854 = vmatprep.mubr.f32.mxu0 %v4512_v3 }
0x18e1   :  { %4177 = vmatprep.subr.bf16.mxu0 %v4844_v13  ;;  %v2295_v13 = vsel %vm153_vm1, %v2288_v49, %v2287_v52  ;;  %v2524_v49 = vld [vmem:[#allocation2 + $0xd] ss:$0 sm:$0xff] }
0x18e4   :  { %4179 = vmatpush1.bf16.msra.mxu0 %v4861_v33 }
0x18e5   :  { %4181 = vmatprep.subr.bf16.mxu0 %v4865_v19 }
0x18e8   :  { %4183 = vmatpush1.bf16.msra.mxu0 %v4883_v31 }
0x18e9   :  { %4185 = vmatprep.subr.bf16.mxu0 %v4887_v32 }
0x18ec   :  { %4187 = vmatpush1.bf16.msra.mxu0 %v4897_v39 }
0x19b2   :  { %v2382_v16 = vpop.f32.mrb[16].mxu0 }
0x19b3   :  { %v2387_v53 = vadd.f32 %v2382_v16, %v2291_v51  ;;  %v2384_v54 = vpop.f32.mrb[17].mxu0  ;;  %v2532_v51 = vsel %vm153_vm1, %v2525_v28, %v2524_v49 }
0x19b4   :  { %v2388_v33 = vadd.f32 %v2384_v54, %v2295_v13 }
0x19b5   :  { %4400 = vtanh.f32 %v2387_v53  ;;  %v3972_v32 = vmul.f32 -1.442695, %v2387_v53 }
0x19b6   :  { %4402 = vtanh.f32 %v2388_v33  ;;  %v3973_v39 = vmul.f32 -1.442695, %v2388_v33 }
0x19b7   :  { %4404 = vpow2.f32 %v3972_v32 }
0x19b8   :  { %4406 = vpow2.f32 %v3973_v39 }
0x19bf   :  { %v4401_v19 = vpop.eup %4400 }
0x19c0   :  { %v4403_v31 = vpop.eup %4402  ;;  %2405 = vrot.lane.b32.xlu0 %v4401_v19, %s4513_s3 }
0x19c1   :  { %2416 = vrot.lane.b32.xlu1 %v4403_v31, %s4513_s3  ;;  %v4405_v55 = vpop.eup %4404 }
0x19c2   :  { %v4407_v10 = vpop.eup %4406  ;;  %v2395_v56 = vadd.f32 1.0, %v4405_v55 }
0x19c3   :  { %v2396_v57 = vadd.f32 1.0, %v4407_v10 }
0x19c4   :  { %4408 = vrcp.f32 %v2395_v56 }
0x19c5   :  { %4410 = vrcp.f32 %v2396_v57 }
0x19ce   :  { %v4409_v58 = vpop.eup %4408 }
0x19cf   :  { %v4411_v59 = vpop.eup %4410  ;;  %v2403_v0 = vmul.f32 %v4409_v58, %v2176_v22 }
0x19d0   :  { %v2414_v6 = vmul.f32 %v4411_v59, %v2187_v24 }
0x1a32   :  { %v2406_v9 = vpop.permute.xlu0 %2405 }
0x1a33   :  { %v2408_v60 = vmul.f32 %v4409_v58, %v2406_v9  ;;  %v2417_v61 = vpop.permute.xlu1 %2416 }
0x1a34   :  { %v2419_v62 = vmul.f32 %v4411_v59, %v2417_v61 }
0x1a35   :  { %2410 = vrot.lane.b32.xlu0 %v2408_v60, %s4514_s10 }
0x1a36   :  { %2421 = vrot.lane.b32.xlu1 %v2419_v62, %s4514_s10 }
0x1aa7   :  { %v2411_v4 = vpop.permute.xlu0 %2410 }
0x1aa8   :  { %v2413_v7 = vadd.f32 %v2411_v4, %v2403_v0  ;;  %v2422_v8 = vpop.permute.xlu1 %2421 }
0x1aa9   :  { %v2424_v15 = vadd.f32 %v2422_v8, %v2414_v6 }
0x1aaa   :  { %4412 = vtanh.f32 %v2413_v7 }
0x1aab   :  { %4414 = vtanh.f32 %v2424_v15 }
0x1ab4   :  { %v4413_v11 = vpop.eup %4412 }
0x1ab5   :  { %v4415_v12 = vpop.eup %4414  ;;  %2427 = vrot.lane.b32.xlu0 %v4413_v11, %s4513_s3 }
0x1ab6   :  { %2433 = vrot.lane.b32.xlu1 %v4415_v12, %s4513_s3 }
0x1b27   :  { %v2428_v21 = vpop.permute.xlu0 %2427 }
0x1b28   :  { %v5016_v29 = vmul.f32 %v4409_v58, %v2428_v21  ;;  %v2434_v27 = vpop.permute.xlu1 %2433 }
0x1b29   :  { %v5018_v30 = vmul.f32 %v4411_v59, %v2434_v27 }
0x1b2a   :  { %2515 = vrot.lane.b32.xlu0 %v5016_v29, %s4514_s10 }
0x1b2b   :  { %2518 = vrot.lane.b32.xlu1 %v5018_v30, %s4513_s3 }
0x1b9c   :  { %v2516_v22 = vpop.permute.xlu0 %2515 }
0x1b9d   :  { %v2519_v24 = vpop.permute.xlu1 %2518 }
0x1b9e   :  { %v2521_v41 = vsel %vm387_vm2, %v2516_v22, %v2519_v24  ;;  %v2760_v24 = vld [vmem:[#allocation2 + $0x33] ss:$0 sm:$0xff] }
0x1b9f   :  { %3974 = vmatmul.mubr.msk.f32.vlgmr.msra.gmra.mrb[10].mxu1 %vm176_vm3, %v2521_v41  ;;  %v2762_v41 = vld [vmem:[#allocation2 + $0x2c] ss:$0 sm:$0xff]  ;;  %v2765_v28 = vsel %vm153_vm1, %v2760_v24, %v2759_v26  ;;  %v3012_v24 = vld [vmem:[%s5768_s2 + $0x20] sm:$0xff]  ;;  %v3017_v26 = vld [vmem:[%s5768_s2 + $0x48] sm:$0xff] }
0x1ba0   :  { %3091 = vmatprep.mubr.f32.mxu1 %v4512_v3 }
0x1c72   :  { %v2619_v47 = vpop.f32.mrb[10].mxu1 }
0x1c73   :  { %v2624_v50 = vadd.f32 %v2619_v47, %v2528_v45  ;;  %v2621_v16 = vpop.f32.mrb[11].mxu1  ;;  %v2761_v45 = vld [vmem:[#allocation2 + $0xc] ss:$0 sm:$0xff] }
0x1c74   :  { %v2625_v52 = vadd.f32 %v2621_v16, %v2532_v51  ;;  %v2769_v49 = vsel %vm153_vm1, %v2762_v41, %v2761_v45  ;;  %v3014_v41 = vld [vmem:[%s5768_s2 + $0x30] sm:$0xff] }
0x1c75   :  { %4416 = vtanh.f32 %v2624_v50  ;;  %v3975_v54 = vmul.f32 -1.442695, %v2624_v50 }
0x1c76   :  { %4418 = vtanh.f32 %v2625_v52  ;;  %v3976_v33 = vmul.f32 -1.442695, %v2625_v52 }
0x1c77   :  { %4420 = vpow2.f32 %v3975_v54 }
0x1c78   :  { %4422 = vpow2.f32 %v3976_v33 }
0x1c7f   :  { %v4417_v53 = vpop.eup %4416 }
0x1c80   :  { %v4419_v13 = vpop.eup %4418  ;;  %2642 = vrot.lane.b32.xlu0 %v4417_v53, %s4513_s3 }
0x1c81   :  { %2653 = vrot.lane.b32.xlu1 %v4419_v13, %s4513_s3  ;;  %v4421_v19 = vpop.eup %4420 }
0x1c82   :  { %v4423_v31 = vpop.eup %4422  ;;  %v2632_v32 = vadd.f32 1.0, %v4421_v19 }
0x1c83   :  { %v2633_v39 = vadd.f32 1.0, %v4423_v31 }
0x1c84   :  { %4424 = vrcp.f32 %v2632_v32 }
0x1c85   :  { %4426 = vrcp.f32 %v2633_v39 }
0x1c8e   :  { %v4425_v55 = vpop.eup %4424 }
0x1c8f   :  { %v4427_v56 = vpop.eup %4426  ;;  %v2640_v59 = vmul.f32 %v4425_v55, %v2413_v7 }
0x1c90   :  { %v2651_v61 = vmul.f32 %v4427_v56, %v2424_v15 }
0x1cf2   :  { %v2643_v10 = vpop.permute.xlu0 %2642 }
0x1cf3   :  { %v2645_v57 = vmul.f32 %v4425_v55, %v2643_v10  ;;  %v2654_v58 = vpop.permute.xlu1 %2653 }
0x1cf4   :  { %v2656_v9 = vmul.f32 %v4427_v56, %v2654_v58 }
0x1cf5   :  { %2647 = vrot.lane.b32.xlu0 %v2645_v57, %s4514_s10 }
0x1cf6   :  { %2658 = vrot.lane.b32.xlu1 %v2656_v9, %s4514_s10 }
0x1d67   :  { %v2648_v60 = vpop.permute.xlu0 %2647 }
0x1d68   :  { %v2650_v62 = vadd.f32 %v2648_v60, %v2640_v59  ;;  %v2659_v0 = vpop.permute.xlu1 %2658 }
0x1d69   :  { %v2661_v4 = vadd.f32 %v2659_v0, %v2651_v61 }
0x1d6a   :  { %4428 = vtanh.f32 %v2650_v62 }
0x1d6b   :  { %4430 = vtanh.f32 %v2661_v4 }
0x1d74   :  { %v4429_v6 = vpop.eup %4428 }
0x1d75   :  { %v4431_v8 = vpop.eup %4430  ;;  %2664 = vrot.lane.b32.xlu0 %v4429_v6, %s4513_s3  ;;  %v3009_v6 = vld [vmem:[%s5768_s2 + $0x8] sm:$0xff] }
0x1d76   :  { %2670 = vrot.lane.b32.xlu1 %v4431_v8, %s4513_s3 }
0x1de7   :  { %v2665_v11 = vpop.permute.xlu0 %2664 }
0x1de8   :  { %v5035_v12 = vmul.f32 %v4425_v55, %v2665_v11  ;;  %v2671_v21 = vpop.permute.xlu1 %2670  ;;  %v3010_v11 = vld [vmem:[%s5768_s2 + $0x10] sm:$0xff] }
0x1de9   :  { %v5037_v27 = vmul.f32 %v4427_v56, %v2671_v21  ;;  %v3013_v21 = vld [vmem:[%s5768_s2 + $0x28] sm:$0xff] }
0x1dea   :  { %2752 = vrot.lane.b32.xlu0 %v5035_v12, %s4514_s10 }
0x1deb   :  { %2755 = vrot.lane.b32.xlu1 %v5037_v27, %s4513_s3 }
0x1e5c   :  { %v2753_v7 = vpop.permute.xlu0 %2752 }
0x1e5d   :  { %v2756_v15 = vpop.permute.xlu1 %2755 }
0x1e5e   :  { %v2758_v22 = vsel %vm387_vm2, %v2753_v7, %v2756_v15  ;;  %v3015_v7 = vld [vmem:[%s5768_s2 + $0x38] sm:$0xff] }
0x1e5f   :  { %3977 = vmatmul.mubr.msk.f32.vlgmr.msra.gmra.mrb[18].mxu0 %vm176_vm3, %v2758_v22  ;;  %v5086_v22 = vpack.c.bf16 %v3015_v7, %v3013_v21 }
0x1e60   :  { %3328 = vmatprep.mubr.f32.mxu0 %v4512_v3 }
0x1f32   :  { %v2856_v17 = vpop.f32.mrb[18].mxu0 }
0x1f33   :  { %v2861_v47 = vadd.f32 %v2856_v17, %v2765_v28  ;;  %v2858_v50 = vpop.f32.mrb[19].mxu0  ;;  %v3019_v28 = vld [vmem:[%s5768_s2 + $0x58] sm:$0xff]  ;;  %v5101_v17 = vpack.c.bf16 %v3014_v41, %v3012_v24 }
0x1f34   :  { %v2862_v51 = vadd.f32 %v2858_v50, %v2769_v49  ;;  %v3016_v49 = vld [vmem:[%s5768_s2 + $0x40] sm:$0xff]  ;;  %v3018_v50 = vld [vmem:[%s5768_s2 + $0x50] sm:$0xff] }
0x1f35   :  { %4432 = vtanh.f32 %v2861_v47  ;;  %v3978_v53 = vmul.f32 -1.442695, %v2861_v47  ;;  %v5105_v47 = vpack.c.bf16 %v3019_v28, %v3017_v26 }
0x1f36   :  { %4434 = vtanh.f32 %v2862_v51  ;;  %v3979_v13 = vmul.f32 -1.442695, %v2862_v51 }
0x1f37   :  { %4436 = vpow2.f32 %v3978_v53  ;;  %v5123_v53 = vpack.c.bf16 %v3018_v50, %v3016_v49 }
0x1f38   :  { %4438 = vpow2.f32 %v3979_v13 }
0x1f3f   :  { %v4433_v16 = vpop.eup %4432 }
0x1f40   :  { %v4435_v52 = vpop.eup %4434  ;;  %2879 = vrot.lane.b32.xlu0 %v4433_v16, %s4513_s3  ;;  %v3021_v16 = vld [vmem:[%s5768_s2 + $0x68] sm:$0xff] }
0x1f41   :  { %2890 = vrot.lane.b32.xlu1 %v4435_v52, %s4513_s3  ;;  %v4437_v54 = vpop.eup %4436  ;;  %v3023_v52 = vld [vmem:[%s5768_s2 + $0x78] sm:$0xff] }
0x1f42   :  { %v4439_v33 = vpop.eup %4438  ;;  %v2869_v19 = vadd.f32 1.0, %v4437_v54  ;;  %v5127_v13 = vpack.c.bf16 %v3023_v52, %v3021_v16  ;;  %v3020_v54 = vld [vmem:[%s5768_s2 + $0x60] sm:$0xff] }
0x1f43   :  { %v2870_v31 = vadd.f32 1.0, %v4439_v33  ;;  %v3022_v33 = vld [vmem:[%s5768_s2 + $0x70] sm:$0xff] }
0x1f44   :  { %4440 = vrcp.f32 %v2869_v19  ;;  %v5137_v19 = vpack.c.bf16 %v3022_v33, %v3020_v54 }
0x1f45   :  { %4442 = vrcp.f32 %v2870_v31 }
0x1f4e   :  { %v5050_v32 = vpop.eup %4440 }
0x1f4f   :  { %v5052_v55 = vpop.eup %4442  ;;  %v2877_v58 = vmul.f32 %v5050_v32, %v2650_v62  ;;  %v3011_v62 = vld [vmem:[%s5768_s2 + $0x18] sm:$0xff] }
0x1f50   :  { %v2888_v59 = vmul.f32 %v5052_v55, %v2661_v4  ;;  %v3008_v4 = vld [vmem:[%s5768_s2] sm:$0xff]  ;;  %v4188_v8 = vpack.c.bf16 %v3011_v62, %v3009_v6  ;;  %v2998_v62 = vld [vmem:[#allocation2 + $0xb] ss:$0 sm:$0xff] }
0x1f51   :  { %v5084_v15 = vpack.c.bf16 %v3010_v11, %v3008_v4 }
0x1f52   :  { %4189 = vmatprep.subr.bf16.mxu1 %v4188_v8  ;;  %4205 = vmatprep.subr.bf16.mxu0 %v4188_v8 }
0x1f53   :  { %4191 = vmatpush1.bf16.msra.mxu1 %v5084_v15  ;;  %4207 = vmatpush1.bf16.msra.mxu0 %v5084_v15 }
0x1f54   :  { %4193 = vmatprep.subr.bf16.mxu1 %v5086_v22  ;;  %4209 = vmatprep.subr.bf16.mxu0 %v5086_v22 }
0x1f57   :  { %4195 = vmatpush1.bf16.msra.mxu1 %v5101_v17  ;;  %4211 = vmatpush1.bf16.msra.mxu0 %v5101_v17 }
0x1f58   :  { %4197 = vmatprep.subr.bf16.mxu1 %v5105_v47  ;;  %4213 = vmatprep.subr.bf16.mxu0 %v5105_v47 }
0x1f5b   :  { %4199 = vmatpush1.bf16.msra.mxu1 %v5123_v53  ;;  %4215 = vmatpush1.bf16.msra.mxu0 %v5123_v53 }
0x1f5c   :  { %4201 = vmatprep.subr.bf16.mxu1 %v5127_v13  ;;  %4217 = vmatprep.subr.bf16.mxu0 %v5127_v13 }
0x1f5f   :  { %4203 = vmatpush1.bf16.msra.mxu1 %v5137_v19  ;;  %4219 = vmatpush1.bf16.msra.mxu0 %v5137_v19 }
0x1f60   :  { %4221 = vmatprep.subr.bf16.mxu1 %v4188_v8  ;;  %4237 = vmatprep.subr.bf16.mxu0 %v4188_v8 }
0x1fb2   :  { %v2880_v39 = vpop.permute.xlu0 %2879 }
0x1fb3   :  { %v2882_v10 = vmul.f32 %v5050_v32, %v2880_v39  ;;  %v2891_v56 = vpop.permute.xlu1 %2890 }
0x1fb4   :  { %v2893_v57 = vmul.f32 %v5052_v55, %v2891_v56 }
0x1fb5   :  { %2884 = vrot.lane.b32.xlu0 %v2882_v10, %s4514_s10 }
0x1fb6   :  { %2895 = vrot.lane.b32.xlu1 %v2893_v57, %s4514_s10 }
0x2027   :  { %v2885_v9 = vpop.permute.xlu0 %2884 }
0x2028   :  { %v5060_v60 = vadd.f32 %v2885_v9, %v2877_v58  ;;  %v2896_v61 = vpop.permute.xlu1 %2895 }
0x2029   :  { %v5062_v0 = vadd.f32 %v2896_v61, %v2888_v59  ;;  %v2996_v59 = vld [vmem:[#allocation2 + $0x14] ss:$0 sm:$0xff] }
0x202a   :  { %4444 = vtanh.f32 %v5060_v60 }
0x202b   :  { %4446 = vtanh.f32 %v5062_v0 }
0x2034   :  { %v4445_v45 = vpop.eup %4444 }
0x2035   :  { %v4447_v51 = vpop.eup %4446  ;;  %2901 = vrot.lane.b32.xlu0 %v4445_v45, %s4513_s3 }
0x2036   :  { %2907 = vrot.lane.b32.xlu1 %v4447_v51, %s4513_s3 }
0x20a7   :  { %v2902_v31 = vpop.permute.xlu0 %2901 }
0x20a8   :  { %v5145_v39 = vmul.f32 %v5050_v32, %v2902_v31  ;;  %v2908_v10 = vpop.permute.xlu1 %2907  ;;  %v2997_v32 = vld [vmem:[#allocation2 + $0x34] ss:$0 sm:$0xff] }
0x20a9   :  { %v5148_v56 = vmul.f32 %v5052_v55, %v2908_v10  ;;  %v2999_v55 = vld [vmem:[#allocation2 + $0x2b] ss:$0 sm:$0xff]  ;;  %v3002_v61 = vsel %vm153_vm1, %v2997_v32, %v2996_v59 }
0x20aa   :  { %2989 = vrot.lane.b32.xlu0 %v5145_v39, %s4514_s10  ;;  %v3006_v8 = vsel %vm153_vm1, %v2999_v55, %v2998_v62 }
0x20ab   :  { %2992 = vrot.lane.b32.xlu1 %v5148_v56, %s4513_s3 }
0x211c   :  { %v2990_v57 = vpop.permute.xlu0 %2989 }
0x211d   :  { %v2993_v58 = vpop.permute.xlu1 %2992 }
0x211e   :  { %v2995_v9 = vsel %vm387_vm2, %v2990_v57, %v2993_v58 }
0x211f   :  { %3980 = vmatmul.mubr.msk.f32.vlgmr.msra.gmra.mrb[12].mxu1 %vm176_vm3, %v2995_v9 }
0x2120   :  { %4223 = vmatpush1.bf16.msra.mxu1 %v5084_v15  ;;  %3565 = vmatprep.mubr.f32.mxu1 %v4512_v3 }
0x2121   :  { %4225 = vmatprep.subr.bf16.mxu1 %v5086_v22 }
0x2124   :  { %4227 = vmatpush1.bf16.msra.mxu1 %v5101_v17 }
0x2125   :  { %4229 = vmatprep.subr.bf16.mxu1 %v5105_v47 }
0x2128   :  { %4231 = vmatpush1.bf16.msra.mxu1 %v5123_v53 }
0x2129   :  { %4233 = vmatprep.subr.bf16.mxu1 %v5127_v13 }
0x212c   :  { %4235 = vmatpush1.bf16.msra.mxu1 %v5137_v19 }
0x21f2   :  { %v3093_v6 = vpop.f32.mrb[12].mxu1 }
0x21f3   :  { %v3098_v4 = vadd.f32 %v3093_v6, %v3002_v61  ;;  %v3095_v11 = vpop.f32.mrb[13].mxu1 }
0x21f4   :  { %v3099_v21 = vadd.f32 %v3095_v11, %v3006_v8 }
0x21f5   :  { %4448 = vtanh.f32 %v3098_v4  ;;  %v3981_v41 = vmul.f32 -1.442695, %v3098_v4 }
0x21f6   :  { %4450 = vtanh.f32 %v3099_v21  ;;  %v3982_v26 = vmul.f32 -1.442695, %v3099_v21  ;;  %v3234_v21 = vld [vmem:[#allocation2 + $0x35] ss:$0 sm:$0xff] }
0x21f7   :  { %4452 = vpow2.f32 %v3981_v41 }
0x21f8   :  { %4454 = vpow2.f32 %v3982_v26  ;;  %v3235_v26 = vld [vmem:[#allocation2 + $0xa] ss:$0 sm:$0xff] }
0x21ff   :  { %v4449_v7 = vpop.eup %4448 }
0x2200   :  { %v4451_v24 = vpop.eup %4450  ;;  %3116 = vrot.lane.b32.xlu0 %v4449_v7, %s4513_s3  ;;  %v3236_v7 = vld [vmem:[#allocation2 + $0x2a] ss:$0 sm:$0xff] }
0x2201   :  { %3127 = vrot.lane.b32.xlu1 %v4451_v24, %s4513_s3  ;;  %v4453_v28 = vpop.eup %4452  ;;  %v3233_v24 = vld [vmem:[#allocation2 + $0x15] ss:$0 sm:$0xff] }
0x2202   :  { %v4455_v45 = vpop.eup %4454  ;;  %v3106_v49 = vadd.f32 1.0, %v4453_v28  ;;  %v3239_v41 = vsel %vm153_vm1, %v3234_v21, %v3233_v24 }
0x2203   :  { %v3107_v50 = vadd.f32 1.0, %v4455_v45 }
0x2204   :  { %4456 = vrcp.f32 %v3106_v49 }
0x2205   :  { %4458 = vrcp.f32 %v3107_v50 }
0x220e   :  { %v4457_v51 = vpop.eup %4456 }
0x220f   :  { %v4459_v52 = vpop.eup %4458  ;;  %v3114_v10 = vmul.f32 %v4457_v51, %v5060_v60 }
0x2210   :  { %v3125_v58 = vmul.f32 %v4459_v52, %v5062_v0 }
0x2272   :  { %v3117_v16 = vpop.permute.xlu0 %3116 }
0x2273   :  { %v3119_v54 = vmul.f32 %v4457_v51, %v3117_v16  ;;  %v3128_v33 = vpop.permute.xlu1 %3127 }
0x2274   :  { %v3130_v31 = vmul.f32 %v4459_v52, %v3128_v33 }
0x2275   :  { %3121 = vrot.lane.b32.xlu0 %v3119_v54, %s4514_s10 }
0x2276   :  { %3132 = vrot.lane.b32.xlu1 %v3130_v31, %s4514_s10 }
0x22e7   :  { %v3122_v57 = vpop.permute.xlu0 %3121 }
0x22e8   :  { %v3124_v9 = vadd.f32 %v3122_v57, %v3114_v10  ;;  %v3133_v32 = vpop.permute.xlu1 %3132 }
0x22e9   :  { %v3135_v55 = vadd.f32 %v3133_v32, %v3125_v58 }
0x22ea   :  { %4460 = vtanh.f32 %v3124_v9 }
0x22eb   :  { %4462 = vtanh.f32 %v3135_v55 }
0x22f4   :  { %v4461_v59 = vpop.eup %4460 }
0x22f5   :  { %v4463_v61 = vpop.eup %4462  ;;  %3138 = vrot.lane.b32.xlu0 %v4461_v59, %s4513_s3 }
0x22f6   :  { %3144 = vrot.lane.b32.xlu1 %v4463_v61, %s4513_s3 }
0x2367   :  { %v3139_v6 = vpop.permute.xlu0 %3138 }
0x2368   :  { %v5174_v62 = vmul.f32 %v4457_v51, %v3139_v6  ;;  %v3145_v4 = vpop.permute.xlu1 %3144 }
0x2369   :  { %v5176_v8 = vmul.f32 %v4459_v52, %v3145_v4 }
0x236a   :  { %3226 = vrot.lane.b32.xlu0 %v5174_v62, %s4514_s10 }
0x236b   :  { %3229 = vrot.lane.b32.xlu1 %v5176_v8, %s4513_s3 }
0x23dc   :  { %v3227_v60 = vpop.permute.xlu0 %3226 }
0x23dd   :  { %v3230_v0 = vpop.permute.xlu1 %3229 }
0x23de   :  { %v3232_v11 = vsel %vm387_vm2, %v3227_v60, %v3230_v0 }
0x23df   :  { %3983 = vmatmul.mubr.msk.f32.vlgmr.msra.gmra.mrb[20].mxu0 %vm176_vm3, %v3232_v11 }
0x23e0   :  { %4239 = vmatpush1.bf16.msra.mxu0 %v5084_v15  ;;  %3802 = vmatprep.mubr.f32.mxu0 %v4512_v3 }
0x23e1   :  { %4241 = vmatprep.subr.bf16.mxu0 %v5086_v22  ;;  %v3243_v22 = vsel %vm153_vm1, %v3236_v7, %v3235_v26  ;;  %v3470_v26 = vld [vmem:[#allocation2 + $0x16] ss:$0 sm:$0xff] }
0x23e4   :  { %4243 = vmatpush1.bf16.msra.mxu0 %v5101_v17 }
0x23e5   :  { %4245 = vmatprep.subr.bf16.mxu0 %v5105_v47 }
0x23e8   :  { %4247 = vmatpush1.bf16.msra.mxu0 %v5123_v53 }
0x23e9   :  { %4249 = vmatprep.subr.bf16.mxu0 %v5127_v13 }
0x23ec   :  { %4251 = vmatpush1.bf16.msra.mxu0 %v5137_v19 }
0x24b2   :  { %v3330_v15 = vpop.f32.mrb[20].mxu0 }
0x24b3   :  { %v3335_v3 = vadd.f32 %v3330_v15, %v3239_v41  ;;  %v3332_v28 = vpop.f32.mrb[21].mxu0  ;;  %v3471_v41 = vld [vmem:[#allocation2 + $0x36] ss:$0 sm:$0xff]  ;;  %v3473_v15 = vld [vmem:[#allocation2 + $0x29] ss:$0 sm:$0xff] }
0x24b4   :  { %v3336_v17 = vadd.f32 %v3332_v28, %v3243_v22  ;;  %v3472_v28 = vld [vmem:[#allocation2 + $0x9] ss:$0 sm:$0xff] }
0x24b5   :  { %4464 = vtanh.f32 %v3335_v3  ;;  %v3984_v13 = vmul.f32 -1.442695, %v3335_v3  ;;  %v3476_v3 = vsel %vm153_vm1, %v3471_v41, %v3470_v26 }
0x24b6   :  { %4466 = vtanh.f32 %v3336_v17  ;;  %v3985_v19 = vmul.f32 -1.442695, %v3336_v17 }
0x24b7   :  { %4468 = vpow2.f32 %v3984_v13 }
0x24b8   :  { %4470 = vpow2.f32 %v3985_v19 }
0x24bf   :  { %v4465_v47 = vpop.eup %4464 }
0x24c0   :  { %v4467_v53 = vpop.eup %4466  ;;  %3353 = vrot.lane.b32.xlu0 %v4465_v47, %s4513_s3  ;;  %v3480_v47 = vsel %vm153_vm1, %v3473_v15, %v3472_v28  ;;  %v3708_v28 = vld [vmem:[#allocation2 + $0x37] ss:$0 sm:$0xff] }
0x24c1   :  { %3364 = vrot.lane.b32.xlu1 %v4467_v53, %s4513_s3  ;;  %v4469_v45 = vpop.eup %4468 }
0x24c2   :  { %v4471_v49 = vpop.eup %4470  ;;  %v3343_v50 = vadd.f32 1.0, %v4469_v45 }
0x24c3   :  { %v3344_v51 = vadd.f32 1.0, %v4471_v49 }
0x24c4   :  { %4472 = vrcp.f32 %v3343_v50 }
0x24c5   :  { %4474 = vrcp.f32 %v3344_v51 }
0x24ce   :  { %v4473_v16 = vpop.eup %4472 }
0x24cf   :  { %v4475_v54 = vpop.eup %4474  ;;  %v3351_v57 = vmul.f32 %v4473_v16, %v3124_v9 }
0x24d0   :  { %v3362_v32 = vmul.f32 %v4475_v54, %v3135_v55 }
0x2532   :  { %v3354_v52 = vpop.permute.xlu0 %3353 }
0x2533   :  { %v3356_v33 = vmul.f32 %v4473_v16, %v3354_v52  ;;  %v3365_v31 = vpop.permute.xlu1 %3364 }
0x2534   :  { %v3367_v10 = vmul.f32 %v4475_v54, %v3365_v31 }
0x2535   :  { %3358 = vrot.lane.b32.xlu0 %v3356_v33, %s4514_s10 }
0x2536   :  { %3369 = vrot.lane.b32.xlu1 %v3367_v10, %s4514_s10 }
0x25a7   :  { %v3359_v58 = vpop.permute.xlu0 %3358 }
0x25a8   :  { %v3361_v59 = vadd.f32 %v3359_v58, %v3351_v57  ;;  %v3370_v61 = vpop.permute.xlu1 %3369 }
0x25a9   :  { %v3372_v6 = vadd.f32 %v3370_v61, %v3362_v32 }
0x25aa   :  { %4476 = vtanh.f32 %v3361_v59 }
0x25ab   :  { %4478 = vtanh.f32 %v3372_v6 }
0x25b4   :  { %v4477_v4 = vpop.eup %4476 }
0x25b5   :  { %v4479_v60 = vpop.eup %4478  ;;  %3375 = vrot.lane.b32.xlu0 %v4477_v4, %s4513_s3 }
0x25b6   :  { %3381 = vrot.lane.b32.xlu1 %v4479_v60, %s4513_s3 }
0x2627   :  { %v3376_v0 = vpop.permute.xlu0 %3375 }
0x2628   :  { %v5200_v11 = vmul.f32 %v4473_v16, %v3376_v0  ;;  %v3382_v21 = vpop.permute.xlu1 %3381 }
0x2629   :  { %v5202_v7 = vmul.f32 %v4475_v54, %v3382_v21 }
0x262a   :  { %3463 = vrot.lane.b32.xlu0 %v5200_v11, %s4514_s10 }
0x262b   :  { %3466 = vrot.lane.b32.xlu1 %v5202_v7, %s4513_s3 }
0x269c   :  { %v3464_v9 = vpop.permute.xlu0 %3463 }
0x269d   :  { %v3467_v55 = vpop.permute.xlu1 %3466 }
0x269e   :  { %v3469_v24 = vsel %vm387_vm2, %v3464_v9, %v3467_v55 }
0x269f   :  { %3986 = vmatmul.mubr.msk.f32.vlgmr.msra.gmra.mrb[14].mxu1 %vm176_vm3, %v3469_v24 }
0x2772   :  { %v3567_v22 = vpop.f32.mrb[14].mxu1 }
0x2773   :  { %v3572_v17 = vadd.f32 %v3567_v22, %v3476_v3  ;;  %v3569_v53 = vpop.f32.mrb[15].mxu1 }
0x2774   :  { %v3573_v13 = vadd.f32 %v3569_v53, %v3480_v47  ;;  %v3707_v47 = vld [vmem:[#allocation2 + $0x17] ss:$0 sm:$0xff] }
0x2775   :  { %4480 = vtanh.f32 %v3572_v17  ;;  %v3987_v49 = vmul.f32 -1.442695, %v3572_v17  ;;  %v3710_v17 = vld [vmem:[#allocation2 + $0x28] ss:$0 sm:$0xff]  ;;  %v3713_v53 = vsel %vm153_vm1, %v3708_v28, %v3707_v47 }
0x2776   :  { %4482 = vtanh.f32 %v3573_v13  ;;  %v3988_v50 = vmul.f32 -1.442695, %v3573_v13 }
0x2777   :  { %4484 = vpow2.f32 %v3987_v49 }
0x2778   :  { %4486 = vpow2.f32 %v3988_v50 }
0x277f   :  { %v4481_v19 = vpop.eup %4480 }
0x2780   :  { %v4483_v45 = vpop.eup %4482  ;;  %3590 = vrot.lane.b32.xlu0 %v4481_v19, %s4513_s3  ;;  %v3709_v19 = vld [vmem:[#allocation2 + $0x8] ss:$0 sm:$0xff] }
0x2781   :  { %3601 = vrot.lane.b32.xlu1 %v4483_v45, %s4513_s3  ;;  %v4485_v51 = vpop.eup %4484  ;;  %v3717_v49 = vsel %vm153_vm1, %v3710_v17, %v3709_v19 }
0x2782   :  { %v4487_v16 = vpop.eup %4486  ;;  %v3580_v52 = vadd.f32 1.0, %v4485_v51 }
0x2783   :  { %v3581_v54 = vadd.f32 1.0, %v4487_v16 }
0x2784   :  { %4488 = vrcp.f32 %v3580_v52 }
0x2785   :  { %4490 = vrcp.f32 %v3581_v54 }
0x278e   :  { %v4489_v33 = vpop.eup %4488 }
0x278f   :  { %v4491_v10 = vpop.eup %4490  ;;  %v3588_v61 = vmul.f32 %v4489_v33, %v3361_v59 }
0x2790   :  { %v3599_v60 = vmul.f32 %v4491_v10, %v3372_v6 }
0x27f2   :  { %v3591_v31 = vpop.permute.xlu0 %3590 }
0x27f3   :  { %v3593_v57 = vmul.f32 %v4489_v33, %v3591_v31  ;;  %v3602_v58 = vpop.permute.xlu1 %3601  ;;  %v4515_v31 = vmov 1966171168  }
0x27f4   :  { %v3604_v32 = vmul.f32 %v4491_v10, %v3602_v58 }
0x27f5   :  { %3595 = vrot.lane.b32.xlu0 %v3593_v57, %s4514_s10 }
0x27f6   :  { %3606 = vrot.lane.b32.xlu1 %v3604_v32, %s4514_s10 }
0x2867   :  { %v3596_v4 = vpop.permute.xlu0 %3595 }
0x2868   :  { %v5216_v0 = vadd.f32 %v3596_v4, %v3588_v61  ;;  %v3607_v21 = vpop.permute.xlu1 %3606 }
0x2869   :  { %v5218_v9 = vadd.f32 %v3607_v21, %v3599_v60 }
0x286a   :  { %4492 = vtanh.f32 %v5216_v0 }
0x286b   :  { %4494 = vtanh.f32 %v5218_v9 }
0x2874   :  { %v4493_v55 = vpop.eup %4492 }
0x2875   :  { %v4495_v24 = vpop.eup %4494  ;;  %3612 = vrot.lane.b32.xlu0 %v4493_v55, %s4513_s3 }
0x2876   :  { %3618 = vrot.lane.b32.xlu1 %v4495_v24, %s4513_s3 }
0x28e7   :  { %v3613_v41 = vpop.permute.xlu0 %3612 }
0x28e8   :  { %v5224_v15 = vmul.f32 %v4489_v33, %v3613_v41  ;;  %v3619_v59 = vpop.permute.xlu1 %3618 }
0x28e9   :  { %v5226_v6 = vmul.f32 %v4491_v10, %v3619_v59  ;;  %v303_v10 = vunpack.c.l.s4 %v4515_v31 }
0x28ea   :  { %3700 = vrot.lane.b32.xlu0 %v5224_v15, %s4514_s10 }
0x28eb   :  { %3703 = vrot.lane.b32.xlu1 %v5226_v6, %s4513_s3  ;;  %v304_v32 = vunpack.c.0.s8 %v303_v10 }
0x28ed   :  { %v5239_v60 = vsub.s32 %v304_v32, %v4667_v36 }
0x28ef   :  { %v308_v21 = vrot.slane %v4691_v38, %v5239_v60  ;;  %v348_v24 = vrot.slane %v4695_v40, %v5239_v60  ;;  %v548_v38 = vrot.slane %v4720_v14, %v5239_v60 }
0x28f1   :  { %v309_v55 = vcombine.high %v308_v21, %v308_v21  ;;  %v349_v17 = vcombine.high %v348_v24, %v348_v24  ;;  %v356_v40 = vrot.slane %v348_v24, %v5239_v60  ;;  %v549_v19 = vcombine.high %v548_v38, %v548_v38 }
0x28f2   :  { %v556_v14 = vrot.slane %v548_v38, %v5239_v60 }
0x28f3   :  { %v323_v28 = vrot.slane %v309_v55, %v5239_v60 }
0x295c   :  { %v3701_v26 = vpop.permute.xlu0 %3700 }
0x295d   :  { %v3704_v3 = vpop.permute.xlu1 %3703 }
0x295e   :  { %v3706_v22 = vsel %vm387_vm2, %v3701_v26, %v3704_v3  ;;  %v316_v3 = vrot.slane %v308_v21, %v5239_v60  ;;  %v1022_v21 = vrot.slane %v4772_v46, %v5239_v60 }
0x295f   :  { %3989 = vmatmul.mubr.msk.f32.vlgmr.msra.gmra.mrb[22].mxu0 %vm176_vm3, %v3706_v22 }
0x2960   :  { %v1030_v46 = vrot.slane %v1022_v21, %v5239_v60 }
0x2a32   :  { %v3804_v13 = vpop.f32.mrb[22].mxu0 }
0x2a33   :  { %v3809_v45 = vadd.f32 %v3804_v13, %v3713_v53  ;;  %v3806_v50 = vpop.f32.mrb[23].mxu0  ;;  %v327_v53 = vrot.slane %v316_v3, %v4670_v37  ;;  %v363_v13 = vrot.slane %v349_v17, %v5239_v60  ;;  %v1023_v3 = vcombine.high %v1022_v21, %v1022_v21 }
0x2a34   :  { %v3810_v51 = vadd.f32 %v3806_v50, %v3717_v49  ;;  %v331_v49 = vrot.slane %v323_v28, %v4670_v37  ;;  %v367_v50 = vrot.slane %v356_v40, %v4670_v37 }
0x2a35   :  { %4496 = vtanh.f32 %v3809_v45  ;;  %v3990_v54 = vmul.f32 -1.442695, %v3809_v45  ;;  %v587_v45 = vrot.slane %v4722_v18, %v5239_v60  ;;  %v1037_v17 = vrot.slane %v1023_v3, %v5239_v60 }
0x2a36   :  { %4498 = vtanh.f32 %v3810_v51  ;;  %v3991_v33 = vmul.f32 -1.442695, %v3810_v51  ;;  %v563_v51 = vrot.slane %v549_v19, %v5239_v60 }
0x2a37   :  { %4500 = vpow2.f32 %v3990_v54  ;;  %v371_v54 = vrot.slane %v363_v13, %v4670_v37  ;;  %v595_v18 = vrot.slane %v587_v45, %v5239_v60 }
0x2a38   :  { %4502 = vpow2.f32 %v3991_v33  ;;  %v567_v33 = vrot.slane %v556_v14, %v4670_v37 }
0x2a39   :  { %v606_v32 = vrot.slane %v595_v18, %v4670_v37 }
0x2a3f   :  { %v4497_v16 = vpop.eup %4496 }
0x2a40   :  { %v4499_v52 = vpop.eup %4498  ;;  %3827 = vrot.lane.b32.xlu0 %v4497_v16, %s4513_s3  ;;  %v588_v16 = vcombine.high %v587_v45, %v587_v45  ;;  %v1298_v45 = vrot.slane %v4793_v25, %v5239_v60 }
0x2a41   :  { %3838 = vrot.lane.b32.xlu1 %v4499_v52, %s4513_s3  ;;  %v4501_v57 = vpop.eup %4500  ;;  %v785_v52 = vrot.slane %v4746_v63, %v5239_v60 }
0x2a42   :  { %v4503_v58 = vpop.eup %4502  ;;  %v3817_v61 = vadd.f32 1.0, %v4501_v57  ;;  %v602_v31 = vrot.slane %v588_v16, %v5239_v60  ;;  %v824_v57 = vrot.slane %v4748_v1, %v5239_v60  ;;  %v1496_v16 = vrot.slane %v4907_v42, %v5239_v60 }
0x2a43   :  { %v3818_v4 = vadd.f32 1.0, %v4503_v58  ;;  %v786_v10 = vcombine.high %v785_v52, %v785_v52  ;;  %v571_v58 = vrot.slane %v563_v51, %v4670_v37  ;;  %v793_v63 = vrot.slane %v785_v52, %v5239_v60 }
0x2a44   :  { %4504 = vrcp.f32 %v3817_v61  ;;  %v610_v55 = vrot.slane %v602_v31, %v4670_v37  ;;  %v832_v1 = vrot.slane %v824_v57, %v5239_v60  ;;  %v1299_v51 = vcombine.high %v1298_v45, %v1298_v45 }
0x2a45   :  { %4506 = vrcp.f32 %v3818_v4  ;;  %v800_v61 = vrot.slane %v786_v10, %v5239_v60  ;;  %v825_v4 = vcombine.high %v824_v57, %v824_v57  ;;  %v804_v24 = vrot.slane %v793_v63, %v4670_v37 }
0x2a46   :  { %v843_v28 = vrot.slane %v832_v1, %v4670_v37  ;;  %v1306_v25 = vrot.slane %v1298_v45, %v5239_v60  ;;  %v1313_v18 = vrot.slane %v1299_v51, %v5239_v60  ;;  %v1535_v31 = vrot.slane %v4910_v44, %v5239_v60 }
0x2a47   :  { %v1504_v42 = vrot.slane %v1496_v16, %v5239_v60  ;;  %v1772_v1 = vrot.slane %v4939_v43, %v5239_v60 }
0x2a48   :  { %v1317_v57 = vrot.slane %v1306_v25, %v4670_v37  ;;  %v1536_v63 = vcombine.high %v1535_v31, %v1535_v31  ;;  %v1543_v44 = vrot.slane %v1535_v31, %v5239_v60  ;;  %v2207_v25 = vrot.slane %v4990_v20, %v5239_v60 }
0x2a49   :  { %v1780_v43 = vrot.slane %v1772_v1, %v5239_v60  ;;  %v2246_v31 = vrot.slane %v4992_v5, %v5239_v60 }
0x2a4a   :  { %v1550_v21 = vrot.slane %v1536_v63, %v5239_v60 }
0x2a4b   :  { %v2247_v63 = vcombine.high %v2246_v31, %v2246_v31 }
0x2a4e   :  { %v5245_v41 = vpop.eup %4504 }
0x2a4f   :  { %v5247_v26 = vpop.eup %4506  ;;  %v3825_v45 = vmul.f32 %v5245_v41, %v5216_v0 }
0x2ab2   :  { %v3828_v59 = vpop.permute.xlu0 %3827 }
0x2ab3   :  { %v3830_v22 = vmul.f32 %v5245_v41, %v3828_v59  ;;  %v3839_v36 = vpop.permute.xlu1 %3838  ;;  %v839_v59 = vrot.slane %v825_v4, %v5239_v60  ;;  %v1515_v4 = vrot.slane %v1504_v42, %v4670_v37 }
0x2ab4   :  { %v3841_v47 = vmul.f32 %v5247_v26, %v3839_v36  ;;  %v808_v36 = vrot.slane %v800_v61, %v4670_v37  ;;  %v1321_v61 = vrot.slane %v1313_v18, %v4670_v37 }
0x2ab5   :  { %3832 = vrot.lane.b32.xlu0 %v3830_v22, %s4514_s10  ;;  %v1061_v22 = vrot.slane %v4774_v48, %v5239_v60  ;;  %v847_v40 = vrot.slane %v839_v59, %v4670_v37  ;;  %v1554_v59 = vrot.slane %v1543_v44, %v4670_v37 }
0x2ab6   :  { %3843 = vrot.lane.b32.xlu1 %v3841_v47, %s4514_s10  ;;  %v1259_v47 = vrot.slane %v4791_v23, %v5239_v60 }
0x2ab7   :  { %v1062_v38 = vcombine.high %v1061_v22, %v1061_v22  ;;  %v1069_v48 = vrot.slane %v1061_v22, %v5239_v60  ;;  %v1773_v22 = vcombine.high %v1772_v1, %v1772_v1 }
0x2ab8   :  { %v1260_v19 = vcombine.high %v1259_v47, %v1259_v47  ;;  %v1267_v23 = vrot.slane %v1259_v47, %v5239_v60 }
0x2ab9   :  { %332 = vrot.lane.b32.xlu0 %v327_v53, %s4514_s10  ;;  %v1041_v53 = vrot.slane %v1030_v46, %v4670_v37  ;;  %v1076_v13 = vrot.slane %v1062_v38, %v5239_v60  ;;  %v1080_v14 = vrot.slane %v1069_v48, %v4670_v37  ;;  %v1558_v46 = vrot.slane %v1550_v21, %v4670_v37 }
0x2aba   :  { %334 = vrot.lane.b32.xlu1 %v331_v49, %s4514_s10  ;;  %v1045_v49 = vrot.slane %v1037_v17, %v4670_v37  ;;  %v1787_v17 = vrot.slane %v1773_v22, %v5239_v60 }
0x2abb   :  { %v1084_v52 = vrot.slane %v1076_v13, %v4670_v37 }
0x2abd   :  { %372 = vrot.lane.b32.xlu0 %v367_v50, %s4513_s3  ;;  %v1274_v50 = vrot.slane %v1260_v19, %v5239_v60 }
0x2abe   :  { %374 = vrot.lane.b32.xlu1 %v371_v54, %s4513_s3  ;;  %v1278_v54 = vrot.slane %v1267_v23, %v4670_v37  ;;  %v3836_v23 = vmul.f32 %v5247_v26, %v5218_v9 }
0x2abf   :  { %v1282_v10 = vrot.slane %v1274_v50, %v4670_v37 }
0x2ac1   :  { %572 = vrot.lane.b32.xlu0 %v567_v33, %s4514_s10  ;;  %v1497_v33 = vcombine.high %v1496_v16, %v1496_v16  ;;  %v2009_v16 = vrot.slane %v4966_v2, %v5239_v60 }
0x2ac2   :  { %574 = vrot.lane.b32.xlu1 %v571_v58, %s4514_s10 }
0x2ac3   :  { %v1511_v58 = vrot.slane %v1497_v33, %v5239_v60  ;;  %v2010_v9 = vcombine.high %v2009_v16, %v2009_v16  ;;  %v2208_v33 = vcombine.high %v2207_v25, %v2207_v25  ;;  %v2017_v42 = vrot.slane %v2009_v16, %v5239_v60 }
0x2ac5   :  { %611 = vrot.lane.b32.xlu0 %v606_v32, %s4513_s3  ;;  %v1733_v32 = vrot.slane %v4937_v35, %v5239_v60  ;;  %v2024_v18 = vrot.slane %v2010_v9, %v5239_v60  ;;  %v2222_v5 = vrot.slane %v2208_v33, %v5239_v60 }
0x2ac6   :  { %613 = vrot.lane.b32.xlu1 %v610_v55, %s4513_s3 }
0x2ac7   :  { %v1734_v55 = vcombine.high %v1733_v32, %v1733_v32  ;;  %v1741_v35 = vrot.slane %v1733_v32, %v5239_v60  ;;  %v2444_v32 = vrot.slane %v5016_v29, %v5239_v60  ;;  %v2032_v44 = vrot.slane %v2024_v18, %v4670_v37 }
0x2ac8   :  { %v2261_v29 = vrot.slane %v2247_v63, %v5239_v60 }
0x2ac9   :  { %809 = vrot.lane.b32.xlu0 %v804_v24, %s4514_s10  ;;  %v1519_v24 = vrot.slane %v1511_v58, %v4670_v37  ;;  %v1748_v3 = vrot.slane %v1734_v55, %v5239_v60  ;;  %v2028_v55 = vrot.slane %v2017_v42, %v4670_v37  ;;  %v2445_v1 = vcombine.high %v2444_v32, %v2444_v32 }
0x2aca   :  { %811 = vrot.lane.b32.xlu1 %v808_v36, %s4514_s10  ;;  %v1970_v36 = vrot.slane %v4964_v34, %v5239_v60 }
0x2acb   :  { %v1756_v47 = vrot.slane %v1748_v3, %v4670_v37  ;;  %v2254_v3 = vrot.slane %v2246_v31, %v5239_v60 }
0x2acc   :  { %v1971_v38 = vcombine.high %v1970_v36, %v1970_v36  ;;  %v1978_v34 = vrot.slane %v1970_v36, %v5239_v60 }
0x2acd   :  { %848 = vrot.lane.b32.xlu0 %v843_v28, %s4513_s3  ;;  %v1752_v28 = vrot.slane %v1741_v35, %v4670_v37 }
0x2ace   :  { %850 = vrot.lane.b32.xlu1 %v847_v40, %s4513_s3  ;;  %v1791_v40 = vrot.slane %v1780_v43, %v4670_v37  ;;  %v1985_v48 = vrot.slane %v1971_v38, %v5239_v60  ;;  %v1989_v13 = vrot.slane %v1978_v34, %v4670_v37  ;;  %v2681_v43 = vrot.slane %v5035_v12, %v5239_v60 }
0x2acf   :  { %v2452_v38 = vrot.slane %v2444_v32, %v5239_v60  ;;  %v2265_v34 = vrot.slane %v2254_v3, %v4670_v37 }
0x2ad0   :  { %v1993_v19 = vrot.slane %v1985_v48, %v4670_v37  ;;  %v2720_v48 = vrot.slane %v5037_v27, %v5239_v60  ;;  %v2689_v16 = vrot.slane %v2681_v43, %v5239_v60 }
0x2ad1   :  { %1046 = vrot.lane.b32.xlu0 %v1041_v53, %s4514_s10  ;;  %v1795_v53 = vrot.slane %v1787_v17, %v4670_v37  ;;  %v2269_v17 = vrot.slane %v2261_v29, %v4670_v37 }
0x2ad2   :  { %1048 = vrot.lane.b32.xlu1 %v1045_v49, %s4514_s10  ;;  %v2728_v18 = vrot.slane %v2720_v48, %v5239_v60  ;;  %v2700_v31 = vrot.slane %v2689_v16, %v4670_v37 }
0x2ad4   :  { %v2739_v63 = vrot.slane %v2728_v18, %v4670_v37 }
0x2ad5   :  { %1085 = vrot.lane.b32.xlu0 %v1080_v14, %s4513_s3 }
0x2ad6   :  { %1087 = vrot.lane.b32.xlu1 %v1084_v52, %s4513_s3 }
0x2ad9   :  { %1283 = vrot.lane.b32.xlu0 %v1278_v54, %s4514_s10 }
0x2ada   :  { %1285 = vrot.lane.b32.xlu1 %v1282_v10, %s4514_s10 }
0x2add   :  { %1322 = vrot.lane.b32.xlu0 %v1317_v57, %s4513_s3 }
0x2ade   :  { %1324 = vrot.lane.b32.xlu1 %v1321_v61, %s4513_s3 }
0x2ae1   :  { %1520 = vrot.lane.b32.xlu0 %v1515_v4, %s4514_s10  ;;  %v2215_v4 = vrot.slane %v2207_v25, %v5239_v60  ;;  %v2957_v25 = vrot.slane %v5148_v56, %v5239_v60 }
0x2ae2   :  { %1522 = vrot.lane.b32.xlu1 %v1519_v24, %s4514_s10  ;;  %v2483_v24 = vrot.slane %v5018_v30, %v5239_v60  ;;  %v2459_v30 = vrot.slane %v2445_v1, %v5239_v60 }
0x2ae3   :  { %v2226_v36 = vrot.slane %v2215_v4, %v4670_v37 }
0x2ae5   :  { %1559 = vrot.lane.b32.xlu0 %v1554_v59, %s4513_s3  ;;  %v2230_v59 = vrot.slane %v2222_v5, %v4670_v37 }
0x2ae6   :  { %1561 = vrot.lane.b32.xlu1 %v1558_v46, %s4513_s3  ;;  %v2484_v46 = vcombine.high %v2483_v24, %v2483_v24 }
0x2ae8   :  { %v2498_v12 = vrot.slane %v2484_v46, %v5239_v60  ;;  %v3431_v46 = vrot.slane %v5202_v7, %v5239_v60 }
0x2ae9   :  { %1757 = vrot.lane.b32.xlu0 %v1752_v28, %s4514_s10 }
0x2aea   :  { %1759 = vrot.lane.b32.xlu1 %v1756_v47, %s4514_s10 }
0x2aed   :  { %1796 = vrot.lane.b32.xlu0 %v1791_v40, %s4513_s3  ;;  %v2682_v40 = vcombine.high %v2681_v43, %v2681_v43 }
0x2aee   :  { %1798 = vrot.lane.b32.xlu1 %v1795_v53, %s4513_s3 }
0x2aef   :  { %v2696_v27 = vrot.slane %v2682_v40, %v5239_v60 }
0x2af1   :  { %1994 = vrot.lane.b32.xlu0 %v1989_v13, %s4514_s10  ;;  %v2467_v13 = vrot.slane %v2459_v30, %v4670_v37 }
0x2af2   :  { %1996 = vrot.lane.b32.xlu1 %v1993_v19, %s4514_s10  ;;  %v2491_v19 = vrot.slane %v2483_v24, %v5239_v60  ;;  %v3392_v24 = vrot.slane %v5200_v11, %v5239_v60 }
0x2af4   :  { %v3393_v30 = vcombine.high %v3392_v24, %v3392_v24 }
0x2af6   :  { %v3407_v7 = vrot.slane %v3393_v30, %v5239_v60 }
0x2b27   :  { %v3833_v49 = vpop.permute.xlu0 %3832 }
0x2b28   :  { %v3835_v14 = vadd.f32 %v3833_v49, %v3825_v45  ;;  %v3844_v50 = vpop.permute.xlu1 %3843  ;;  %v2463_v49 = vrot.slane %v2452_v38, %v4670_v37 }
0x2b29   :  { %v3846_v51 = vadd.f32 %v3844_v50, %v3836_v23  ;;  %v2721_v23 = vcombine.high %v2720_v48, %v2720_v48 }
0x2b2a   :  { %4508 = vtanh.f32 %v3835_v14  ;;  %v2918_v14 = vrot.slane %v5145_v39, %v5239_v60 }
0x2b2b   :  { %4510 = vtanh.f32 %v3846_v51  ;;  %v333_v52 = vpop.permute.xlu0 %332  ;;  %v2506_v51 = vrot.slane %v2498_v12, %v4670_v37  ;;  %v2735_v39 = vrot.slane %v2721_v23, %v5239_v60  ;;  %v3629_v12 = vrot.slane %v5224_v15, %v5239_v60 }
0x2b2c   :  { %339 = vst.msk [vmem:[%s5771_s4] sm:$0x1] %vm338_vm4, %v333_v52  ;;  %v335_v0 = vpop.permute.xlu1 %334  ;;  %v2919_v9 = vcombine.high %v2918_v14, %v2918_v14  ;;  %v3415_v23 = vrot.slane %v3407_v7, %v4670_v37 }
0x2b2d   :  { %340 = vst.msk [vmem:[%s5771_s4 + $0x10] sm:$0x1] %vm338_vm4, %v335_v0  ;;  %v2502_v0 = vrot.slane %v2491_v19, %v4670_v37 }
0x2b2e   :  { %v2933_v56 = vrot.slane %v2919_v9, %v5239_v60 }
0x2b2f   :  { %v373_v54 = vpop.permute.xlu0 %372 }
0x2b30   :  { %379 = vst.msk [vmem:[%s5771_s4 + $0xf] sm:$0x1] %vm378_vm5, %v373_v54  ;;  %v375_v2 = vpop.permute.xlu1 %374  ;;  %v2941_v4 = vrot.slane %v2933_v56, %v4670_v37 }
0x2b31   :  { %380 = vst.msk [vmem:[%s5771_s4 + $0x1f] sm:$0x1] %vm378_vm5, %v375_v2  ;;  %v2704_v2 = vrot.slane %v2696_v27, %v4670_v37 }
0x2b33   :  { %v573_v10 = vpop.permute.xlu0 %572 }
0x2b34   :  { %v4509_v20 = vpop.eup %4508  ;;  %578 = vst.msk [vmem:[%s5771_s4 + $0x1] sm:$0x1] %vm338_vm4, %v573_v10  ;;  %v575_v57 = vpop.permute.xlu1 %574  ;;  %v2958_v10 = vcombine.high %v2957_v25, %v2957_v25 }
0x2b35   :  { %v4511_v58 = vpop.eup %4510  ;;  %579 = vst.msk [vmem:[%s5771_s4 + $0x11] sm:$0x1] %vm338_vm4, %v575_v57  ;;  %3849 = vrot.lane.b32.xlu1 %v4509_v20, %s4513_s3  ;;  %v3155_v20 = vrot.slane %v5174_v62, %v5239_v60  ;;  %v2743_v57 = vrot.slane %v2735_v39, %v4670_v37  ;;  %v3637_v39 = vrot.slane %v3629_v12, %v5239_v60 }
0x2b36   :  { %3855 = vrot.lane.b32.xlu0 %v4511_v58, %s4513_s3  ;;  %v2926_v58 = vrot.slane %v2918_v14, %v5239_v60  ;;  %v2972_v62 = vrot.slane %v2958_v10, %v5239_v60 }
0x2b37   :  { %v612_v61 = vpop.permute.xlu0 %611  ;;  %v3156_v32 = vcombine.high %v3155_v20, %v3155_v20 }
0x2b38   :  { %617 = vst.msk [vmem:[%s5771_s4 + $0xe] sm:$0x1] %vm378_vm5, %v612_v61  ;;  %v614_v21 = vpop.permute.xlu1 %613  ;;  %v3194_v61 = vrot.slane %v5176_v8, %v5239_v60 }
0x2b39   :  { %618 = vst.msk [vmem:[%s5771_s4 + $0x1e] sm:$0x1] %vm378_vm5, %v614_v21  ;;  %2035 = vrot.lane.b32.xlu1 %v2032_v44, %s4513_s3  ;;  %v2937_v21 = vrot.slane %v2926_v58, %v4670_v37  ;;  %v3170_v8 = vrot.slane %v3156_v32, %v5239_v60 }
0x2b3a   :  { %2033 = vrot.lane.b32.xlu0 %v2028_v55, %s4513_s3  ;;  %v2965_v55 = vrot.slane %v2957_v25, %v5239_v60  ;;  %v3195_v1 = vcombine.high %v3194_v61, %v3194_v61  ;;  %v3202_v38 = vrot.slane %v3194_v61, %v5239_v60 }
0x2b3b   :  { %v810_v35 = vpop.permute.xlu0 %809 }
0x2b3c   :  { %815 = vst.msk [vmem:[%s5771_s4 + $0x2] sm:$0x1] %vm338_vm4, %v810_v35  ;;  %v812_v22 = vpop.permute.xlu1 %811  ;;  %v2976_v3 = vrot.slane %v2965_v55, %v4670_v37  ;;  %v3209_v11 = vrot.slane %v3195_v1, %v5239_v60 }
0x2b3d   :  { %816 = vst.msk [vmem:[%s5771_s4 + $0x12] sm:$0x1] %vm338_vm4, %v812_v22  ;;  %2233 = vrot.lane.b32.xlu1 %v2230_v59, %s4514_s10  ;;  %v2980_v59 = vrot.slane %v2972_v62, %v4670_v37  ;;  %v3163_v22 = vrot.slane %v3155_v20, %v5239_v60 }
0x2b3e   :  { %2231 = vrot.lane.b32.xlu0 %v2226_v36, %s4514_s10  ;;  %v3217_v48 = vrot.slane %v3209_v11, %v4670_v37 }
0x2b3f   :  { %v849_v28 = vpop.permute.xlu0 %848 }
0x2b40   :  { %854 = vst.msk [vmem:[%s5771_s4 + $0xd] sm:$0x1] %vm378_vm5, %v849_v28  ;;  %v851_v47 = vpop.permute.xlu1 %850  ;;  %v3178_v28 = vrot.slane %v3170_v8, %v4670_v37 }
0x2b41   :  { %855 = vst.msk [vmem:[%s5771_s4 + $0x1d] sm:$0x1] %vm378_vm5, %v851_v47  ;;  %2272 = vrot.lane.b32.xlu1 %v2269_v17, %s4513_s3  ;;  %v3174_v17 = vrot.slane %v3163_v22, %v4670_v37 }
0x2b42   :  { %2270 = vrot.lane.b32.xlu0 %v2265_v34, %s4513_s3  ;;  %v3432_v34 = vcombine.high %v3431_v46, %v3431_v46 }
0x2b43   :  { %v1047_v53 = vpop.permute.xlu0 %1046 }
0x2b44   :  { %1052 = vst.msk [vmem:[%s5771_s4 + $0x3] sm:$0x1] %vm338_vm4, %v1047_v53  ;;  %v1049_v45 = vpop.permute.xlu1 %1048  ;;  %v3213_v53 = vrot.slane %v3202_v38, %v4670_v37  ;;  %v3446_v15 = vrot.slane %v3432_v34, %v5239_v60 }
0x2b45   :  { %1053 = vst.msk [vmem:[%s5771_s4 + $0x13] sm:$0x1] %vm338_vm4, %v1049_v45  ;;  %2470 = vrot.lane.b32.xlu1 %v2467_v13, %s4514_s10  ;;  %v3400_v13 = vrot.slane %v3392_v24, %v5239_v60  ;;  %v3630_v45 = vcombine.high %v3629_v12, %v3629_v12 }
0x2b46   :  { %2468 = vrot.lane.b32.xlu0 %v2463_v49, %s4514_s10  ;;  %v3668_v49 = vrot.slane %v5226_v6, %v5239_v60 }
0x2b47   :  { %v1086_v50 = vpop.permute.xlu0 %1085  ;;  %v3411_v14 = vrot.slane %v3400_v13, %v4670_v37  ;;  %v3644_v6 = vrot.slane %v3630_v45, %v5239_v60 }
0x2b48   :  { %1091 = vst.msk [vmem:[%s5771_s4 + $0xc] sm:$0x1] %vm378_vm5, %v1086_v50  ;;  %v1088_v52 = vpop.permute.xlu1 %1087  ;;  %v3439_v50 = vrot.slane %v3431_v46, %v5239_v60  ;;  %v3669_v16 = vcombine.high %v3668_v49, %v3668_v49 }
0x2b49   :  { %1092 = vst.msk [vmem:[%s5771_s4 + $0x1c] sm:$0x1] %vm378_vm5, %v1088_v52  ;;  %2509 = vrot.lane.b32.xlu1 %v2506_v51, %s4513_s3  ;;  %v3454_v52 = vrot.slane %v3446_v15, %v4670_v37  ;;  %v3652_v25 = vrot.slane %v3644_v6, %v4670_v37 }
0x2b4a   :  { %2507 = vrot.lane.b32.xlu0 %v2502_v0, %s4513_s3  ;;  %v3450_v0 = vrot.slane %v3439_v50, %v4670_v37  ;;  %v3683_v9 = vrot.slane %v3669_v16, %v5239_v60 }
0x2b4b   :  { %v1284_v54 = vpop.permute.xlu0 %1283 }
0x2b4c   :  { %1289 = vst.msk [vmem:[%s5771_s4 + $0x4] sm:$0x1] %vm338_vm4, %v1284_v54  ;;  %v1286_v33 = vpop.permute.xlu1 %1285  ;;  %v3648_v54 = vrot.slane %v3637_v39, %v4670_v37  ;;  %v3691_v18 = vrot.slane %v3683_v9, %v4670_v37 }
0x2b4d   :  { %1290 = vst.msk [vmem:[%s5771_s4 + $0x14] sm:$0x1] %vm338_vm4, %v1286_v33  ;;  %2707 = vrot.lane.b32.xlu1 %v2704_v2, %s4514_s10  ;;  %v3676_v2 = vrot.slane %v3668_v49, %v5239_v60 }
0x2b4e   :  { %2705 = vrot.lane.b32.xlu0 %v2700_v31, %s4514_s10 }
0x2b4f   :  { %v1323_v42 = vpop.permute.xlu0 %1322  ;;  %v3687_v33 = vrot.slane %v3676_v2, %v4670_v37 }
0x2b50   :  { %1328 = vst.msk [vmem:[%s5771_s4 + $0xb] sm:$0x1] %vm378_vm5, %v1323_v42  ;;  %v1325_v5 = vpop.permute.xlu1 %1324 }
0x2b51   :  { %1329 = vst.msk [vmem:[%s5771_s4 + $0x1b] sm:$0x1] %vm378_vm5, %v1325_v5  ;;  %2746 = vrot.lane.b32.xlu1 %v2743_v57, %s4513_s3 }
0x2b52   :  { %2744 = vrot.lane.b32.xlu0 %v2739_v63, %s4513_s3 }
0x2b53   :  { %v1521_v44 = vpop.permute.xlu0 %1520 }
0x2b54   :  { %1526 = vst.msk [vmem:[%s5771_s4 + $0x5] sm:$0x1] %vm338_vm4, %v1521_v44  ;;  %v1523_v29 = vpop.permute.xlu1 %1522 }
0x2b55   :  { %1527 = vst.msk [vmem:[%s5771_s4 + $0x15] sm:$0x1] %vm338_vm4, %v1523_v29  ;;  %2944 = vrot.lane.b32.xlu1 %v2941_v4, %s4514_s10 }
0x2b56   :  { %2942 = vrot.lane.b32.xlu0 %v2937_v21, %s4514_s10 }
0x2b57   :  { %v1560_v35 = vpop.permute.xlu0 %1559 }
0x2b58   :  { %1565 = vst.msk [vmem:[%s5771_s4 + $0xa] sm:$0x1] %vm378_vm5, %v1560_v35  ;;  %v1562_v36 = vpop.permute.xlu1 %1561 }
0x2b59   :  { %1566 = vst.msk [vmem:[%s5771_s4 + $0x1a] sm:$0x1] %vm378_vm5, %v1562_v36  ;;  %2983 = vrot.lane.b32.xlu1 %v2980_v59, %s4513_s3 }
0x2b5a   :  { %2981 = vrot.lane.b32.xlu0 %v2976_v3, %s4513_s3 }
0x2b5b   :  { %v1758_v43 = vpop.permute.xlu0 %1757 }
0x2b5c   :  { %1763 = vst.msk [vmem:[%s5771_s4 + $0x6] sm:$0x1] %vm338_vm4, %v1758_v43  ;;  %v1760_v47 = vpop.permute.xlu1 %1759 }
0x2b5d   :  { %1764 = vst.msk [vmem:[%s5771_s4 + $0x16] sm:$0x1] %vm338_vm4, %v1760_v47  ;;  %3181 = vrot.lane.b32.xlu1 %v3178_v28, %s4514_s10 }
0x2b5e   :  { %3179 = vrot.lane.b32.xlu0 %v3174_v17, %s4514_s10 }
0x2b5f   :  { %v1797_v40 = vpop.permute.xlu0 %1796 }
0x2b60   :  { %1802 = vst.msk [vmem:[%s5771_s4 + $0x9] sm:$0x1] %vm378_vm5, %v1797_v40  ;;  %v1799_v19 = vpop.permute.xlu1 %1798 }
0x2b61   :  { %1803 = vst.msk [vmem:[%s5771_s4 + $0x19] sm:$0x1] %vm378_vm5, %v1799_v19  ;;  %3220 = vrot.lane.b32.xlu1 %v3217_v48, %s4513_s3 }
0x2b62   :  { %3218 = vrot.lane.b32.xlu0 %v3213_v53, %s4513_s3 }
0x2b63   :  { %v1995_v27 = vpop.permute.xlu0 %1994 }
0x2b64   :  { %2000 = vst.msk [vmem:[%s5771_s4 + $0x7] sm:$0x1] %vm338_vm4, %v1995_v27  ;;  %v1997_v51 = vpop.permute.xlu1 %1996 }
0x2b65   :  { %2001 = vst.msk [vmem:[%s5771_s4 + $0x17] sm:$0x1] %vm338_vm4, %v1997_v51  ;;  %3418 = vrot.lane.b32.xlu1 %v3415_v23, %s4514_s10 }
0x2b66   :  { %3416 = vrot.lane.b32.xlu0 %v3411_v14, %s4514_s10 }
0x2b69   :  { %3457 = vrot.lane.b32.xlu1 %v3454_v52, %s4513_s3 }
0x2b6a   :  { %3455 = vrot.lane.b32.xlu0 %v3450_v0, %s4513_s3 }
0x2b6d   :  { %3655 = vrot.lane.b32.xlu1 %v3652_v25, %s4514_s10 }
0x2b6e   :  { %3653 = vrot.lane.b32.xlu0 %v3648_v54, %s4514_s10 }
0x2b71   :  { %3694 = vrot.lane.b32.xlu1 %v3691_v18, %s4513_s3 }
0x2b72   :  { %3692 = vrot.lane.b32.xlu0 %v3687_v33, %s4513_s3 }
0x2ba7   :  { %v3850_v31 = vpop.permute.xlu1 %3849 }
0x2ba8   :  { %v3852_v56 = vmul.f32 %v5245_v41, %v3850_v31  ;;  %v3856_v10 = vpop.permute.xlu0 %3855 }
0x2ba9   :  { %v3858_v20 = vmul.f32 %v5247_v26, %v3856_v10 }
0x2baa   :  { %v3866_v42 = vrot.slane %v3852_v56, %v5239_v60 }
0x2bab   :  { %v3905_v57 = vrot.slane %v3858_v20, %v5239_v60  ;;  %v2036_v58 = vpop.permute.xlu1 %2035 }
0x2bac   :  { %v3867_v5 = vcombine.high %v3866_v42, %v3866_v42  ;;  %v3874_v63 = vrot.slane %v3866_v42, %v5239_v60  ;;  %2040 = vst.msk [vmem:[%s5771_s4 + $0x18] sm:$0x1] %vm378_vm5, %v2036_v58  ;;  %v2034_v62 = vpop.permute.xlu0 %2033 }
0x2bad   :  { %v3906_v32 = vcombine.high %v3905_v57, %v3905_v57  ;;  %2039 = vst.msk [vmem:[%s5771_s4 + $0x8] sm:$0x1] %vm378_vm5, %v2034_v62  ;;  %v3913_v61 = vrot.slane %v3905_v57, %v5239_v60 }
0x2bae   :  { %v3881_v41 = vrot.slane %v3867_v5, %v5239_v60  ;;  %v3885_v26 = vrot.slane %v3874_v63, %v4670_v37 }
0x2baf   :  { %v2234_v44 = vpop.permute.xlu1 %2233  ;;  %v3920_v4 = vrot.slane %v3906_v32, %v5239_v60  ;;  %v3924_v29 = vrot.slane %v3913_v61, %v4670_v37 }
0x2bb0   :  { %2238 = vst.msk [vmem:[%s5771_s4 + $0x18] sm:$0x1] %vm338_vm4, %v2234_v44  ;;  %v2232_v21 = vpop.permute.xlu0 %2231  ;;  %3890 = vrot.lane.b32.xlu0 %v3885_v26, %s4514_s10  ;;  %v3889_v55 = vrot.slane %v3881_v41, %v4670_v37 }
0x2bb1   :  { %2237 = vst.msk [vmem:[%s5771_s4 + $0x8] sm:$0x1] %vm338_vm4, %v2232_v21  ;;  %v3928_v1 = vrot.slane %v3920_v4, %v4670_v37 }
0x2bb2   :  { %3892 = vrot.lane.b32.xlu1 %v3889_v55, %s4514_s10 }
0x2bb3   :  { %v2273_v60 = vpop.permute.xlu1 %2272 }
0x2bb4   :  { %2277 = vst.msk [vmem:[%s5771_s4 + $0x17] sm:$0x1] %vm378_vm5, %v2273_v60  ;;  %v2271_v8 = vpop.permute.xlu0 %2270  ;;  %3929 = vrot.lane.b32.xlu0 %v3924_v29, %s4513_s3 }
0x2bb5   :  { %2276 = vst.msk [vmem:[%s5771_s4 + $0x7] sm:$0x1] %vm378_vm5, %v2271_v8 }
0x2bb6   :  { %3931 = vrot.lane.b32.xlu1 %v3928_v1, %s4513_s3 }
0x2bb7   :  { %v2471_v24 = vpop.permute.xlu1 %2470 }
0x2bb8   :  { %2475 = vst.msk [vmem:[%s5771_s4 + $0x19] sm:$0x1] %vm338_vm4, %v2471_v24  ;;  %v2469_v35 = vpop.permute.xlu0 %2468 }
0x2bb9   :  { %2474 = vst.msk [vmem:[%s5771_s4 + $0x9] sm:$0x1] %vm338_vm4, %v2469_v35 }
0x2bbb   :  { %v2510_v37 = vpop.permute.xlu1 %2509 }
0x2bbc   :  { %2514 = vst.msk [vmem:[%s5771_s4 + $0x16] sm:$0x1] %vm378_vm5, %v2510_v37  ;;  %v2508_v59 = vpop.permute.xlu0 %2507 }
0x2bbd   :  { %2513 = vst.msk [vmem:[%s5771_s4 + $0x6] sm:$0x1] %vm378_vm5, %v2508_v59 }
0x2bbf   :  { %v2708_v3 = vpop.permute.xlu1 %2707 }
0x2bc0   :  { %2712 = vst.msk [vmem:[%s5771_s4 + $0x1a] sm:$0x1] %vm338_vm4, %v2708_v3  ;;  %v2706_v22 = vpop.permute.xlu0 %2705 }
0x2bc1   :  { %2711 = vst.msk [vmem:[%s5771_s4 + $0xa] sm:$0x1] %vm338_vm4, %v2706_v22 }
0x2bc3   :  { %v2747_v36 = vpop.permute.xlu1 %2746 }
0x2bc4   :  { %2751 = vst.msk [vmem:[%s5771_s4 + $0x15] sm:$0x1] %vm378_vm5, %v2747_v36  ;;  %v2745_v11 = vpop.permute.xlu0 %2744 }
0x2bc5   :  { %2750 = vst.msk [vmem:[%s5771_s4 + $0x5] sm:$0x1] %vm378_vm5, %v2745_v11 }
0x2bc7   :  { %v2945_v30 = vpop.permute.xlu1 %2944 }
0x2bc8   :  { %2949 = vst.msk [vmem:[%s5771_s4 + $0x1b] sm:$0x1] %vm338_vm4, %v2945_v30  ;;  %v2943_v46 = vpop.permute.xlu0 %2942 }
0x2bc9   :  { %2948 = vst.msk [vmem:[%s5771_s4 + $0xb] sm:$0x1] %vm338_vm4, %v2943_v46 }
0x2bcb   :  { %v2984_v43 = vpop.permute.xlu1 %2983 }
0x2bcc   :  { %2988 = vst.msk [vmem:[%s5771_s4 + $0x14] sm:$0x1] %vm378_vm5, %v2984_v43  ;;  %v2982_v28 = vpop.permute.xlu0 %2981 }
0x2bcd   :  { %2987 = vst.msk [vmem:[%s5771_s4 + $0x4] sm:$0x1] %vm378_vm5, %v2982_v28 }
0x2bcf   :  { %v3182_v17 = vpop.permute.xlu1 %3181 }
0x2bd0   :  { %3186 = vst.msk [vmem:[%s5771_s4 + $0x1c] sm:$0x1] %vm338_vm4, %v3182_v17  ;;  %v3180_v38 = vpop.permute.xlu0 %3179 }
0x2bd1   :  { %3185 = vst.msk [vmem:[%s5771_s4 + $0xc] sm:$0x1] %vm338_vm4, %v3180_v38 }
0x2bd3   :  { %v3221_v47 = vpop.permute.xlu1 %3220 }
0x2bd4   :  { %3225 = vst.msk [vmem:[%s5771_s4 + $0x13] sm:$0x1] %vm378_vm5, %v3221_v47  ;;  %v3219_v7 = vpop.permute.xlu0 %3218 }
0x2bd5   :  { %3224 = vst.msk [vmem:[%s5771_s4 + $0x3] sm:$0x1] %vm378_vm5, %v3219_v7 }
0x2bd7   :  { %v3419_v34 = vpop.permute.xlu1 %3418 }
0x2bd8   :  { %3423 = vst.msk [vmem:[%s5771_s4 + $0x1d] sm:$0x1] %vm338_vm4, %v3419_v34  ;;  %v3417_v12 = vpop.permute.xlu0 %3416 }
0x2bd9   :  { %3422 = vst.msk [vmem:[%s5771_s4 + $0xd] sm:$0x1] %vm338_vm4, %v3417_v12 }
0x2bdb   :  { %v3458_v40 = vpop.permute.xlu1 %3457 }
0x2bdc   :  { %3462 = vst.msk [vmem:[%s5771_s4 + $0x12] sm:$0x1] %vm378_vm5, %v3458_v40  ;;  %v3456_v48 = vpop.permute.xlu0 %3455 }
0x2bdd   :  { %3461 = vst.msk [vmem:[%s5771_s4 + $0x2] sm:$0x1] %vm378_vm5, %v3456_v48 }
0x2bdf   :  { %v3656_v53 = vpop.permute.xlu1 %3655 }
0x2be0   :  { %3660 = vst.msk [vmem:[%s5771_s4 + $0x1e] sm:$0x1] %vm338_vm4, %v3656_v53  ;;  %v3654_v13 = vpop.permute.xlu0 %3653 }
0x2be1   :  { %3659 = vst.msk [vmem:[%s5771_s4 + $0xe] sm:$0x1] %vm338_vm4, %v3654_v13 }
0x2be3   :  { %v3695_v19 = vpop.permute.xlu1 %3694 }
0x2be4   :  { %3699 = vst.msk [vmem:[%s5771_s4 + $0x11] sm:$0x1] %vm378_vm5, %v3695_v19  ;;  %v3693_v15 = vpop.permute.xlu0 %3692 }
0x2be5   :  { %3698 = vst.msk [vmem:[%s5771_s4 + $0x1] sm:$0x1] %vm378_vm5, %v3693_v15 }
0x2c22   :  { %v3891_v45 = vpop.permute.xlu0 %3890 }
0x2c23   :  { %3896 = vst.msk [vmem:[%s5771_s4 + $0xf] sm:$0x1] %vm338_vm4, %v3891_v45 }
0x2c24   :  { %v3893_v49 = vpop.permute.xlu1 %3892 }
0x2c25   :  { %3897 = vst.msk [vmem:[%s5771_s4 + $0x1f] sm:$0x1] %vm338_vm4, %v3893_v49 }
0x2c26   :  { %v3930_v27 = vpop.permute.xlu0 %3929 }
0x2c27   :  { %3935 = vst.msk [vmem:[%s5771_s4] sm:$0x1] %vm378_vm5, %v3930_v27 }
0x2c28   :  { %v3932_v23 = vpop.permute.xlu1 %3931 }
0x2c29   :  { %3936 = vst.msk [vmem:[%s5771_s4 + $0x10] sm:$0x1] %vm378_vm5, %v3932_v23 }

</bundles_post_ra>
